<compile_context>
chip_gen: v7x
topology: tpu7x:2x2x1
jax: 0.10.0
libtpu: 0.0.40
codegen_flags: <defaults>
</compile_context>

<pallas_src>
import numpy as np
import jax
import jax.numpy as jnp
from jax.experimental import pallas as pl
from jax.experimental.pallas import tpu as pltpu

_PI_OFF = 128   # lane offset of the policy logits inside the fused head GEMM


# ------------------------------ fused kernel --------------------------------

def _fused_kernel(a0_ref,
                  r0_ref, m0_ref, b0_ref,
                  r1_ref, m1_ref, b1_ref,
                  r2_ref, m2_ref, b2_ref,
                  s3_ref, k3_ref, b3_ref,
                  h_ref, c_ref,
                  wzh_ref, bzh_ref,
                  whead_ref, bhead_ref,
                  v_ref, pi_ref, hout_ref, cout_ref,
                  zh_ref):
    def elu(x):
        # ELU(alpha=1); clamp so exp never overflows on the discarded branch.
        return jnp.where(x > 0.0, x, jnp.exp(jnp.minimum(x, 0.0)) - 1.0)

    # ---- conv layers 0..2: activation layout (B*H, W*Cin) -> (B*Ho, Wo*Cout)
    a = a0_ref[...]
    for r_ref, m_ref, brow_ref in ((r0_ref, m0_ref, b0_ref),
                                   (r1_ref, m1_ref, b1_ref),
                                   (r2_ref, m2_ref, b2_ref)):
        acc = None
        for kh in range(3):                      # three kernel-row taps
            y = jnp.dot(r_ref[kh], a, preferred_element_type=jnp.float32)
            t = jnp.dot(y, m_ref[kh], preferred_element_type=jnp.float32)
            acc = t if acc is None else acc + t
        a = elu(acc + brow_ref[...])

    # ---- conv layer 3: produce phi (B, 288) directly in PyTorch flatten order
    acc = None
    for ih in range(s3_ref.shape[0]):            # 5 input rows
        y = jnp.dot(s3_ref[ih], a, preferred_element_type=jnp.float32)
        t = jnp.dot(y, k3_ref[ih], preferred_element_type=jnp.float32)
        acc = t if acc is None else acc + t
    phi = elu(acc + b3_ref[...])                 # (B, 288)

    # ---- fused LSTMCell: single GEMM on [h | phi] --------------------------
    hd = h_ref.shape[1]
    feat = phi.shape[1]
    zh_ref[:, 0:hd] = h_ref[...]                 # aligned at lane 0
    zh_ref[:, hd:hd + feat] = phi                # aligned at lane 256
    gates = (jnp.dot(zh_ref[...], wzh_ref[...],
                     preferred_element_type=jnp.float32) + bzh_ref[...])
    # PyTorch LSTMCell gate order: i, f, g, o
    i_g = jax.nn.sigmoid(gates[:, 0:hd])
    f_g = jax.nn.sigmoid(gates[:, hd:2 * hd])
    g_g = jnp.tanh(gates[:, 2 * hd:3 * hd])
    o_g = jax.nn.sigmoid(gates[:, 3 * hd:4 * hd])
    c_new = f_g * c_ref[...] + i_g * g_g
    h_new = o_g * jnp.tanh(c_new)
    cout_ref[...] = c_new
    hout_ref[...] = h_new

    # ---- fused value + policy heads (one GEMM, 128-aligned output slices) --
    head = (jnp.dot(h_new, whead_ref[...],
                    preferred_element_type=jnp.float32) + bhead_ref[...])
    v_ref[...] = head[:, 0:1]                    # value at lane 0
    pi_ref[...] = head[:, _PI_OFF:]              # policy logits at lane 128


# ------------------------------ public forward ------------------------------

def light_ac_net_forward(kp, ix, hx, cx):
    """kp = prepare_params(...) output; ix is NCHW; returns (v, pi, (h', c'))."""
    B, C, H, W = ix.shape
    # Public boundary only: NCHW -> (B*H, W*C)  (rows: (b,h), cols: (w,c)).
    a0 = jnp.transpose(ix, (0, 2, 3, 1)).reshape(B * H, W * C)
    hd = hx.shape[1]
    feat = kp["w_zh"].shape[0] - hd
    action_dim = kp["w_heads"].shape[1] - _PI_OFF

    vspec = pl.BlockSpec(memory_space=pltpu.MemorySpace.VMEM)
    out_shape = (
        jax.ShapeDtypeStruct((B, 1), jnp.float32),           # v
        jax.ShapeDtypeStruct((B, action_dim), jnp.float32),  # pi logits
        jax.ShapeDtypeStruct((B, hd), jnp.float32),          # h'
        jax.ShapeDtypeStruct((B, hd), jnp.float32),          # c'
    )
    v, pi, h_new, c_new = pl.pallas_call(
        _fused_kernel,
        out_shape=out_shape,
        in_specs=[vspec] * 19,
        out_specs=(vspec, vspec, vspec, vspec),
        scratch_shapes=[pltpu.VMEM((B, hd + feat), jnp.float32)],
        # recurrent state aliases: hx -> h', cx -> c'
        input_output_aliases={13: 2, 14: 3},
        compiler_params=pltpu.CompilerParams(
            vmem_limit_bytes=32 * 1024 * 1024),
    )(a0,
      kp["R0"], kp["M0"], kp["b0"],
      kp["R1"], kp["M1"], kp["b1"],
      kp["R2"], kp["M2"], kp["b2"],
      kp["S3"], kp["K3"], kp["b3"],
      hx, cx,
      kp["w_zh"], kp["b_zh"],
      kp["w_heads"], kp["b_heads"])
    return v, pi, (h_new, c_new)


# ----------------------- one-time parameter preparation ----------------------

def prepare_params(params, batch, in_channels, height, width):
    """Convert native PyTorch-layout weights into fused-kernel operands.

    Conv layers 0..2:  out[(b,oh),(ow,co)] = ELU( sum_kh (R_kh @ A) @ M_kh + b )
    Conv layer 3:      phi[b,(co,oh,ow)]   = ELU( sum_ih (S_ih @ A) @ K_ih + b )
    LSTM:              gates = [h | phi] @ [W_hh^T ; W_ih^T] + (b_ih + b_hh)
    Heads:             [v | pi] = h' @ W_heads + b_heads  (pi packed at lane 128)
    Pure host-side numpy; run once outside the step function.
    """
    B = batch
    H, W, Cin = height, width, in_channels
    kp = {}

    # layers 0..2
    for li in range(3):
        w = np.asarray(params[f"conv{li}_w"], np.float32)    # (Cout, Cin, 3, 3)
        b = np.asarray(params[f"conv{li}_b"], np.float32)    # (Cout,)
        Cout = w.shape[0]
        Ho, Wo = (H - 1) // 2 + 1, (W - 1) // 2 + 1
        R = np.zeros((3, B * Ho, B * H), np.float32)
        M = np.zeros((3, W * Cin, Wo * Cout), np.float32)
        for kh in range(3):
            for bb in range(B):
                for oh in range(Ho):
                    ih = 2 * oh + kh - 1
                    if 0 <= ih < H:
                        R[kh, bb * Ho + oh, bb * H + ih] = 1.0
            for ow in range(Wo):
                for kw in range(3):
                    iw = 2 * ow + kw - 1
                    if 0 <= iw < W:
                        M[kh, iw * Cin:(iw + 1) * Cin,
                          ow * Cout:(ow + 1) * Cout] = w[:, :, kh, kw].T
        kp[f"R{li}"] = jnp.asarray(R)
        kp[f"M{li}"] = jnp.asarray(M)
        kp[f"b{li}"] = jnp.asarray(np.tile(b, Wo)[None, :])
        H, W, Cin = Ho, Wo, Cout

    # layer 3 (emits the PyTorch-flatten-order feature vector directly)
    w = np.asarray(params["conv3_w"], np.float32)
    b = np.asarray(params["conv3_b"], np.float32)
    Cout = w.shape[0]
    Ho, Wo = (H - 1) // 2 + 1, (W - 1) // 2 + 1
    S = np.zeros((H, B, B * H), np.float32)
    K = np.zeros((H, W * Cin, Cout * Ho * Wo), np.float32)
    for ih in range(H):
        for bb in range(B):
            S[ih, bb, bb * H + ih] = 1.0
        for oh in range(Ho):
            kh = ih - 2 * oh + 1
            if not 0 <= kh < 3:
                continue
            for ow in range(Wo):
                for kw in range(3):
                    iw = 2 * ow + kw - 1
                    if 0 <= iw < W:
                        # output feature index = co*Ho*Wo + oh*Wo + ow
                        K[ih, iw * Cin:(iw + 1) * Cin,
                          oh * Wo + ow::Ho * Wo] = w[:, :, kh, kw].T
    kp["S3"] = jnp.asarray(S)
    kp["K3"] = jnp.asarray(K)
    kp["b3"] = jnp.asarray(np.repeat(b, Ho * Wo)[None, :])

    feat = Cout * Ho * Wo
    w_ih = np.asarray(params["lstm_w_ih"], np.float32)       # (4H, feat)
    w_hh = np.asarray(params["lstm_w_hh"], np.float32)       # (4H, hidden)
    assert w_ih.shape[1] == feat, (
        f"LightACNet expects 36x36 input -> 32*3*3 = {w_ih.shape[1]} features, "
        f"got {feat}")
    hidden = w_hh.shape[1]
    kp["w_zh"] = jnp.asarray(np.concatenate([w_hh.T, w_ih.T], axis=0))
    kp["b_zh"] = jnp.asarray(
        (np.asarray(params["lstm_b_ih"], np.float32)
         + np.asarray(params["lstm_b_hh"], np.float32))[None, :])

    # fused heads: value at lane 0, policy logits starting at lane 128
    w_v = np.asarray(params["fc_v_w"], np.float32)            # (1, hidden)
    b_v = np.asarray(params["fc_v_b"], np.float32)            # (1,)
    w_pi = np.asarray(params["fc_pi_w"], np.float32)          # (A, hidden)
    b_pi = np.asarray(params["fc_pi_b"], np.float32)          # (A,)
    action_dim = w_pi.shape[0]
    w_heads = np.zeros((hidden, _PI_OFF + action_dim), np.float32)
    b_heads = np.zeros((1, _PI_OFF + action_dim), np.float32)
    w_heads[:, 0] = w_v[0]
    w_heads[:, _PI_OFF:] = w_pi.T
    b_heads[0, 0] = b_v[0]
    b_heads[0, _PI_OFF:] = b_pi
    kp["w_heads"] = jnp.asarray(w_heads)
    kp["b_heads"] = jnp.asarray(b_heads)
    return kp


# --------------------------- parameter construction --------------------------

def init_params(key, in_channels, action_dim, hidden=256, feat=32 * 3 * 3):
    """Random parameters in native PyTorch layouts (as LightACNet stores them)."""
    ks = jax.random.split(key, 12)
    p = {}
    c_in = in_channels
    for li in range(4):
        p[f"conv{li}_w"] = 0.08 * jax.random.normal(
            ks[li], (32, c_in, 3, 3), jnp.float32)
        p[f"conv{li}_b"] = 0.02 * jax.random.normal(ks[li + 4], (32,), jnp.float32)
        c_in = 32
    p["lstm_w_ih"] = 0.05 * jax.random.normal(ks[8], (4 * hidden, feat), jnp.float32)
    p["lstm_w_hh"] = 0.05 * jax.random.normal(ks[9], (4 * hidden, hidden), jnp.float32)
    p["lstm_b_ih"] = jnp.zeros((4 * hidden,), jnp.float32)
    p["lstm_b_hh"] = jnp.zeros((4 * hidden,), jnp.float32)
    p["fc_v_w"] = 0.05 * jax.random.normal(ks[10], (1, hidden), jnp.float32)
    p["fc_v_b"] = jnp.zeros((1,), jnp.float32)
    p["fc_pi_w"] = 0.01 * jax.random.normal(ks[11], (action_dim, hidden), jnp.float32)
    p["fc_pi_b"] = jnp.zeros((action_dim,), jnp.float32)
    return p


# ----------------------- pure-JAX reference (for checking) -------------------

def reference_forward(params, ix, hx, cx):
    hp = jax.lax.Precision.HIGHEST
    x = ix
    for li in range(4):
        x = jax.lax.conv_general_dilated(
            x, params[f"conv{li}_w"], window_strides=(2, 2),
            padding=((1, 1), (1, 1)),
            dimension_numbers=("NCHW", "OIHW", "NCHW"), precision=hp)
        x = x + params[f"conv{li}_b"][None, :, None, None]
        x = jnp.where(x > 0.0, x, jnp.exp(jnp.minimum(x, 0.0)) - 1.0)
    phi = x.reshape(x.shape[0], -1)
    gates = (jnp.dot(phi, params["lstm_w_ih"].T, precision=hp)
             + jnp.dot(hx, params["lstm_w_hh"].T, precision=hp)
             + params["lstm_b_ih"] + params["lstm_b_hh"])
    hd = hx.shape[1]
    i = jax.nn.sigmoid(gates[:, 0:hd])
    f = jax.nn.sigmoid(gates[:, hd:2 * hd])
    g = jnp.tanh(gates[:, 2 * hd:3 * hd])
    o = jax.nn.sigmoid(gates[:, 3 * hd:4 * hd])
    c_new = f * cx + i * g
    h_new = o * jnp.tanh(c_new)
    v = jnp.dot(h_new, params["fc_v_w"].T, precision=hp) + params["fc_v_b"]
    pi = jnp.dot(h_new, params["fc_pi_w"].T, precision=hp) + params["fc_pi_b"]
    return v, pi, (h_new, c_new)


# ------------------------------------ main -----------------------------------

if __name__ == "__main__":
    B, IN_CH, HW, ACTION_DIM = 2, 4, 36, 6   # 36 -> 18 -> 9 -> 5 -> 3 spatial
    key = jax.random.PRNGKey(0)
    k_ix, k_h, k_c, k_p = jax.random.split(key, 4)

    ix = jax.random.normal(k_ix, (B, IN_CH, HW, HW), jnp.float32)
    hx = jax.random.normal(k_h, (B, 256), jnp.float32)
    cx = jax.random.normal(k_c, (B, 256), jnp.float32)

    params = init_params(k_p, IN_CH, ACTION_DIM)
    kparams = prepare_params(params, B, IN_CH, HW, HW)   # one-time weight prep

    fwd = jax.jit(light_ac_net_forward)
    v, pi, (h_new, c_new) = fwd(kparams, ix, hx, cx)
    jax.block_until_ready((v, pi, h_new, c_new))

    assert v.shape == (B, 1) and pi.shape == (B, ACTION_DIM)
    assert h_new.shape == (B, 256) and c_new.shape == (B, 256)

    # correctness vs. a pure-JAX/XLA reference of the PyTorch module
    v_r, pi_r, (h_r, c_r) = jax.jit(reference_forward)(params, ix, hx, cx)
    for got, want in ((v, v_r), (pi, pi_r), (h_new, h_r), (c_new, c_r)):
        err = float(jnp.max(jnp.abs(got - want)))
        assert err < 5e-3, f"mismatch vs reference: max abs err {err}"

    print("KERNEL_OK")
</pallas_src>

<mosaic_0001>
module attributes {stable_mosaic.version = 11 : i64} {
  func.func @_fused_kernel(%arg0: memref<72x144xf32, #tpu.memory_space<vmem>>, %arg1: memref<3x36x72xf32, #tpu.memory_space<vmem>>, %arg2: memref<3x144x576xf32, #tpu.memory_space<vmem>>, %arg3: memref<1x576xf32, #tpu.memory_space<vmem>>, %arg4: memref<3x18x36xf32, #tpu.memory_space<vmem>>, %arg5: memref<3x576x288xf32, #tpu.memory_space<vmem>>, %arg6: memref<1x288xf32, #tpu.memory_space<vmem>>, %arg7: memref<3x10x18xf32, #tpu.memory_space<vmem>>, %arg8: memref<3x288x160xf32, #tpu.memory_space<vmem>>, %arg9: memref<1x160xf32, #tpu.memory_space<vmem>>, %arg10: memref<5x2x10xf32, #tpu.memory_space<vmem>>, %arg11: memref<5x160x288xf32, #tpu.memory_space<vmem>>, %arg12: memref<1x288xf32, #tpu.memory_space<vmem>>, %arg13: memref<2x256xf32, #tpu.memory_space<vmem>>, %arg14: memref<2x256xf32, #tpu.memory_space<vmem>>, %arg15: memref<544x1024xf32, #tpu.memory_space<vmem>>, %arg16: memref<1x1024xf32, #tpu.memory_space<vmem>>, %arg17: memref<256x134xf32, #tpu.memory_space<vmem>>, %arg18: memref<1x134xf32, #tpu.memory_space<vmem>>, %arg19: memref<2x1xf32, #tpu.memory_space<vmem>>, %arg20: memref<2x6xf32, #tpu.memory_space<vmem>>, %arg21: memref<2x256xf32, #tpu.memory_space<vmem>>, %arg22: memref<2x256xf32, #tpu.memory_space<vmem>>, %arg23: memref<2x544xf32, #tpu.memory_space<vmem>>) attributes {dimension_semantics = [], scalar_prefetch = 0 : i64, scratch_operands = 1 : i64, tpu.core_type = #tpu.core_type<tc>} {
    %c0 = arith.constant 0 : index
    %c0_0 = arith.constant 0 : index
    %0 = vector.load %arg0[%c0, %c0_0] : memref<72x144xf32, #tpu.memory_space<vmem>>, vector<72x144xf32>
    %c0_1 = arith.constant 0 : index
    %c0_2 = arith.constant 0 : index
    %c0_3 = arith.constant 0 : index
    %1 = vector.load %arg1[%c0_1, %c0_2, %c0_3] : memref<3x36x72xf32, #tpu.memory_space<vmem>>, vector<1x36x72xf32>
    %2 = vector.shape_cast %1 : vector<1x36x72xf32> to vector<36x72xf32>
    %cst = arith.constant dense<0.000000e+00> : vector<36x144xf32>
    %3 = tpu.matmul %2, %0, %cst {dimension_numbers = #tpu.dot_dimension_numbers<[1], [0], [0], [1], [0, 0, 1, 1], [], []>} : vector<36x72xf32>, vector<72x144xf32>, vector<36x144xf32> -> vector<36x144xf32>
    %c0_4 = arith.constant 0 : index
    %c0_5 = arith.constant 0 : index
    %c0_6 = arith.constant 0 : index
    %4 = vector.load %arg2[%c0_4, %c0_5, %c0_6] : memref<3x144x576xf32, #tpu.memory_space<vmem>>, vector<1x144x576xf32>
    %5 = vector.shape_cast %4 : vector<1x144x576xf32> to vector<144x576xf32>
    %cst_7 = arith.constant dense<0.000000e+00> : vector<36x576xf32>
    %6 = tpu.matmul %3, %5, %cst_7 {dimension_numbers = #tpu.dot_dimension_numbers<[1], [0], [0], [1], [0, 0, 1, 1], [], []>} : vector<36x144xf32>, vector<144x576xf32>, vector<36x576xf32> -> vector<36x576xf32>
    %c1 = arith.constant 1 : index
    %c0_8 = arith.constant 0 : index
    %c0_9 = arith.constant 0 : index
    %7 = vector.load %arg1[%c1, %c0_8, %c0_9] : memref<3x36x72xf32, #tpu.memory_space<vmem>>, vector<1x36x72xf32>
    %8 = vector.shape_cast %7 : vector<1x36x72xf32> to vector<36x72xf32>
    %cst_10 = arith.constant dense<0.000000e+00> : vector<36x144xf32>
    %9 = tpu.matmul %8, %0, %cst_10 {dimension_numbers = #tpu.dot_dimension_numbers<[1], [0], [0], [1], [0, 0, 1, 1], [], []>} : vector<36x72xf32>, vector<72x144xf32>, vector<36x144xf32> -> vector<36x144xf32>
    %c1_11 = arith.constant 1 : index
    %c0_12 = arith.constant 0 : index
    %c0_13 = arith.constant 0 : index
    %10 = vector.load %arg2[%c1_11, %c0_12, %c0_13] : memref<3x144x576xf32, #tpu.memory_space<vmem>>, vector<1x144x576xf32>
    %11 = vector.shape_cast %10 : vector<1x144x576xf32> to vector<144x576xf32>
    %cst_14 = arith.constant dense<0.000000e+00> : vector<36x576xf32>
    %12 = tpu.matmul %9, %11, %cst_14 {dimension_numbers = #tpu.dot_dimension_numbers<[1], [0], [0], [1], [0, 0, 1, 1], [], []>} : vector<36x144xf32>, vector<144x576xf32>, vector<36x576xf32> -> vector<36x576xf32>
    %13 = arith.addf %6, %12 : vector<36x576xf32>
    %c2 = arith.constant 2 : index
    %c0_15 = arith.constant 0 : index
    %c0_16 = arith.constant 0 : index
    %14 = vector.load %arg1[%c2, %c0_15, %c0_16] : memref<3x36x72xf32, #tpu.memory_space<vmem>>, vector<1x36x72xf32>
    %15 = vector.shape_cast %14 : vector<1x36x72xf32> to vector<36x72xf32>
    %cst_17 = arith.constant dense<0.000000e+00> : vector<36x144xf32>
    %16 = tpu.matmul %15, %0, %cst_17 {dimension_numbers = #tpu.dot_dimension_numbers<[1], [0], [0], [1], [0, 0, 1, 1], [], []>} : vector<36x72xf32>, vector<72x144xf32>, vector<36x144xf32> -> vector<36x144xf32>
    %c2_18 = arith.constant 2 : index
    %c0_19 = arith.constant 0 : index
    %c0_20 = arith.constant 0 : index
    %17 = vector.load %arg2[%c2_18, %c0_19, %c0_20] : memref<3x144x576xf32, #tpu.memory_space<vmem>>, vector<1x144x576xf32>
    %18 = vector.shape_cast %17 : vector<1x144x576xf32> to vector<144x576xf32>
    %cst_21 = arith.constant dense<0.000000e+00> : vector<36x576xf32>
    %19 = tpu.matmul %16, %18, %cst_21 {dimension_numbers = #tpu.dot_dimension_numbers<[1], [0], [0], [1], [0, 0, 1, 1], [], []>} : vector<36x144xf32>, vector<144x576xf32>, vector<36x576xf32> -> vector<36x576xf32>
    %20 = arith.addf %13, %19 : vector<36x576xf32>
    %c0_22 = arith.constant 0 : index
    %c0_23 = arith.constant 0 : index
    %21 = vector.load %arg3[%c0_22, %c0_23] : memref<1x576xf32, #tpu.memory_space<vmem>>, vector<1x576xf32>
    %22 = vector.broadcast %21 : vector<1x576xf32> to vector<36x576xf32>
    %23 = arith.addf %20, %22 : vector<36x576xf32>
    %cst_24 = arith.constant 0.000000e+00 : f32
    %24 = vector.broadcast %cst_24 : f32 to vector<36x576xf32>
    %25 = arith.cmpf ogt, %23, %24 : vector<36x576xf32>
    %cst_25 = arith.constant 0.000000e+00 : f32
    %26 = vector.broadcast %cst_25 : f32 to vector<36x576xf32>
    %27 = arith.minimumf %23, %26 : vector<36x576xf32>
    %28 = math.exp %27 : vector<36x576xf32>
    %cst_26 = arith.constant 1.000000e+00 : f32
    %29 = vector.broadcast %cst_26 : f32 to vector<36x576xf32>
    %30 = arith.subf %28, %29 : vector<36x576xf32>
    %31 = arith.select %25, %23, %30 : vector<36x576xi1>, vector<36x576xf32>
    %c0_27 = arith.constant 0 : index
    %c0_28 = arith.constant 0 : index
    %c0_29 = arith.constant 0 : index
    %32 = vector.load %arg4[%c0_27, %c0_28, %c0_29] : memref<3x18x36xf32, #tpu.memory_space<vmem>>, vector<1x18x36xf32>
    %33 = vector.shape_cast %32 : vector<1x18x36xf32> to vector<18x36xf32>
    %cst_30 = arith.constant dense<0.000000e+00> : vector<18x576xf32>
    %34 = tpu.matmul %33, %31, %cst_30 {dimension_numbers = #tpu.dot_dimension_numbers<[1], [0], [0], [1], [0, 0, 1, 1], [], []>} : vector<18x36xf32>, vector<36x576xf32>, vector<18x576xf32> -> vector<18x576xf32>
    %c0_31 = arith.constant 0 : index
    %c0_32 = arith.constant 0 : index
    %c0_33 = arith.constant 0 : index
    %35 = vector.load %arg5[%c0_31, %c0_32, %c0_33] : memref<3x576x288xf32, #tpu.memory_space<vmem>>, vector<1x576x288xf32>
    %36 = vector.shape_cast %35 : vector<1x576x288xf32> to vector<576x288xf32>
    %cst_34 = arith.constant dense<0.000000e+00> : vector<18x288xf32>
    %37 = tpu.matmul %34, %36, %cst_34 {dimension_numbers = #tpu.dot_dimension_numbers<[1], [0], [0], [1], [0, 0, 1, 1], [], []>} : vector<18x576xf32>, vector<576x288xf32>, vector<18x288xf32> -> vector<18x288xf32>
    %c1_35 = arith.constant 1 : index
    %c0_36 = arith.constant 0 : index
    %c0_37 = arith.constant 0 : index
    %38 = vector.load %arg4[%c1_35, %c0_36, %c0_37] : memref<3x18x36xf32, #tpu.memory_space<vmem>>, vector<1x18x36xf32>
    %39 = vector.shape_cast %38 : vector<1x18x36xf32> to vector<18x36xf32>
    %cst_38 = arith.constant dense<0.000000e+00> : vector<18x576xf32>
    %40 = tpu.matmul %39, %31, %cst_38 {dimension_numbers = #tpu.dot_dimension_numbers<[1], [0], [0], [1], [0, 0, 1, 1], [], []>} : vector<18x36xf32>, vector<36x576xf32>, vector<18x576xf32> -> vector<18x576xf32>
    %c1_39 = arith.constant 1 : index
    %c0_40 = arith.constant 0 : index
    %c0_41 = arith.constant 0 : index
    %41 = vector.load %arg5[%c1_39, %c0_40, %c0_41] : memref<3x576x288xf32, #tpu.memory_space<vmem>>, vector<1x576x288xf32>
    %42 = vector.shape_cast %41 : vector<1x576x288xf32> to vector<576x288xf32>
    %cst_42 = arith.constant dense<0.000000e+00> : vector<18x288xf32>
    %43 = tpu.matmul %40, %42, %cst_42 {dimension_numbers = #tpu.dot_dimension_numbers<[1], [0], [0], [1], [0, 0, 1, 1], [], []>} : vector<18x576xf32>, vector<576x288xf32>, vector<18x288xf32> -> vector<18x288xf32>
    %44 = arith.addf %37, %43 : vector<18x288xf32>
    %c2_43 = arith.constant 2 : index
    %c0_44 = arith.constant 0 : index
    %c0_45 = arith.constant 0 : index
    %45 = vector.load %arg4[%c2_43, %c0_44, %c0_45] : memref<3x18x36xf32, #tpu.memory_space<vmem>>, vector<1x18x36xf32>
    %46 = vector.shape_cast %45 : vector<1x18x36xf32> to vector<18x36xf32>
    %cst_46 = arith.constant dense<0.000000e+00> : vector<18x576xf32>
    %47 = tpu.matmul %46, %31, %cst_46 {dimension_numbers = #tpu.dot_dimension_numbers<[1], [0], [0], [1], [0, 0, 1, 1], [], []>} : vector<18x36xf32>, vector<36x576xf32>, vector<18x576xf32> -> vector<18x576xf32>
    %c2_47 = arith.constant 2 : index
    %c0_48 = arith.constant 0 : index
    %c0_49 = arith.constant 0 : index
    %48 = vector.load %arg5[%c2_47, %c0_48, %c0_49] : memref<3x576x288xf32, #tpu.memory_space<vmem>>, vector<1x576x288xf32>
    %49 = vector.shape_cast %48 : vector<1x576x288xf32> to vector<576x288xf32>
    %cst_50 = arith.constant dense<0.000000e+00> : vector<18x288xf32>
    %50 = tpu.matmul %47, %49, %cst_50 {dimension_numbers = #tpu.dot_dimension_numbers<[1], [0], [0], [1], [0, 0, 1, 1], [], []>} : vector<18x576xf32>, vector<576x288xf32>, vector<18x288xf32> -> vector<18x288xf32>
    %51 = arith.addf %44, %50 : vector<18x288xf32>
    %c0_51 = arith.constant 0 : index
    %c0_52 = arith.constant 0 : index
    %52 = vector.load %arg6[%c0_51, %c0_52] : memref<1x288xf32, #tpu.memory_space<vmem>>, vector<1x288xf32>
    %53 = vector.broadcast %52 : vector<1x288xf32> to vector<18x288xf32>
    %54 = arith.addf %51, %53 : vector<18x288xf32>
    %cst_53 = arith.constant 0.000000e+00 : f32
    %55 = vector.broadcast %cst_53 : f32 to vector<18x288xf32>
    %56 = arith.cmpf ogt, %54, %55 : vector<18x288xf32>
    %cst_54 = arith.constant 0.000000e+00 : f32
    %57 = vector.broadcast %cst_54 : f32 to vector<18x288xf32>
    %58 = arith.minimumf %54, %57 : vector<18x288xf32>
    %59 = math.exp %58 : vector<18x288xf32>
    %cst_55 = arith.constant 1.000000e+00 : f32
    %60 = vector.broadcast %cst_55 : f32 to vector<18x288xf32>
    %61 = arith.subf %59, %60 : vector<18x288xf32>
    %62 = arith.select %56, %54, %61 : vector<18x288xi1>, vector<18x288xf32>
    %c0_56 = arith.constant 0 : index
    %c0_57 = arith.constant 0 : index
    %c0_58 = arith.constant 0 : index
    %63 = vector.load %arg7[%c0_56, %c0_57, %c0_58] : memref<3x10x18xf32, #tpu.memory_space<vmem>>, vector<1x10x18xf32>
    %64 = vector.shape_cast %63 : vector<1x10x18xf32> to vector<10x18xf32>
    %cst_59 = arith.constant dense<0.000000e+00> : vector<10x288xf32>
    %65 = tpu.matmul %64, %62, %cst_59 {dimension_numbers = #tpu.dot_dimension_numbers<[1], [0], [0], [1], [0, 0, 1, 1], [], []>} : vector<10x18xf32>, vector<18x288xf32>, vector<10x288xf32> -> vector<10x288xf32>
    %c0_60 = arith.constant 0 : index
    %c0_61 = arith.constant 0 : index
    %c0_62 = arith.constant 0 : index
    %66 = vector.load %arg8[%c0_60, %c0_61, %c0_62] : memref<3x288x160xf32, #tpu.memory_space<vmem>>, vector<1x288x160xf32>
    %67 = vector.shape_cast %66 : vector<1x288x160xf32> to vector<288x160xf32>
    %cst_63 = arith.constant dense<0.000000e+00> : vector<10x160xf32>
    %68 = tpu.matmul %65, %67, %cst_63 {dimension_numbers = #tpu.dot_dimension_numbers<[1], [0], [0], [1], [0, 0, 1, 1], [], []>} : vector<10x288xf32>, vector<288x160xf32>, vector<10x160xf32> -> vector<10x160xf32>
    %c1_64 = arith.constant 1 : index
    %c0_65 = arith.constant 0 : index
    %c0_66 = arith.constant 0 : index
    %69 = vector.load %arg7[%c1_64, %c0_65, %c0_66] : memref<3x10x18xf32, #tpu.memory_space<vmem>>, vector<1x10x18xf32>
    %70 = vector.shape_cast %69 : vector<1x10x18xf32> to vector<10x18xf32>
    %cst_67 = arith.constant dense<0.000000e+00> : vector<10x288xf32>
    %71 = tpu.matmul %70, %62, %cst_67 {dimension_numbers = #tpu.dot_dimension_numbers<[1], [0], [0], [1], [0, 0, 1, 1], [], []>} : vector<10x18xf32>, vector<18x288xf32>, vector<10x288xf32> -> vector<10x288xf32>
    %c1_68 = arith.constant 1 : index
    %c0_69 = arith.constant 0 : index
    %c0_70 = arith.constant 0 : index
    %72 = vector.load %arg8[%c1_68, %c0_69, %c0_70] : memref<3x288x160xf32, #tpu.memory_space<vmem>>, vector<1x288x160xf32>
    %73 = vector.shape_cast %72 : vector<1x288x160xf32> to vector<288x160xf32>
    %cst_71 = arith.constant dense<0.000000e+00> : vector<10x160xf32>
    %74 = tpu.matmul %71, %73, %cst_71 {dimension_numbers = #tpu.dot_dimension_numbers<[1], [0], [0], [1], [0, 0, 1, 1], [], []>} : vector<10x288xf32>, vector<288x160xf32>, vector<10x160xf32> -> vector<10x160xf32>
    %75 = arith.addf %68, %74 : vector<10x160xf32>
    %c2_72 = arith.constant 2 : index
    %c0_73 = arith.constant 0 : index
    %c0_74 = arith.constant 0 : index
    %76 = vector.load %arg7[%c2_72, %c0_73, %c0_74] : memref<3x10x18xf32, #tpu.memory_space<vmem>>, vector<1x10x18xf32>
    %77 = vector.shape_cast %76 : vector<1x10x18xf32> to vector<10x18xf32>
    %cst_75 = arith.constant dense<0.000000e+00> : vector<10x288xf32>
    %78 = tpu.matmul %77, %62, %cst_75 {dimension_numbers = #tpu.dot_dimension_numbers<[1], [0], [0], [1], [0, 0, 1, 1], [], []>} : vector<10x18xf32>, vector<18x288xf32>, vector<10x288xf32> -> vector<10x288xf32>
    %c2_76 = arith.constant 2 : index
    %c0_77 = arith.constant 0 : index
    %c0_78 = arith.constant 0 : index
    %79 = vector.load %arg8[%c2_76, %c0_77, %c0_78] : memref<3x288x160xf32, #tpu.memory_space<vmem>>, vector<1x288x160xf32>
    %80 = vector.shape_cast %79 : vector<1x288x160xf32> to vector<288x160xf32>
    %cst_79 = arith.constant dense<0.000000e+00> : vector<10x160xf32>
    %81 = tpu.matmul %78, %80, %cst_79 {dimension_numbers = #tpu.dot_dimension_numbers<[1], [0], [0], [1], [0, 0, 1, 1], [], []>} : vector<10x288xf32>, vector<288x160xf32>, vector<10x160xf32> -> vector<10x160xf32>
    %82 = arith.addf %75, %81 : vector<10x160xf32>
    %c0_80 = arith.constant 0 : index
    %c0_81 = arith.constant 0 : index
    %83 = vector.load %arg9[%c0_80, %c0_81] : memref<1x160xf32, #tpu.memory_space<vmem>>, vector<1x160xf32>
    %84 = vector.broadcast %83 : vector<1x160xf32> to vector<10x160xf32>
    %85 = arith.addf %82, %84 : vector<10x160xf32>
    %cst_82 = arith.constant 0.000000e+00 : f32
    %86 = vector.broadcast %cst_82 : f32 to vector<10x160xf32>
    %87 = arith.cmpf ogt, %85, %86 : vector<10x160xf32>
    %cst_83 = arith.constant 0.000000e+00 : f32
    %88 = vector.broadcast %cst_83 : f32 to vector<10x160xf32>
    %89 = arith.minimumf %85, %88 : vector<10x160xf32>
    %90 = math.exp %89 : vector<10x160xf32>
    %cst_84 = arith.constant 1.000000e+00 : f32
    %91 = vector.broadcast %cst_84 : f32 to vector<10x160xf32>
    %92 = arith.subf %90, %91 : vector<10x160xf32>
    %93 = arith.select %87, %85, %92 : vector<10x160xi1>, vector<10x160xf32>
    %c0_85 = arith.constant 0 : index
    %c0_86 = arith.constant 0 : index
    %c0_87 = arith.constant 0 : index
    %94 = vector.load %arg10[%c0_85, %c0_86, %c0_87] : memref<5x2x10xf32, #tpu.memory_space<vmem>>, vector<1x2x10xf32>
    %95 = vector.shape_cast %94 : vector<1x2x10xf32> to vector<2x10xf32>
    %cst_88 = arith.constant dense<0.000000e+00> : vector<2x160xf32>
    %96 = tpu.matmul %95, %93, %cst_88 {dimension_numbers = #tpu.dot_dimension_numbers<[1], [0], [0], [1], [0, 0, 1, 1], [], []>} : vector<2x10xf32>, vector<10x160xf32>, vector<2x160xf32> -> vector<2x160xf32>
    %c0_89 = arith.constant 0 : index
    %c0_90 = arith.constant 0 : index
    %c0_91 = arith.constant 0 : index
    %97 = vector.load %arg11[%c0_89, %c0_90, %c0_91] : memref<5x160x288xf32, #tpu.memory_space<vmem>>, vector<1x160x288xf32>
    %98 = vector.shape_cast %97 : vector<1x160x288xf32> to vector<160x288xf32>
    %cst_92 = arith.constant dense<0.000000e+00> : vector<2x288xf32>
    %99 = tpu.matmul %96, %98, %cst_92 {dimension_numbers = #tpu.dot_dimension_numbers<[1], [0], [0], [1], [0, 0, 1, 1], [], []>} : vector<2x160xf32>, vector<160x288xf32>, vector<2x288xf32> -> vector<2x288xf32>
    %c1_93 = arith.constant 1 : index
    %c0_94 = arith.constant 0 : index
    %c0_95 = arith.constant 0 : index
    %100 = vector.load %arg10[%c1_93, %c0_94, %c0_95] : memref<5x2x10xf32, #tpu.memory_space<vmem>>, vector<1x2x10xf32>
    %101 = vector.shape_cast %100 : vector<1x2x10xf32> to vector<2x10xf32>
    %cst_96 = arith.constant dense<0.000000e+00> : vector<2x160xf32>
    %102 = tpu.matmul %101, %93, %cst_96 {dimension_numbers = #tpu.dot_dimension_numbers<[1], [0], [0], [1], [0, 0, 1, 1], [], []>} : vector<2x10xf32>, vector<10x160xf32>, vector<2x160xf32> -> vector<2x160xf32>
    %c1_97 = arith.constant 1 : index
    %c0_98 = arith.constant 0 : index
    %c0_99 = arith.constant 0 : index
    %103 = vector.load %arg11[%c1_97, %c0_98, %c0_99] : memref<5x160x288xf32, #tpu.memory_space<vmem>>, vector<1x160x288xf32>
    %104 = vector.shape_cast %103 : vector<1x160x288xf32> to vector<160x288xf32>
    %cst_100 = arith.constant dense<0.000000e+00> : vector<2x288xf32>
    %105 = tpu.matmul %102, %104, %cst_100 {dimension_numbers = #tpu.dot_dimension_numbers<[1], [0], [0], [1], [0, 0, 1, 1], [], []>} : vector<2x160xf32>, vector<160x288xf32>, vector<2x288xf32> -> vector<2x288xf32>
    %106 = arith.addf %99, %105 : vector<2x288xf32>
    %c2_101 = arith.constant 2 : index
    %c0_102 = arith.constant 0 : index
    %c0_103 = arith.constant 0 : index
    %107 = vector.load %arg10[%c2_101, %c0_102, %c0_103] : memref<5x2x10xf32, #tpu.memory_space<vmem>>, vector<1x2x10xf32>
    %108 = vector.shape_cast %107 : vector<1x2x10xf32> to vector<2x10xf32>
    %cst_104 = arith.constant dense<0.000000e+00> : vector<2x160xf32>
    %109 = tpu.matmul %108, %93, %cst_104 {dimension_numbers = #tpu.dot_dimension_numbers<[1], [0], [0], [1], [0, 0, 1, 1], [], []>} : vector<2x10xf32>, vector<10x160xf32>, vector<2x160xf32> -> vector<2x160xf32>
    %c2_105 = arith.constant 2 : index
    %c0_106 = arith.constant 0 : index
    %c0_107 = arith.constant 0 : index
    %110 = vector.load %arg11[%c2_105, %c0_106, %c0_107] : memref<5x160x288xf32, #tpu.memory_space<vmem>>, vector<1x160x288xf32>
    %111 = vector.shape_cast %110 : vector<1x160x288xf32> to vector<160x288xf32>
    %cst_108 = arith.constant dense<0.000000e+00> : vector<2x288xf32>
    %112 = tpu.matmul %109, %111, %cst_108 {dimension_numbers = #tpu.dot_dimension_numbers<[1], [0], [0], [1], [0, 0, 1, 1], [], []>} : vector<2x160xf32>, vector<160x288xf32>, vector<2x288xf32> -> vector<2x288xf32>
    %113 = arith.addf %106, %112 : vector<2x288xf32>
    %c3 = arith.constant 3 : index
    %c0_109 = arith.constant 0 : index
    %c0_110 = arith.constant 0 : index
    %114 = vector.load %arg10[%c3, %c0_109, %c0_110] : memref<5x2x10xf32, #tpu.memory_space<vmem>>, vector<1x2x10xf32>
    %115 = vector.shape_cast %114 : vector<1x2x10xf32> to vector<2x10xf32>
    %cst_111 = arith.constant dense<0.000000e+00> : vector<2x160xf32>
    %116 = tpu.matmul %115, %93, %cst_111 {dimension_numbers = #tpu.dot_dimension_numbers<[1], [0], [0], [1], [0, 0, 1, 1], [], []>} : vector<2x10xf32>, vector<10x160xf32>, vector<2x160xf32> -> vector<2x160xf32>
    %c3_112 = arith.constant 3 : index
    %c0_113 = arith.constant 0 : index
    %c0_114 = arith.constant 0 : index
    %117 = vector.load %arg11[%c3_112, %c0_113, %c0_114] : memref<5x160x288xf32, #tpu.memory_space<vmem>>, vector<1x160x288xf32>
    %118 = vector.shape_cast %117 : vector<1x160x288xf32> to vector<160x288xf32>
    %cst_115 = arith.constant dense<0.000000e+00> : vector<2x288xf32>
    %119 = tpu.matmul %116, %118, %cst_115 {dimension_numbers = #tpu.dot_dimension_numbers<[1], [0], [0], [1], [0, 0, 1, 1], [], []>} : vector<2x160xf32>, vector<160x288xf32>, vector<2x288xf32> -> vector<2x288xf32>
    %120 = arith.addf %113, %119 : vector<2x288xf32>
    %c4 = arith.constant 4 : index
    %c0_116 = arith.constant 0 : index
    %c0_117 = arith.constant 0 : index
    %121 = vector.load %arg10[%c4, %c0_116, %c0_117] : memref<5x2x10xf32, #tpu.memory_space<vmem>>, vector<1x2x10xf32>
    %122 = vector.shape_cast %121 : vector<1x2x10xf32> to vector<2x10xf32>
    %cst_118 = arith.constant dense<0.000000e+00> : vector<2x160xf32>
    %123 = tpu.matmul %122, %93, %cst_118 {dimension_numbers = #tpu.dot_dimension_numbers<[1], [0], [0], [1], [0, 0, 1, 1], [], []>} : vector<2x10xf32>, vector<10x160xf32>, vector<2x160xf32> -> vector<2x160xf32>
    %c4_119 = arith.constant 4 : index
    %c0_120 = arith.constant 0 : index
    %c0_121 = arith.constant 0 : index
    %124 = vector.load %arg11[%c4_119, %c0_120, %c0_121] : memref<5x160x288xf32, #tpu.memory_space<vmem>>, vector<1x160x288xf32>
    %125 = vector.shape_cast %124 : vector<1x160x288xf32> to vector<160x288xf32>
    %cst_122 = arith.constant dense<0.000000e+00> : vector<2x288xf32>
    %126 = tpu.matmul %123, %125, %cst_122 {dimension_numbers = #tpu.dot_dimension_numbers<[1], [0], [0], [1], [0, 0, 1, 1], [], []>} : vector<2x160xf32>, vector<160x288xf32>, vector<2x288xf32> -> vector<2x288xf32>
    %127 = arith.addf %120, %126 : vector<2x288xf32>
    %c0_123 = arith.constant 0 : index
    %c0_124 = arith.constant 0 : index
    %128 = vector.load %arg12[%c0_123, %c0_124] : memref<1x288xf32, #tpu.memory_space<vmem>>, vector<1x288xf32>
    %129 = vector.broadcast %128 : vector<1x288xf32> to vector<2x288xf32>
    %130 = arith.addf %127, %129 : vector<2x288xf32>
    %cst_125 = arith.constant 0.000000e+00 : f32
    %131 = vector.broadcast %cst_125 : f32 to vector<2x288xf32>
    %132 = arith.cmpf ogt, %130, %131 : vector<2x288xf32>
    %cst_126 = arith.constant 0.000000e+00 : f32
    %133 = vector.broadcast %cst_126 : f32 to vector<2x288xf32>
    %134 = arith.minimumf %130, %133 : vector<2x288xf32>
    %135 = math.exp %134 : vector<2x288xf32>
    %cst_127 = arith.constant 1.000000e+00 : f32
    %136 = vector.broadcast %cst_127 : f32 to vector<2x288xf32>
    %137 = arith.subf %135, %136 : vector<2x288xf32>
    %138 = arith.select %132, %130, %137 : vector<2x288xi1>, vector<2x288xf32>
    %c0_128 = arith.constant 0 : index
    %c0_129 = arith.constant 0 : index
    %139 = vector.load %arg13[%c0_128, %c0_129] : memref<2x256xf32, #tpu.memory_space<vmem>>, vector<2x256xf32>
    %c0_130 = arith.constant 0 : index
    %c0_131 = arith.constant 0 : index
    %140 = vector.load %arg23[%c0_130, %c0_131] : memref<2x544xf32, #tpu.memory_space<vmem>>, vector<2x256xf32>
    tpu.vector_store %arg23[%c0_130, %c0_131], %139 {strides = array<i32>} : memref<2x544xf32, #tpu.memory_space<vmem>>, vector<2x256xf32>,
    %c0_132 = arith.constant 0 : index
    %c256 = arith.constant 256 : index
    %141 = vector.load %arg23[%c0_132, %c256] : memref<2x544xf32, #tpu.memory_space<vmem>>, vector<2x288xf32>
    tpu.vector_store %arg23[%c0_132, %c256], %138 {strides = array<i32>} : memref<2x544xf32, #tpu.memory_space<vmem>>, vector<2x288xf32>,
    %c0_133 = arith.constant 0 : index
    %c0_134 = arith.constant 0 : index
    %142 = vector.load %arg23[%c0_133, %c0_134] : memref<2x544xf32, #tpu.memory_space<vmem>>, vector<2x544xf32>
    %c0_135 = arith.constant 0 : index
    %c0_136 = arith.constant 0 : index
    %143 = vector.load %arg15[%c0_135, %c0_136] : memref<544x1024xf32, #tpu.memory_space<vmem>>, vector<544x1024xf32>
    %cst_137 = arith.constant dense<0.000000e+00> : vector<2x1024xf32>
    %144 = tpu.matmul %142, %143, %cst_137 {dimension_numbers = #tpu.dot_dimension_numbers<[1], [0], [0], [1], [0, 0, 1, 1], [], []>} : vector<2x544xf32>, vector<544x1024xf32>, vector<2x1024xf32> -> vector<2x1024xf32>
    %c0_138 = arith.constant 0 : index
    %c0_139 = arith.constant 0 : index
    %145 = vector.load %arg16[%c0_138, %c0_139] : memref<1x1024xf32, #tpu.memory_space<vmem>>, vector<1x1024xf32>
    %146 = vector.broadcast %145 : vector<1x1024xf32> to vector<2x1024xf32>
    %147 = arith.addf %144, %146 : vector<2x1024xf32>
    %148 = vector.extract_strided_slice %147 {offsets = [0, 0], sizes = [2, 256], strides = [1, 1]} : vector<2x1024xf32> to vector<2x256xf32>
    %149 = arith.negf %148 : vector<2x256xf32>
    %150 = math.exp %149 : vector<2x256xf32>
    %cst_140 = arith.constant 1.000000e+00 : f32
    %151 = vector.broadcast %cst_140 : f32 to vector<2x256xf32>
    %152 = arith.addf %151, %150 : vector<2x256xf32>
    %153 = arith.divf %151, %152 : vector<2x256xf32>
    %154 = vector.extract_strided_slice %147 {offsets = [0, 256], sizes = [2, 256], strides = [1, 1]} : vector<2x1024xf32> to vector<2x256xf32>
    %155 = arith.negf %154 : vector<2x256xf32>
    %156 = math.exp %155 : vector<2x256xf32>
    %cst_141 = arith.constant 1.000000e+00 : f32
    %157 = vector.broadcast %cst_141 : f32 to vector<2x256xf32>
    %158 = arith.addf %157, %156 : vector<2x256xf32>
    %159 = arith.divf %157, %158 : vector<2x256xf32>
    %160 = vector.extract_strided_slice %147 {offsets = [0, 512], sizes = [2, 256], strides = [1, 1]} : vector<2x1024xf32> to vector<2x256xf32>
    %161 = math.tanh %160 : vector<2x256xf32>
    %162 = vector.extract_strided_slice %147 {offsets = [0, 768], sizes = [2, 256], strides = [1, 1]} : vector<2x1024xf32> to vector<2x256xf32>
    %163 = arith.negf %162 : vector<2x256xf32>
    %164 = math.exp %163 : vector<2x256xf32>
    %cst_142 = arith.constant 1.000000e+00 : f32
    %165 = vector.broadcast %cst_142 : f32 to vector<2x256xf32>
    %166 = arith.addf %165, %164 : vector<2x256xf32>
    %167 = arith.divf %165, %166 : vector<2x256xf32>
    %c0_143 = arith.constant 0 : index
    %c0_144 = arith.constant 0 : index
    %168 = vector.load %arg14[%c0_143, %c0_144] : memref<2x256xf32, #tpu.memory_space<vmem>>, vector<2x256xf32>
    %169 = arith.mulf %159, %168 : vector<2x256xf32>
    %170 = arith.mulf %153, %161 : vector<2x256xf32>
    %171 = arith.addf %169, %170 : vector<2x256xf32>
    %172 = math.tanh %171 : vector<2x256xf32>
    %173 = arith.mulf %167, %172 : vector<2x256xf32>
    %c0_145 = arith.constant 0 : index
    %c0_146 = arith.constant 0 : index
    %174 = vector.load %arg22[%c0_145, %c0_146] : memref<2x256xf32, #tpu.memory_space<vmem>>, vector<2x256xf32>
    tpu.vector_store %arg22[%c0_145, %c0_146], %171 {strides = array<i32>} : memref<2x256xf32, #tpu.memory_space<vmem>>, vector<2x256xf32>,
    %c0_147 = arith.constant 0 : index
    %c0_148 = arith.constant 0 : index
    %175 = vector.load %arg21[%c0_147, %c0_148] : memref<2x256xf32, #tpu.memory_space<vmem>>, vector<2x256xf32>
    tpu.vector_store %arg21[%c0_147, %c0_148], %173 {strides = array<i32>} : memref<2x256xf32, #tpu.memory_space<vmem>>, vector<2x256xf32>,
    %c0_149 = arith.constant 0 : index
    %c0_150 = arith.constant 0 : index
    %176 = vector.load %arg17[%c0_149, %c0_150] : memref<256x134xf32, #tpu.memory_space<vmem>>, vector<256x134xf32>
    %cst_151 = arith.constant dense<0.000000e+00> : vector<2x134xf32>
    %177 = tpu.matmul %173, %176, %cst_151 {dimension_numbers = #tpu.dot_dimension_numbers<[1], [0], [0], [1], [0, 0, 1, 1], [], []>} : vector<2x256xf32>, vector<256x134xf32>, vector<2x134xf32> -> vector<2x134xf32>
    %c0_152 = arith.constant 0 : index
    %c0_153 = arith.constant 0 : index
    %178 = vector.load %arg18[%c0_152, %c0_153] : memref<1x134xf32, #tpu.memory_space<vmem>>, vector<1x134xf32>
    %179 = vector.broadcast %178 : vector<1x134xf32> to vector<2x134xf32>
    %180 = arith.addf %177, %179 : vector<2x134xf32>
    %181 = vector.extract_strided_slice %180 {offsets = [0, 0], sizes = [2, 1], strides = [1, 1]} : vector<2x134xf32> to vector<2x1xf32>
    %c0_154 = arith.constant 0 : index
    %c0_155 = arith.constant 0 : index
    %182 = vector.load %arg19[%c0_154, %c0_155] : memref<2x1xf32, #tpu.memory_space<vmem>>, vector<2x1xf32>
    tpu.vector_store %arg19[%c0_154, %c0_155], %181 {strides = array<i32>} : memref<2x1xf32, #tpu.memory_space<vmem>>, vector<2x1xf32>,
    %183 = vector.extract_strided_slice %180 {offsets = [0, 128], sizes = [2, 6], strides = [1, 1]} : vector<2x134xf32> to vector<2x6xf32>
    %c0_156 = arith.constant 0 : index
    %c0_157 = arith.constant 0 : index
    %184 = vector.load %arg20[%c0_156, %c0_157] : memref<2x6xf32, #tpu.memory_space<vmem>>, vector<2x6xf32>
    tpu.vector_store %arg20[%c0_156, %c0_157], %183 {strides = array<i32>} : memref<2x6xf32, #tpu.memory_space<vmem>>, vector<2x6xf32>,
    return
  }
}

</mosaic_0001>

<bundles_post_ra>
// kernel: light_ac_net_forward.1
= control target key start
LH: loop header
LB: loop body
LE: loop exit
PB: predicated region body
PF: predicated region fallthrough
CT: control target
= control target key end

     0   :  { %s21260_s0 = inlined_call_operand.vmem [shape: f32[72,144], index: 0, kind: input, shape index: {}]   ;;  %s21261_s1 = inlined_call_operand.vmem [shape: f32[3,36,72], index: 1, kind: input, shape index: {}]   ;;  %s21262_s2 = inlined_call_operand.vmem [shape: f32[3,144,576], index: 2, kind: input, shape index: {}]   ;;  %s21263_s3 = inlined_call_operand.vmem [shape: f32[1,576], index: 3, kind: input, shape index: {}]   ;;  %s21264_s4 = inlined_call_operand.vmem [shape: f32[3,18,36], index: 4, kind: input, shape index: {}]   ;;  %s21265_s5 = inlined_call_operand.vmem [shape: f32[3,576,288], index: 5, kind: input, shape index: {}]   ;;  %s21266_s6 = inlined_call_operand.vmem [shape: f32[1,288], index: 6, kind: input, shape index: {}]   ;;  %s21267_s7 = inlined_call_operand.vmem [shape: f32[3,10,18], index: 7, kind: input, shape index: {}]   ;;  %s21268_s8 = inlined_call_operand.vmem [shape: f32[3,288,160], index: 8, kind: input, shape index: {}]   ;;  %s21269_s9 = inlined_call_operand.vmem [shape: f32[1,160], index: 9, kind: input, shape index: {}]   ;;  %s21270_s10 = inlined_call_operand.vmem [shape: f32[5,2,10], index: 10, kind: input, shape index: {}]   ;;  %s21271_s11 = inlined_call_operand.vmem [shape: f32[5,160,288], index: 11, kind: input, shape index: {}]   ;;  %s21272_s12 = inlined_call_operand.vmem [shape: f32[1,288], index: 12, kind: input, shape index: {}]   ;;  %s21273_s13 = inlined_call_operand.vmem [shape: f32[2,256], index: 13, kind: input, shape index: {}, may-alias: {13,21}]   ;;  %s21274_s14 = inlined_call_operand.vmem [shape: f32[2,256], index: 14, kind: input, shape index: {}, may-alias: {14,22}]   ;;  %s21275_s15 = inlined_call_operand.vmem [shape: f32[544,1024], index: 15, kind: input, shape index: {}]   ;;  %s21276_s16 = inlined_call_operand.vmem [shape: f32[1,1024], index: 16, kind: input, shape index: {}]   ;;  %s21277_s17 = inlined_call_operand.vmem [shape: f32[256,134], index: 17, kind: input, shape index: {}]   ;;  %s21278_s18 = inlined_call_operand.vmem [shape: f32[1,134], index: 18, kind: input, shape index: {}]   ;;  %s21279_s19 = inlined_call_operand.vmem [shape: f32[2,1], index: 19, kind: output, shape index: {0}]   ;;  %s21280_s20 = inlined_call_operand.hbm [shape: f32[2,6], index: 20, kind: output, shape index: {1}]   ;;  %s21281_s21 = inlined_call_operand.vmem [shape: f32[2,256], index: 21, kind: output, shape index: {2}, may-alias: {13,21}]   ;;  %s21282_s22 = inlined_call_operand.vmem [shape: f32[2,256], index: 22, kind: output, shape index: {3}, may-alias: {14,22}]  }
   0x1   :  { %21302 = sst [smem:[#allocation10_spill]] %s21260_s0 }
   0x2   :  { %21303 = sst [smem:[#allocation11_spill]] %s21261_s1 }
   0x3   :  { %21304 = sst [smem:[#allocation12_spill]] %s21262_s2 }
   0x4   :  { %21305 = sst [smem:[#allocation13_spill]] %s21263_s3 }
   0x5   :  { %21306 = sst [smem:[#allocation14_spill]] %s21264_s4 }
   0x6   :  { %21307 = sst [smem:[#allocation15_spill]] %s21265_s5 }
   0x7   :  { %21308 = sst [smem:[#allocation16_spill]] %s21266_s6 }
   0x8   :  { %s21309_s29 = sld [smem:[#allocation10_spill]]  ;;  %v21296_v7 = vmov 0.0   ;;  %s21310_s25 = sld [smem:[#allocation12_spill]]  ;;  %vm90_vm0 = vcmask 588800  }
   0x9   :  { %376 = vmatprep.mubr.f32.mxu1 %v21296_v7  ;;  %170 = vmatprep.mubr.f32.mxu0 %v21296_v7  ;;  %s21311_s27 = sld [smem:[#allocation11_spill]] }
   0xe   :  { %v68_v0 = vld [vmem:[%s21309_s29 + $0x8] sm:$0xff]  ;;  %v70_v1 = vld [vmem:[%s21309_s29 + $0x18] sm:$0xff]  ;;  %v67_v2 = vld [vmem:[%s21309_s29] sm:$0xff] }
   0xf   :  { %v13737_v3 = vpack.c.bf16 %v70_v1, %v68_v0  ;;  %v69_v4 = vld [vmem:[%s21309_s29 + $0x10] sm:$0xff]  ;;  %v72_v5 = vld [vmem:[%s21309_s29 + $0x28] sm:$0xff]  ;;  %v74_v6 = vld [vmem:[%s21309_s29 + $0x38] sm:$0xff] }
  0x10   :  { %v13750_v8 = vpack.c.bf16 %v69_v4, %v67_v2  ;;  %v13752_v9 = vpack.c.bf16 %v74_v6, %v72_v5  ;;  %v71_v10 = vld [vmem:[%s21309_s29 + $0x20] sm:$0xff]  ;;  %v73_v11 = vld [vmem:[%s21309_s29 + $0x30] sm:$0xff]  ;;  %v76_v12 = vld [vmem:[%s21309_s29 + $0x48] sm:$0xff] }
  0x11   :  { %11039 = vmatprep.subr.bf16.mxu1 %v13737_v3  ;;  %v78_v13 = vld [vmem:[%s21309_s29 + $0x58] sm:$0xff]  ;;  %11023 = vmatprep.subr.bf16.mxu0 %v13737_v3  ;;  %v13769_v14 = vpack.c.bf16 %v73_v11, %v71_v10  ;;  %v75_v16 = vld [vmem:[%s21309_s29 + $0x40] sm:$0xff]  ;;  %v77_v17 = vld [vmem:[%s21309_s29 + $0x50] sm:$0xff] }
  0x12   :  { %11041 = vmatpush1.bf16.msra.mxu1 %v13750_v8  ;;  %11025 = vmatpush1.bf16.msra.mxu0 %v13750_v8  ;;  %v13773_v15 = vpack.c.bf16 %v78_v13, %v76_v12  ;;  %v80_v18 = vld [vmem:[%s21309_s29 + $0x68] sm:$0xff]  ;;  %v82_v19 = vld [vmem:[%s21309_s29 + $0x78] sm:$0xff]  ;;  %v13789_v20 = vpack.c.bf16 %v77_v17, %v75_v16  ;;  %v79_v22 = vld [vmem:[%s21309_s29 + $0x60] sm:$0xff] }
  0x13   :  { %11043 = vmatprep.subr.bf16.mxu1 %v13752_v9  ;;  %11027 = vmatprep.subr.bf16.mxu0 %v13752_v9  ;;  %v13793_v21 = vpack.c.bf16 %v82_v19, %v80_v18  ;;  %v81_v23 = vld [vmem:[%s21309_s29 + $0x70] sm:$0xff]  ;;  %v13811_v25 = vld [vmem:[%s21309_s29 + $0x88] sm:$0xff]  ;;  %v13816_v26 = vld [vmem:[%s21309_s29 + $0x80] sm:$0xff] }
  0x14   :  { %v13803_v24 = vpack.c.bf16 %v81_v23, %v79_v22  ;;  %v9314_v27 = vld [vmem:[%s21310_s25 + $0x2d8] sm:$0xff]  ;;  %v9319_v28 = vld [vmem:[%s21310_s25 + $0x300] sm:$0xff]  ;;  %v9316_v29 = vld [vmem:[%s21310_s25 + $0x2e8] sm:$0xff] }
  0x15   :  { %v9321_v30 = vld [vmem:[%s21310_s25 + $0x310] sm:$0xff]  ;;  %v9318_v32 = vld [vmem:[%s21310_s25 + $0x2f8] sm:$0xff]  ;;  %v9315_v33 = vld [vmem:[%s21310_s25 + $0x2e0] sm:$0xff]  ;;  %v11054_v37 = vpack.c.bf16 %v9319_v28, %v9314_v27 }
  0x16   :  { %11045 = vmatpush1.bf16.msra.mxu1 %v13769_v14  ;;  %11029 = vmatpush1.bf16.msra.mxu0 %v13769_v14  ;;  %v9313_v31 = vld [vmem:[%s21310_s25 + $0x2d0] sm:$0xff]  ;;  %v9320_v34 = vld [vmem:[%s21310_s25 + $0x308] sm:$0xff]  ;;  %v85_v36 = vld [vmem:[%s21311_s27] sm:$0xff]  ;;  %v11090_v38 = vpack.c.bf16 %v9321_v30, %v9316_v29 }
  0x17   :  { %11047 = vmatprep.subr.bf16.mxu1 %v13773_v15  ;;  %11031 = vmatprep.subr.bf16.mxu0 %v13773_v15  ;;  %v9303_v35 = vld [vmem:[%s21311_s27 + $0x28] sm:$0xff]  ;;  %v9329_v40 = vld [vmem:[%s21310_s25 + $0x350] sm:$0xff]  ;;  %v11056_v41 = vpack.c.bf16 %v9318_v32, %v9313_v31  ;;  %v11092_v42 = vpack.c.bf16 %v9320_v34, %v9315_v33  ;;  %v9326_v43 = vld [vmem:[%s21310_s25 + $0x338] sm:$0xff] }
  0x18   :  { %v9324_v39 = vld [vmem:[%s21310_s25 + $0x328] sm:$0xff]  ;;  %v9331_v44 = vld [vmem:[%s21310_s25 + $0x360] sm:$0xff]  ;;  %v9325_v47 = vld [vmem:[%s21310_s25 + $0x330] sm:$0xff] }
  0x19   :  { %v9323_v45 = vld [vmem:[%s21310_s25 + $0x320] sm:$0xff]  ;;  %v9328_v46 = vld [vmem:[%s21310_s25 + $0x348] sm:$0xff]  ;;  %v9330_v48 = vld [vmem:[%s21310_s25 + $0x358] sm:$0xff]  ;;  %v11058_v51 = vpack.c.bf16 %v9329_v40, %v9324_v39  ;;  %v11094_v52 = vpack.c.bf16 %v9331_v44, %v9326_v43 }
  0x1a   :  { %11049 = vmatpush1.bf16.msra.mxu1 %v13789_v20  ;;  %11033 = vmatpush1.bf16.msra.mxu0 %v13789_v20  ;;  %v9304_v49 = vld [vmem:[%s21311_s27 + $0x30] sm:$0xff]  ;;  %v86_v50 = vld [vmem:[%s21311_s27 + $0x8] sm:$0xff]  ;;  %v9334_v53 = vld [vmem:[%s21310_s25 + $0x378] sm:$0xff]  ;;  %v11060_v55 = vpack.c.bf16 %v9328_v46, %v9323_v45  ;;  %v11096_v56 = vpack.c.bf16 %v9330_v48, %v9325_v47 }
  0x1b   :  { %11051 = vmatprep.subr.bf16.mxu1 %v13793_v21  ;;  %11035 = vmatprep.subr.bf16.mxu0 %v13793_v21  ;;  %v9339_v54 = vld [vmem:[%s21310_s25 + $0x3a0] sm:$0xff]  ;;  %v9336_v57 = vld [vmem:[%s21310_s25 + $0x388] sm:$0xff]  ;;  %v9341_v58 = vld [vmem:[%s21310_s25 + $0x3b0] sm:$0xff] }
  0x1c   :  { %v9333_v59 = vld [vmem:[%s21310_s25 + $0x370] sm:$0xff]  ;;  %v9338_v60 = vld [vmem:[%s21310_s25 + $0x398] sm:$0xff]  ;;  %v9335_v61 = vld [vmem:[%s21310_s25 + $0x380] sm:$0xff]  ;;  %v11062_v1 = vpack.c.bf16 %v9339_v54, %v9334_v53  ;;  %v11098_v2 = vpack.c.bf16 %v9341_v58, %v9336_v57 }
  0x1d   :  { %v9340_v62 = vld [vmem:[%s21310_s25 + $0x3a8] sm:$0xff]  ;;  %v9305_v63 = vld [vmem:[%s21311_s27 + $0x38] sm:$0xff]  ;;  %v87_v0 = vld [vmem:[%s21311_s27 + $0x10] sm:$0xff]  ;;  %v11064_v6 = vpack.c.bf16 %v9338_v60, %v9333_v59 }
  0x1e   :  { %11053 = vmatpush1.bf16.msra.mxu1 %v13803_v24  ;;  %11037 = vmatpush1.bf16.msra.mxu0 %v13803_v24  ;;  %v9344_v4 = vld [vmem:[%s21310_s25 + $0x3c8] sm:$0xff]  ;;  %v9349_v5 = vld [vmem:[%s21310_s25 + $0x3f0] sm:$0xff]  ;;  %v11100_v10 = vpack.c.bf16 %v9340_v62, %v9335_v61  ;;  %v9346_v11 = vld [vmem:[%s21310_s25 + $0x3d8] sm:$0xff] }
  0x1f   :  { %328 = vmatprep.subr.mxu1 %v13811_v25  ;;  %122 = vmatprep.subr.mxu0 %v13811_v25  ;;  %v9351_v12 = vld [vmem:[%s21310_s25 + $0x400] sm:$0xff]  ;;  %v9348_v16 = vld [vmem:[%s21310_s25 + $0x3e8] sm:$0xff]  ;;  %v9345_v17 = vld [vmem:[%s21310_s25 + $0x3d0] sm:$0xff]  ;;  %v11066_v27 = vpack.c.bf16 %v9349_v5, %v9344_v4 }
  0x20   :  { %v9343_v13 = vld [vmem:[%s21310_s25 + $0x3c0] sm:$0xff]  ;;  %v9350_v18 = vld [vmem:[%s21310_s25 + $0x3f8] sm:$0xff]  ;;  %v11102_v28 = vpack.c.bf16 %v9351_v12, %v9346_v11  ;;  %v9356_v30 = vld [vmem:[%s21310_s25 + $0x428] sm:$0xff] }
  0x21   :  { %v9306_v19 = vld [vmem:[%s21311_s27 + $0x40] sm:$0xff]  ;;  %v88_v22 = vld [vmem:[%s21311_s27 + $0x18] sm:$0xff]  ;;  %v9361_v31 = vld [vmem:[%s21310_s25 + $0x450] sm:$0xff]  ;;  %v11068_v34 = vpack.c.bf16 %v9348_v16, %v9343_v13 }
  0x22   :  { %329 = vmatpush1.msra.mxu1 %v13816_v26  ;;  %123 = vmatpush1.msra.mxu0 %v13816_v26  ;;  %v9354_v23 = vld [vmem:[%s21310_s25 + $0x418] sm:$0xff]  ;;  %v9359_v29 = vld [vmem:[%s21310_s25 + $0x440] sm:$0xff]  ;;  %v9307_v32 = vld [vmem:[%s21311_s27 + $0x48] sm:$0xf] }
  0x23   :  { %9308 = vmatmul.mubr.msk.f32.vlgmr.msra.gmra.mrb[0].mxu1 %vm90_vm0, %v9303_v35  ;;  %9298 = vmatmul.mubr.msk.f32.vlgmr.msra.gmra.mrb[0].mxu0 %vm90_vm0, %v85_v36  ;;  %v89_v33 = vld [vmem:[%s21311_s27 + $0x20] sm:$0xf]  ;;  %v11104_v35 = vpack.c.bf16 %v9350_v18, %v9345_v17  ;;  %v9353_v36 = vld [vmem:[%s21310_s25 + $0x410] sm:$0xff]  ;;  %v9360_v39 = vld [vmem:[%s21310_s25 + $0x448] sm:$0xff] }
  0x24   :  { %382 = vmatprep.mubr.f32.mxu1 %v21296_v7  ;;  %176 = vmatprep.mubr.f32.mxu0 %v21296_v7  ;;  %v9364_v40 = vld [vmem:[%s21310_s25 + $0x468] sm:$0xff] }
  0x25   :  { %11055 = vmatprep.subr.bf16.mxu0 %v11054_v37  ;;  %11091 = vmatprep.subr.bf16.mxu1 %v11090_v38  ;;  %v9358_v37 = vld [vmem:[%s21310_s25 + $0x438] sm:$0xff]  ;;  %v9355_v38 = vld [vmem:[%s21310_s25 + $0x420] sm:$0xff] }
  0x26   :  { %11057 = vmatpush1.bf16.msra.mxu0 %v11056_v41  ;;  %11093 = vmatpush1.bf16.msra.mxu1 %v11092_v42 }
  0x27   :  { %9309 = vmatmul.mubr.msk.f32.gmra.mrb[2].mxu1 %vm90_vm0, %v9304_v49  ;;  %9299 = vmatmul.mubr.msk.f32.gmra.mrb[2].mxu0 %vm90_vm0, %v86_v50 }
  0x28   :  { %388 = vmatprep.mubr.f32.mxu1 %v21296_v7  ;;  %182 = vmatprep.mubr.f32.mxu0 %v21296_v7 }
  0x29   :  { %11059 = vmatprep.subr.bf16.mxu0 %v11058_v51  ;;  %11095 = vmatprep.subr.bf16.mxu1 %v11094_v52 }
  0x2a   :  { %11061 = vmatpush1.bf16.msra.mxu0 %v11060_v55  ;;  %11097 = vmatpush1.bf16.msra.mxu1 %v11096_v56 }
  0x2b   :  { %9310 = vmatmul.mubr.msk.f32.gmra.mrb[4].mxu1 %vm90_vm0, %v9305_v63  ;;  %9300 = vmatmul.mubr.msk.f32.gmra.mrb[4].mxu0 %vm90_vm0, %v87_v0 }
  0x2c   :  { %394 = vmatprep.mubr.f32.mxu1 %v21296_v7  ;;  %188 = vmatprep.mubr.f32.mxu0 %v21296_v7 }
  0x2d   :  { %11063 = vmatprep.subr.bf16.mxu0 %v11062_v1  ;;  %11099 = vmatprep.subr.bf16.mxu1 %v11098_v2 }
  0x2e   :  { %11065 = vmatpush1.bf16.msra.mxu0 %v11064_v6  ;;  %11101 = vmatpush1.bf16.msra.mxu1 %v11100_v10 }
  0x2f   :  { %9311 = vmatmul.mubr.msk.f32.gmra.mrb[6].mxu1 %vm90_vm0, %v9306_v19  ;;  %9301 = vmatmul.mubr.msk.f32.gmra.mrb[6].mxu0 %vm90_vm0, %v88_v22 }
  0x30   :  { %28 = vsyncpa [#allocation4], 0  ;;  %400 = vmatprep.mubr.f32.mxu1 %v21296_v7  ;;  %194 = vmatprep.mubr.f32.mxu0 %v21296_v7  ;;  %v11070_v41 = vpack.c.bf16 %v9359_v29, %v9354_v23  ;;  %v11106_v42 = vpack.c.bf16 %v9361_v31, %v9356_v30  ;;  %v9369_v43 = vld [vmem:[%s21310_s25 + $0x490] sm:$0xff]  ;;  %v9366_v44 = vld [vmem:[%s21310_s25 + $0x478] sm:$0xff]  ;;  %v11072_v46 = vpack.c.bf16 %v9358_v37, %v9353_v36  ;;  %vm498_vm1 = vcmask 130048   ;;  %s21315_s1 = sld [smem:[#allocation13_spill]] }
  0x31   :  { %v9371_v45 = vld [vmem:[%s21310_s25 + $0x4a0] sm:$0xff]  ;;  %11067 = vmatprep.subr.bf16.mxu0 %v11066_v27  ;;  %11103 = vmatprep.subr.bf16.mxu1 %v11102_v28  ;;  %v11108_v47 = vpack.c.bf16 %v9360_v39, %v9355_v38  ;;  %v9368_v49 = vld [vmem:[%s21310_s25 + $0x488] sm:$0xff]  ;;  %v11074_v50 = vpack.c.bf16 %v9369_v43, %v9364_v40  ;;  %v9365_v52 = vld [vmem:[%s21310_s25 + $0x470] sm:$0xff]  ;;  %vm13609_vm2 = vmmov 0   ;;  %s21317_s6 = sld [smem:[#allocation14_spill]]  ;;  %s21318_s5 = sld [smem:[#allocation15_spill]] }
  0x32   :  { %11069 = vmatpush1.bf16.msra.mxu0 %v11068_v34  ;;  %11105 = vmatpush1.bf16.msra.mxu1 %v11104_v35  ;;  %v9363_v48 = vld [vmem:[%s21310_s25 + $0x460] sm:$0xff]  ;;  %v11110_v51 = vpack.c.bf16 %v9371_v45, %v9366_v44  ;;  %v9370_v53 = vld [vmem:[%s21310_s25 + $0x498] sm:$0xff]  ;;  %v9376_v56 = vld [vmem:[%s21310_s25 + $0x4c8] sm:$0xff] }
  0x33   :  { %9312 = vmatmul.mubr.msk.f32.gmra.mrb[8].mxu1 %vm90_vm0, %v9307_v32  ;;  %9302 = vmatmul.mubr.msk.f32.gmra.mrb[8].mxu0 %vm90_vm0, %v89_v33  ;;  %v9374_v54 = vld [vmem:[%s21310_s25 + $0x4b8] sm:$0xff]  ;;  %v9379_v55 = vld [vmem:[%s21310_s25 + $0x4e0] sm:$0xff]  ;;  %v9381_v57 = vld [vmem:[%s21310_s25 + $0x4f0] sm:$0xff]  ;;  %v11076_v58 = vpack.c.bf16 %v9368_v49, %v9363_v48  ;;  %v11112_v59 = vpack.c.bf16 %v9370_v53, %v9365_v52 }
  0x34   :  { %11071 = vmatprep.subr.bf16.mxu0 %v11070_v41  ;;  %11107 = vmatprep.subr.bf16.mxu1 %v11106_v42  ;;  %v9373_v60 = vld [vmem:[%s21310_s25 + $0x4b0] sm:$0xff]  ;;  %v9378_v61 = vld [vmem:[%s21310_s25 + $0x4d8] sm:$0xff]  ;;  %v11078_v62 = vpack.c.bf16 %v9379_v55, %v9374_v54  ;;  %v11114_v63 = vpack.c.bf16 %v9381_v57, %v9376_v56  ;;  %v9375_v0 = vld [vmem:[%s21310_s25 + $0x4c0] sm:$0xff]  ;;  %v21294_v42 = vmov 0.0|0.0  }
  0x35   :  { %v9380_v1 = vld [vmem:[%s21310_s25 + $0x4e8] sm:$0xff]  ;;  %v9389_v4 = vld [vmem:[%s21310_s25 + $0x530] sm:$0xff]  ;;  %v9386_v5 = vld [vmem:[%s21310_s25 + $0x518] sm:$0xff]  ;;  %v11080_v10 = vpack.c.bf16 %v9378_v61, %v9373_v60 }
  0x36   :  { %11073 = vmatpush1.bf16.msra.mxu0 %v11072_v46  ;;  %11109 = vmatpush1.bf16.msra.mxu1 %v11108_v47  ;;  %v9384_v2 = vld [vmem:[%s21310_s25 + $0x508] sm:$0xff]  ;;  %v9391_v6 = vld [vmem:[%s21310_s25 + $0x540] sm:$0xff]  ;;  %v11116_v11 = vpack.c.bf16 %v9380_v1, %v9375_v0  ;;  %v9385_v18 = vld [vmem:[%s21310_s25 + $0x510] sm:$0xff] }
  0x37   :  { %11075 = vmatprep.subr.bf16.mxu0 %v11074_v50  ;;  %11111 = vmatprep.subr.bf16.mxu1 %v11110_v51  ;;  %v9383_v12 = vld [vmem:[%s21310_s25 + $0x500] sm:$0xff]  ;;  %v9388_v13 = vld [vmem:[%s21310_s25 + $0x528] sm:$0xff]  ;;  %v11082_v16 = vpack.c.bf16 %v9389_v4, %v9384_v2  ;;  %v11118_v17 = vpack.c.bf16 %v9391_v6, %v9386_v5  ;;  %v9390_v19 = vld [vmem:[%s21310_s25 + $0x538] sm:$0xff] }
  0x38   :  { %v9394_v22 = vld [vmem:[%s21310_s25 + $0x558] sm:$0xff]  ;;  %v9399_v23 = vld [vmem:[%s21310_s25 + $0x580] sm:$0xff]  ;;  %v9396_v27 = vld [vmem:[%s21310_s25 + $0x568] sm:$0xff]  ;;  %v11084_v29 = vpack.c.bf16 %v9388_v13, %v9383_v12  ;;  %v11120_v30 = vpack.c.bf16 %v9390_v19, %v9385_v18 }
  0x39   :  { %v9401_v28 = vld [vmem:[%s21310_s25 + $0x590] sm:$0xff]  ;;  %v11086_v32 = vpack.c.bf16 %v9399_v23, %v9394_v22  ;;  %v9398_v34 = vld [vmem:[%s21310_s25 + $0x578] sm:$0xff]  ;;  %v9395_v35 = vld [vmem:[%s21310_s25 + $0x560] sm:$0xff] }
  0x3a   :  { %11077 = vmatpush1.bf16.msra.mxu0 %v11076_v58  ;;  %11113 = vmatpush1.bf16.msra.mxu1 %v11112_v59  ;;  %v9393_v31 = vld [vmem:[%s21310_s25 + $0x550] sm:$0xff]  ;;  %v11122_v33 = vpack.c.bf16 %v9401_v28, %v9396_v27  ;;  %v9400_v36 = vld [vmem:[%s21310_s25 + $0x588] sm:$0xff]  ;;  %v204_v39 = vld [vmem:[%s21310_s25 + $0x18] sm:$0xff] }
  0x3b   :  { %11079 = vmatprep.subr.bf16.mxu0 %v11078_v62  ;;  %11115 = vmatprep.subr.bf16.mxu1 %v11114_v63  ;;  %v11088_v37 = vpack.c.bf16 %v9398_v34, %v9393_v31  ;;  %v11124_v38 = vpack.c.bf16 %v9400_v36, %v9395_v35  ;;  %v209_v40 = vld [vmem:[%s21310_s25 + $0x40] sm:$0xff]  ;;  %v9317_v43 = vld [vmem:[%s21310_s25 + $0x2f0] sm:$0xff]  ;;  %v9322_v44 = vld [vmem:[%s21310_s25 + $0x318] sm:$0xff] }
  0x3c   :  { %v11189_v41 = vpack.c.bf16 %v209_v40, %v204_v39  ;;  %v203_v45 = vld [vmem:[%s21310_s25 + $0x10] sm:$0xff]  ;;  %v208_v46 = vld [vmem:[%s21310_s25 + $0x38] sm:$0xff]  ;;  %v214_v47 = vld [vmem:[%s21310_s25 + $0x68] sm:$0xff]  ;;  %v11127_v50 = vpack.c.bf16 %v9322_v44, %v9317_v43 }
  0x3d   :  { %v219_v48 = vld [vmem:[%s21310_s25 + $0x90] sm:$0xff]  ;;  %v11191_v51 = vpack.c.bf16 %v208_v46, %v203_v45  ;;  %v9327_v52 = vld [vmem:[%s21310_s25 + $0x340] sm:$0xff]  ;;  %v9332_v56 = vld [vmem:[%s21310_s25 + $0x368] sm:$0xff] }
  0x3e   :  { %11081 = vmatpush1.bf16.msra.mxu0 %v11080_v10  ;;  %11117 = vmatpush1.bf16.msra.mxu1 %v11116_v11  ;;  %v11193_v55 = vpack.c.bf16 %v219_v48, %v214_v47  ;;  %v213_v57 = vld [vmem:[%s21310_s25 + $0x60] sm:$0xff]  ;;  %v218_v58 = vld [vmem:[%s21310_s25 + $0x88] sm:$0xff]  ;;  %v224_v60 = vld [vmem:[%s21310_s25 + $0xb8] sm:$0xff]  ;;  %v11130_v63 = vpack.c.bf16 %v9332_v56, %v9327_v52 }
  0x3f   :  { %11083 = vmatprep.subr.bf16.mxu0 %v11082_v16  ;;  %11119 = vmatprep.subr.bf16.mxu1 %v11118_v17  ;;  %v229_v61 = vld [vmem:[%s21310_s25 + $0xe0] sm:$0xff]  ;;  %v11195_v0 = vpack.c.bf16 %v218_v58, %v213_v57  ;;  %v9337_v1 = vld [vmem:[%s21310_s25 + $0x390] sm:$0xff]  ;;  %v9342_v6 = vld [vmem:[%s21310_s25 + $0x3b8] sm:$0xff] }
  0x40   :  { %v11197_v5 = vpack.c.bf16 %v229_v61, %v224_v60  ;;  %v223_v10 = vld [vmem:[%s21310_s25 + $0xb0] sm:$0xff]  ;;  %v228_v11 = vld [vmem:[%s21310_s25 + $0xd8] sm:$0xff]  ;;  %v234_v13 = vld [vmem:[%s21310_s25 + $0x108] sm:$0xff]  ;;  %v11133_v18 = vpack.c.bf16 %v9342_v6, %v9337_v1 }
  0x41   :  { %v239_v16 = vld [vmem:[%s21310_s25 + $0x130] sm:$0xff]  ;;  %v11199_v19 = vpack.c.bf16 %v228_v11, %v223_v10  ;;  %v9347_v22 = vld [vmem:[%s21310_s25 + $0x3e0] sm:$0xff]  ;;  %v238_v31 = vld [vmem:[%s21310_s25 + $0x128] sm:$0xff] }
  0x42   :  { %11085 = vmatpush1.bf16.msra.mxu0 %v11084_v29  ;;  %11121 = vmatpush1.bf16.msra.mxu1 %v11120_v30  ;;  %v11201_v28 = vpack.c.bf16 %v239_v16, %v234_v13  ;;  %v9352_v29 = vld [vmem:[%s21310_s25 + $0x408] sm:$0xff]  ;;  %v233_v30 = vld [vmem:[%s21310_s25 + $0x100] sm:$0xff]  ;;  %v9362_v43 = vld [vmem:[%s21310_s25 + $0x458] sm:$0xff] }
  0x43   :  { %11087 = vmatprep.subr.bf16.mxu0 %v11086_v32  ;;  %11123 = vmatprep.subr.bf16.mxu1 %v11122_v33  ;;  %v244_v33 = vld [vmem:[%s21310_s25 + $0x158] sm:$0xff]  ;;  %v249_v34 = vld [vmem:[%s21310_s25 + $0x180] sm:$0xff]  ;;  %v11136_v36 = vpack.c.bf16 %v9352_v29, %v9347_v22  ;;  %v243_v44 = vld [vmem:[%s21310_s25 + $0x150] sm:$0xff] }
  0x44   :  { %v248_v45 = vld [vmem:[%s21310_s25 + $0x178] sm:$0xff]  ;;  %v254_v47 = vld [vmem:[%s21310_s25 + $0x1a8] sm:$0xff]  ;;  %v259_v48 = vld [vmem:[%s21310_s25 + $0x1d0] sm:$0xff] }
  0x45   :  { %v11207_v52 = vpack.c.bf16 %v248_v45, %v243_v44  ;;  %v9372_v58 = vld [vmem:[%s21310_s25 + $0x4a8] sm:$0xff]  ;;  %v253_v60 = vld [vmem:[%s21310_s25 + $0x1a0] sm:$0xff]  ;;  %v264_v1 = vld [vmem:[%s21310_s25 + $0x1f8] sm:$0xff] }
  0x46   :  { %11089 = vmatpush1.bf16.msra.mxu0 %v11088_v37  ;;  %11125 = vmatpush1.bf16.msra.mxu1 %v11124_v38  ;;  %v11203_v37 = vpack.c.bf16 %v238_v31, %v233_v30  ;;  %v9357_v38 = vld [vmem:[%s21310_s25 + $0x430] sm:$0xff]  ;;  %v258_v61 = vld [vmem:[%s21310_s25 + $0x1c8] sm:$0xff]  ;;  %v9382_v16 = vld [vmem:[%s21310_s25 + $0x4f8] sm:$0xff] }
  0x47   :  { %11126 = vmatprep.subr.bf16.mxu0 %v21294_v42  ;;  %11190 = vmatprep.subr.bf16.mxu1 %v11189_v41  ;;  %v11205_v41 = vpack.c.bf16 %v249_v34, %v244_v33  ;;  %v11211_v10 = vpack.c.bf16 %v258_v61, %v253_v60  ;;  %v9377_v11 = vld [vmem:[%s21310_s25 + $0x4d0] sm:$0xff]  ;;  %v9387_v30 = vld [vmem:[%s21310_s25 + $0x520] sm:$0xff]  ;;  %v9392_v33 = vld [vmem:[%s21310_s25 + $0x548] sm:$0xff] }
  0x48   :  { %v279_v22 = vld [vmem:[%s21310_s25 + $0x270] sm:$0xff]  ;;  %v273_v34 = vld [vmem:[%s21310_s25 + $0x240] sm:$0xff] }
  0x49   :  { %v9397_v44 = vld [vmem:[%s21310_s25 + $0x570] sm:$0xff] }
  0xf6   :  { %v14113_v49 = vpop.f32.mrb[0].mxu1  ;;  %v14118_v53 = vpop.f32.mrb[0].mxu0 }
  0xf7   :  { %v14120_v54 = vpop.f32.mrb[1].mxu1  ;;  %v14131_v59 = vpop.f32.mrb[1].mxu0 }
  0xf8   :  { %9403 = vmatprep.mubr.msk.f32.mxu0 %vm498_vm1, %v14120_v54  ;;  %9408 = vmatprep.mubr.msk.f32.mxu1 %vm498_vm1, %v14120_v54 }
  0xf9   :  { %579 = vmatmul.mubr.f32.vlgmr.msra.gmra.mrb[10].mxu0 %v14113_v49  ;;  %674 = vmatmul.mubr.f32.vlgmr.msra.gmra.mrb[10].mxu1 %v14113_v49 }
  0xfa   :  { %11128 = vmatpush1.bf16.msra.mxu0 %v11127_v50  ;;  %11192 = vmatpush1.bf16.msra.mxu1 %v11191_v51  ;;  %v14145_v62 = vpop.f32.mrb[2].mxu1  ;;  %v14150_v2 = vpop.f32.mrb[2].mxu0  ;;  %v11139_v51 = vpack.c.bf16 %v9362_v43, %v9357_v38  ;;  %v289_v38 = vld [vmem:[%s21310_s25 + $0x2c0] sm:$0xff] }
  0xfb   :  { %v14152_v4 = vpop.f32.mrb[3].mxu1  ;;  %11129 = vmatprep.subr.bf16.mxu0 %v21294_v42  ;;  %11194 = vmatprep.subr.bf16.mxu1 %v11193_v55  ;;  %v14164_v12 = vpop.f32.mrb[3].mxu0  ;;  %v9367_v55 = vld [vmem:[%s21310_s25 + $0x480] sm:$0xff] }
  0xfc   :  { %9404 = vmatprep.mubr.msk.f32.mxu0 %vm498_vm1, %v14152_v4  ;;  %9409 = vmatprep.mubr.msk.f32.mxu1 %vm498_vm1, %v14152_v4  ;;  %v11142_v6 = vpack.c.bf16 %v9372_v58, %v9367_v55  ;;  %v207_v55 = vld [vmem:[%s21310_s25 + $0x30] sm:$0xff] }
  0xfd   :  { %585 = vmatmul.mubr.f32.gmra.mrb[12].mxu0 %v14145_v62  ;;  %680 = vmatmul.mubr.f32.gmra.mrb[12].mxu1 %v14145_v62 }
  0xfe   :  { %11131 = vmatpush1.bf16.msra.mxu0 %v11130_v63  ;;  %11196 = vmatpush1.bf16.msra.mxu1 %v11195_v0  ;;  %v14178_v17 = vpop.f32.mrb[4].mxu1  ;;  %v14183_v23 = vpop.f32.mrb[4].mxu0  ;;  %v11209_v0 = vpack.c.bf16 %v259_v48, %v254_v47  ;;  %v9402_v47 = vld [vmem:[%s21310_s25 + $0x598] sm:$0xff]  ;;  %v283_v48 = vld [vmem:[%s21310_s25 + $0x290] sm:$0xff] }
  0xff   :  { %v14185_v27 = vpop.f32.mrb[5].mxu1  ;;  %11132 = vmatprep.subr.bf16.mxu0 %v21294_v42  ;;  %11198 = vmatprep.subr.bf16.mxu1 %v11197_v5  ;;  %v14197_v32 = vpop.f32.mrb[5].mxu0  ;;  %v269_v5 = vld [vmem:[%s21310_s25 + $0x220] sm:$0xff]  ;;  %v11151_v58 = vpack.c.bf16 %v9402_v47, %v9397_v44  ;;  %v231_v47 = vld [vmem:[%s21310_s25 + $0xf0] sm:$0xff] }
 0x100   :  { %9405 = vmatprep.mubr.msk.f32.mxu0 %vm498_vm1, %v14185_v27  ;;  %9410 = vmatprep.mubr.msk.f32.mxu1 %vm498_vm1, %v14185_v27  ;;  %v11213_v13 = vpack.c.bf16 %v269_v5, %v264_v1  ;;  %v206_v1 = vld [vmem:[%s21310_s25 + $0x28] sm:$0xff]  ;;  %v205_v5 = vld [vmem:[%s21310_s25 + $0x20] sm:$0xff] }
 0x101   :  { %591 = vmatmul.mubr.f32.gmra.mrb[14].mxu0 %v14178_v17  ;;  %686 = vmatmul.mubr.f32.gmra.mrb[14].mxu1 %v14178_v17 }
 0x102   :  { %11134 = vmatpush1.bf16.msra.mxu0 %v11133_v18  ;;  %11200 = vmatpush1.bf16.msra.mxu1 %v11199_v19  ;;  %v14211_v35 = vpop.f32.mrb[6].mxu1  ;;  %v14216_v39 = vpop.f32.mrb[6].mxu0  ;;  %v263_v18 = vld [vmem:[%s21310_s25 + $0x1f0] sm:$0xff]  ;;  %v268_v19 = vld [vmem:[%s21310_s25 + $0x218] sm:$0xff] }
 0x103   :  { %v14218_v40 = vpop.f32.mrb[7].mxu1  ;;  %11135 = vmatprep.subr.bf16.mxu0 %v21294_v42  ;;  %11202 = vmatprep.subr.bf16.mxu1 %v11201_v28  ;;  %v14230_v46 = vpop.f32.mrb[7].mxu0  ;;  %v11145_v28 = vpack.c.bf16 %v9382_v16, %v9377_v11  ;;  %v11215_v29 = vpack.c.bf16 %v268_v19, %v263_v18  ;;  %v217_v11 = vld [vmem:[%s21310_s25 + $0x80] sm:$0xff]  ;;  %v211_v19 = vld [vmem:[%s21310_s25 + $0x50] sm:$0xff] }
 0x104   :  { %9406 = vmatprep.mubr.msk.f32.mxu0 %vm498_vm1, %v14218_v40  ;;  %9411 = vmatprep.mubr.msk.f32.mxu1 %vm498_vm1, %v14218_v40 }
 0x105   :  { %597 = vmatmul.mubr.f32.gmra.mrb[16].mxu0 %v14211_v35  ;;  %692 = vmatmul.mubr.f32.gmra.mrb[16].mxu1 %v14211_v35 }
 0x106   :  { %11137 = vmatpush1.bf16.msra.mxu0 %v11136_v36  ;;  %11204 = vmatpush1.bf16.msra.mxu1 %v11203_v37  ;;  %v14244_v50 = vpop.f32.mrb[8].mxu1  ;;  %v14249_v56 = vpop.f32.mrb[8].mxu0  ;;  %v278_v36 = vld [vmem:[%s21310_s25 + $0x268] sm:$0xff]  ;;  %v284_v37 = vld [vmem:[%s21310_s25 + $0x298] sm:$0xff] }
 0x107   :  { %v14251_v57 = vpop.f32.mrb[9].mxu1  ;;  %11138 = vmatprep.subr.bf16.mxu0 %v21294_v42  ;;  %11206 = vmatprep.subr.bf16.mxu1 %v11205_v41  ;;  %v14263_v63 = vpop.f32.mrb[9].mxu0  ;;  %v11148_v41 = vpack.c.bf16 %v9392_v33, %v9387_v30  ;;  %v11219_v43 = vpack.c.bf16 %v278_v36, %v273_v34  ;;  %v11221_v45 = vpack.c.bf16 %v289_v38, %v284_v37  ;;  %v227_v30 = vld [vmem:[%s21310_s25 + $0xd0] sm:$0xff]  ;;  %v221_v36 = vld [vmem:[%s21310_s25 + $0xa0] sm:$0xff]  ;;  %v226_v37 = vld [vmem:[%s21310_s25 + $0xc8] sm:$0xff] }
 0x108   :  { %9407 = vmatprep.mubr.msk.f32.mxu0 %vm498_vm1, %v14251_v57  ;;  %9412 = vmatprep.mubr.msk.f32.mxu1 %vm498_vm1, %v14251_v57  ;;  %v232_v38 = vld [vmem:[%s21310_s25 + $0xf8] sm:$0xff] }
 0x109   :  { %603 = vmatmul.mubr.f32.gmra.mrb[18].mxu0 %v14244_v50  ;;  %698 = vmatmul.mubr.f32.gmra.mrb[18].mxu1 %v14244_v50 }
 0x10a   :  { %11140 = vmatpush1.bf16.msra.mxu0 %v11139_v51  ;;  %11208 = vmatpush1.bf16.msra.mxu1 %v11207_v52  ;;  %v288_v51 = vld [vmem:[%s21310_s25 + $0x2b8] sm:$0xff]  ;;  %v202_v52 = vld [vmem:[%s21310_s25 + $0x8] sm:$0xff] }
 0x10b   :  { %9413 = vmatprep.mubr.msk.f32.mxu0 %vm498_vm1, %v14120_v54  ;;  %11141 = vmatprep.subr.bf16.mxu0 %v21294_v42  ;;  %v274_v54 = vld [vmem:[%s21310_s25 + $0x248] sm:$0xff]  ;;  %v11223_v60 = vpack.c.bf16 %v288_v51, %v283_v48  ;;  %v11153_v61 = vpack.c.bf16 %v207_v55, %v202_v52  ;;  %v236_v48 = vld [vmem:[%s21310_s25 + $0x118] sm:$0xff]  ;;  %v247_v52 = vld [vmem:[%s21310_s25 + $0x170] sm:$0xff] }
 0x10c   :  { %11210 = vmatprep.subr.bf16.mxu1 %v11209_v0  ;;  %9423 = vmatprep.mubr.msk.f32.mxu1 %vm498_vm1, %v14131_v59  ;;  %v11217_v31 = vpack.c.bf16 %v279_v22, %v274_v54  ;;  %v201_v0 = vld [vmem:[%s21310_s25] sm:$0xff]  ;;  %v216_v54 = vld [vmem:[%s21310_s25 + $0x78] sm:$0xff]  ;;  %v215_v22 = vld [vmem:[%s21310_s25 + $0x70] sm:$0xff]  ;;  %v11167_v55 = vpack.c.bf16 %v236_v48, %v231_v47 }
 0x10d   :  { %v242_v51 = vld [vmem:[%s21310_s25 + $0x148] sm:$0xff] }
 0x10e   :  { %11143 = vmatpush1.bf16.msra.mxu0 %v11142_v6  ;;  %11212 = vmatpush1.bf16.msra.mxu1 %v11211_v10  ;;  %v210_v6 = vld [vmem:[%s21310_s25 + $0x48] sm:$0xff]  ;;  %v212_v10 = vld [vmem:[%s21310_s25 + $0x58] sm:$0xff] }
 0x10f   :  { %11144 = vmatprep.subr.bf16.mxu0 %v21294_v42  ;;  %11214 = vmatprep.subr.bf16.mxu1 %v11213_v13  ;;  %v11155_v13 = vpack.c.bf16 %v206_v1, %v201_v0  ;;  %v11226_v16 = vpack.c.bf16 %v210_v6, %v205_v5  ;;  %v11157_v18 = vpack.c.bf16 %v217_v11, %v212_v10  ;;  %v246_v0 = vld [vmem:[%s21310_s25 + $0x168] sm:$0xff]  ;;  %v252_v1 = vld [vmem:[%s21310_s25 + $0x198] sm:$0xff]  ;;  %v257_v5 = vld [vmem:[%s21310_s25 + $0x1c0] sm:$0xff] }
 0x110   :  { %v11173_v11 = vpack.c.bf16 %v257_v5, %v252_v1  ;;  %v9460_v1 = vld [vmem:[%s21310_s25 + $0x628] sm:$0xff]  ;;  %v9453_v5 = vld [vmem:[%s21310_s25 + $0x5f0] sm:$0xff] }
 0x112   :  { %11146 = vmatpush1.bf16.msra.mxu0 %v11145_v28  ;;  %11216 = vmatpush1.bf16.msra.mxu1 %v11215_v29  ;;  %v220_v28 = vld [vmem:[%s21310_s25 + $0x98] sm:$0xff]  ;;  %v222_v29 = vld [vmem:[%s21310_s25 + $0xa8] sm:$0xff] }
 0x113   :  { %11147 = vmatprep.subr.bf16.mxu0 %v21294_v42  ;;  %11218 = vmatprep.subr.bf16.mxu1 %v11217_v31  ;;  %v11159_v31 = vpack.c.bf16 %v216_v54, %v211_v19  ;;  %v11229_v33 = vpack.c.bf16 %v220_v28, %v215_v22  ;;  %v11161_v34 = vpack.c.bf16 %v227_v30, %v222_v29  ;;  %v267_v19 = vld [vmem:[%s21310_s25 + $0x210] sm:$0xff]  ;;  %v261_v29 = vld [vmem:[%s21310_s25 + $0x1e0] sm:$0xff]  ;;  %v266_v30 = vld [vmem:[%s21310_s25 + $0x208] sm:$0xff] }
 0x116   :  { %11149 = vmatpush1.bf16.msra.mxu0 %v11148_v41  ;;  %11220 = vmatpush1.bf16.msra.mxu1 %v11219_v43  ;;  %v237_v41 = vld [vmem:[%s21310_s25 + $0x120] sm:$0xff]  ;;  %v11163_v43 = vpack.c.bf16 %v226_v37, %v221_v36  ;;  %v11179_v36 = vpack.c.bf16 %v266_v30, %v261_v29  ;;  %v9468_v29 = vld [vmem:[%s21310_s25 + $0x668] sm:$0xff] }
 0x117   :  { %11150 = vmatprep.subr.bf16.mxu0 %v21294_v42  ;;  %11222 = vmatprep.subr.bf16.mxu1 %v11221_v45  ;;  %v11165_v45 = vpack.c.bf16 %v237_v41, %v232_v38  ;;  %v276_v38 = vld [vmem:[%s21310_s25 + $0x258] sm:$0xff]  ;;  %v275_v41 = vld [vmem:[%s21310_s25 + $0x250] sm:$0xff] }
 0x11a   :  { %11152 = vmatpush1.bf16.msra.mxu0 %v11151_v58  ;;  %11224 = vmatpush1.bf16.msra.mxu1 %v11223_v60  ;;  %v11169_v60 = vpack.c.bf16 %v247_v52, %v242_v51  ;;  %v285_v51 = vld [vmem:[%s21310_s25 + $0x2a0] sm:$0xff]  ;;  %v290_v52 = vld [vmem:[%s21310_s25 + $0x2c8] sm:$0xff] }
 0x11b   :  { %11154 = vmatprep.subr.bf16.mxu0 %v11153_v61  ;;  %11225 = vmatprep.subr.bf16.mxu1 %v21294_v42  ;;  %v241_v61 = vld [vmem:[%s21310_s25 + $0x140] sm:$0xff] }
 0x11c   :  { %v11171_v6 = vpack.c.bf16 %v246_v0, %v241_v61  ;;  %v9459_v61 = vld [vmem:[%s21310_s25 + $0x620] sm:$0xff] }
 0x11d   :  { %769 = vmatmul.mubr.f32.vlgmr.msra.gmra.mrb[20].mxu0 %v14113_v49  ;;  %969 = vmatmul.mubr.f32.vlgmr.msra.gmra.mrb[10].mxu1 %v14118_v53  ;;  %v225_v49 = vld [vmem:[%s21310_s25 + $0xc0] sm:$0xff] }
 0x11e   :  { %9414 = vmatprep.mubr.msk.f32.mxu0 %vm498_vm1, %v14152_v4  ;;  %11156 = vmatpush1.bf16.msra.mxu0 %v11155_v13  ;;  %v230_v4 = vld [vmem:[%s21310_s25 + $0xe8] sm:$0xff]  ;;  %v251_v13 = vld [vmem:[%s21310_s25 + $0x190] sm:$0xff] }
 0x11f   :  { %11227 = vmatpush1.bf16.msra.mxu1 %v11226_v16  ;;  %11158 = vmatprep.subr.bf16.mxu0 %v11157_v18  ;;  %v11232_v44 = vpack.c.bf16 %v230_v4, %v225_v49  ;;  %v256_v16 = vld [vmem:[%s21310_s25 + $0x1b8] sm:$0xff]  ;;  %v262_v18 = vld [vmem:[%s21310_s25 + $0x1e8] sm:$0xff]  ;;  %v271_v4 = vld [vmem:[%s21310_s25 + $0x230] sm:$0xff] }
 0x120   :  { %11228 = vmatprep.subr.bf16.mxu1 %v21294_v42  ;;  %9424 = vmatprep.mubr.msk.f32.mxu1 %vm498_vm1, %v14164_v12  ;;  %v11175_v54 = vpack.c.bf16 %v256_v16, %v251_v13  ;;  %v11177_v28 = vpack.c.bf16 %v267_v19, %v262_v18  ;;  %v9471_v13 = vld [vmem:[%s21310_s25 + $0x680] sm:$0xff]  ;;  %v9469_v18 = vld [vmem:[%s21310_s25 + $0x670] sm:$0xff] }
 0x121   :  { %774 = vmatmul.mubr.f32.gmra.mrb[22].mxu0 %v14145_v62  ;;  %975 = vmatmul.mubr.f32.gmra.mrb[12].mxu1 %v14150_v2  ;;  %v235_v62 = vld [vmem:[%s21310_s25 + $0x110] sm:$0xff] }
 0x122   :  { %9415 = vmatprep.mubr.msk.f32.mxu0 %vm498_vm1, %v14185_v27  ;;  %11160 = vmatpush1.bf16.msra.mxu0 %v11159_v31  ;;  %v240_v27 = vld [vmem:[%s21310_s25 + $0x138] sm:$0xff]  ;;  %v270_v31 = vld [vmem:[%s21310_s25 + $0x228] sm:$0xff]  ;;  %v9465_v19 = vld [vmem:[%s21310_s25 + $0x650] sm:$0xff] }
 0x123   :  { %11230 = vmatpush1.bf16.msra.mxu1 %v11229_v33  ;;  %11162 = vmatprep.subr.bf16.mxu0 %v11161_v34  ;;  %v11235_v58 = vpack.c.bf16 %v240_v27, %v235_v62  ;;  %v272_v33 = vld [vmem:[%s21310_s25 + $0x238] sm:$0xff]  ;;  %v277_v34 = vld [vmem:[%s21310_s25 + $0x260] sm:$0xff]  ;;  %v286_v27 = vld [vmem:[%s21310_s25 + $0x2a8] sm:$0xff] }
 0x124   :  { %11231 = vmatprep.subr.bf16.mxu1 %v21294_v42  ;;  %9425 = vmatprep.mubr.msk.f32.mxu1 %vm498_vm1, %v14197_v32  ;;  %v11181_v49 = vpack.c.bf16 %v277_v34, %v272_v33  ;;  %v281_v62 = vld [vmem:[%s21310_s25 + $0x280] sm:$0xff]  ;;  %v9474_v33 = vld [vmem:[%s21310_s25 + $0x698] sm:$0xff] }
 0x125   :  { %779 = vmatmul.mubr.f32.gmra.mrb[24].mxu0 %v14178_v17  ;;  %981 = vmatmul.mubr.f32.gmra.mrb[14].mxu1 %v14183_v23  ;;  %v245_v17 = vld [vmem:[%s21310_s25 + $0x160] sm:$0xff] }
 0x126   :  { %9416 = vmatprep.mubr.msk.f32.mxu0 %vm498_vm1, %v14218_v40  ;;  %11164 = vmatpush1.bf16.msra.mxu0 %v11163_v43  ;;  %v250_v40 = vld [vmem:[%s21310_s25 + $0x188] sm:$0xff] }
 0x127   :  { %11233 = vmatpush1.bf16.msra.mxu1 %v11232_v44  ;;  %11166 = vmatprep.subr.bf16.mxu0 %v11165_v45  ;;  %v11238_v10 = vpack.c.bf16 %v250_v40, %v245_v17  ;;  %v282_v43 = vld [vmem:[%s21310_s25 + $0x288] sm:$0xff]  ;;  %v287_v44 = vld [vmem:[%s21310_s25 + $0x2b0] sm:$0xff]  ;;  %v11183_v45 = vpack.c.bf16 %v276_v38, %v271_v4  ;;  %v9455_v40 = vld [vmem:[%s21310_s25 + $0x600] sm:$0xff] }
 0x128   :  { %11234 = vmatprep.subr.bf16.mxu1 %v21294_v42  ;;  %9426 = vmatprep.mubr.msk.f32.mxu1 %vm498_vm1, %v14230_v46  ;;  %v11185_v48 = vpack.c.bf16 %v287_v44, %v282_v43  ;;  %v9480_v4 = vld [vmem:[%s21310_s25 + $0x6c8] sm:$0xff]  ;;  %v9478_v43 = vld [vmem:[%s21310_s25 + $0x6b8] sm:$0xff] }
 0x129   :  { %784 = vmatmul.mubr.f32.gmra.mrb[26].mxu0 %v14211_v35  ;;  %987 = vmatmul.mubr.f32.gmra.mrb[16].mxu1 %v14216_v39  ;;  %v255_v35 = vld [vmem:[%s21310_s25 + $0x1b0] sm:$0xff] }
 0x12a   :  { %9417 = vmatprep.mubr.msk.f32.mxu0 %vm498_vm1, %v14251_v57  ;;  %11168 = vmatpush1.bf16.msra.mxu0 %v11167_v55  ;;  %v260_v57 = vld [vmem:[%s21310_s25 + $0x1d8] sm:$0xff]  ;;  %v11187_v55 = vpack.c.bf16 %v286_v27, %v281_v62  ;;  %v9484_v62 = vld [vmem:[%s21310_s25 + $0x6e8] sm:$0xff]  ;;  %v9489_v27 = vld [vmem:[%s21310_s25 + $0x710] sm:$0xff] }
 0x12b   :  { %11236 = vmatpush1.bf16.msra.mxu1 %v11235_v58  ;;  %11170 = vmatprep.subr.bf16.mxu0 %v11169_v60  ;;  %v11241_v22 = vpack.c.bf16 %v260_v57, %v255_v35  ;;  %v11250_v58 = vpack.c.bf16 %v290_v52, %v285_v51  ;;  %v9454_v60 = vld [vmem:[%s21310_s25 + $0x5f8] sm:$0xff]  ;;  %v9464_v57 = vld [vmem:[%s21310_s25 + $0x648] sm:$0xff]  ;;  %v9485_v51 = vld [vmem:[%s21310_s25 + $0x6f0] sm:$0xff]  ;;  %v11284_v52 = vpack.c.bf16 %v9489_v27, %v9484_v62 }
 0x12c   :  { %11237 = vmatprep.subr.bf16.mxu1 %v21294_v42  ;;  %9427 = vmatprep.mubr.msk.f32.mxu1 %vm498_vm1, %v14263_v63  ;;  %v11272_v17 = vpack.c.bf16 %v9459_v61, %v9454_v60  ;;  %v9509_v60 = vld [vmem:[%s21310_s25 + $0x7b0] sm:$0xff] }
 0x12d   :  { %789 = vmatmul.mubr.f32.gmra.mrb[28].mxu0 %v14244_v50  ;;  %993 = vmatmul.mubr.f32.gmra.mrb[18].mxu1 %v14249_v56  ;;  %v265_v50 = vld [vmem:[%s21310_s25 + $0x200] sm:$0xff]  ;;  %v9505_v61 = vld [vmem:[%s21310_s25 + $0x790] sm:$0xff] }
 0x12e   :  { %11172 = vmatpush1.bf16.msra.mxu0 %v11171_v6  ;;  %9418 = vmatprep.mubr.msk.f32.mxu0 %vm498_vm1, %v14131_v59  ;;  %v11244_v37 = vpack.c.bf16 %v270_v31, %v265_v50  ;;  %v11310_v6 = vpack.c.bf16 %v9460_v1, %v9455_v40  ;;  %v9476_v50 = vld [vmem:[%s21310_s25 + $0x6a8] sm:$0xff]  ;;  %v9481_v31 = vld [vmem:[%s21310_s25 + $0x6d0] sm:$0xff]  ;;  %v9503_v40 = vld [vmem:[%s21310_s25 + $0x780] sm:$0xff] }
 0x12f   :  { %11239 = vmatpush1.bf16.msra.mxu1 %v11238_v10  ;;  %11174 = vmatprep.subr.bf16.mxu0 %v11173_v11  ;;  %v9458_v10 = vld [vmem:[%s21310_s25 + $0x618] sm:$0xff]  ;;  %v9508_v1 = vld [vmem:[%s21310_s25 + $0x7a8] sm:$0xff] }
 0x130   :  { %11240 = vmatprep.subr.bf16.mxu1 %v21294_v42  ;;  %9428 = vmatprep.mubr.msk.f32.mxu1 %vm498_vm1, %v14131_v59  ;;  %v280_v59 = vld [vmem:[%s21310_s25 + $0x278] sm:$0xff]  ;;  %v11274_v16 = vpack.c.bf16 %v9458_v10, %v9453_v5  ;;  %v9516_v10 = vld [vmem:[%s21310_s25 + $0x7e8] sm:$0xff] }
 0x131   :  { %v11247_v47 = vpack.c.bf16 %v280_v59, %v275_v41  ;;  %v9466_v11 = vld [vmem:[%s21310_s25 + $0x658] sm:$0xff]  ;;  %v9473_v59 = vld [vmem:[%s21310_s25 + $0x690] sm:$0xff] }
 0x132   :  { %11176 = vmatpush1.bf16.msra.mxu0 %v11175_v54  ;;  %v11312_v35 = vpack.c.bf16 %v9471_v13, %v9466_v11  ;;  %v11276_v54 = vpack.c.bf16 %v9469_v18, %v9464_v57  ;;  %v11282_v44 = vpack.c.bf16 %v9478_v43, %v9473_v59  ;;  %v9521_v11 = vld [vmem:[%s21310_s25 + $0x810] sm:$0xff]  ;;  %v9515_v57 = vld [vmem:[%s21310_s25 + $0x7e0] sm:$0xff] }
 0x133   :  { %11242 = vmatpush1.bf16.msra.mxu1 %v11241_v22  ;;  %11178 = vmatprep.subr.bf16.mxu0 %v11177_v28  ;;  %v9470_v22 = vld [vmem:[%s21310_s25 + $0x678] sm:$0xff]  ;;  %v9463_v28 = vld [vmem:[%s21310_s25 + $0x640] sm:$0xff]  ;;  %v11332_v13 = vpack.c.bf16 %v9521_v11, %v9516_v10 }
 0x134   :  { %11243 = vmatprep.subr.bf16.mxu1 %v21294_v42  ;;  %v11314_v30 = vpack.c.bf16 %v9470_v22, %v9465_v19  ;;  %v11278_v34 = vpack.c.bf16 %v9468_v29, %v9463_v28  ;;  %v9520_v19 = vld [vmem:[%s21310_s25 + $0x808] sm:$0xff]  ;;  %v9518_v22 = vld [vmem:[%s21310_s25 + $0x7f8] sm:$0xff] }
 0x135   :  { %v11334_v28 = vpack.c.bf16 %v9520_v19, %v9515_v57  ;;  %v9487_v19 = vld [vmem:[%s21310_s25 + $0x700] sm:$0xff] }
 0x136   :  { %11180 = vmatpush1.bf16.msra.mxu0 %v11179_v36  ;;  %v11316_v36 = vpack.c.bf16 %v9481_v31, %v9476_v50  ;;  %v9531_v50 = vld [vmem:[%s21310_s25 + $0x860] sm:$0xff] }
 0x137   :  { %11245 = vmatpush1.bf16.msra.mxu1 %v11244_v37  ;;  %11182 = vmatprep.subr.bf16.mxu0 %v11181_v49  ;;  %v9479_v37 = vld [vmem:[%s21310_s25 + $0x6c0] sm:$0xff] }
 0x138   :  { %11246 = vmatprep.subr.bf16.mxu1 %v21294_v42  ;;  %v9475_v49 = vld [vmem:[%s21310_s25 + $0x6a0] sm:$0xff]  ;;  %v11280_v38 = vpack.c.bf16 %v9479_v37, %v9474_v33  ;;  %v9524_v33 = vld [vmem:[%s21310_s25 + $0x828] sm:$0xff] }
 0x139   :  { %v11318_v41 = vpack.c.bf16 %v9480_v4, %v9475_v49  ;;  %v9530_v49 = vld [vmem:[%s21310_s25 + $0x858] sm:$0xff]  ;;  %v9523_v4 = vld [vmem:[%s21310_s25 + $0x820] sm:$0xff] }
 0x13a   :  { %11184 = vmatpush1.bf16.msra.mxu0 %v11183_v45  ;;  %v9486_v45 = vld [vmem:[%s21310_s25 + $0x6f8] sm:$0xff] }
 0x13b   :  { %11248 = vmatpush1.bf16.msra.mxu1 %v11247_v47  ;;  %11186 = vmatprep.subr.bf16.mxu0 %v11185_v48  ;;  %v9491_v47 = vld [vmem:[%s21310_s25 + $0x720] sm:$0xff] }
 0x13c   :  { %11249 = vmatprep.subr.bf16.mxu1 %v21294_v42  ;;  %v11320_v48 = vpack.c.bf16 %v9491_v47, %v9486_v45 }
 0x13e   :  { %11188 = vmatpush1.bf16.msra.mxu0 %v11187_v55  ;;  %v9490_v55 = vld [vmem:[%s21310_s25 + $0x718] sm:$0xff] }
 0x13f   :  { %11251 = vmatpush1.bf16.msra.mxu1 %v11250_v58  ;;  %11253 = vmatprep.subr.bf16.mxu0 %v13737_v3  ;;  %v9433_v3 = vld [vmem:[%s21311_s27 + $0x50] sm:$0xff]  ;;  %v9483_v58 = vld [vmem:[%s21310_s25 + $0x6e0] sm:$0xff] }
 0x141   :  { %874 = vmatmul.mubr.f32.vlgmr.msra.gmra.mrb[10].mxu0 %v14118_v53 }
 0x142   :  { %1064 = vmatmul.mubr.f32.vlgmr.msra.gmra.mrb[20].mxu1 %v14118_v53  ;;  %9419 = vmatprep.mubr.msk.f32.mxu0 %vm498_vm1, %v14164_v12  ;;  %v9445_v53 = vld [vmem:[%s21310_s25 + $0x5b0] sm:$0xff] }
 0x143   :  { %9429 = vmatprep.mubr.msk.f32.mxu1 %vm498_vm1, %v14164_v12  ;;  %11255 = vmatpush1.bf16.msra.mxu0 %v13750_v8  ;;  %v9434_v8 = vld [vmem:[%s21311_s27 + $0x58] sm:$0xff] }
 0x144   :  { %11257 = vmatprep.subr.bf16.mxu0 %v13752_v9  ;;  %v9435_v9 = vld [vmem:[%s21311_s27 + $0x60] sm:$0xff] }
 0x145   :  { %880 = vmatmul.mubr.f32.gmra.mrb[12].mxu0 %v14150_v2 }
 0x146   :  { %1069 = vmatmul.mubr.f32.gmra.mrb[22].mxu1 %v14150_v2  ;;  %9420 = vmatprep.mubr.msk.f32.mxu0 %vm498_vm1, %v14197_v32  ;;  %v9450_v2 = vld [vmem:[%s21310_s25 + $0x5d8] sm:$0xff] }
 0x147   :  { %9430 = vmatprep.mubr.msk.f32.mxu1 %vm498_vm1, %v14197_v32  ;;  %11259 = vmatpush1.bf16.msra.mxu0 %v13769_v14  ;;  %v9436_v14 = vld [vmem:[%s21311_s27 + $0x68] sm:$0xff]  ;;  %v9443_v32 = vld [vmem:[%s21310_s25 + $0x5a0] sm:$0xff] }
 0x148   :  { %11261 = vmatprep.subr.bf16.mxu0 %v13773_v15  ;;  %v9437_v15 = vld [vmem:[%s21311_s27 + $0x70] sm:$0xf]  ;;  %s21321_s27 = sld [smem:[#allocation16_spill]] }
 0x149   :  { %886 = vmatmul.mubr.f32.gmra.mrb[14].mxu0 %v14183_v23 }
 0x14a   :  { %1074 = vmatmul.mubr.f32.gmra.mrb[24].mxu1 %v14183_v23  ;;  %9421 = vmatprep.mubr.msk.f32.mxu0 %vm498_vm1, %v14230_v46  ;;  %v11306_v23 = vpack.c.bf16 %v9450_v2, %v9445_v53  ;;  %v9500_v53 = vld [vmem:[%s21310_s25 + $0x768] sm:$0xff]  ;;  %v9493_v2 = vld [vmem:[%s21310_s25 + $0x730] sm:$0xff] }
 0x14b   :  { %9431 = vmatprep.mubr.msk.f32.mxu1 %vm498_vm1, %v14230_v46  ;;  %11263 = vmatpush1.bf16.msra.mxu0 %v13789_v20  ;;  %v9446_v20 = vld [vmem:[%s21310_s25 + $0x5b8] sm:$0xff]  ;;  %v9456_v46 = vld [vmem:[%s21310_s25 + $0x608] sm:$0xff] }
 0x14c   :  { %11265 = vmatprep.subr.bf16.mxu0 %v13793_v21  ;;  %v9451_v21 = vld [vmem:[%s21310_s25 + $0x5e0] sm:$0xff] }
 0x14d   :  { %892 = vmatmul.mubr.f32.gmra.mrb[16].mxu0 %v14216_v39 }
 0x14e   :  { %1079 = vmatmul.mubr.f32.gmra.mrb[26].mxu1 %v14216_v39  ;;  %9422 = vmatprep.mubr.msk.f32.mxu0 %vm498_vm1, %v14263_v63  ;;  %v9448_v39 = vld [vmem:[%s21310_s25 + $0x5c8] sm:$0xff] }
 0x14f   :  { %9432 = vmatprep.mubr.msk.f32.mxu1 %vm498_vm1, %v14263_v63  ;;  %11267 = vmatpush1.bf16.msra.mxu0 %v13803_v24  ;;  %v9444_v24 = vld [vmem:[%s21310_s25 + $0x5a8] sm:$0xff]  ;;  %v9461_v63 = vld [vmem:[%s21310_s25 + $0x630] sm:$0xff] }
 0x150   :  { %1126 = vmatprep.subr.mxu0 %v13811_v25  ;;  %v11304_v25 = vpack.c.bf16 %v9451_v21, %v9446_v20  ;;  %v11308_v0 = vpack.c.bf16 %v9461_v63, %v9456_v46  ;;  %v9494_v21 = vld [vmem:[%s21310_s25 + $0x738] sm:$0xff]  ;;  %v9511_v46 = vld [vmem:[%s21310_s25 + $0x7c0] sm:$0xff]  ;;  %v9504_v63 = vld [vmem:[%s21310_s25 + $0x788] sm:$0xff] }
 0x151   :  { %898 = vmatmul.mubr.f32.gmra.mrb[18].mxu0 %v14249_v56 }
 0x152   :  { %1084 = vmatmul.mubr.f32.gmra.mrb[28].mxu1 %v14249_v56  ;;  %1174 = vmatprep.mubr.f32.mxu0 %v21296_v7  ;;  %v11270_v56 = vpack.c.bf16 %v9448_v39, %v9443_v32  ;;  %v9506_v39 = vld [vmem:[%s21310_s25 + $0x798] sm:$0xff] }
 0x153   :  { %1127 = vmatpush1.msra.mxu0 %v13816_v26  ;;  %v9449_v26 = vld [vmem:[%s21310_s25 + $0x5d0] sm:$0xff]  ;;  %11305 = vmatprep.subr.bf16.mxu1 %v11304_v25  ;;  %v9495_v25 = vld [vmem:[%s21310_s25 + $0x740] sm:$0xff] }
 0x154   :  { %v11268_v12 = vpack.c.bf16 %v9449_v26, %v9444_v24  ;;  %11307 = vmatpush1.bf16.msra.mxu1 %v11306_v23  ;;  %v9499_v24 = vld [vmem:[%s21310_s25 + $0x760] sm:$0xff]  ;;  %v11326_v23 = vpack.c.bf16 %v9500_v53, %v9495_v25 }
 0x155   :  { %9438 = vmatmul.mubr.msk.f32.vlgmr.msra.gmra.mrb[30].mxu0 %vm90_vm0, %v9433_v3  ;;  %11309 = vmatprep.subr.bf16.mxu1 %v11308_v0  ;;  %v9488_v3 = vld [vmem:[%s21310_s25 + $0x708] sm:$0xff]  ;;  %v11288_v26 = vpack.c.bf16 %v9499_v24, %v9494_v21  ;;  %v11292_v0 = vpack.c.bf16 %v9509_v60, %v9504_v63  ;;  %v9457_v60 = vld [vmem:[%s21310_s25 + $0x610] sm:$0xff] }
 0x156   :  { %1180 = vmatprep.mubr.f32.mxu0 %v21296_v7  ;;  %11269 = vmatprep.subr.bf16.mxu0 %v11268_v12  ;;  %v9498_v12 = vld [vmem:[%s21310_s25 + $0x758] sm:$0xff] }
 0x157   :  { %11271 = vmatpush1.bf16.msra.mxu0 %v11270_v56  ;;  %v11290_v32 = vpack.c.bf16 %v9498_v12, %v9493_v2  ;;  %v11328_v56 = vpack.c.bf16 %v9511_v46, %v9506_v39  ;;  %v9447_v12 = vld [vmem:[%s21310_s25 + $0x5c0] sm:$0xff] }
 0x158   :  { %11273 = vmatprep.subr.bf16.mxu0 %v11272_v17  ;;  %11311 = vmatpush1.bf16.msra.mxu1 %v11310_v6  ;;  %v9510_v17 = vld [vmem:[%s21310_s25 + $0x7b8] sm:$0xff]  ;;  %v11294_v6 = vpack.c.bf16 %v9508_v1, %v9503_v40  ;;  %v9467_v1 = vld [vmem:[%s21310_s25 + $0x660] sm:$0xff] }
 0x159   :  { %9439 = vmatmul.mubr.msk.f32.gmra.mrb[32].mxu0 %vm90_vm0, %v9434_v8  ;;  %11313 = vmatprep.subr.bf16.mxu1 %v11312_v35  ;;  %v11322_v8 = vpack.c.bf16 %v9490_v55, %v9485_v51  ;;  %v11330_v5 = vpack.c.bf16 %v9510_v17, %v9505_v61  ;;  %v9519_v35 = vld [vmem:[%s21310_s25 + $0x800] sm:$0xff]  ;;  %v9462_v61 = vld [vmem:[%s21310_s25 + $0x638] sm:$0xff] }
 0x15a   :  { %1186 = vmatprep.mubr.f32.mxu0 %v21296_v7  ;;  %v11344_v17 = vpack.c.bf16 %v9462_v61, %v9457_v60 }
 0x15b   :  { %11275 = vmatpush1.bf16.msra.mxu0 %v11274_v16  ;;  %v9514_v16 = vld [vmem:[%s21310_s25 + $0x7d8] sm:$0xff] }
 0x15c   :  { %11277 = vmatprep.subr.bf16.mxu0 %v11276_v54  ;;  %11315 = vmatpush1.bf16.msra.mxu1 %v11314_v30  ;;  %v11296_v18 = vpack.c.bf16 %v9519_v35, %v9514_v16  ;;  %v9513_v54 = vld [vmem:[%s21310_s25 + $0x7d0] sm:$0xff]  ;;  %v9526_v30 = vld [vmem:[%s21310_s25 + $0x838] sm:$0xff] }
 0x15d   :  { %9440 = vmatmul.mubr.msk.f32.gmra.mrb[34].mxu0 %vm90_vm0, %v9435_v9  ;;  %11317 = vmatprep.subr.bf16.mxu1 %v11316_v36  ;;  %v11286_v9 = vpack.c.bf16 %v9488_v3, %v9483_v58  ;;  %v11298_v29 = vpack.c.bf16 %v9518_v22, %v9513_v54  ;;  %v11336_v31 = vpack.c.bf16 %v9531_v50, %v9526_v30  ;;  %v9525_v36 = vld [vmem:[%s21310_s25 + $0x830] sm:$0xff]  ;;  %v9482_v16 = vld [vmem:[%s21310_s25 + $0x6d8] sm:$0xff]  ;;  %v9492_v54 = vld [vmem:[%s21310_s25 + $0x728] sm:$0xff] }
 0x15e   :  { %1192 = vmatprep.mubr.f32.mxu0 %v21296_v7  ;;  %v9497_v30 = vld [vmem:[%s21310_s25 + $0x750] sm:$0xff]  ;;  %v9502_v50 = vld [vmem:[%s21310_s25 + $0x778] sm:$0xff] }
 0x15f   :  { %11279 = vmatpush1.bf16.msra.mxu0 %v11278_v34  ;;  %v9529_v34 = vld [vmem:[%s21310_s25 + $0x850] sm:$0xff] }
 0x160   :  { %11281 = vmatprep.subr.bf16.mxu0 %v11280_v38  ;;  %11319 = vmatpush1.bf16.msra.mxu1 %v11318_v41  ;;  %v11300_v37 = vpack.c.bf16 %v9529_v34, %v9524_v33  ;;  %v9528_v38 = vld [vmem:[%s21310_s25 + $0x848] sm:$0xff]  ;;  %v11338_v41 = vpack.c.bf16 %v9530_v49, %v9525_v36  ;;  %v9507_v33 = vld [vmem:[%s21310_s25 + $0x7a0] sm:$0xff]  ;;  %v9522_v49 = vld [vmem:[%s21310_s25 + $0x818] sm:$0xff] }
 0x161   :  { %9441 = vmatmul.mubr.msk.f32.gmra.mrb[36].mxu0 %vm90_vm0, %v9436_v14  ;;  %11321 = vmatprep.subr.bf16.mxu1 %v11320_v48  ;;  %v9496_v14 = vld [vmem:[%s21310_s25 + $0x748] sm:$0xff]  ;;  %v11302_v59 = vpack.c.bf16 %v9528_v38, %v9523_v4  ;;  %v9527_v38 = vld [vmem:[%s21310_s25 + $0x840] sm:$0xff] }
 0x162   :  { %1198 = vmatprep.mubr.f32.mxu0 %v21296_v7  ;;  %v9512_v34 = vld [vmem:[%s21310_s25 + $0x7c8] sm:$0xff] }
 0x163   :  { %11283 = vmatpush1.bf16.msra.mxu0 %v11282_v44  ;;  %v11359_v36 = vpack.c.bf16 %v9512_v34, %v9507_v33 }
 0x164   :  { %11285 = vmatprep.subr.bf16.mxu0 %v11284_v52  ;;  %11323 = vmatpush1.bf16.msra.mxu1 %v11322_v8 }
 0x165   :  { %9442 = vmatmul.mubr.msk.f32.gmra.mrb[38].mxu0 %vm90_vm0, %v9437_v15  ;;  %v9501_v15 = vld [vmem:[%s21310_s25 + $0x770] sm:$0xff] }
 0x166   :  { %v11324_v20 = vpack.c.bf16 %v9501_v15, %v9496_v14 }
 0x167   :  { %11287 = vmatpush1.bf16.msra.mxu0 %v11286_v9 }
 0x168   :  { %11325 = vmatprep.subr.bf16.mxu1 %v11324_v20  ;;  %11289 = vmatprep.subr.bf16.mxu0 %v11288_v26 }
 0x169   :  { %11327 = vmatpush1.bf16.msra.mxu1 %v11326_v23  ;;  %v9452_v23 = vld [vmem:[%s21310_s25 + $0x5e8] sm:$0xff] }
 0x16a   :  { %11329 = vmatprep.subr.bf16.mxu1 %v11328_v56  ;;  %v11341_v56 = vpack.c.bf16 %v9452_v23, %v9447_v12 }
 0x16b   :  { %11291 = vmatpush1.bf16.msra.mxu0 %v11290_v32 }
 0x16c   :  { %11293 = vmatprep.subr.bf16.mxu0 %v11292_v0 }
 0x16d   :  { %11331 = vmatpush1.bf16.msra.mxu1 %v11330_v5  ;;  %v9472_v5 = vld [vmem:[%s21310_s25 + $0x688] sm:$0xff] }
 0x16e   :  { %11333 = vmatprep.subr.bf16.mxu1 %v11332_v13  ;;  %v11347_v10 = vpack.c.bf16 %v9472_v5, %v9467_v1  ;;  %v9477_v13 = vld [vmem:[%s21310_s25 + $0x6b0] sm:$0xff] }
 0x16f   :  { %11295 = vmatpush1.bf16.msra.mxu0 %v11294_v6  ;;  %v11350_v57 = vpack.c.bf16 %v9482_v16, %v9477_v13 }
 0x170   :  { %11297 = vmatprep.subr.bf16.mxu0 %v11296_v18 }
 0x171   :  { %11335 = vmatpush1.bf16.msra.mxu1 %v11334_v28  ;;  %v11353_v28 = vpack.c.bf16 %v9492_v54, %v9487_v19 }
 0x172   :  { %11337 = vmatprep.subr.bf16.mxu1 %v11336_v31  ;;  %v11356_v31 = vpack.c.bf16 %v9502_v50, %v9497_v30 }
 0x173   :  { %11299 = vmatpush1.bf16.msra.mxu0 %v11298_v29 }
 0x174   :  { %11301 = vmatprep.subr.bf16.mxu0 %v11300_v37  ;;  %v9517_v37 = vld [vmem:[%s21310_s25 + $0x7f0] sm:$0xff] }
 0x175   :  { %11339 = vmatpush1.bf16.msra.mxu1 %v11338_v41  ;;  %v11362_v4 = vpack.c.bf16 %v9522_v49, %v9517_v37  ;;  %v9532_v41 = vld [vmem:[%s21310_s25 + $0x868] sm:$0xff] }
 0x176   :  { %11340 = vmatprep.subr.bf16.mxu1 %v21294_v42 }
 0x177   :  { %11303 = vmatpush1.bf16.msra.mxu0 %v11302_v59  ;;  %v11365_v59 = vpack.c.bf16 %v9532_v41, %v9527_v38 }
 0x1f0   :  { %v770_v43 = vpop.f32.mrb[20].mxu0 }
 0x1f1   :  { %v772_v44 = vpop.f32.mrb[21].mxu0 }
 0x1f4   :  { %v775_v45 = vpop.f32.mrb[22].mxu0 }
 0x1f5   :  { %v777_v47 = vpop.f32.mrb[23].mxu0 }
 0x1f8   :  { %v780_v48 = vpop.f32.mrb[24].mxu0 }
 0x1f9   :  { %v782_v62 = vpop.f32.mrb[25].mxu0 }
 0x1fc   :  { %v785_v27 = vpop.f32.mrb[26].mxu0 }
 0x1fd   :  { %v787_v51 = vpop.f32.mrb[27].mxu0 }
 0x200   :  { %v790_v52 = vpop.f32.mrb[28].mxu0 }
 0x201   :  { %v792_v55 = vpop.f32.mrb[29].mxu0 }
 0x215   :  { %v1065_v58 = vpop.f32.mrb[20].mxu1 }
 0x216   :  { %v14812_v3 = vadd.f32 %v1065_v58, %v770_v43  ;;  %v1067_v8 = vpop.f32.mrb[21].mxu1  ;;  %v1618_v43 = vlaneseq }
 0x218   :  { %v14918_v44 = vshrl.u32 %v1618_v43, 7 }
 0x219   :  { %v1070_v9 = vpop.f32.mrb[22].mxu1 }
 0x21a   :  { %v14814_v14 = vadd.f32 %v1070_v9, %v775_v45  ;;  %v1072_v15 = vpop.f32.mrb[23].mxu1  ;;  %21312 = vst [vmem:[#allocation6_spill] sm:$0xff] %v14918_v44  ;;  %v14921_v45 = vsub.s32 0, %v14918_v44  ;;  %v14924_v47 = vsub.s32 2, %v14918_v44  ;;  %v14932_v62 = vsub.s32 1, %v14918_v44 }
 0x21c   :  { %21313 = vst [vmem:[#allocation7_spill] sm:$0xff] %v14921_v45  ;;  %21314 = vst [vmem:[#allocation8_spill] sm:$0xff] %v14924_v47 }
 0x21d   :  { %v1075_v20 = vpop.f32.mrb[24].mxu1  ;;  %21316 = vst [vmem:[#allocation9_spill] sm:$0xff] %v14932_v62 }
 0x21e   :  { %v14816_v21 = vadd.f32 %v1075_v20, %v780_v48  ;;  %v1077_v24 = vpop.f32.mrb[25].mxu1  ;;  %v14929_v48 = vld [vmem:[%s21315_s1] sm:$0x1f] }
 0x21f   :  { %v14937_v51 = vrot.slane %v14929_v48, %v14921_v45  ;;  %v14945_v55 = vrot.slane %v14929_v48, %v14932_v62  ;;  %v2095_v62 = vld [vmem:[%s21318_s5 + $0x10] sm:$0xff] }
 0x221   :  { %v1080_v25 = vpop.f32.mrb[26].mxu1 }
 0x222   :  { %v14818_v26 = vadd.f32 %v1080_v25, %v785_v27  ;;  %v1082_v53 = vpop.f32.mrb[27].mxu1  ;;  %v21289_v27 = vsub.s32 3, %v14918_v44 }
 0x224   :  { %v14950_v58 = vrot.slane %v14929_v48, %v21289_v27  ;;  %v9819_v27 = vld [vmem:[%s21318_s5 + $0xd78] sm:$0xff] }
 0x225   :  { %v1085_v2 = vpop.f32.mrb[28].mxu1 }
 0x226   :  { %v14826_v32 = vadd.f32 %v1085_v2, %v790_v52  ;;  %v1087_v39 = vpop.f32.mrb[29].mxu1  ;;  %v14941_v52 = vrot.slane %v14929_v48, %v14924_v47 }
 0x228   :  { %v14828_v46 = vpop.f32.mrb[30].mxu0 }
 0x229   :  { %v1178_v63 = vpop.f32.mrb[31].mxu0 }
 0x22a   :  { %9533 = vmatprep.mubr.msk.f32.mxu0 %vm498_vm1, %v1178_v63  ;;  %9538 = vmatprep.mubr.msk.f32.mxu1 %vm498_vm1, %v1178_v63 }
 0x22b   :  { %1376 = vmatmul.mubr.f32.vlgmr.msra.gmra.mrb[10].mxu0 %v14828_v46  ;;  %1471 = vmatmul.mubr.f32.vlgmr.msra.gmra.mrb[10].mxu1 %v14828_v46 }
 0x22c   :  { %11342 = vmatpush1.bf16.msra.mxu1 %v11341_v56  ;;  %v14840_v0 = vpop.f32.mrb[32].mxu0 }
 0x22d   :  { %v14842_v40 = vpop.f32.mrb[33].mxu0  ;;  %11343 = vmatprep.subr.bf16.mxu1 %v21294_v42 }
 0x22e   :  { %9534 = vmatprep.mubr.msk.f32.mxu0 %vm498_vm1, %v14842_v40  ;;  %9539 = vmatprep.mubr.msk.f32.mxu1 %vm498_vm1, %v14842_v40 }
 0x22f   :  { %1382 = vmatmul.mubr.f32.gmra.mrb[12].mxu0 %v14840_v0  ;;  %1477 = vmatmul.mubr.f32.gmra.mrb[12].mxu1 %v14840_v0 }
 0x230   :  { %11345 = vmatpush1.bf16.msra.mxu1 %v11344_v17  ;;  %v1188_v6 = vpop.f32.mrb[34].mxu0 }
 0x231   :  { %v1190_v11 = vpop.f32.mrb[35].mxu0  ;;  %11346 = vmatprep.subr.bf16.mxu1 %v21294_v42 }
 0x232   :  { %9535 = vmatprep.mubr.msk.f32.mxu0 %vm498_vm1, %v1190_v11  ;;  %9540 = vmatprep.mubr.msk.f32.mxu1 %vm498_vm1, %v1190_v11 }
 0x233   :  { %1388 = vmatmul.mubr.f32.gmra.mrb[14].mxu0 %v1188_v6  ;;  %1483 = vmatmul.mubr.f32.gmra.mrb[14].mxu1 %v1188_v6 }
 0x234   :  { %11348 = vmatpush1.bf16.msra.mxu1 %v11347_v10  ;;  %v1194_v35 = vpop.f32.mrb[36].mxu0 }
 0x235   :  { %v1196_v18 = vpop.f32.mrb[37].mxu0  ;;  %11349 = vmatprep.subr.bf16.mxu1 %v21294_v42 }
 0x236   :  { %9536 = vmatprep.mubr.msk.f32.mxu0 %vm498_vm1, %v1196_v18  ;;  %9541 = vmatprep.mubr.msk.f32.mxu1 %vm498_vm1, %v1196_v18 }
 0x237   :  { %1394 = vmatmul.mubr.f32.gmra.mrb[16].mxu0 %v1194_v35  ;;  %1489 = vmatmul.mubr.f32.gmra.mrb[16].mxu1 %v1194_v35 }
 0x238   :  { %11351 = vmatpush1.bf16.msra.mxu1 %v11350_v57  ;;  %v1200_v22 = vpop.f32.mrb[38].mxu0 }
 0x239   :  { %v1202_v29 = vpop.f32.mrb[39].mxu0  ;;  %11352 = vmatprep.subr.bf16.mxu1 %v21294_v42 }
 0x23a   :  { %9537 = vmatprep.mubr.msk.f32.mxu0 %vm498_vm1, %v1202_v29  ;;  %9542 = vmatprep.mubr.msk.f32.mxu1 %vm498_vm1, %v1202_v29 }
 0x23b   :  { %1400 = vmatmul.mubr.f32.gmra.mrb[18].mxu0 %v1200_v22  ;;  %1495 = vmatmul.mubr.f32.gmra.mrb[18].mxu1 %v1200_v22 }
 0x23c   :  { %11354 = vmatpush1.bf16.msra.mxu1 %v11353_v28  ;;  %9543 = vmatprep.mubr.msk.f32.mxu1 %vm498_vm1, %v1178_v63 }
 0x23d   :  { %11355 = vmatprep.subr.bf16.mxu1 %v21294_v42  ;;  %1911 = vmatprep.mubr.f32.mxu0 %v21296_v7 }
 0x240   :  { %11357 = vmatpush1.bf16.msra.mxu1 %v11356_v31 }
 0x241   :  { %11358 = vmatprep.subr.bf16.mxu1 %v21294_v42 }
 0x244   :  { %11360 = vmatpush1.bf16.msra.mxu1 %v11359_v36 }
 0x245   :  { %11361 = vmatprep.subr.bf16.mxu1 %v21294_v42 }
 0x248   :  { %11363 = vmatpush1.bf16.msra.mxu1 %v11362_v4 }
 0x249   :  { %11364 = vmatprep.subr.bf16.mxu1 %v21294_v42 }
 0x24c   :  { %11366 = vmatpush1.bf16.msra.mxu1 %v11365_v59 }
 0x24d   :  { %11383 = vmatprep.subr.bf16.mxu1 %v21294_v42 }
 0x24f   :  { %1566 = vmatmul.mubr.f32.vlgmr.msra.gmra.mrb[30].mxu1 %v14828_v46 }
 0x250   :  { %9544 = vmatprep.mubr.msk.f32.mxu1 %vm498_vm1, %v14842_v40 }
 0x253   :  { %1571 = vmatmul.mubr.f32.gmra.mrb[32].mxu1 %v14840_v0 }
 0x254   :  { %9545 = vmatprep.mubr.msk.f32.mxu1 %vm498_vm1, %v1190_v11 }
 0x257   :  { %1576 = vmatmul.mubr.f32.gmra.mrb[34].mxu1 %v1188_v6 }
 0x258   :  { %9546 = vmatprep.mubr.msk.f32.mxu1 %vm498_vm1, %v1196_v18 }
 0x25b   :  { %1581 = vmatmul.mubr.f32.gmra.mrb[36].mxu1 %v1194_v35 }
 0x25c   :  { %9547 = vmatprep.mubr.msk.f32.mxu1 %vm498_vm1, %v1202_v29 }
 0x25f   :  { %1586 = vmatmul.mubr.f32.gmra.mrb[38].mxu1 %v1200_v22 }
 0x260   :  { %10873 = vmatprep.mubr.msk.f32.mxu1 %vm13609_vm2, %v21296_v7 }
 0x2fe   :  { %v1377_v8 = vpop.f32.mrb[10].mxu0  ;;  %v1472_v9 = vpop.f32.mrb[10].mxu1 }
 0x2ff   :  { %v14953_v15 = vadd.f32 %v14937_v51, %v1377_v8  ;;  %v14956_v20 = vadd.f32 %v14941_v52, %v1472_v9  ;;  %v1379_v24 = vpop.f32.mrb[11].mxu0  ;;  %v1474_v25 = vpop.f32.mrb[11].mxu1  ;;  %v21288_v9 = vsub.s32 4, %v14918_v44 }
 0x300   :  { %v14959_v53 = vadd.f32 %v14945_v55, %v1379_v24  ;;  %v14962_v2 = vadd.f32 %v14950_v58, %v1474_v25 }
 0x301   :  { %v1693_v12 = vmin.f32 %v14953_v15, 0.0  ;;  %v1695_v23 = vmin.f32 %v14956_v20, 0.0  ;;  %vm1668_vm3 = vcmp.gt.f32.partialorder %v14953_v15, 0.0  ;;  %vm1670_vm4 = vcmp.gt.f32.partialorder %v14956_v20, 0.0 }
 0x302   :  { %v1694_v39 = vmin.f32 %v14959_v53, 0.0  ;;  %v1696_v46 = vmin.f32 %v14962_v2, 0.0  ;;  %v1383_v56 = vpop.f32.mrb[12].mxu0  ;;  %v1478_v63 = vpop.f32.mrb[12].mxu1  ;;  %vm1669_vm7 = vcmp.gt.f32.partialorder %v14959_v53, 0.0  ;;  %vm1671_vm9 = vcmp.gt.f32.partialorder %v14962_v2, 0.0 }
 0x303   :  { %v1718_v60 = vmul.f32 1.442695, %v1693_v12  ;;  %v1722_v61 = vmul.f32 1.442695, %v1695_v23  ;;  %v14969_v0 = vadd.f32 %v14937_v51, %v1383_v56  ;;  %v14972_v17 = vadd.f32 %v14941_v52, %v1478_v63  ;;  %v1385_v40 = vpop.f32.mrb[13].mxu0  ;;  %v1480_v1 = vpop.f32.mrb[13].mxu1 }
 0x304   :  { %v1720_v5 = vmul.f32 1.442695, %v1694_v39  ;;  %v1724_v6 = vmul.f32 1.442695, %v1696_v46  ;;  %v14975_v10 = vadd.f32 %v14945_v55, %v1385_v40  ;;  %v14978_v11 = vadd.f32 %v14950_v58, %v1480_v1 }
 0x305   :  { %13468 = vpow2.f32 %v1718_v60  ;;  %v1698_v13 = vmin.f32 %v14969_v0, 0.0  ;;  %v1700_v16 = vmin.f32 %v14972_v17, 0.0  ;;  %vm1673_vm5 = vcmp.gt.f32.partialorder %v14969_v0, 0.0 }
 0x306   :  { %13470 = vpow2.f32 %v1722_v61  ;;  %v1699_v35 = vmin.f32 %v14975_v10, 0.0  ;;  %v1389_v57 = vpop.f32.mrb[14].mxu0  ;;  %v1484_v18 = vpop.f32.mrb[14].mxu1  ;;  %v1701_v54 = vmin.f32 %v14978_v11, 0.0  ;;  %vm1675_vm6 = vcmp.gt.f32.partialorder %v14972_v17, 0.0 }
 0x307   :  { %13472 = vpow2.f32 %v1720_v5  ;;  %v1728_v19 = vmul.f32 1.442695, %v1698_v13  ;;  %v1391_v22 = vpop.f32.mrb[15].mxu0  ;;  %v1486_v28 = vpop.f32.mrb[15].mxu1  ;;  %v1732_v29 = vmul.f32 1.442695, %v1700_v16  ;;  %v14985_v50 = vadd.f32 %v14937_v51, %v1389_v57 }
 0x308   :  { %13474 = vpow2.f32 %v1724_v6  ;;  %v1730_v30 = vmul.f32 1.442695, %v1699_v35  ;;  %v1734_v31 = vmul.f32 1.442695, %v1701_v54  ;;  %v14988_v33 = vadd.f32 %v14941_v52, %v1484_v18 }
 0x309   :  { %13476 = vpow2.f32 %v1728_v19  ;;  %v14991_v34 = vadd.f32 %v14945_v55, %v1391_v22  ;;  %v1703_v36 = vmin.f32 %v14985_v50, 0.0  ;;  %v14995_v37 = vadd.f32 %v14950_v58, %v1486_v28 }
 0x30a   :  { %13478 = vpow2.f32 %v1732_v29  ;;  %v1395_v49 = vpop.f32.mrb[16].mxu0  ;;  %v1490_v4 = vpop.f32.mrb[16].mxu1  ;;  %v1705_v38 = vmin.f32 %v14988_v33, 0.0  ;;  %v15018_v35 = vrot.slane %v14929_v48, %v21288_v9  ;;  %vm1674_vm8 = vcmp.gt.f32.partialorder %v14975_v10, 0.0 }
 0x30b   :  { %13480 = vpow2.f32 %v1730_v30  ;;  %v1397_v41 = vpop.f32.mrb[17].mxu0  ;;  %v1492_v59 = vpop.f32.mrb[17].mxu1  ;;  %v1738_v43 = vmul.f32 1.442695, %v1703_v36  ;;  %v1704_v8 = vmin.f32 %v14991_v34, 0.0  ;;  %v1706_v25 = vmin.f32 %v14995_v37, 0.0 }
 0x30c   :  { %13482 = vpow2.f32 %v1734_v31  ;;  %v1742_v24 = vmul.f32 1.442695, %v1705_v38  ;;  %v15002_v12 = vadd.f32 %v14937_v51, %v1395_v49  ;;  %v15005_v23 = vadd.f32 %v14941_v52, %v1490_v4 }
 0x30d   :  { %13484 = vpow2.f32 %v1738_v43  ;;  %v1740_v39 = vmul.f32 1.442695, %v1704_v8  ;;  %v15008_v46 = vadd.f32 %v14945_v55, %v1397_v41  ;;  %v1744_v61 = vmul.f32 1.442695, %v1706_v25 }
 0x30e   :  { %v1401_v56 = vpop.f32.mrb[18].mxu0  ;;  %v1496_v63 = vpop.f32.mrb[18].mxu1  ;;  %13486 = vpow2.f32 %v1742_v24  ;;  %v1708_v40 = vmin.f32 %v15002_v12, 0.0  ;;  %v1710_v13 = vmin.f32 %v15005_v23, 0.0  ;;  %v15013_v16 = vadd.f32 %v14950_v58, %v1492_v59 }
 0x30f   :  { %v13469_v60 = vpop.eup %13468  ;;  %v1403_v1 = vpop.f32.mrb[19].mxu0  ;;  %13488 = vpow2.f32 %v1740_v39  ;;  %v1709_v28 = vmin.f32 %v15008_v46, 0.0  ;;  %v15029_v41 = vadd.f32 %v14937_v51, %v1401_v56  ;;  %vm1676_vm10 = vcmp.gt.f32.partialorder %v14978_v11, 0.0 }
 0x310   :  { %v1498_v5 = vpop.f32.mrb[19].mxu1  ;;  %v13471_v6 = vpop.eup %13470  ;;  %v1748_v18 = vmul.f32 1.442695, %v1708_v40  ;;  %v9548_v54 = vadd.f32 -1.0, %v13469_v60  ;;  %13490 = vpow2.f32 %v1744_v61  ;;  %v1752_v22 = vmul.f32 1.442695, %v1710_v13 }
 0x311   :  { %v13473_v57 = vpop.eup %13472  ;;  %v9550_v30 = vadd.f32 -1.0, %v13471_v6  ;;  %v1750_v36 = vmul.f32 1.442695, %v1709_v28  ;;  %v1711_v49 = vmin.f32 %v15013_v16, 0.0  ;;  %v15032_v59 = vadd.f32 %v14945_v55, %v1403_v1 }
 0x312   :  { %v13475_v19 = vpop.eup %13474  ;;  %13492 = vpow2.f32 %v1748_v18  ;;  %v1793_v8 = vsel %vm1668_vm3, %v14953_v15, %v9548_v54  ;;  %v15054_v60 = vadd.f32 %v14941_v52, %v1496_v63  ;;  %v9549_v40 = vadd.f32 -1.0, %v13473_v57 }
 0x313   :  { %v13477_v29 = vpop.eup %13476  ;;  %13494 = vpow2.f32 %v1752_v22  ;;  %v1754_v25 = vmul.f32 1.442695, %v1711_v49  ;;  %v1795_v51 = vsel %vm1670_vm4, %v14956_v20, %v9550_v30  ;;  %v1714_v6 = vmin.f32 %v15032_v59, 0.0 }
 0x314   :  { %v13479_v48 = vpop.eup %13478  ;;  %v9553_v31 = vadd.f32 -1.0, %v13477_v29  ;;  %13496 = vpow2.f32 %v1750_v36  ;;  %vm1678_vm11 = vcmp.gt.f32.partialorder %v14985_v50, 0.0  ;;  %vm1680_vm12 = vcmp.gt.f32.partialorder %v14988_v33, 0.0 }
 0x315   :  { %v13481_v4 = vpop.eup %13480  ;;  %v9555_v38 = vadd.f32 -1.0, %v13479_v48  ;;  %13498 = vpow2.f32 %v1754_v25  ;;  %v15060_v13 = vadd.f32 %v14950_v58, %v1498_v5  ;;  %v9551_v54 = vadd.f32 -1.0, %v13475_v19 }
 0x316   :  { %v13483_v43 = vpop.eup %13482  ;;  %v1798_v24 = vsel %vm1673_vm5, %v14969_v0, %v9553_v31  ;;  %v1713_v0 = vmin.f32 %v15029_v41, 0.0  ;;  %v9554_v20 = vadd.f32 -1.0, %v13481_v4  ;;  %vm1683_vm13 = vcmp.gt.f32.partialorder %v15002_v12, 0.0 }
 0x317   :  { %v15044_v39 = vpack.c.bf16 %v1798_v24, %v1793_v8  ;;  %v1800_v55 = vsel %vm1675_vm6, %v14972_v17, %v9555_v38  ;;  %v13485_v15 = vpop.eup %13484  ;;  %v9556_v22 = vadd.f32 -1.0, %v13483_v43  ;;  %v1760_v52 = vmul.f32 1.442695, %v1714_v6 }
 0x318   :  { %v15050_v56 = vpack.c.bf16 %v1800_v55, %v1795_v51  ;;  %v13487_v61 = vpop.eup %13486  ;;  %v9558_v1 = vadd.f32 -1.0, %v13485_v15  ;;  %v1758_v17 = vmul.f32 1.442695, %v1713_v0  ;;  %vm1685_vm14 = vcmp.gt.f32.partialorder %v15005_v23, 0.0 }
 0x319   :  { %v13489_v18 = vpop.eup %13488  ;;  %v9560_v57 = vadd.f32 -1.0, %v13487_v61  ;;  %v1715_v28 = vmin.f32 %v15054_v60, 0.0  ;;  %v1716_v48 = vmin.f32 %v15060_v13, 0.0  ;;  %v1794_v58 = vsel %vm1669_vm7, %v14959_v53, %v9549_v40 }
 0x31a   :  { %v13491_v63 = vpop.eup %13490  ;;  %13500 = vpow2.f32 %v1758_v17  ;;  %v1803_v30 = vsel %vm1678_vm11, %v14985_v50, %v9558_v1  ;;  %v1799_v5 = vsel %vm1674_vm8, %v14975_v10, %v9554_v20  ;;  %v9559_v31 = vadd.f32 -1.0, %v13489_v18 }
 0x31b   :  { %13502 = vpow2.f32 %v1760_v52  ;;  %v15073_v49 = vpack.c.bf16 %v1799_v5, %v1794_v58  ;;  %v1764_v38 = vmul.f32 1.442695, %v1716_v48  ;;  %v1796_v50 = vsel %vm1671_vm9, %v14962_v2, %v9551_v54  ;;  %v15130_v48 = vld [vmem:[%s21317_s6] sm:$0xff] }
 0x31c   :  { %v13493_v29 = vpop.eup %13492  ;;  %v1801_v53 = vsel %vm1676_vm10, %v14978_v11, %v9556_v22  ;;  %v1805_v10 = vsel %vm1680_vm12, %v14988_v33, %v9560_v57  ;;  %v1762_v24 = vmul.f32 1.442695, %v1715_v28  ;;  %v9561_v51 = vadd.f32 -1.0, %v13491_v63 }
 0x31d   :  { %v13495_v19 = vpop.eup %13494  ;;  %v9563_v36 = vadd.f32 -1.0, %v13493_v29  ;;  %11368 = vmatprep.subr.bf16.mxu0 %v15073_v49  ;;  %v15088_v25 = vpack.c.bf16 %v1801_v53, %v1796_v50  ;;  %vm1679_vm15 = vcmp.gt.f32.partialorder %v14991_v34, 0.0  ;;  %vm1684_vm0 = vcmp.gt.f32.partialorder %v15008_v46, 0.0 }
 0x31e   :  { %v9565_v4 = vadd.f32 -1.0, %v13495_v19  ;;  %v13497_v43 = vpop.eup %13496  ;;  %11370 = vmatpush1.bf16.msra.mxu0 %v15044_v39  ;;  %13504 = vpow2.f32 %v1764_v38  ;;  %v1804_v20 = vsel %vm1679_vm15, %v14991_v34, %v9559_v31  ;;  %vm1681_vm1 = vcmp.gt.f32.partialorder %v14995_v37, 0.0 }
 0x31f   :  { %v1808_v8 = vsel %vm1683_vm13, %v15002_v12, %v9563_v36  ;;  %v9564_v55 = vadd.f32 -1.0, %v13497_v43  ;;  %v13499_v33 = vpop.eup %13498  ;;  %vm1686_vm3 = vcmp.gt.f32.partialorder %v15013_v16, 0.0  ;;  %13506 = vpow2.f32 %v1762_v24 }
 0x320   :  { %v15090_v2 = vpack.c.bf16 %v1808_v8, %v1803_v30  ;;  %v1810_v11 = vsel %vm1685_vm14, %v15005_v23, %v9565_v4  ;;  %v9566_v0 = vadd.f32 -1.0, %v13499_v33  ;;  %v1806_v17 = vsel %vm1681_vm1, %v14995_v37, %v9561_v51 }
 0x321   :  { %v15097_v15 = vpack.c.bf16 %v1810_v11, %v1805_v10  ;;  %v1809_v23 = vsel %vm1684_vm0, %v15008_v46, %v9564_v55  ;;  %vm1831_vm4 = vcmask 1043456   ;;  %vm1689_vm5 = vcmp.gt.f32.partialorder %v15032_v59, 0.0  ;;  %v15168_v55 = vld [vmem:[%s21317_s6 + $0x10] sm:$0x3] }
 0x322   :  { %v1567_v12 = vpop.f32.mrb[30].mxu1  ;;  %v15105_v1 = vpack.c.bf16 %v1809_v23, %v1804_v20  ;;  %v1811_v18 = vsel %vm1686_vm3, %v15013_v16, %v9566_v0  ;;  %vm1821_vm6 = vcmask 293888   ;;  %vm1688_vm7 = vcmp.gt.f32.partialorder %v15029_v41, 0.0 }
 0x323   :  { %v1595_v61 = vadd.f32 %v1567_v12, %v14812_v3  ;;  %v1569_v40 = vpop.f32.mrb[31].mxu1  ;;  %v15113_v54 = vpack.c.bf16 %v1811_v18, %v1806_v17  ;;  %vm1691_vm8 = vcmp.gt.f32.partialorder %v15060_v13, 0.0  ;;  %vm1690_vm9 = vcmp.gt.f32.partialorder %v15054_v60, 0.0 }
 0x324   :  { %v13501_v3 = vpop.eup %13500  ;;  %11372 = vmatprep.subr.bf16.mxu0 %v15105_v1  ;;  %vm2785_vm15 = vcmask 523264  }
 0x325   :  { %v15108_v6 = vadd.f32 %v15018_v35, %v1595_v61  ;;  %11374 = vmatpush1.bf16.msra.mxu0 %v15090_v2  ;;  %v13503_v63 = vpop.eup %13502  ;;  %v9568_v57 = vadd.f32 -1.0, %v13501_v3 }
 0x326   :  { %v1572_v34 = vpop.f32.mrb[32].mxu1  ;;  %v9569_v29 = vadd.f32 -1.0, %v13503_v63 }
 0x327   :  { %v1697_v46 = vmin.f32 %v15108_v6, 0.0  ;;  %v1600_v22 = vadd.f32 %v1572_v34, %v14814_v14  ;;  %v1574_v52 = vpop.f32.mrb[33].mxu1  ;;  %v15133_v19 = vsel %vm1688_vm7, %v15029_v41, %v9568_v57  ;;  %vm1672_vm10 = vcmp.gt.f32.partialorder %v15108_v6, 0.0 }
 0x328   :  { %v15124_v30 = vsel %vm1689_vm5, %v15032_v59, %v9569_v29  ;;  %v13505_v5 = vpop.eup %13504  ;;  %v9587_v52 = vld [vmem:[%s21317_s6 + $0x18] sm:$0xff] }
 0x329   :  { %v1726_v28 = vmul.f32 1.442695, %v1697_v46  ;;  %v15119_v37 = vadd.f32 %v15018_v35, %v1600_v22  ;;  %9573 = vmatprep.subr.msk.mxu0 %vm1831_vm4, %v15124_v30  ;;  %v13507_v41 = vpop.eup %13506  ;;  %v9571_v53 = vadd.f32 -1.0, %v13505_v5  ;;  %v9608_v5 = vld [vmem:[%s21318_s5 + $0x6e0] sm:$0xff] }
 0x32a   :  { %v1577_v16 = vpop.f32.mrb[34].mxu1  ;;  %9574 = vmatpush1.msk.msra.mxu0 %vm1831_vm4, %v15133_v19  ;;  %v9570_v8 = vadd.f32 -1.0, %v13507_v41  ;;  %v9614_v41 = vld [vmem:[%s21318_s5 + $0x710] sm:$0xff] }
 0x32b   :  { %13508 = vpow2.f32 %v1726_v28  ;;  %v1702_v14 = vmin.f32 %v15119_v37, 0.0  ;;  %v1579_v58 = vpop.f32.mrb[35].mxu1  ;;  %v1605_v31 = vadd.f32 %v1577_v16, %v14816_v21  ;;  %9575 = vmatmul.mubr.msk.f32.vlgmr.msra.gmra.mrb[40].mxu0 %vm1821_vm6, %v15130_v48  ;;  %11376 = vmatprep.subr.bf16.mxu0 %v15088_v25  ;;  %v15151_v21 = vld [vmem:[%s21317_s6 + $0x8] sm:$0xff]  ;;  %vm1677_vm11 = vcmp.gt.f32.partialorder %v15119_v37, 0.0  ;;  %v9588_v16 = vld [vmem:[%s21317_s6 + $0x20] sm:$0xff] }
 0x32c   :  { %11378 = vmatpush1.bf16.msra.mxu0 %v15050_v56  ;;  %1917 = vmatprep.mubr.f32.mxu0 %v21296_v7  ;;  %v15176_v40 = vsel %vm1690_vm9, %v15054_v60, %v9570_v8  ;;  %v9589_v58 = vld [vmem:[%s21317_s6 + $0x28] sm:$0x3]  ;;  %vm4847_vm9 = vcmask 146432  }
 0x32d   :  { %v1736_v36 = vmul.f32 1.442695, %v1702_v14  ;;  %v15144_v59 = vadd.f32 %v15018_v35, %v1605_v31  ;;  %11380 = vmatprep.subr.bf16.mxu0 %v15113_v54 }
 0x32e   :  { %v1582_v4 = vpop.f32.mrb[36].mxu1 }
 0x32f   :  { %13510 = vpow2.f32 %v1736_v36  ;;  %v1610_v38 = vadd.f32 %v1582_v4, %v14818_v26  ;;  %v1584_v50 = vpop.f32.mrb[37].mxu1  ;;  %v1707_v43 = vmin.f32 %v15144_v59, 0.0  ;;  %9576 = vmatmul.mubr.msk.f32.gmra.mrb[42].mxu0 %vm1821_vm6, %v15151_v21  ;;  %v15162_v26 = vsel %vm1691_vm8, %v15060_v13, %v9571_v53  ;;  %v9604_v36 = vld [vmem:[%s21318_s5 + $0x6c0] sm:$0xff]  ;;  %v9611_v4 = vld [vmem:[%s21318_s5 + $0x6f8] sm:$0xff]  ;;  %v9613_v53 = vld [vmem:[%s21318_s5 + $0x708] sm:$0xff] }
 0x330   :  { %11382 = vmatpush1.bf16.msra.mxu0 %v15097_v15  ;;  %1923 = vmatprep.mubr.f32.mxu0 %v21296_v7  ;;  %vm1682_vm12 = vcmp.gt.f32.partialorder %v15144_v59, 0.0  ;;  %v9610_v50 = vld [vmem:[%s21318_s5 + $0x6f0] sm:$0xff] }
 0x331   :  { %v1662_v10 = vadd.f32 %v15018_v35, %v1610_v38  ;;  %v1746_v24 = vmul.f32 1.442695, %v1707_v43  ;;  %9578 = vmatprep.subr.msk.mxu0 %vm1831_vm4, %v15162_v26  ;;  %v11415_v38 = vpack.c.bf16 %v9614_v41, %v9611_v4  ;;  %v9617_v43 = vld [vmem:[%s21318_s5 + $0x728] sm:$0xff]  ;;  %v11417_v8 = vpack.c.bf16 %v9613_v53, %v9610_v50  ;;  %v9652_v53 = vld [vmem:[%s21318_s5 + $0x840] sm:$0xff] }
 0x332   :  { %v1587_v51 = vpop.f32.mrb[38].mxu1  ;;  %v9649_v4 = vld [vmem:[%s21318_s5 + $0x828] sm:$0xff] }
 0x333   :  { %v1712_v11 = vmin.f32 %v1662_v10, 0.0  ;;  %v1615_v33 = vadd.f32 %v1587_v51, %v14826_v32  ;;  %v1589_v12 = vpop.f32.mrb[39].mxu1  ;;  %13512 = vpow2.f32 %v1746_v24  ;;  %9577 = vmatmul.mubr.msk.f32.gmra.mrb[44].mxu0 %vm1821_vm6, %v15168_v55  ;;  %vm1687_vm13 = vcmp.gt.f32.partialorder %v1662_v10, 0.0  ;;  %v9616_v51 = vld [vmem:[%s21318_s5 + $0x720] sm:$0xff]  ;;  %v9653_v41 = vld [vmem:[%s21318_s5 + $0x848] sm:$0xff] }
 0x334   :  { %9579 = vmatpush1.msk.msra.mxu0 %vm1831_vm4, %v15176_v40  ;;  %1994 = vmatprep.mubr.f32.mxu0 %v21296_v7 }
 0x335   :  { %v13509_v0 = vpop.eup %13508  ;;  %v1756_v61 = vmul.f32 1.442695, %v1712_v11  ;;  %v1667_v13 = vadd.f32 %v15018_v35, %v1615_v33  ;;  %11390 = vmatprep.subr.bf16.mxu0 %v15073_v49  ;;  %v9619_v11 = vld [vmem:[%s21318_s5 + $0x738] sm:$0xff]  ;;  %v9626_v33 = vld [vmem:[%s21318_s5 + $0x770] sm:$0xff] }
 0x336   :  { %v9552_v32 = vadd.f32 -1.0, %v13509_v0  ;;  %v11421_v12 = vpack.c.bf16 %v9619_v11, %v9616_v51  ;;  %v9658_v11 = vld [vmem:[%s21318_s5 + $0x870] sm:$0xff] }
 0x337   :  { %13514 = vpow2.f32 %v1756_v61  ;;  %v1717_v20 = vmin.f32 %v1667_v13, 0.0  ;;  %9580 = vmatmul.mubr.msk.f32.vlgmr.msra.gmra.mrb[46].mxu0 %vm1821_vm6, %v15130_v48  ;;  %vm1692_vm14 = vcmp.gt.f32.partialorder %v1667_v13, 0.0  ;;  %v9622_v61 = vld [vmem:[%s21318_s5 + $0x750] sm:$0xff] }
 0x338   :  { %11392 = vmatpush1.bf16.msra.mxu0 %v15044_v39  ;;  %2000 = vmatprep.mubr.f32.mxu0 %v21296_v7  ;;  %v1797_v35 = vsel %vm1672_vm10, %v15108_v6, %v9552_v32  ;;  %v9632_v32 = vld [vmem:[%s21318_s5 + $0x7a0] sm:$0xff] }
 0x339   :  { %v13511_v23 = vpop.eup %13510  ;;  %v1766_v17 = vmul.f32 1.442695, %v1717_v20  ;;  %11394 = vmatprep.subr.bf16.mxu0 %v15105_v1  ;;  %v9629_v20 = vld [vmem:[%s21318_s5 + $0x788] sm:$0xff] }
 0x33a   :  { %v9557_v18 = vadd.f32 -1.0, %v13511_v23 }
 0x33b   :  { %13516 = vpow2.f32 %v1766_v17  ;;  %9581 = vmatmul.mubr.msk.f32.gmra.mrb[48].mxu0 %vm1821_vm6, %v15151_v21  ;;  %v11427_v17 = vpack.c.bf16 %v9632_v32, %v9629_v20  ;;  %v9667_v20 = vld [vmem:[%s21318_s5 + $0x8b8] sm:$0xff] }
 0x33c   :  { %v1802_v60 = vsel %vm1677_vm11, %v15119_v37, %v9557_v18  ;;  %11396 = vmatpush1.bf16.msra.mxu0 %v15090_v2  ;;  %2006 = vmatprep.mubr.f32.mxu0 %v21296_v7  ;;  %v9628_v18 = vld [vmem:[%s21318_s5 + $0x780] sm:$0xff]  ;;  %v9671_v32 = vld [vmem:[%s21318_s5 + $0x8d8] sm:$0xff]  ;;  %vm5322_vm11 = vcmask 261120  }
 0x33d   :  { %v15193_v3 = vpack.c.bf16 %v1802_v60, %v1797_v35  ;;  %v13513_v34 = vpop.eup %13512  ;;  %9590 = vmatprep.subr.msk.mxu0 %vm1831_vm4, %v15124_v30  ;;  %v9631_v35 = vld [vmem:[%s21318_s5 + $0x798] sm:$0xff] }
 0x33e   :  { %v9562_v46 = vadd.f32 -1.0, %v13513_v34  ;;  %v9635_v60 = vld [vmem:[%s21318_s5 + $0x7b8] sm:$0xff]  ;;  %v9638_v34 = vld [vmem:[%s21318_s5 + $0x7d0] sm:$0xff] }
 0x33f   :  { %11385 = vmatpush3.bf16.msra.mxu1 %v15193_v3  ;;  %9582 = vmatmul.mubr.msk.f32.gmra.mrb[50].mxu0 %vm1821_vm6, %v15168_v55 }
 0x340   :  { %11386 = vmatprep.subr.bf16.mxu1 %v21294_v42  ;;  %9591 = vmatpush1.msk.msra.mxu0 %vm1831_vm4, %v15133_v19  ;;  %v1807_v63 = vsel %vm1682_vm12, %v15144_v59, %v9562_v46  ;;  %v9607_v59 = vld [vmem:[%s21318_s5 + $0x6d8] sm:$0xff]  ;;  %v11429_v46 = vpack.c.bf16 %v9631_v35, %v9628_v18  ;;  %v9670_v35 = vld [vmem:[%s21318_s5 + $0x8d0] sm:$0xff] }
 0x341   :  { %v13515_v6 = vpop.eup %13514  ;;  %2386 = vmatprep.mubr.f32.mxu0 %v21296_v7  ;;  %11405 = vmatprep.subr.bf16.mxu0 %v21294_v42 }
 0x342   :  { %v9567_v22 = vadd.f32 -1.0, %v13515_v6  ;;  %v11431_v6 = vpack.c.bf16 %v9638_v34, %v9635_v60  ;;  %v9673_v60 = vld [vmem:[%s21318_s5 + $0x8e8] sm:$0xff] }
 0x343   :  { %9592 = vmatmul.mubr.msk.f32.vlgmr.msra.gmra.mrb[52].mxu0 %vm1821_vm6, %v9587_v52  ;;  %v9677_v34 = vld [vmem:[%s21318_s5 + $0x908] sm:$0xff] }
 0x344   :  { %v1812_v57 = vsel %vm1687_vm13, %v1662_v10, %v9567_v22  ;;  %11407 = vmatpush3.bf16.msra.mxu0 %v15193_v3  ;;  %2392 = vmatprep.mubr.f32.mxu0 %v21296_v7  ;;  %v9620_v10 = vld [vmem:[%s21318_s5 + $0x740] sm:$0xff]  ;;  %v9634_v22 = vld [vmem:[%s21318_s5 + $0x7b0] sm:$0xff] }
 0x345   :  { %v13517_v28 = vpop.eup %13516  ;;  %v15214_v29 = vpack.c.bf16 %v1812_v57, %v1807_v63  ;;  %11408 = vmatprep.subr.bf16.mxu0 %v21294_v42  ;;  %v11419_v24 = vpack.c.bf16 %v9620_v10, %v9617_v43  ;;  %v9641_v63 = vld [vmem:[%s21318_s5 + $0x7e8] sm:$0xff]  ;;  %v9644_v57 = vld [vmem:[%s21318_s5 + $0x800] sm:$0xff]  ;;  %v9655_v43 = vld [vmem:[%s21318_s5 + $0x858] sm:$0xff] }
 0x346   :  { %v9572_v37 = vadd.f32 -1.0, %v13517_v28  ;;  %v9659_v10 = vld [vmem:[%s21318_s5 + $0x878] sm:$0xff] }
 0x347   :  { %11388 = vmatpush3.bf16.msra.mxu1 %v15214_v29  ;;  %9593 = vmatmul.mubr.msk.f32.gmra.mrb[54].mxu0 %vm1821_vm6, %v9588_v16 }
 0x348   :  { %10871 = vmatprep.subr.mxu1 %v21296_v7  ;;  %v15225_v14 = vsel %vm1692_vm14, %v1667_v13, %v9572_v37  ;;  %11410 = vmatpush3.bf16.msra.mxu0 %v15214_v29  ;;  %v9625_v13 = vld [vmem:[%s21318_s5 + $0x768] sm:$0xff]  ;;  %v11435_v37 = vpack.c.bf16 %v9644_v57, %v9641_v63  ;;  %v9679_v63 = vld [vmem:[%s21318_s5 + $0x918] sm:$0xff] }
 0x349   :  { %10890 = vmatprep.subr.mxu0 %v21296_v7  ;;  %2398 = vmatprep.mubr.f32.mxu0 %v21296_v7  ;;  %v11425_v23 = vpack.c.bf16 %v9625_v13, %v9622_v61  ;;  %v9664_v13 = vld [vmem:[%s21318_s5 + $0x8a0] sm:$0xff]  ;;  %v9683_v57 = vld [vmem:[%s21318_s5 + $0x938] sm:$0xff] }
 0x34b   :  { %10872 = vmatpush3.msk.msra.mxu1 %vm1831_vm4, %v15225_v14  ;;  %9594 = vmatmul.mubr.msk.f32.gmra.mrb[56].mxu0 %vm1821_vm6, %v9589_v58 }
 0x34c   :  { %10874 = vmatmul.mubr.msk.f32.vlgmr.msra.gmra.mrb[40].mxu1 %vm1821_vm6, %v15130_v48  ;;  %11398 = vmatprep.subr.bf16.mxu1 %v15088_v25  ;;  %v9605_v48 = vld [vmem:[%s21318_s5 + $0x6c8] sm:$0xff] }
 0x34d   :  { %10876 = vmatprep.mubr.msk.f32.mxu1 %vm13609_vm2, %v21296_v7  ;;  %11400 = vmatpush1.bf16.msra.mxu1 %v15050_v56  ;;  %v11411_v31 = vpack.c.bf16 %v9608_v5, %v9605_v48  ;;  %v9647_v48 = vld [vmem:[%s21318_s5 + $0x818] sm:$0xff]  ;;  %v9650_v5 = vld [vmem:[%s21318_s5 + $0x830] sm:$0xff] }
 0x34e   :  { %10891 = vmatpush3.msk.msra.mxu0 %vm1831_vm4, %v15225_v14  ;;  %11402 = vmatprep.subr.bf16.mxu1 %v15113_v54 }
 0x34f   :  { %10892 = vmatprep.mubr.msk.f32.mxu0 %vm13609_vm2, %v21296_v7 }
 0x350   :  { %10877 = vmatmul.mubr.msk.f32.gmra.mrb[42].mxu1 %vm1821_vm6, %v15151_v21  ;;  %10893 = vmatmul.mubr.msk.f32.vlgmr.msra.gmra.mrb[58].mxu0 %vm1821_vm6, %v9587_v52  ;;  %v11413_v21 = vpack.c.bf16 %v9607_v59, %v9604_v36  ;;  %v11439_v36 = vpack.c.bf16 %v9650_v5, %v9647_v48  ;;  %v9646_v59 = vld [vmem:[%s21318_s5 + $0x810] sm:$0xff]  ;;  %v9685_v48 = vld [vmem:[%s21318_s5 + $0x948] sm:$0xff] }
 0x351   :  { %10879 = vmatprep.mubr.msk.f32.mxu1 %vm13609_vm2, %v21296_v7  ;;  %11404 = vmatpush1.bf16.msra.mxu1 %v15097_v15 }
 0x352   :  { %9595 = vmatprep.subr.msk.mxu1 %vm1831_vm4, %v15162_v26  ;;  %10895 = vmatprep.mubr.msk.f32.mxu0 %vm13609_vm2, %v21296_v7 }
 0x354   :  { %10880 = vmatmul.mubr.msk.f32.gmra.mrb[44].mxu1 %vm1821_vm6, %v15168_v55  ;;  %10896 = vmatmul.mubr.msk.f32.gmra.mrb[60].mxu0 %vm1821_vm6, %v9588_v16  ;;  %v9623_v55 = vld [vmem:[%s21318_s5 + $0x758] sm:$0xff] }
 0x355   :  { %2469 = vmatprep.mubr.f32.mxu1 %v21296_v7  ;;  %9596 = vmatpush1.msk.msra.mxu1 %vm1831_vm4, %v15176_v40  ;;  %v11423_v0 = vpack.c.bf16 %v9626_v33, %v9623_v55  ;;  %v9661_v55 = vld [vmem:[%s21318_s5 + $0x888] sm:$0xff] }
 0x356   :  { %11412 = vmatprep.subr.bf16.mxu1 %v11411_v31  ;;  %10898 = vmatprep.mubr.msk.f32.mxu0 %vm13609_vm2, %v21296_v7  ;;  %v9665_v33 = vld [vmem:[%s21318_s5 + $0x8a8] sm:$0xff] }
 0x358   :  { %9597 = vmatmul.mubr.msk.f32.vlgmr.msra.gmra.mrb[46].mxu1 %vm1821_vm6, %v9587_v52  ;;  %10899 = vmatmul.mubr.msk.f32.gmra.mrb[62].mxu0 %vm1821_vm6, %v9589_v58  ;;  %v9637_v52 = vld [vmem:[%s21318_s5 + $0x7c8] sm:$0xff] }
 0x359   :  { %2475 = vmatprep.mubr.f32.mxu1 %v21296_v7  ;;  %11414 = vmatpush1.bf16.msra.mxu1 %v11413_v21  ;;  %v11433_v28 = vpack.c.bf16 %v9637_v52, %v9634_v22  ;;  %v9656_v21 = vld [vmem:[%s21318_s5 + $0x860] sm:$0xff] }
 0x35a   :  { %11416 = vmatprep.subr.bf16.mxu1 %v11415_v38  ;;  %v11441_v38 = vpack.c.bf16 %v9649_v4, %v9646_v59  ;;  %v11443_v50 = vpack.c.bf16 %v9656_v21, %v9653_v41  ;;  %v9676_v52 = vld [vmem:[%s21318_s5 + $0x900] sm:$0xff]  ;;  %v9689_v4 = vld [vmem:[%s21318_s5 + $0x968] sm:$0xff]  ;;  %v9702_v21 = vld [vmem:[%s21318_s5 + $0x9d0] sm:$0xff] }
 0x35b   :  { %v9692_v41 = vld [vmem:[%s21318_s5 + $0x980] sm:$0xff] }
 0x35c   :  { %9598 = vmatmul.mubr.msk.f32.gmra.mrb[48].mxu1 %vm1821_vm6, %v9588_v16  ;;  %v9640_v16 = vld [vmem:[%s21318_s5 + $0x7e0] sm:$0xff] }
 0x35d   :  { %2481 = vmatprep.mubr.f32.mxu1 %v21296_v7  ;;  %11418 = vmatpush1.bf16.msra.mxu1 %v11417_v8  ;;  %v9662_v8 = vld [vmem:[%s21318_s5 + $0x890] sm:$0xff] }
 0x35e   :  { %11420 = vmatprep.subr.bf16.mxu1 %v11419_v24  ;;  %v11445_v24 = vpack.c.bf16 %v9655_v43, %v9652_v53  ;;  %v11447_v51 = vpack.c.bf16 %v9662_v8, %v9659_v10  ;;  %v9688_v53 = vld [vmem:[%s21318_s5 + $0x960] sm:$0xff]  ;;  %v9691_v43 = vld [vmem:[%s21318_s5 + $0x978] sm:$0xff] }
 0x35f   :  { %v11469_v8 = vpack.c.bf16 %v9691_v43, %v9688_v53  ;;  %v9735_v53 = vld [vmem:[%s21318_s5 + $0xad8] sm:$0xff] }
 0x360   :  { %9599 = vmatmul.mubr.msk.f32.gmra.mrb[50].mxu1 %vm1821_vm6, %v9589_v58  ;;  %v9643_v58 = vld [vmem:[%s21318_s5 + $0x7f8] sm:$0xff] }
 0x361   :  { %11422 = vmatpush1.bf16.msra.mxu1 %v11421_v12  ;;  %v11437_v31 = vpack.c.bf16 %v9643_v58, %v9640_v16  ;;  %v9668_v12 = vld [vmem:[%s21318_s5 + $0x8c0] sm:$0xff]  ;;  %v9682_v58 = vld [vmem:[%s21318_s5 + $0x930] sm:$0xff] }
 0x362   :  { %11424 = vmatprep.subr.bf16.mxu1 %v11423_v0  ;;  %v11449_v0 = vpack.c.bf16 %v9661_v55, %v9658_v11  ;;  %v11451_v61 = vpack.c.bf16 %v9668_v12, %v9665_v33  ;;  %v11465_v5 = vpack.c.bf16 %v9685_v48, %v9682_v58  ;;  %v9695_v55 = vld [vmem:[%s21318_s5 + $0x998] sm:$0xff]  ;;  %v9698_v33 = vld [vmem:[%s21318_s5 + $0x9b0] sm:$0xff]  ;;  %v9708_v12 = vld [vmem:[%s21318_s5 + $0xa00] sm:$0xff] }
 0x363   :  { %v9774_v48 = vld [vmem:[%s21318_s5 + $0xc10] sm:$0xff] }
 0x365   :  { %11426 = vmatpush1.bf16.msra.mxu1 %v11425_v23  ;;  %v9674_v23 = vld [vmem:[%s21318_s5 + $0x8f0] sm:$0xff] }
 0x366   :  { %11428 = vmatprep.subr.bf16.mxu1 %v11427_v17  ;;  %v11453_v17 = vpack.c.bf16 %v9667_v20, %v9664_v13  ;;  %v11455_v18 = vpack.c.bf16 %v9674_v23, %v9671_v32  ;;  %v9694_v13 = vld [vmem:[%s21318_s5 + $0x990] sm:$0xff]  ;;  %v9697_v20 = vld [vmem:[%s21318_s5 + $0x9a8] sm:$0xff] }
 0x367   :  { %v11473_v23 = vpack.c.bf16 %v9697_v20, %v9694_v13  ;;  %v9747_v13 = vld [vmem:[%s21318_s5 + $0xb38] sm:$0xff] }
 0x369   :  { %11430 = vmatpush1.bf16.msra.mxu1 %v11429_v46  ;;  %v9680_v46 = vld [vmem:[%s21318_s5 + $0x920] sm:$0xff] }
 0x36a   :  { %11432 = vmatprep.subr.bf16.mxu1 %v11431_v6  ;;  %v11457_v6 = vpack.c.bf16 %v9673_v60, %v9670_v35  ;;  %v11459_v22 = vpack.c.bf16 %v9680_v46, %v9677_v34  ;;  %v9701_v60 = vld [vmem:[%s21318_s5 + $0x9c8] sm:$0xff]  ;;  %v9704_v34 = vld [vmem:[%s21318_s5 + $0x9e0] sm:$0xff]  ;;  %v9714_v46 = vld [vmem:[%s21318_s5 + $0xa30] sm:$0xff] }
 0x36d   :  { %11434 = vmatpush1.bf16.msra.mxu1 %v11433_v28  ;;  %v9686_v28 = vld [vmem:[%s21318_s5 + $0x950] sm:$0xff] }
 0x36e   :  { %11436 = vmatprep.subr.bf16.mxu1 %v11435_v37  ;;  %v11461_v37 = vpack.c.bf16 %v9679_v63, %v9676_v52  ;;  %v11463_v16 = vpack.c.bf16 %v9686_v28, %v9683_v57  ;;  %v9768_v63 = vld [vmem:[%s21318_s5 + $0xbe0] sm:$0xff]  ;;  %v9771_v57 = vld [vmem:[%s21318_s5 + $0xbf8] sm:$0xff] }
 0x36f   :  { %v11599_v28 = vpack.c.bf16 %v9771_v57, %v9768_v63  ;;  %v9700_v57 = vld [vmem:[%s21318_s5 + $0x9c0] sm:$0xff] }
 0x371   :  { %11438 = vmatpush1.bf16.msra.mxu1 %v11437_v31  ;;  %v9750_v31 = vld [vmem:[%s21318_s5 + $0xb50] sm:$0xff] }
 0x372   :  { %11440 = vmatprep.subr.bf16.mxu1 %v11439_v36  ;;  %v9753_v36 = vld [vmem:[%s21318_s5 + $0xb68] sm:$0xff] }
 0x373   :  { %v11587_v59 = vpack.c.bf16 %v9753_v36, %v9750_v31  ;;  %v9726_v36 = vld [vmem:[%s21318_s5 + $0xa90] sm:$0xff] }
 0x375   :  { %11442 = vmatpush1.bf16.msra.mxu1 %v11441_v38  ;;  %11588 = vmatprep.subr.bf16.mxu0 %v11587_v59  ;;  %v11467_v38 = vpack.c.bf16 %v9692_v41, %v9689_v4  ;;  %v9729_v59 = vld [vmem:[%s21318_s5 + $0xaa8] sm:$0xff]  ;;  %v9780_v41 = vld [vmem:[%s21318_s5 + $0xc40] sm:$0xff] }
 0x376   :  { %11444 = vmatprep.subr.bf16.mxu1 %v11443_v50  ;;  %v9705_v50 = vld [vmem:[%s21318_s5 + $0x9e8] sm:$0xff]  ;;  %v11605_v4 = vpack.c.bf16 %v9729_v59, %v9726_v36  ;;  %v9706_v36 = vld [vmem:[%s21318_s5 + $0x9f0] sm:$0xff] }
 0x377   :  { %v11589_v10 = vpack.c.bf16 %v9705_v50, %v9702_v21  ;;  %v9783_v21 = vld [vmem:[%s21318_s5 + $0xc58] sm:$0xff]  ;;  %v9732_v50 = vld [vmem:[%s21318_s5 + $0xac0] sm:$0xff]  ;;  %v9709_v59 = vld [vmem:[%s21318_s5 + $0xa08] sm:$0xff] }
 0x378   :  { %v11609_v43 = vpack.c.bf16 %v9735_v53, %v9732_v50  ;;  %v9712_v53 = vld [vmem:[%s21318_s5 + $0xa20] sm:$0xff] }
 0x379   :  { %11446 = vmatpush1.bf16.msra.mxu1 %v11445_v24  ;;  %11590 = vmatpush3.bf16.msra.mxu0 %v11589_v10  ;;  %v9756_v24 = vld [vmem:[%s21318_s5 + $0xb80] sm:$0xff]  ;;  %v9786_v10 = vld [vmem:[%s21318_s5 + $0xc70] sm:$0xff] }
 0x37a   :  { %11448 = vmatprep.subr.bf16.mxu1 %v11447_v51  ;;  %v9759_v51 = vld [vmem:[%s21318_s5 + $0xb98] sm:$0xff] }
 0x37b   :  { %v11591_v11 = vpack.c.bf16 %v9759_v51, %v9756_v24  ;;  %v9738_v51 = vld [vmem:[%s21318_s5 + $0xaf0] sm:$0xff] }
 0x37d   :  { %11450 = vmatpush1.bf16.msra.mxu1 %v11449_v0  ;;  %11592 = vmatprep.subr.bf16.mxu0 %v11591_v11  ;;  %v11471_v0 = vpack.c.bf16 %v9698_v33, %v9695_v55  ;;  %v9741_v11 = vld [vmem:[%s21318_s5 + $0xb08] sm:$0xff]  ;;  %v9792_v33 = vld [vmem:[%s21318_s5 + $0xca0] sm:$0xff] }
 0x37e   :  { %11452 = vmatprep.subr.bf16.mxu1 %v11451_v61  ;;  %v9711_v61 = vld [vmem:[%s21318_s5 + $0xa18] sm:$0xff]  ;;  %v11613_v55 = vpack.c.bf16 %v9741_v11, %v9738_v51  ;;  %v9722_v51 = vld [vmem:[%s21318_s5 + $0xa70] sm:$0xff] }
 0x37f   :  { %v11593_v32 = vpack.c.bf16 %v9711_v61, %v9708_v12  ;;  %v9795_v12 = vld [vmem:[%s21318_s5 + $0xcb8] sm:$0xff]  ;;  %v9744_v61 = vld [vmem:[%s21318_s5 + $0xb20] sm:$0xff] }
 0x380   :  { %v11617_v20 = vpack.c.bf16 %v9747_v13, %v9744_v61  ;;  %v9725_v13 = vld [vmem:[%s21318_s5 + $0xa88] sm:$0xff] }
 0x381   :  { %11454 = vmatpush1.bf16.msra.mxu1 %v11453_v17  ;;  %11594 = vmatpush3.bf16.msra.mxu0 %v11593_v32  ;;  %v9762_v17 = vld [vmem:[%s21318_s5 + $0xbb0] sm:$0xff] }
 0x382   :  { %11456 = vmatprep.subr.bf16.mxu1 %v11455_v18  ;;  %v9765_v18 = vld [vmem:[%s21318_s5 + $0xbc8] sm:$0xff] }
 0x383   :  { %v11595_v35 = vpack.c.bf16 %v9765_v18, %v9762_v17 }
 0x385   :  { %11458 = vmatpush1.bf16.msra.mxu1 %v11457_v6  ;;  %v11475_v6 = vpack.c.bf16 %v9704_v34, %v9701_v60  ;;  %11596 = vmatprep.subr.bf16.mxu0 %v11595_v35 }
 0x386   :  { %11460 = vmatprep.subr.bf16.mxu1 %v11459_v22  ;;  %v9717_v22 = vld [vmem:[%s21318_s5 + $0xa48] sm:$0xff] }
 0x387   :  { %v11597_v52 = vpack.c.bf16 %v9717_v22, %v9714_v46 }
 0x389   :  { %11462 = vmatpush1.bf16.msra.mxu1 %v11461_v37  ;;  %v9720_v37 = vld [vmem:[%s21318_s5 + $0xa60] sm:$0xff]  ;;  %11598 = vmatpush3.bf16.msra.mxu0 %v11597_v52 }
 0x38a   :  { %11464 = vmatprep.subr.bf16.mxu1 %v11463_v16  ;;  %v9723_v16 = vld [vmem:[%s21318_s5 + $0xa78] sm:$0xff]  ;;  %11600 = vmatprep.subr.bf16.mxu0 %v11599_v28 }
 0x38b   :  { %v11601_v58 = vpack.c.bf16 %v9723_v16, %v9720_v37  ;;  %v9703_v28 = vld [vmem:[%s21318_s5 + $0x9d8] sm:$0xff]  ;;  %v9710_v16 = vld [vmem:[%s21318_s5 + $0xa10] sm:$0xff] }
 0x38c   :  { %v9707_v37 = vld [vmem:[%s21318_s5 + $0x9f8] sm:$0xff] }
 0x38d   :  { %11466 = vmatpush1.bf16.msra.mxu1 %v11465_v5  ;;  %v9777_v5 = vld [vmem:[%s21318_s5 + $0xc28] sm:$0xff]  ;;  %11602 = vmatpush3.bf16.msra.mxu0 %v11601_v58 }
 0x38e   :  { %11468 = vmatprep.subr.bf16.mxu1 %v11467_v38  ;;  %v11603_v31 = vpack.c.bf16 %v9777_v5, %v9774_v48  ;;  %v11607_v38 = vpack.c.bf16 %v9783_v21, %v9780_v41  ;;  %v11477_v48 = vpack.c.bf16 %v9703_v28, %v9700_v57  ;;  %v9716_v41 = vld [vmem:[%s21318_s5 + $0xa40] sm:$0xff]  ;;  %v11481_v21 = vpack.c.bf16 %v9709_v59, %v9706_v36  ;;  %v9727_v36 = vld [vmem:[%s21318_s5 + $0xa98] sm:$0xff] }
 0x390   :  { %11604 = vmatprep.subr.bf16.mxu0 %v11603_v31  ;;  %v11479_v31 = vpack.c.bf16 %v9710_v16, %v9707_v37 }
 0x391   :  { %11470 = vmatpush1.bf16.msra.mxu1 %v11469_v8  ;;  %11606 = vmatpush3.bf16.msra.mxu0 %v11605_v4  ;;  %v9789_v8 = vld [vmem:[%s21318_s5 + $0xc88] sm:$0xff] }
 0x392   :  { %11472 = vmatprep.subr.bf16.mxu1 %v11471_v0  ;;  %11608 = vmatprep.subr.bf16.mxu0 %v11607_v38  ;;  %v11611_v24 = vpack.c.bf16 %v9789_v8, %v9786_v10  ;;  %v11615_v0 = vpack.c.bf16 %v9795_v12, %v9792_v33  ;;  %v9713_v4 = vld [vmem:[%s21318_s5 + $0xa28] sm:$0xff]  ;;  %v9718_v12 = vld [vmem:[%s21318_s5 + $0xa50] sm:$0xff] }
 0x393   :  { %v11483_v50 = vpack.c.bf16 %v9716_v41, %v9713_v4  ;;  %v9731_v4 = vld [vmem:[%s21318_s5 + $0xab8] sm:$0xff]  ;;  %v9734_v41 = vld [vmem:[%s21318_s5 + $0xad0] sm:$0xff] }
 0x395   :  { %11474 = vmatpush1.bf16.msra.mxu1 %v11473_v23  ;;  %11610 = vmatpush3.bf16.msra.mxu0 %v11609_v43  ;;  %v9715_v43 = vld [vmem:[%s21318_s5 + $0xa38] sm:$0xff] }
 0x396   :  { %11476 = vmatprep.subr.bf16.mxu1 %v11475_v6  ;;  %11612 = vmatprep.subr.bf16.mxu0 %v11611_v24  ;;  %v9719_v24 = vld [vmem:[%s21318_s5 + $0xa58] sm:$0xff] }
 0x397   :  { %v11487_v33 = vpack.c.bf16 %v9722_v51, %v9719_v24  ;;  %v9798_v24 = vld [vmem:[%s21318_s5 + $0xcd0] sm:$0xff]  ;;  %v9801_v51 = vld [vmem:[%s21318_s5 + $0xce8] sm:$0xff] }
 0x399   :  { %11614 = vmatpush3.bf16.msra.mxu0 %v11613_v55  ;;  %v11485_v55 = vpack.c.bf16 %v9715_v43, %v9712_v53 }
 0x39a   :  { %11616 = vmatprep.subr.bf16.mxu0 %v11615_v0  ;;  %v9721_v0 = vld [vmem:[%s21318_s5 + $0xa68] sm:$0xff] }
 0x39b   :  { %v11489_v16 = vpack.c.bf16 %v9721_v0, %v9718_v12  ;;  %v9737_v0 = vld [vmem:[%s21318_s5 + $0xae8] sm:$0xff] }
 0x39d   :  { %11618 = vmatpush3.bf16.msra.mxu0 %v11617_v20  ;;  %v9728_v20 = vld [vmem:[%s21318_s5 + $0xaa0] sm:$0xff] }
 0x39e   :  { %11619 = vmatprep.subr.bf16.mxu0 %v21294_v42 }
 0x3fe   :  { %v15567_v32 = vpop.f32.mrb[40].mxu0 }
 0x3ff   :  { %v15569_v23 = vpop.f32.mrb[41].mxu0 }
 0x402   :  { %v15571_v17 = vpop.f32.mrb[42].mxu0 }
 0x403   :  { %v15573_v18 = vpop.f32.mrb[43].mxu0 }
 0x406   :  { %v15575_v35 = vpop.f32.mrb[44].mxu0 }
 0x407   :  { %v15577_v60 = vpop.f32.mrb[45].mxu0 }
 0x40a   :  { %v15579_v34 = vpop.f32.mrb[46].mxu0 }
 0x40b   :  { %v15581_v46 = vpop.f32.mrb[47].mxu0 }
 0x40e   :  { %v15583_v6 = vpop.f32.mrb[48].mxu0 }
 0x40f   :  { %v15585_v22 = vpop.f32.mrb[49].mxu0 }
 0x412   :  { %v15587_v52 = vpop.f32.mrb[50].mxu0 }
 0x413   :  { %v15589_v63 = vpop.f32.mrb[51].mxu0 }
 0x416   :  { %v15603_v58 = vpop.f32.mrb[52].mxu0 }
 0x417   :  { %v15605_v5 = vpop.f32.mrb[53].mxu0 }
 0x418   :  { %2859 = vmatprep.mubr.f32.mxu1 %v15605_v5 }
 0x419   :  { %2860 = vmatmul.mubr.f32.vlgmr.msra.gmra.mrb[52].mxu1 %v15603_v58 }
 0x41a   :  { %11478 = vmatpush1.bf16.msra.mxu1 %v11477_v48  ;;  %v15621_v38 = vpop.f32.mrb[54].mxu0  ;;  %v11491_v48 = vpack.c.bf16 %v9728_v20, %v9725_v13  ;;  %v9740_v13 = vld [vmem:[%s21318_s5 + $0xb00] sm:$0xff] }
 0x41b   :  { %11480 = vmatprep.subr.bf16.mxu1 %v11479_v31  ;;  %v15629_v10 = vpop.f32.mrb[55].mxu0  ;;  %v9724_v31 = vld [vmem:[%s21318_s5 + $0xa80] sm:$0xff] }
 0x41c   :  { %2865 = vmatprep.mubr.f32.mxu1 %v15629_v10  ;;  %v11493_v43 = vpack.c.bf16 %v9727_v36, %v9724_v31  ;;  %v9804_v36 = vld [vmem:[%s21318_s5 + $0xd00] sm:$0xff] }
 0x41d   :  { %2866 = vmatmul.mubr.f32.gmra.mrb[54].mxu1 %v15621_v38 }
 0x41e   :  { %11482 = vmatpush1.bf16.msra.mxu1 %v11481_v21  ;;  %v15655_v57 = vpop.f32.mrb[56].mxu0 }
 0x41f   :  { %v15631_v8 = vpop.f32.mrb[40].mxu1  ;;  %11484 = vmatprep.subr.bf16.mxu1 %v11483_v50  ;;  %v15657_v37 = vpop.f32.mrb[57].mxu0 }
 0x420   :  { %v10875_v11 = vpop.f32.mrb[41].mxu1  ;;  %2871 = vmatprep.mubr.f32.mxu1 %v15657_v37 }
 0x421   :  { %2872 = vmatmul.mubr.f32.gmra.mrb[56].mxu1 %v15655_v57  ;;  %v11495_v11 = vpack.c.bf16 %v9734_v41, %v9731_v4  ;;  %v9807_v4 = vld [vmem:[%s21318_s5 + $0xd18] sm:$0xff]  ;;  %v11499_v41 = vpack.c.bf16 %v9740_v13, %v9737_v0 }
 0x422   :  { %11486 = vmatpush1.bf16.msra.mxu1 %v11485_v55  ;;  %v9730_v55 = vld [vmem:[%s21318_s5 + $0xab0] sm:$0xff] }
 0x423   :  { %v15647_v61 = vpop.f32.mrb[42].mxu1  ;;  %11488 = vmatprep.subr.bf16.mxu1 %v11487_v33  ;;  %v15675_v21 = vpop.f32.mrb[58].mxu0  ;;  %v9733_v33 = vld [vmem:[%s21318_s5 + $0xac8] sm:$0xff] }
 0x424   :  { %v10878_v28 = vpop.f32.mrb[43].mxu1  ;;  %v10894_v53 = vpop.f32.mrb[59].mxu0  ;;  %v11497_v31 = vpack.c.bf16 %v9733_v33, %v9730_v55  ;;  %v11623_v33 = vpack.c.bf16 %v9807_v4, %v9804_v36  ;;  %v9749_v4 = vld [vmem:[%s21318_s5 + $0xb48] sm:$0xff] }
 0x425   :  { %v9739_v53 = vld [vmem:[%s21318_s5 + $0xaf8] sm:$0xff] }
 0x426   :  { %11490 = vmatpush1.bf16.msra.mxu1 %v11489_v16  ;;  %v11620_v16 = vpack.c.bf16 %v9801_v51, %v9798_v24  ;;  %v9743_v24 = vld [vmem:[%s21318_s5 + $0xb18] sm:$0xff]  ;;  %v9746_v51 = vld [vmem:[%s21318_s5 + $0xb30] sm:$0xff] }
 0x427   :  { %v15667_v59 = vpop.f32.mrb[44].mxu1  ;;  %11492 = vmatprep.subr.bf16.mxu1 %v11491_v48  ;;  %v15697_v20 = vpop.f32.mrb[60].mxu0  ;;  %v11503_v9 = vpack.c.bf16 %v9746_v51, %v9743_v24  ;;  %v9748_v51 = vld [vmem:[%s21318_s5 + $0xb40] sm:$0xff] }
 0x428   :  { %v10881_v50 = vpop.f32.mrb[45].mxu1  ;;  %v10897_v48 = vpop.f32.mrb[61].mxu0 }
 0x429   :  { %v9736_v50 = vld [vmem:[%s21318_s5 + $0xae0] sm:$0xff]  ;;  %v9813_v48 = vld [vmem:[%s21318_s5 + $0xd48] sm:$0xff] }
 0x42a   :  { %11494 = vmatpush1.bf16.msra.mxu1 %v11493_v43  ;;  %v11501_v13 = vpack.c.bf16 %v9739_v53, %v9736_v50 }
 0x42b   :  { %v15689_v12 = vpop.f32.mrb[46].mxu1  ;;  %11496 = vmatprep.subr.bf16.mxu1 %v11495_v11  ;;  %v15720_v11 = vpop.f32.mrb[62].mxu0 }
 0x42c   :  { %v2473_v28 = vpop.f32.mrb[47].mxu1  ;;  %v10900_v0 = vpop.f32.mrb[63].mxu0 }
 0x42d   :  { %2942 = vmatprep.mubr.f32.mxu1 %v2473_v28  ;;  %3188 = vmatprep.mubr.f32.mxu0 %v2473_v28  ;;  %v9810_v28 = vld [vmem:[%s21318_s5 + $0xd30] sm:$0xff]  ;;  %v9816_v0 = vld [vmem:[%s21318_s5 + $0xd60] sm:$0xff] }
 0x42e   :  { %3189 = vmatmul.mubr.f32.vlgmr.msra.gmra.mrb[64].mxu0 %v15689_v12  ;;  %11498 = vmatpush1.bf16.msra.mxu1 %v11497_v31  ;;  %v9745_v31 = vld [vmem:[%s21318_s5 + $0xb28] sm:$0xff]  ;;  %v11626_v53 = vpack.c.bf16 %v9813_v48, %v9810_v28  ;;  %v2143_v28 = vld [vmem:[%s21318_s5 + $0x190] sm:$0xff] }
 0x42f   :  { %v15712_v43 = vpop.f32.mrb[48].mxu1  ;;  %11621 = vmatpush3.bf16.msra.mxu0 %v11620_v16  ;;  %11500 = vmatprep.subr.bf16.mxu1 %v11499_v41  ;;  %v9742_v16 = vld [vmem:[%s21318_s5 + $0xb10] sm:$0xff]  ;;  %v9752_v41 = vld [vmem:[%s21318_s5 + $0xb60] sm:$0xff]  ;;  %v2146_v48 = vld [vmem:[%s21318_s5 + $0x1a8] sm:$0xff] }
 0x430   :  { %v15722_v55 = vpop.f32.mrb[49].mxu1  ;;  %11622 = vmatprep.subr.bf16.mxu0 %v21294_v42  ;;  %v11505_v24 = vpack.c.bf16 %v9745_v31, %v9742_v16  ;;  %v9758_v16 = vld [vmem:[%s21318_s5 + $0xb90] sm:$0xff]  ;;  %v11629_v31 = vpack.c.bf16 %v9819_v27, %v9816_v0  ;;  %v11775_v44 = vpack.c.bf16 %v2146_v48, %v2143_v28  ;;  %v2098_v27 = vld [vmem:[%s21318_s5 + $0x28] sm:$0xff]  ;;  %v2152_v0 = vld [vmem:[%s21318_s5 + $0x1d8] sm:$0xff] }
 0x431   :  { %3193 = vmatprep.mubr.f32.mxu0 %v15722_v55  ;;  %v11777_v28 = vpack.c.bf16 %v2098_v27, %v2095_v62  ;;  %v9763_v62 = vld [vmem:[%s21318_s5 + $0xbb8] sm:$0xff]  ;;  %v9770_v27 = vld [vmem:[%s21318_s5 + $0xbf0] sm:$0xff] }
 0x432   :  { %3194 = vmatmul.mubr.f32.gmra.mrb[66].mxu0 %v15712_v43  ;;  %11502 = vmatpush1.bf16.msra.mxu1 %v11501_v13  ;;  %v9751_v13 = vld [vmem:[%s21318_s5 + $0xb58] sm:$0xff] }
 0x433   :  { %v15739_v36 = vpop.f32.mrb[50].mxu1  ;;  %11624 = vmatpush3.bf16.msra.mxu0 %v11623_v33  ;;  %11504 = vmatprep.subr.bf16.mxu1 %v11503_v9  ;;  %v11507_v33 = vpack.c.bf16 %v9752_v41, %v9749_v4  ;;  %v9755_v9 = vld [vmem:[%s21318_s5 + $0xb78] sm:$0xff]  ;;  %v11509_v4 = vpack.c.bf16 %v9751_v13, %v9748_v51  ;;  %v9754_v41 = vld [vmem:[%s21318_s5 + $0xb70] sm:$0xff]  ;;  %v2149_v51 = vld [vmem:[%s21318_s5 + $0x1c0] sm:$0xff] }
 0x434   :  { %v15747_v50 = vpop.f32.mrb[51].mxu1  ;;  %11625 = vmatprep.subr.bf16.mxu0 %v21294_v42  ;;  %v9761_v13 = vld [vmem:[%s21318_s5 + $0xba8] sm:$0xff] }
 0x435   :  { %3198 = vmatprep.mubr.f32.mxu0 %v15747_v50 }
 0x436   :  { %3199 = vmatmul.mubr.f32.gmra.mrb[68].mxu0 %v15739_v36  ;;  %11506 = vmatpush1.bf16.msra.mxu1 %v11505_v24  ;;  %v9757_v24 = vld [vmem:[%s21318_s5 + $0xb88] sm:$0xff] }
 0x437   :  { %11627 = vmatpush3.bf16.msra.mxu0 %v11626_v53  ;;  %10917 = vmatprep.mubr.msk.f32.mxu0 %vm13609_vm2, %v21296_v7  ;;  %v11511_v53 = vpack.c.bf16 %v9758_v16, %v9755_v9  ;;  %v11513_v48 = vpack.c.bf16 %v9757_v24, %v9754_v41  ;;  %v9760_v9 = vld [vmem:[%s21318_s5 + $0xba0] sm:$0xff]  ;;  %v11779_v16 = vpack.c.bf16 %v2152_v0, %v2149_v51  ;;  %v2104_v7 = vld [vmem:[%s21318_s5 + $0x58] sm:$0xff]  ;;  %v9766_v0 = vld [vmem:[%s21318_s5 + $0xbd0] sm:$0xff] }
 0x438   :  { %11628 = vmatprep.subr.bf16.mxu0 %v21294_v42  ;;  %11508 = vmatprep.subr.bf16.mxu1 %v11507_v33  ;;  %v9764_v33 = vld [vmem:[%s21318_s5 + $0xbc0] sm:$0xff]  ;;  %v9767_v41 = vld [vmem:[%s21318_s5 + $0xbd8] sm:$0xff]  ;;  %v11517_v51 = vpack.c.bf16 %v9763_v62, %v9760_v9  ;;  %v9773_v9 = vld [vmem:[%s21318_s5 + $0xc08] sm:$0xff] }
 0x439   :  { %v2101_v42 = vld [vmem:[%s21318_s5 + $0x40] sm:$0xff]  ;;  %v11519_v45 = vpack.c.bf16 %v9770_v27, %v9767_v41  ;;  %v2116_v27 = vld [vmem:[%s21318_s5 + $0xb8] sm:$0xff] }
 0x43a   :  { %11510 = vmatpush1.bf16.msra.mxu1 %v11509_v4  ;;  %v2158_v4 = vld [vmem:[%s21318_s5 + $0x208] sm:$0xff]  ;;  %v11781_v24 = vpack.c.bf16 %v2104_v7, %v2101_v42  ;;  %v2161_v42 = vld [vmem:[%s21318_s5 + $0x220] sm:$0xff] }
 0x43b   :  { %11630 = vmatpush3.bf16.msra.mxu0 %v11629_v31  ;;  %11512 = vmatprep.subr.bf16.mxu1 %v11511_v53  ;;  %v11515_v31 = vpack.c.bf16 %v9764_v33, %v9761_v13  ;;  %v21319_v53 = vmov 0.0   ;;  %v2107_v33 = vld [vmem:[%s21318_s5 + $0x70] sm:$0xff]  ;;  %v9769_v7 = vld [vmem:[%s21318_s5 + $0xbe8] sm:$0xff]  ;;  %v2113_v41 = vld [vmem:[%s21318_s5 + $0xa0] sm:$0xff] }
 0x43c   :  { %11776 = vmatprep.subr.bf16.mxu0 %v11775_v44  ;;  %v2155_v44 = vld [vmem:[%s21318_s5 + $0x1f0] sm:$0xff]  ;;  %v11521_v62 = vpack.c.bf16 %v9769_v7, %v9766_v0 }
 0x43d   :  { %v11783_v13 = vpack.c.bf16 %v2158_v4, %v2155_v44  ;;  %v9772_v44 = vld [vmem:[%s21318_s5 + $0xc00] sm:$0xff]  ;;  %v2167_v0 = vld [vmem:[%s21318_s5 + $0x250] sm:$0xff] }
 0x43e   :  { %10918 = vmatmul.mubr.msk.f32.vlgmr.msra.gmra.mrb[70].mxu0 %vm2785_vm15, %v15675_v21  ;;  %11514 = vmatpush1.bf16.msra.mxu1 %v11513_v48  ;;  %v2164_v48 = vld [vmem:[%s21318_s5 + $0x238] sm:$0xff] }
 0x43f   :  { %11778 = vmatpush3.bf16.msra.mxu0 %v11777_v28  ;;  %10920 = vmatprep.mubr.msk.f32.mxu0 %vm13609_vm2, %v21319_v53  ;;  %v2110_v28 = vld [vmem:[%s21318_s5 + $0x88] sm:$0xff]  ;;  %v11787_v4 = vpack.c.bf16 %v2164_v48, %v2161_v42  ;;  %v9778_v42 = vld [vmem:[%s21318_s5 + $0xc30] sm:$0xff] }
 0x440   :  { %11780 = vmatprep.subr.bf16.mxu0 %v11779_v16  ;;  %11516 = vmatprep.subr.bf16.mxu1 %v11515_v31  ;;  %v9776_v16 = vld [vmem:[%s21318_s5 + $0xc20] sm:$0xff]  ;;  %v11785_v31 = vpack.c.bf16 %v2110_v28, %v2107_v33  ;;  %v9782_v33 = vld [vmem:[%s21318_s5 + $0xc50] sm:$0xff]  ;;  %v11789_v28 = vpack.c.bf16 %v2116_v27, %v2113_v41  ;;  %v9785_v41 = vld [vmem:[%s21318_s5 + $0xc68] sm:$0xff] }
 0x441   :  { %v9788_v27 = vld [vmem:[%s21318_s5 + $0xc80] sm:$0xff] }
 0x442   :  { %10921 = vmatmul.mubr.msk.f32.gmra.mrb[72].mxu0 %vm2785_vm15, %v15697_v20  ;;  %11518 = vmatpush1.bf16.msra.mxu1 %v11517_v51  ;;  %v9775_v51 = vld [vmem:[%s21318_s5 + $0xc18] sm:$0xff]  ;;  %v11531_v47 = vpack.c.bf16 %v9788_v27, %v9785_v41  ;;  %v2134_v41 = vld [vmem:[%s21318_s5 + $0x148] sm:$0xff] }
 0x443   :  { %11782 = vmatpush3.bf16.msra.mxu0 %v11781_v24  ;;  %10923 = vmatprep.mubr.msk.f32.mxu0 %vm13609_vm2, %v21319_v53  ;;  %v11523_v24 = vpack.c.bf16 %v9776_v16, %v9773_v9  ;;  %v11525_v7 = vpack.c.bf16 %v9775_v51, %v9772_v44  ;;  %v2119_v9 = vld [vmem:[%s21318_s5 + $0xd0] sm:$0xff]  ;;  %v2122_v16 = vld [vmem:[%s21318_s5 + $0xe8] sm:$0xff]  ;;  %v2173_v44 = vld [vmem:[%s21318_s5 + $0x280] sm:$0xff] }
 0x444   :  { %11784 = vmatprep.subr.bf16.mxu0 %v11783_v13  ;;  %11520 = vmatprep.subr.bf16.mxu1 %v11519_v45  ;;  %v2170_v13 = vld [vmem:[%s21318_s5 + $0x268] sm:$0xff]  ;;  %v9779_v45 = vld [vmem:[%s21318_s5 + $0xc38] sm:$0xff] }
 0x445   :  { %v11791_v48 = vpack.c.bf16 %v2170_v13, %v2167_v0  ;;  %v9784_v0 = vld [vmem:[%s21318_s5 + $0xc60] sm:$0xff] }
 0x446   :  { %10924 = vmatmul.mubr.msk.f32.gmra.mrb[74].mxu0 %vm2785_vm15, %v15720_v11  ;;  %11522 = vmatpush1.bf16.msra.mxu1 %v11521_v62  ;;  %v9781_v62 = vld [vmem:[%s21318_s5 + $0xc48] sm:$0xff] }
 0x447   :  { %11786 = vmatpush3.bf16.msra.mxu0 %v11785_v31  ;;  %3606 = vmatprep.mubr.f32.mxu0 %v15569_v23  ;;  %v11527_v31 = vpack.c.bf16 %v9782_v33, %v9779_v45  ;;  %v11529_v51 = vpack.c.bf16 %v9781_v62, %v9778_v42  ;;  %v2125_v45 = vld [vmem:[%s21318_s5 + $0x100] sm:$0xff]  ;;  %v2128_v33 = vld [vmem:[%s21318_s5 + $0x118] sm:$0xff]  ;;  %v2182_v42 = vld [vmem:[%s21318_s5 + $0x2c8] sm:$0xff] }
 0x448   :  { %11788 = vmatprep.subr.bf16.mxu0 %v11787_v4  ;;  %11524 = vmatprep.subr.bf16.mxu1 %v11523_v24  ;;  %v2176_v4 = vld [vmem:[%s21318_s5 + $0x298] sm:$0xff]  ;;  %v11793_v24 = vpack.c.bf16 %v2122_v16, %v2119_v9  ;;  %v9794_v9 = vld [vmem:[%s21318_s5 + $0xcb0] sm:$0xff]  ;;  %v11797_v16 = vpack.c.bf16 %v2128_v33, %v2125_v45 }
 0x449   :  { %v11795_v13 = vpack.c.bf16 %v2176_v4, %v2173_v44  ;;  %v9790_v62 = vld [vmem:[%s21318_s5 + $0xc90] sm:$0xff] }
 0x44a   :  { %11526 = vmatpush1.bf16.msra.mxu1 %v11525_v7  ;;  %v2179_v7 = vld [vmem:[%s21318_s5 + $0x2b0] sm:$0xff] }
 0x44b   :  { %11790 = vmatpush3.bf16.msra.mxu0 %v11789_v28  ;;  %11528 = vmatprep.subr.bf16.mxu1 %v11527_v31  ;;  %v9787_v28 = vld [vmem:[%s21318_s5 + $0xc78] sm:$0xff]  ;;  %v11799_v44 = vpack.c.bf16 %v2182_v42, %v2179_v7  ;;  %v2131_v4 = vld [vmem:[%s21318_s5 + $0x130] sm:$0xff]  ;;  %v2137_v7 = vld [vmem:[%s21318_s5 + $0x160] sm:$0xff] }
 0x44c   :  { %11792 = vmatprep.subr.bf16.mxu0 %v11791_v48  ;;  %v9791_v48 = vld [vmem:[%s21318_s5 + $0xc98] sm:$0xff]  ;;  %v11533_v31 = vpack.c.bf16 %v9787_v28, %v9784_v0  ;;  %v11801_v45 = vpack.c.bf16 %v2134_v41, %v2131_v4  ;;  %v2242_v4 = vld [vmem:[%s21318_s5 + $0x4a8] sm:$0xff] }
 0x44d   :  { %v11535_v27 = vpack.c.bf16 %v9794_v9, %v9791_v48  ;;  %v2188_v0 = vld [vmem:[%s21318_s5 + $0x2f8] sm:$0xff]  ;;  %v9796_v9 = vld [vmem:[%s21318_s5 + $0xcc0] sm:$0xff] }
 0x44e   :  { %11530 = vmatpush1.bf16.msra.mxu1 %v11529_v51  ;;  %v2185_v51 = vld [vmem:[%s21318_s5 + $0x2e0] sm:$0xff]  ;;  %v2140_v42 = vld [vmem:[%s21318_s5 + $0x178] sm:$0xff] }
 0x44f   :  { %11794 = vmatpush3.bf16.msra.mxu0 %v11793_v24  ;;  %11532 = vmatprep.subr.bf16.mxu1 %v11531_v47  ;;  %v9793_v24 = vld [vmem:[%s21318_s5 + $0xca8] sm:$0xff]  ;;  %v9800_v47 = vld [vmem:[%s21318_s5 + $0xce0] sm:$0xff]  ;;  %v11803_v28 = vpack.c.bf16 %v2188_v0, %v2185_v51  ;;  %v11805_v41 = vpack.c.bf16 %v2140_v42, %v2137_v7  ;;  %v9802_v51 = vld [vmem:[%s21318_s5 + $0xcf0] sm:$0xff] }
 0x450   :  { %11796 = vmatprep.subr.bf16.mxu0 %v11795_v13  ;;  %v9797_v13 = vld [vmem:[%s21318_s5 + $0xcc8] sm:$0xff]  ;;  %v11537_v33 = vpack.c.bf16 %v9793_v24, %v9790_v62  ;;  %v9806_v62 = vld [vmem:[%s21318_s5 + $0xd10] sm:$0xff]  ;;  %v2245_v7 = vld [vmem:[%s21318_s5 + $0x4c0] sm:$0xff] }
 0x451   :  { %v11539_v48 = vpack.c.bf16 %v9800_v47, %v9797_v13  ;;  %v9805_v0 = vld [vmem:[%s21318_s5 + $0xd08] sm:$0xff]  ;;  %v2248_v42 = vld [vmem:[%s21318_s5 + $0x4d8] sm:$0xff] }
 0x452   :  { %11534 = vmatpush1.bf16.msra.mxu1 %v11533_v31  ;;  %v9803_v31 = vld [vmem:[%s21318_s5 + $0xcf8] sm:$0xff]  ;;  %v9809_v47 = vld [vmem:[%s21318_s5 + $0xd28] sm:$0xff] }
 0x453   :  { %11798 = vmatpush3.bf16.msra.mxu0 %v11797_v16  ;;  %11536 = vmatprep.subr.bf16.mxu1 %v11535_v27  ;;  %v9799_v16 = vld [vmem:[%s21318_s5 + $0xcd8] sm:$0xff]  ;;  %v11543_v24 = vpack.c.bf16 %v9806_v62, %v9803_v31 }
 0x454   :  { %11800 = vmatprep.subr.bf16.mxu0 %v11799_v44  ;;  %v2239_v44 = vld [vmem:[%s21318_s5 + $0x490] sm:$0xff]  ;;  %v11541_v27 = vpack.c.bf16 %v9799_v16, %v9796_v9  ;;  %v9811_v31 = vld [vmem:[%s21318_s5 + $0xd38] sm:$0xff] }
 0x455   :  { %v11807_v13 = vpack.c.bf16 %v2242_v4, %v2239_v44  ;;  %v9815_v62 = vld [vmem:[%s21318_s5 + $0xd58] sm:$0xff]  ;;  %v9818_v44 = vld [vmem:[%s21318_s5 + $0xd70] sm:$0xff]  ;;  %v2197_v4 = vld [vmem:[%s21318_s5 + $0x340] sm:$0xff] }
 0x456   :  { %11538 = vmatpush1.bf16.msra.mxu1 %v11537_v33  ;;  %v2191_v33 = vld [vmem:[%s21318_s5 + $0x310] sm:$0xff] }
 0x457   :  { %11802 = vmatpush3.bf16.msra.mxu0 %v11801_v45  ;;  %11540 = vmatprep.subr.bf16.mxu1 %v11539_v48  ;;  %v9812_v45 = vld [vmem:[%s21318_s5 + $0xd40] sm:$0xff]  ;;  %v11545_v48 = vpack.c.bf16 %v9805_v0, %v9802_v51  ;;  %v11551_v0 = vpack.c.bf16 %v9818_v44, %v9815_v62  ;;  %v9663_v44 = vld [vmem:[%s21318_s5 + $0x898] sm:$0xff] }
 0x458   :  { %11804 = vmatprep.subr.bf16.mxu0 %v11803_v28  ;;  %v2194_v28 = vld [vmem:[%s21318_s5 + $0x328] sm:$0xff]  ;;  %v11547_v9 = vpack.c.bf16 %v9812_v45, %v9809_v47  ;;  %v9654_v45 = vld [vmem:[%s21318_s5 + $0x850] sm:$0xff]  ;;  %v9660_v62 = vld [vmem:[%s21318_s5 + $0x880] sm:$0xff] }
 0x459   :  { %2943 = vmatmul.mubr.f32.vlgmr.msra.gmra.mrb[52].mxu1 %v15689_v12  ;;  %v11809_v16 = vpack.c.bf16 %v2194_v28, %v2191_v33  ;;  %v9808_v12 = vld [vmem:[%s21318_s5 + $0xd20] sm:$0xff]  ;;  %v9817_v47 = vld [vmem:[%s21318_s5 + $0xd68] sm:$0xff]  ;;  %v2203_v28 = vld [vmem:[%s21318_s5 + $0x370] sm:$0xff] }
 0x45a   :  { %2948 = vmatprep.mubr.f32.mxu1 %v15722_v55  ;;  %11542 = vmatpush1.bf16.msra.mxu1 %v11541_v27  ;;  %v11811_v55 = vpack.c.bf16 %v2248_v42, %v2245_v7  ;;  %v2251_v27 = vld [vmem:[%s21318_s5 + $0x4f0] sm:$0xff]  ;;  %v11549_v51 = vpack.c.bf16 %v9811_v31, %v9808_v12  ;;  %v9657_v33 = vld [vmem:[%s21318_s5 + $0x868] sm:$0xff]  ;;  %v2257_v42 = vld [vmem:[%s21318_s5 + $0x520] sm:$0xff] }
 0x45b   :  { %11806 = vmatpush3.bf16.msra.mxu0 %v11805_v41  ;;  %11544 = vmatprep.subr.bf16.mxu1 %v11543_v24  ;;  %v2200_v41 = vld [vmem:[%s21318_s5 + $0x358] sm:$0xff]  ;;  %v2254_v24 = vld [vmem:[%s21318_s5 + $0x508] sm:$0xff] }
 0x45c   :  { %11808 = vmatprep.subr.bf16.mxu0 %v11807_v13  ;;  %v11813_v13 = vpack.c.bf16 %v2200_v41, %v2197_v4  ;;  %v2206_v7 = vld [vmem:[%s21318_s5 + $0x388] sm:$0xff]  ;;  %v2209_v4 = vld [vmem:[%s21318_s5 + $0x3a0] sm:$0xff]  ;;  %v2212_v41 = vld [vmem:[%s21318_s5 + $0x3b8] sm:$0xff] }
 0x45d   :  { %2949 = vmatmul.mubr.f32.gmra.mrb[54].mxu1 %v15712_v43  ;;  %v9814_v43 = vld [vmem:[%s21318_s5 + $0xd50] sm:$0xff]  ;;  %v11817_v12 = vpack.c.bf16 %v2206_v7, %v2203_v28  ;;  %v9609_v31 = vld [vmem:[%s21318_s5 + $0x6e8] sm:$0xff] }
 0x45e   :  { %3607 = vmatmul.mubr.f32.vlgmr.msra.gmra.mrb[76].mxu0 %v15567_v32  ;;  %2954 = vmatprep.mubr.f32.mxu1 %v15747_v50  ;;  %v11815_v50 = vpack.c.bf16 %v2254_v24, %v2251_v27  ;;  %v2263_v27 = vld [vmem:[%s21318_s5 + $0x550] sm:$0xff]  ;;  %v2266_v24 = vld [vmem:[%s21318_s5 + $0x568] sm:$0xff] }
 0x45f   :  { %3611 = vmatprep.mubr.f32.mxu0 %v15573_v18  ;;  %11546 = vmatpush1.bf16.msra.mxu1 %v11545_v48  ;;  %v2260_v48 = vld [vmem:[%s21318_s5 + $0x538] sm:$0xff]  ;;  %v2215_v28 = vld [vmem:[%s21318_s5 + $0x3d0] sm:$0xff]  ;;  %v2218_v7 = vld [vmem:[%s21318_s5 + $0x3e8] sm:$0xff] }
 0x460   :  { %11548 = vmatprep.subr.bf16.mxu1 %v11547_v9  ;;  %11810 = vmatpush3.bf16.msra.mxu0 %v11809_v16  ;;  %v11553_v9 = vpack.c.bf16 %v9817_v47, %v9814_v43  ;;  %v11555_v16 = vpack.c.bf16 %v9657_v33, %v9654_v45  ;;  %v9612_v43 = vld [vmem:[%s21318_s5 + $0x700] sm:$0xff]  ;;  %v9615_v47 = vld [vmem:[%s21318_s5 + $0x718] sm:$0xff]  ;;  %v9666_v45 = vld [vmem:[%s21318_s5 + $0x8b0] sm:$0xff] }
 0x461   :  { %11812 = vmatprep.subr.bf16.mxu0 %v11811_v55  ;;  %2955 = vmatmul.mubr.f32.gmra.mrb[56].mxu1 %v15739_v36  ;;  %v9606_v36 = vld [vmem:[%s21318_s5 + $0x6d0] sm:$0xff]  ;;  %v11819_v55 = vpack.c.bf16 %v2260_v48, %v2257_v42  ;;  %v9669_v33 = vld [vmem:[%s21318_s5 + $0x8c8] sm:$0xff]  ;;  %v2269_v42 = vld [vmem:[%s21318_s5 + $0x580] sm:$0xff] }
 0x462   :  { %3612 = vmatmul.mubr.f32.gmra.mrb[78].mxu0 %v15571_v17  ;;  %3025 = vmatprep.mubr.f32.mxu1 %v21319_v53  ;;  %v2272_v48 = vld [vmem:[%s21318_s5 + $0x598] sm:$0xff] }
 0x463   :  { %3616 = vmatprep.mubr.f32.mxu0 %v15577_v60  ;;  %11550 = vmatpush1.bf16.msra.mxu1 %v11549_v51  ;;  %v11557_v51 = vpack.c.bf16 %v9609_v31, %v9606_v36  ;;  %v9621_v36 = vld [vmem:[%s21318_s5 + $0x748] sm:$0xff]  ;;  %v9672_v31 = vld [vmem:[%s21318_s5 + $0x8e0] sm:$0xff] }
 0x464   :  { %11552 = vmatprep.subr.bf16.mxu1 %v11551_v0  ;;  %11814 = vmatpush3.bf16.msra.mxu0 %v11813_v13  ;;  %v11559_v0 = vpack.c.bf16 %v9663_v44, %v9660_v62  ;;  %v11821_v13 = vpack.c.bf16 %v2212_v41, %v2209_v4  ;;  %v11827_v62 = vpack.c.bf16 %v2272_v48, %v2269_v42  ;;  %v2221_v44 = vld [vmem:[%s21318_s5 + $0x400] sm:$0xff]  ;;  %v2224_v4 = vld [vmem:[%s21318_s5 + $0x418] sm:$0xff]  ;;  %v2275_v41 = vld [vmem:[%s21318_s5 + $0x5b0] sm:$0xff] }
 0x465   :  { %11816 = vmatprep.subr.bf16.mxu0 %v11815_v50  ;;  %v11823_v50 = vpack.c.bf16 %v2266_v24, %v2263_v27  ;;  %v2278_v27 = vld [vmem:[%s21318_s5 + $0x5c8] sm:$0xff] }
 0x466   :  { %3617 = vmatmul.mubr.f32.gmra.mrb[80].mxu0 %v15575_v35 }
 0x467   :  { %3686 = vmatprep.mubr.f32.mxu0 %v15581_v46  ;;  %11554 = vmatpush1.bf16.msra.mxu1 %v11553_v9  ;;  %v11561_v9 = vpack.c.bf16 %v9615_v47, %v9612_v43  ;;  %v9678_v43 = vld [vmem:[%s21318_s5 + $0x910] sm:$0xff]  ;;  %v11831_v47 = vpack.c.bf16 %v2278_v27, %v2275_v41  ;;  %v9639_v41 = vld [vmem:[%s21318_s5 + $0x7d8] sm:$0xff] }
 0x468   :  { %11556 = vmatprep.subr.bf16.mxu1 %v11555_v16  ;;  %11818 = vmatpush3.bf16.msra.mxu0 %v11817_v12  ;;  %v11563_v16 = vpack.c.bf16 %v9669_v33, %v9666_v45  ;;  %v11825_v12 = vpack.c.bf16 %v2218_v7, %v2215_v28  ;;  %v9681_v45 = vld [vmem:[%s21318_s5 + $0x928] sm:$0xff]  ;;  %v2281_v28 = vld [vmem:[%s21318_s5 + $0x5e0] sm:$0xff]  ;;  %v2284_v7 = vld [vmem:[%s21318_s5 + $0x5f8] sm:$0xff] }
 0x469   :  { %11820 = vmatprep.subr.bf16.mxu0 %v11819_v55  ;;  %v9675_v55 = vld [vmem:[%s21318_s5 + $0x8f8] sm:$0xff]  ;;  %v2230_v33 = vld [vmem:[%s21318_s5 + $0x448] sm:$0xff]  ;;  %v11571_v48 = vpack.c.bf16 %v9681_v45, %v9678_v43  ;;  %v9690_v27 = vld [vmem:[%s21318_s5 + $0x970] sm:$0xff]  ;;  %v21320_v45 = vmov 0.0|0.0  }
 0x46a   :  { %9820 = vmatmul.mubr.msk.f32.vlgmr.msra.gmra.mrb[52].mxu1 %vm2785_vm15, %v15675_v21  ;;  %v9618_v21 = vld [vmem:[%s21318_s5 + $0x730] sm:$0xff] }
 0x46b   :  { %11558 = vmatpush3.bf16.msra.mxu1 %v11557_v51  ;;  %3031 = vmatprep.mubr.f32.mxu1 %v21319_v53  ;;  %v11565_v24 = vpack.c.bf16 %v9621_v36, %v9618_v21  ;;  %v11567_v51 = vpack.c.bf16 %v9675_v55, %v9672_v31  ;;  %v11835_v21 = vpack.c.bf16 %v2284_v7, %v2281_v28  ;;  %v2233_v36 = vld [vmem:[%s21318_s5 + $0x460] sm:$0xff]  ;;  %v2236_v31 = vld [vmem:[%s21318_s5 + $0x478] sm:$0xff]  ;;  %v9642_v43 = vld [vmem:[%s21318_s5 + $0x7f0] sm:$0xff] }
 0x46c   :  { %11560 = vmatprep.subr.bf16.mxu1 %v11559_v0  ;;  %11822 = vmatpush3.bf16.msra.mxu0 %v11821_v13  ;;  %v11829_v0 = vpack.c.bf16 %v2224_v4, %v2221_v44  ;;  %v9627_v13 = vld [vmem:[%s21318_s5 + $0x778] sm:$0xff]  ;;  %v11837_v44 = vpack.c.bf16 %v2236_v31, %v2233_v36  ;;  %v9636_v4 = vld [vmem:[%s21318_s5 + $0x7c0] sm:$0xff]  ;;  %v2299_v36 = vld [vmem:[%s21318_s5 + $0x670] sm:$0xff] }
 0x46d   :  { %11824 = vmatprep.subr.bf16.mxu0 %v11823_v50  ;;  %v2227_v50 = vld [vmem:[%s21318_s5 + $0x430] sm:$0xff]  ;;  %v9699_v28 = vld [vmem:[%s21318_s5 + $0x9b8] sm:$0xff]  ;;  %v2293_v7 = vld [vmem:[%s21318_s5 + $0x640] sm:$0xff] }
 0x46e   :  { %9821 = vmatmul.mubr.msk.f32.gmra.mrb[54].mxu1 %vm2785_vm15, %v15697_v20  ;;  %v9624_v20 = vld [vmem:[%s21318_s5 + $0x760] sm:$0xff]  ;;  %v2302_v31 = vld [vmem:[%s21318_s5 + $0x688] sm:$0xff] }
 0x46f   :  { %11562 = vmatpush3.bf16.msra.mxu1 %v11561_v9  ;;  %3037 = vmatprep.mubr.f32.mxu1 %v21319_v53  ;;  %v11569_v42 = vpack.c.bf16 %v9627_v13, %v9624_v20  ;;  %v11833_v9 = vpack.c.bf16 %v2230_v33, %v2227_v50  ;;  %v11577_v20 = vpack.c.bf16 %v9639_v41, %v9636_v4  ;;  %v9696_v33 = vld [vmem:[%s21318_s5 + $0x9a0] sm:$0xff]  ;;  %v2096_v4 = vld [vmem:[%s21318_s5 + $0x18] sm:$0xff] }
 0x470   :  { %11564 = vmatprep.subr.bf16.mxu1 %v11563_v16  ;;  %11826 = vmatpush3.bf16.msra.mxu0 %v11825_v12  ;;  %v9633_v16 = vld [vmem:[%s21318_s5 + $0x7a8] sm:$0xff]  ;;  %v9684_v12 = vld [vmem:[%s21318_s5 + $0x940] sm:$0xff]  ;;  %v11846_v41 = vpack.c.bf16 %v2302_v31, %v2299_v36  ;;  %v2120_v36 = vld [vmem:[%s21318_s5 + $0xd8] sm:$0xff] }
 0x471   :  { %11828 = vmatprep.subr.bf16.mxu0 %v11827_v62  ;;  %v2123_v31 = vld [vmem:[%s21318_s5 + $0xf0] sm:$0xff] }
 0x472   :  { %9822 = vmatmul.mubr.msk.f32.gmra.mrb[56].mxu1 %vm2785_vm15, %v15720_v11  ;;  %v9630_v11 = vld [vmem:[%s21318_s5 + $0x790] sm:$0xff] }
 0x473   :  { %11566 = vmatpush3.bf16.msra.mxu1 %v11565_v24  ;;  %3108 = vmatprep.mubr.f32.mxu1 %v15605_v5  ;;  %v9687_v5 = vld [vmem:[%s21318_s5 + $0x958] sm:$0xff]  ;;  %v11573_v62 = vpack.c.bf16 %v9633_v16, %v9630_v11  ;;  %v9693_v24 = vld [vmem:[%s21318_s5 + $0x988] sm:$0xff]  ;;  %v9648_v11 = vld [vmem:[%s21318_s5 + $0x820] sm:$0xff] }
 0x474   :  { %11568 = vmatprep.subr.bf16.mxu1 %v11567_v51  ;;  %11830 = vmatpush3.bf16.msra.mxu0 %v11829_v0  ;;  %v11575_v55 = vpack.c.bf16 %v9687_v5, %v9684_v12  ;;  %v2287_v51 = vld [vmem:[%s21318_s5 + $0x610] sm:$0xff]  ;;  %v2290_v0 = vld [vmem:[%s21318_s5 + $0x628] sm:$0xff]  ;;  %v11579_v13 = vpack.c.bf16 %v9693_v24, %v9690_v27  ;;  %v9651_v16 = vld [vmem:[%s21318_s5 + $0x838] sm:$0xff] }
 0x475   :  { %11832 = vmatprep.subr.bf16.mxu0 %v11831_v47  ;;  %v9645_v47 = vld [vmem:[%s21318_s5 + $0x808] sm:$0xff]  ;;  %v11840_v50 = vpack.c.bf16 %v2290_v0, %v2287_v51  ;;  %v2097_v5 = vld [vmem:[%s21318_s5 + $0x20] sm:$0xff]  ;;  %v2100_v27 = vld [vmem:[%s21318_s5 + $0x38] sm:$0xff] }
 0x476   :  { %v2103_v24 = vld [vmem:[%s21318_s5 + $0x50] sm:$0xff]  ;;  %v2305_v51 = vld [vmem:[%s21318_s5 + $0x6a0] sm:$0xff]  ;;  %v2308_v0 = vld [vmem:[%s21318_s5 + $0x6b8] sm:$0xff] }
 0x477   :  { %11570 = vmatpush3.bf16.msra.mxu1 %v11569_v42  ;;  %v2296_v42 = vld [vmem:[%s21318_s5 + $0x658] sm:$0xff] }
 0x478   :  { %11572 = vmatprep.subr.bf16.mxu1 %v11571_v48  ;;  %11834 = vmatpush3.bf16.msra.mxu0 %v11833_v9  ;;  %v11581_v48 = vpack.c.bf16 %v9645_v47, %v9642_v43  ;;  %v11583_v9 = vpack.c.bf16 %v9699_v28, %v9696_v33  ;;  %v11843_v12 = vpack.c.bf16 %v2296_v42, %v2293_v7  ;;  %v2099_v43 = vld [vmem:[%s21318_s5 + $0x30] sm:$0xff]  ;;  %v2102_v47 = vld [vmem:[%s21318_s5 + $0x48] sm:$0xff]  ;;  %v2109_v28 = vld [vmem:[%s21318_s5 + $0x80] sm:$0xff] }
 0x479   :  { %11836 = vmatprep.subr.bf16.mxu0 %v11835_v21  ;;  %v2094_v21 = vld [vmem:[%s21318_s5 + $0x8] sm:$0xff]  ;;  %v11637_v7 = vpack.c.bf16 %v2102_v47, %v2099_v43  ;;  %v2145_v47 = vld [vmem:[%s21318_s5 + $0x1a0] sm:$0xff] }
 0x47a   :  { %v2106_v33 = vld [vmem:[%s21318_s5 + $0x68] sm:$0xff] }
 0x47b   :  { %11574 = vmatpush3.bf16.msra.mxu1 %v11573_v62  ;;  %v11585_v62 = vpack.c.bf16 %v9651_v16, %v9648_v11  ;;  %v11639_v42 = vpack.c.bf16 %v2109_v28, %v2106_v33  ;;  %v2142_v43 = vld [vmem:[%s21318_s5 + $0x188] sm:$0xff]  ;;  %v2141_v33 = vld [vmem:[%s21318_s5 + $0x180] sm:$0xff]  ;;  %v2144_v28 = vld [vmem:[%s21318_s5 + $0x198] sm:$0xff] }
 0x47c   :  { %11576 = vmatprep.subr.bf16.mxu1 %v11575_v55  ;;  %11838 = vmatpush3.bf16.msra.mxu0 %v11837_v44  ;;  %v11631_v55 = vpack.c.bf16 %v2097_v5, %v2094_v21  ;;  %v2093_v44 = vld [vmem:[%s21318_s5] sm:$0xff]  ;;  %v2114_v21 = vld [vmem:[%s21318_s5 + $0xa8] sm:$0xff] }
 0x47d   :  { %11839 = vmatprep.subr.bf16.mxu0 %v21320_v45  ;;  %v2117_v5 = vld [vmem:[%s21318_s5 + $0xc0] sm:$0xff] }
 0x47f   :  { %11578 = vmatpush3.bf16.msra.mxu1 %v11577_v20  ;;  %3687 = vmatmul.mubr.f32.vlgmr.msra.gmra.mrb[82].mxu0 %v15579_v34  ;;  %v11633_v20 = vpack.c.bf16 %v2096_v4, %v2093_v44  ;;  %v2133_v44 = vld [vmem:[%s21318_s5 + $0x140] sm:$0xff] }
 0x480   :  { %11580 = vmatprep.subr.bf16.mxu1 %v11579_v13  ;;  %3691 = vmatprep.mubr.f32.mxu0 %v15585_v22  ;;  %v11635_v13 = vpack.c.bf16 %v2103_v24, %v2100_v27  ;;  %v2132_v27 = vld [vmem:[%s21318_s5 + $0x138] sm:$0xff] }
 0x481   :  { %11841 = vmatpush3.bf16.msra.mxu0 %v11840_v50  ;;  %v11849_v50 = vpack.c.bf16 %v2308_v0, %v2305_v51  ;;  %v2136_v24 = vld [vmem:[%s21318_s5 + $0x158] sm:$0xff]  ;;  %v2139_v51 = vld [vmem:[%s21318_s5 + $0x170] sm:$0xff] }
 0x482   :  { %11842 = vmatprep.subr.bf16.mxu0 %v21320_v45 }
 0x483   :  { %11582 = vmatpush3.bf16.msra.mxu1 %v11581_v48  ;;  %3692 = vmatmul.mubr.f32.gmra.mrb[84].mxu0 %v15583_v6  ;;  %v2105_v48 = vld [vmem:[%s21318_s5 + $0x60] sm:$0xff] }
 0x484   :  { %11584 = vmatprep.subr.bf16.mxu1 %v11583_v9  ;;  %3696 = vmatprep.mubr.f32.mxu0 %v15589_v63  ;;  %v2108_v9 = vld [vmem:[%s21318_s5 + $0x78] sm:$0xff] }
 0x485   :  { %11844 = vmatpush3.bf16.msra.mxu0 %v11843_v12  ;;  %v11641_v11 = vpack.c.bf16 %v2108_v9, %v2105_v48  ;;  %v2111_v12 = vld [vmem:[%s21318_s5 + $0x90] sm:$0xff]  ;;  %v2150_v9 = vld [vmem:[%s21318_s5 + $0x1c8] sm:$0xff] }
 0x486   :  { %11845 = vmatprep.subr.bf16.mxu0 %v21320_v45 }
 0x487   :  { %11586 = vmatpush3.bf16.msra.mxu1 %v11585_v62  ;;  %3697 = vmatmul.mubr.f32.gmra.mrb[86].mxu0 %v15587_v52  ;;  %v2126_v62 = vld [vmem:[%s21318_s5 + $0x108] sm:$0xff] }
 0x488   :  { %11632 = vmatprep.subr.bf16.mxu1 %v11631_v55  ;;  %10942 = vmatprep.mubr.msk.f32.mxu0 %vm13609_vm2, %v21319_v53  ;;  %v2130_v55 = vld [vmem:[%s21318_s5 + $0x128] sm:$0xff]  ;;  %v11653_v4 = vpack.c.bf16 %v2126_v62, %v2123_v31  ;;  %v2175_v31 = vld [vmem:[%s21318_s5 + $0x290] sm:$0xff] }
 0x489   :  { %11847 = vmatpush3.bf16.msra.mxu0 %v11846_v41  ;;  %v2129_v41 = vld [vmem:[%s21318_s5 + $0x120] sm:$0xff] }
 0x48a   :  { %3109 = vmatmul.mubr.f32.vlgmr.msra.gmra.mrb[58].mxu1 %v15603_v58  ;;  %11848 = vmatprep.subr.bf16.mxu0 %v21320_v45  ;;  %v2112_v58 = vld [vmem:[%s21318_s5 + $0x98] sm:$0xff]  ;;  %v11657_v0 = vpack.c.bf16 %v2132_v27, %v2129_v41 }
 0x48b   :  { %3113 = vmatprep.mubr.f32.mxu1 %v15629_v10  ;;  %11634 = vmatpush1.bf16.msra.mxu1 %v11633_v20  ;;  %v2115_v10 = vld [vmem:[%s21318_s5 + $0xb0] sm:$0xff] }
 0x48c   :  { %11636 = vmatprep.subr.bf16.mxu1 %v11635_v13  ;;  %v11643_v16 = vpack.c.bf16 %v2115_v10, %v2112_v58  ;;  %v2135_v20 = vld [vmem:[%s21318_s5 + $0x150] sm:$0xff]  ;;  %v2138_v13 = vld [vmem:[%s21318_s5 + $0x168] sm:$0xff]  ;;  %v2157_v10 = vld [vmem:[%s21318_s5 + $0x200] sm:$0xff] }
 0x48d   :  { %11850 = vmatpush3.bf16.msra.mxu0 %v11849_v50  ;;  %v11663_v50 = vpack.c.bf16 %v2145_v47, %v2142_v43  ;;  %v2154_v58 = vld [vmem:[%s21318_s5 + $0x1e8] sm:$0xff]  ;;  %v2193_v47 = vld [vmem:[%s21318_s5 + $0x320] sm:$0xff] }
 0x48e   :  { %3114 = vmatmul.mubr.f32.gmra.mrb[60].mxu1 %v15621_v38  ;;  %11852 = vmatprep.subr.bf16.mxu0 %v15073_v49  ;;  %v2118_v49 = vld [vmem:[%s21318_s5 + $0xc8] sm:$0xff]  ;;  %v2121_v38 = vld [vmem:[%s21318_s5 + $0xe0] sm:$0xff] }
 0x48f   :  { %3118 = vmatprep.mubr.f32.mxu1 %v15657_v37  ;;  %11638 = vmatpush1.bf16.msra.mxu1 %v11637_v7  ;;  %v11645_v37 = vpack.c.bf16 %v2114_v21, %v2111_v12  ;;  %v2151_v7 = vld [vmem:[%s21318_s5 + $0x1d0] sm:$0xff]  ;;  %v2156_v12 = vld [vmem:[%s21318_s5 + $0x1f8] sm:$0xff]  ;;  %v2190_v43 = vld [vmem:[%s21318_s5 + $0x308] sm:$0xff] }
 0x490   :  { %10943 = vmatmul.mubr.msk.f32.vlgmr.msra.gmra.mrb[88].mxu0 %vm2785_vm15, %v15631_v8  ;;  %11640 = vmatprep.subr.bf16.mxu1 %v11639_v42  ;;  %v11665_v42 = vpack.c.bf16 %v2144_v28, %v2141_v33  ;;  %v2160_v21 = vld [vmem:[%s21318_s5 + $0x218] sm:$0xff]  ;;  %v9851_v28 = vld [vmem:[%s21318_s5 + $0xd90] sm:$0xff] }
 0x491   :  { %11854 = vmatpush1.bf16.msra.mxu0 %v15044_v39  ;;  %10945 = vmatprep.mubr.msk.f32.mxu0 %vm13609_vm2, %v21319_v53  ;;  %v11647_v39 = vpack.c.bf16 %v2121_v38, %v2118_v49  ;;  %v2163_v49 = vld [vmem:[%s21318_s5 + $0x230] sm:$0xff] }
 0x492   :  { %3119 = vmatmul.mubr.f32.gmra.mrb[62].mxu1 %v15655_v57  ;;  %11856 = vmatprep.subr.bf16.mxu0 %v15105_v1  ;;  %v2124_v1 = vld [vmem:[%s21318_s5 + $0xf8] sm:$0xff]  ;;  %v11649_v57 = vpack.c.bf16 %v2120_v36, %v2117_v5  ;;  %v2166_v5 = vld [vmem:[%s21318_s5 + $0x248] sm:$0xff]  ;;  %v2169_v36 = vld [vmem:[%s21318_s5 + $0x260] sm:$0xff] }
 0x493   :  { %11642 = vmatpush1.bf16.msra.mxu1 %v11641_v11  ;;  %3357 = vmatprep.mubr.f32.mxu1 %v15569_v23  ;;  %v2127_v23 = vld [vmem:[%s21318_s5 + $0x110] sm:$0xff] }
 0x494   :  { %10946 = vmatmul.mubr.msk.f32.gmra.mrb[90].mxu0 %vm2785_vm15, %v15647_v61  ;;  %11644 = vmatprep.subr.bf16.mxu1 %v11643_v16  ;;  %v11671_v16 = vpack.c.bf16 %v2157_v10, %v2154_v58  ;;  %v2196_v58 = vld [vmem:[%s21318_s5 + $0x338] sm:$0xff]  ;;  %v2199_v10 = vld [vmem:[%s21318_s5 + $0x350] sm:$0xff] }
 0x495   :  { %11858 = vmatpush1.bf16.msra.mxu0 %v15090_v2  ;;  %10948 = vmatprep.mubr.msk.f32.mxu0 %vm13609_vm2, %v21319_v53  ;;  %v11651_v2 = vpack.c.bf16 %v2127_v23, %v2124_v1  ;;  %v11679_v23 = vpack.c.bf16 %v2169_v36, %v2166_v5  ;;  %v2208_v5 = vld [vmem:[%s21318_s5 + $0x398] sm:$0xff] }
 0x496   :  { %9835 = vmatprep.subr.msk.mxu0 %vm1831_vm4, %v15124_v30  ;;  %v16354_v30 = vld [vmem:[%s21317_s6 + $0x30] sm:$0xff] }
 0x497   :  { %11646 = vmatpush1.bf16.msra.mxu1 %v11645_v37  ;;  %v11675_v37 = vpack.c.bf16 %v2163_v49, %v2160_v21  ;;  %v2202_v21 = vld [vmem:[%s21318_s5 + $0x368] sm:$0xff]  ;;  %v2205_v49 = vld [vmem:[%s21318_s5 + $0x380] sm:$0xff] }
 0x498   :  { %10949 = vmatmul.mubr.msk.f32.gmra.mrb[92].mxu0 %vm2785_vm15, %v15667_v59  ;;  %11648 = vmatprep.subr.bf16.mxu1 %v11647_v39  ;;  %v2162_v39 = vld [vmem:[%s21318_s5 + $0x228] sm:$0xff] }
 0x499   :  { %9836 = vmatpush1.msk.msra.mxu0 %vm1831_vm4, %v15133_v19  ;;  %3859 = vmatprep.mubr.f32.mxu0 %v21319_v53  ;;  %v11655_v19 = vpack.c.bf16 %v2133_v44, %v2130_v55  ;;  %v2171_v44 = vld [vmem:[%s21318_s5 + $0x270] sm:$0xff] }
 0x49a   :  { %11860 = vmatprep.subr.bf16.mxu0 %v15088_v25  ;;  %v16376_v25 = vld [vmem:[%s21317_s6 + $0x38] sm:$0xff] }
 0x49b   :  { %11650 = vmatpush1.bf16.msra.mxu1 %v11649_v57  ;;  %v2165_v57 = vld [vmem:[%s21318_s5 + $0x240] sm:$0xff] }
 0x49c   :  { %9837 = vmatmul.mubr.msk.f32.vlgmr.msra.gmra.mrb[94].mxu0 %vm1821_vm6, %v16354_v30  ;;  %11652 = vmatprep.subr.bf16.mxu1 %v11651_v2  ;;  %v2172_v2 = vld [vmem:[%s21318_s5 + $0x278] sm:$0xff] }
 0x49d   :  { %11862 = vmatpush1.bf16.msra.mxu0 %v15050_v56  ;;  %3865 = vmatprep.mubr.f32.mxu0 %v21319_v53  ;;  %v11659_v56 = vpack.c.bf16 %v2139_v51, %v2136_v24  ;;  %v11683_v55 = vpack.c.bf16 %v2175_v31, %v2172_v2  ;;  %v2177_v24 = vld [vmem:[%s21318_s5 + $0x2a0] sm:$0xff]  ;;  %v2184_v51 = vld [vmem:[%s21318_s5 + $0x2d8] sm:$0xff] }
 0x49e   :  { %11864 = vmatprep.subr.bf16.mxu0 %v15113_v54  ;;  %v16398_v54 = vld [vmem:[%s21317_s6 + $0x40] sm:$0x3]  ;;  %v2216_v31 = vld [vmem:[%s21318_s5 + $0x3d8] sm:$0xff] }
 0x49f   :  { %11654 = vmatpush1.bf16.msra.mxu1 %v11653_v4  ;;  %v2178_v4 = vld [vmem:[%s21318_s5 + $0x2a8] sm:$0xff]  ;;  %v2213_v2 = vld [vmem:[%s21318_s5 + $0x3c0] sm:$0xff] }
 0x4a0   :  { %9838 = vmatmul.mubr.msk.f32.gmra.mrb[96].mxu0 %vm1821_vm6, %v16376_v25  ;;  %11656 = vmatprep.subr.bf16.mxu1 %v11655_v19  ;;  %v2181_v19 = vld [vmem:[%s21318_s5 + $0x2c0] sm:$0xff] }
 0x4a1   :  { %11866 = vmatpush1.bf16.msra.mxu0 %v15097_v15  ;;  %3871 = vmatprep.mubr.f32.mxu0 %v21319_v53  ;;  %v11661_v15 = vpack.c.bf16 %v2138_v13, %v2135_v20  ;;  %v11687_v27 = vpack.c.bf16 %v2181_v19, %v2178_v4  ;;  %v2183_v13 = vld [vmem:[%s21318_s5 + $0x2d0] sm:$0xff]  ;;  %v9860_v4 = vld [vmem:[%s21318_s5 + $0xdd8] sm:$0xff]  ;;  %v11713_v19 = vpack.c.bf16 %v2216_v31, %v2213_v2  ;;  %v9929_v2 = vld [vmem:[%s21318_s5 + $0x1000] sm:$0xff] }
 0x4a2   :  { %9840 = vmatprep.subr.msk.mxu0 %vm1831_vm4, %v15162_v26  ;;  %v2148_v26 = vld [vmem:[%s21318_s5 + $0x1b8] sm:$0xff] }
 0x4a3   :  { %11658 = vmatpush1.bf16.msra.mxu1 %v11657_v0  ;;  %v11667_v48 = vpack.c.bf16 %v2151_v7, %v2148_v26  ;;  %v2187_v0 = vld [vmem:[%s21318_s5 + $0x2f0] sm:$0xff]  ;;  %v9854_v7 = vld [vmem:[%s21318_s5 + $0xda8] sm:$0xff] }
 0x4a4   :  { %9839 = vmatmul.mubr.msk.f32.gmra.mrb[98].mxu0 %vm1821_vm6, %v16398_v54  ;;  %11660 = vmatprep.subr.bf16.mxu1 %v11659_v56  ;;  %v11691_v20 = vpack.c.bf16 %v2187_v0, %v2184_v51  ;;  %v9911_v51 = vld [vmem:[%s21318_s5 + $0xf70] sm:$0xff]  ;;  %v2226_v0 = vld [vmem:[%s21318_s5 + $0x428] sm:$0xff] }
 0x4a5   :  { %9841 = vmatpush1.msk.msra.mxu0 %vm1831_vm4, %v15176_v40  ;;  %3942 = vmatprep.mubr.f32.mxu0 %v21319_v53  ;;  %v2147_v40 = vld [vmem:[%s21318_s5 + $0x1b0] sm:$0xff] }
 0x4a6   :  { %11867 = vmatprep.subr.bf16.mxu0 %v21320_v45  ;;  %v11669_v11 = vpack.c.bf16 %v2150_v9, %v2147_v40  ;;  %v2192_v40 = vld [vmem:[%s21318_s5 + $0x318] sm:$0xff]  ;;  %v12019_v9 = vpack.c.bf16 %v9854_v7, %v9851_v28  ;;  %v2235_v7 = vld [vmem:[%s21318_s5 + $0x470] sm:$0xff] }
 0x4a7   :  { %11662 = vmatpush1.bf16.msra.mxu1 %v11661_v15  ;;  %v9899_v15 = vld [vmem:[%s21318_s5 + $0xf10] sm:$0xff]  ;;  %v2228_v28 = vld [vmem:[%s21318_s5 + $0x438] sm:$0xff] }
 0x4a8   :  { %9842 = vmatmul.mubr.msk.f32.vlgmr.msra.gmra.mrb[100].mxu0 %vm1821_vm6, %v16354_v30  ;;  %11664 = vmatprep.subr.bf16.mxu1 %v11663_v50  ;;  %v9902_v50 = vld [vmem:[%s21318_s5 + $0xf28] sm:$0xff] }
 0x4a9   :  { %11869 = vmatpush3.bf16.msra.mxu0 %v15193_v3  ;;  %3948 = vmatprep.mubr.f32.mxu0 %v21319_v53  ;;  %v2153_v3 = vld [vmem:[%s21318_s5 + $0x1e0] sm:$0xff]  ;;  %v12017_v33 = vpack.c.bf16 %v9902_v50, %v9899_v15 }
 0x4aa   :  { %11870 = vmatprep.subr.bf16.mxu0 %v21320_v45  ;;  %v11673_v38 = vpack.c.bf16 %v2156_v12, %v2153_v3  ;;  %v2195_v3 = vld [vmem:[%s21318_s5 + $0x330] sm:$0xff]  ;;  %v2198_v12 = vld [vmem:[%s21318_s5 + $0x348] sm:$0xff] }
 0x4ab   :  { %11666 = vmatpush1.bf16.msra.mxu1 %v11665_v42  ;;  %v11695_v42 = vpack.c.bf16 %v2193_v47, %v2190_v43  ;;  %v9866_v43 = vld [vmem:[%s21318_s5 + $0xe08] sm:$0xff] }
 0x4ac   :  { %11668 = vmatprep.subr.bf16.mxu1 %v11667_v48  ;;  %9843 = vmatmul.mubr.msk.f32.gmra.mrb[102].mxu0 %vm1821_vm6, %v16376_v25  ;;  %v2189_v48 = vld [vmem:[%s21318_s5 + $0x300] sm:$0xff] }
 0x4ad   :  { %11872 = vmatpush3.bf16.msra.mxu0 %v15214_v29  ;;  %3954 = vmatprep.mubr.f32.mxu0 %v21319_v53  ;;  %v2159_v29 = vld [vmem:[%s21318_s5 + $0x210] sm:$0xff] }
 0x4ae   :  { %10959 = vmatprep.subr.mxu0 %v21319_v53  ;;  %v11677_v1 = vpack.c.bf16 %v2162_v39, %v2159_v29  ;;  %v2201_v29 = vld [vmem:[%s21318_s5 + $0x360] sm:$0xff]  ;;  %v2204_v39 = vld [vmem:[%s21318_s5 + $0x378] sm:$0xff] }
 0x4af   :  { %11670 = vmatpush1.bf16.msra.mxu1 %v11669_v11  ;;  %v11697_v11 = vpack.c.bf16 %v2192_v40, %v2189_v48  ;;  %v2231_v48 = vld [vmem:[%s21318_s5 + $0x450] sm:$0xff]  ;;  %v9917_v40 = vld [vmem:[%s21318_s5 + $0xfa0] sm:$0xff] }
 0x4b0   :  { %11672 = vmatprep.subr.bf16.mxu1 %v11671_v16  ;;  %9844 = vmatmul.mubr.msk.f32.gmra.mrb[104].mxu0 %vm1821_vm6, %v16398_v54  ;;  %v11699_v16 = vpack.c.bf16 %v2199_v10, %v2196_v58  ;;  %v2234_v58 = vld [vmem:[%s21318_s5 + $0x468] sm:$0xff] }
 0x4b1   :  { %10960 = vmatpush3.msk.msra.mxu0 %vm1831_vm4, %v15225_v14  ;;  %10961 = vmatprep.mubr.msk.f32.mxu0 %vm13609_vm2, %v21319_v53  ;;  %v2168_v14 = vld [vmem:[%s21318_s5 + $0x258] sm:$0xff]  ;;  %v2238_v10 = vld [vmem:[%s21318_s5 + $0x488] sm:$0xff] }
 0x4b2   :  { %v11681_v62 = vpack.c.bf16 %v2168_v14, %v2165_v57  ;;  %12018 = vmatprep.subr.bf16.mxu0 %v12017_v33  ;;  %v2214_v57 = vld [vmem:[%s21318_s5 + $0x3c8] sm:$0xff]  ;;  %v2225_v33 = vld [vmem:[%s21318_s5 + $0x420] sm:$0xff] }
 0x4b3   :  { %11674 = vmatpush1.bf16.msra.mxu1 %v11673_v38  ;;  %v11701_v38 = vpack.c.bf16 %v2198_v12, %v2195_v3  ;;  %v9869_v12 = vld [vmem:[%s21318_s5 + $0xe20] sm:$0xff] }
 0x4b4   :  { %11676 = vmatprep.subr.bf16.mxu1 %v11675_v37  ;;  %10962 = vmatmul.mubr.msk.f32.vlgmr.msra.gmra.mrb[106].mxu0 %vm1821_vm6, %v16354_v30  ;;  %v2174_v30 = vld [vmem:[%s21318_s5 + $0x288] sm:$0xff]  ;;  %v11703_v37 = vpack.c.bf16 %v2205_v49, %v2202_v21  ;;  %v9872_v21 = vld [vmem:[%s21318_s5 + $0xe38] sm:$0xff] }
 0x4b5   :  { %10964 = vmatprep.mubr.msk.f32.mxu0 %vm13609_vm2, %v21319_v53  ;;  %v11685_v41 = vpack.c.bf16 %v2174_v30, %v2171_v44  ;;  %12020 = vmatpush3.bf16.msra.mxu0 %v12019_v9  ;;  %v9857_v30 = vld [vmem:[%s21318_s5 + $0xdc0] sm:$0xff]  ;;  %v12031_v49 = vpack.c.bf16 %v9872_v21, %v9869_v12 }
 0x4b7   :  { %11678 = vmatpush1.bf16.msra.mxu1 %v11677_v1  ;;  %v2207_v1 = vld [vmem:[%s21318_s5 + $0x390] sm:$0xff] }
 0x4b8   :  { %11680 = vmatprep.subr.bf16.mxu1 %v11679_v23  ;;  %10965 = vmatmul.mubr.msk.f32.gmra.mrb[108].mxu0 %vm1821_vm6, %v16376_v25  ;;  %v2180_v25 = vld [vmem:[%s21318_s5 + $0x2b8] sm:$0xff]  ;;  %v2210_v23 = vld [vmem:[%s21318_s5 + $0x3a8] sm:$0xff] }
 0x4b9   :  { %10967 = vmatprep.mubr.msk.f32.mxu0 %vm13609_vm2, %v21319_v53  ;;  %v11689_v56 = vpack.c.bf16 %v2180_v25, %v2177_v24  ;;  %v2219_v24 = vld [vmem:[%s21318_s5 + $0x3f0] sm:$0xff]  ;;  %v2222_v25 = vld [vmem:[%s21318_s5 + $0x408] sm:$0xff] }
 0x4ba   :  { %v11717_v47 = vpack.c.bf16 %v2222_v25, %v2219_v24  ;;  %v9935_v24 = vld [vmem:[%s21318_s5 + $0x1030] sm:$0xff] }
 0x4bb   :  { %11682 = vmatpush1.bf16.msra.mxu1 %v11681_v62  ;;  %v9905_v62 = vld [vmem:[%s21318_s5 + $0xf40] sm:$0xff] }
 0x4bc   :  { %11684 = vmatprep.subr.bf16.mxu1 %v11683_v55  ;;  %10968 = vmatmul.mubr.msk.f32.gmra.mrb[110].mxu0 %vm1821_vm6, %v16398_v54  ;;  %v2186_v54 = vld [vmem:[%s21318_s5 + $0x2e8] sm:$0xff]  ;;  %v9908_v55 = vld [vmem:[%s21318_s5 + $0xf58] sm:$0xff]  ;;  %vm4854_vm6 = vcmask 1041408  }
 0x4bd   :  { %v11693_v26 = vpack.c.bf16 %v2186_v54, %v2183_v13  ;;  %v12021_v44 = vpack.c.bf16 %v9908_v55, %v9905_v62  ;;  %v9863_v54 = vld [vmem:[%s21318_s5 + $0xdf0] sm:$0xff]  ;;  %v2246_v62 = vld [vmem:[%s21318_s5 + $0x4c8] sm:$0xff]  ;;  %v2253_v55 = vld [vmem:[%s21318_s5 + $0x500] sm:$0xff] }
 0x4be   :  { %v12027_v15 = vpack.c.bf16 %v9866_v43, %v9863_v54  ;;  %v9887_v54 = vld [vmem:[%s21318_s5 + $0xeb0] sm:$0xff]  ;;  %v9890_v43 = vld [vmem:[%s21318_s5 + $0xec8] sm:$0xff] }
 0x4bf   :  { %11686 = vmatpush1.bf16.msra.mxu1 %v11685_v41  ;;  %v12023_v41 = vpack.c.bf16 %v9860_v4, %v9857_v30  ;;  %12022 = vmatprep.subr.bf16.mxu0 %v12021_v44  ;;  %v9881_v30 = vld [vmem:[%s21318_s5 + $0xe80] sm:$0xff]  ;;  %v9884_v4 = vld [vmem:[%s21318_s5 + $0xe98] sm:$0xff] }
 0x4c0   :  { %11688 = vmatprep.subr.bf16.mxu1 %v11687_v27 }
 0x4c1   :  { %12024 = vmatpush3.bf16.msra.mxu0 %v12023_v41 }
 0x4c3   :  { %11690 = vmatpush1.bf16.msra.mxu1 %v11689_v56  ;;  %v2229_v56 = vld [vmem:[%s21318_s5 + $0x440] sm:$0xff] }
 0x4c4   :  { %11692 = vmatprep.subr.bf16.mxu1 %v11691_v20  ;;  %v9914_v20 = vld [vmem:[%s21318_s5 + $0xf88] sm:$0xff]  ;;  %v11719_v50 = vpack.c.bf16 %v2229_v56, %v2226_v0  ;;  %v2256_v0 = vld [vmem:[%s21318_s5 + $0x518] sm:$0xff] }
 0x4c5   :  { %v12025_v13 = vpack.c.bf16 %v9914_v20, %v9911_v51  ;;  %v2252_v51 = vld [vmem:[%s21318_s5 + $0x4f8] sm:$0xff]  ;;  %v9938_v56 = vld [vmem:[%s21318_s5 + $0x1048] sm:$0xff]  ;;  %v2259_v20 = vld [vmem:[%s21318_s5 + $0x530] sm:$0xff] }
 0x4c7   :  { %11694 = vmatpush1.bf16.msra.mxu1 %v11693_v26  ;;  %12026 = vmatprep.subr.bf16.mxu0 %v12025_v13  ;;  %v2232_v26 = vld [vmem:[%s21318_s5 + $0x458] sm:$0xff]  ;;  %v12041_v13 = vpack.c.bf16 %v9938_v56, %v9935_v24 }
 0x4c8   :  { %11696 = vmatprep.subr.bf16.mxu1 %v11695_v42  ;;  %12028 = vmatpush3.bf16.msra.mxu0 %v12027_v15  ;;  %v11721_v42 = vpack.c.bf16 %v2228_v28, %v2225_v33  ;;  %v11723_v9 = vpack.c.bf16 %v2235_v7, %v2232_v26  ;;  %v9941_v33 = vld [vmem:[%s21318_s5 + $0x1060] sm:$0xff]  ;;  %v11739_v28 = vpack.c.bf16 %v2259_v20, %v2256_v0  ;;  %v2258_v26 = vld [vmem:[%s21318_s5 + $0x528] sm:$0xff]  ;;  %v2292_v56 = vld [vmem:[%s21318_s5 + $0x638] sm:$0xff] }
 0x4c9   :  { %v2262_v7 = vld [vmem:[%s21318_s5 + $0x548] sm:$0xff]  ;;  %v2295_v20 = vld [vmem:[%s21318_s5 + $0x650] sm:$0xff] }
 0x4ca   :  { %3358 = vmatmul.mubr.f32.vlgmr.msra.gmra.mrb[52].mxu1 %v15567_v32  ;;  %v2211_v32 = vld [vmem:[%s21318_s5 + $0x3b0] sm:$0xff] }
 0x4cb   :  { %3363 = vmatprep.mubr.f32.mxu1 %v15573_v18  ;;  %11698 = vmatpush1.bf16.msra.mxu1 %v11697_v11  ;;  %v11705_v18 = vpack.c.bf16 %v2204_v39, %v2201_v29  ;;  %v11707_v36 = vpack.c.bf16 %v2211_v32, %v2208_v5  ;;  %v9920_v11 = vld [vmem:[%s21318_s5 + $0xfb8] sm:$0xff]  ;;  %v9923_v29 = vld [vmem:[%s21318_s5 + $0xfd0] sm:$0xff] }
 0x4cc   :  { %11700 = vmatprep.subr.bf16.mxu1 %v11699_v16  ;;  %v2241_v16 = vld [vmem:[%s21318_s5 + $0x4a0] sm:$0xff]  ;;  %v12029_v3 = vpack.c.bf16 %v9920_v11, %v9917_v40  ;;  %v2240_v5 = vld [vmem:[%s21318_s5 + $0x498] sm:$0xff]  ;;  %v9995_v11 = vld [vmem:[%s21318_s5 + $0x1210] sm:$0xff] }
 0x4cd   :  { %v11727_v39 = vpack.c.bf16 %v2241_v16, %v2238_v10  ;;  %v2244_v32 = vld [vmem:[%s21318_s5 + $0x4b8] sm:$0xff]  ;;  %v9998_v16 = vld [vmem:[%s21318_s5 + $0x1228] sm:$0xff] }
 0x4ce   :  { %3364 = vmatmul.mubr.f32.gmra.mrb[54].mxu1 %v15571_v17  ;;  %v2217_v17 = vld [vmem:[%s21318_s5 + $0x3e0] sm:$0xff]  ;;  %12030 = vmatprep.subr.bf16.mxu0 %v12029_v3  ;;  %v12049_v12 = vpack.c.bf16 %v9998_v16, %v9995_v11  ;;  %v2303_v16 = vld [vmem:[%s21318_s5 + $0x690] sm:$0xff] }
 0x4cf   :  { %3369 = vmatprep.mubr.f32.mxu1 %v15577_v60  ;;  %11702 = vmatpush1.bf16.msra.mxu1 %v11701_v38  ;;  %v11709_v60 = vpack.c.bf16 %v2210_v23, %v2207_v1  ;;  %v11711_v14 = vpack.c.bf16 %v2217_v17, %v2214_v57  ;;  %v11725_v38 = vpack.c.bf16 %v2234_v58, %v2231_v48  ;;  %v9875_v23 = vld [vmem:[%s21318_s5 + $0xe50] sm:$0xff]  ;;  %v9878_v57 = vld [vmem:[%s21318_s5 + $0xe68] sm:$0xff]  ;;  %v2265_v48 = vld [vmem:[%s21318_s5 + $0x560] sm:$0xff] }
 0x4d0   :  { %11704 = vmatprep.subr.bf16.mxu1 %v11703_v37  ;;  %v2237_v37 = vld [vmem:[%s21318_s5 + $0x480] sm:$0xff]  ;;  %12032 = vmatpush3.bf16.msra.mxu0 %v12031_v49  ;;  %v12035_v17 = vpack.c.bf16 %v9878_v57, %v9875_v23  ;;  %v9896_v58 = vld [vmem:[%s21318_s5 + $0xef8] sm:$0xff]  ;;  %v11743_v21 = vpack.c.bf16 %v2265_v48, %v2262_v7 }
 0x4d1   :  { %v2261_v49 = vld [vmem:[%s21318_s5 + $0x540] sm:$0xff] }
 0x4d2   :  { %3370 = vmatmul.mubr.f32.gmra.mrb[56].mxu1 %v15575_v35  ;;  %v2220_v35 = vld [vmem:[%s21318_s5 + $0x3f8] sm:$0xff] }
 0x4d3   :  { %11706 = vmatpush1.bf16.msra.mxu1 %v11705_v18  ;;  %3440 = vmatprep.mubr.f32.mxu1 %v15581_v46  ;;  %v2223_v46 = vld [vmem:[%s21318_s5 + $0x410] sm:$0xff]  ;;  %v9926_v18 = vld [vmem:[%s21318_s5 + $0xfe8] sm:$0xff] }
 0x4d4   :  { %11708 = vmatprep.subr.bf16.mxu1 %v11707_v36  ;;  %v11715_v27 = vpack.c.bf16 %v2223_v46, %v2220_v35  ;;  %v2247_v36 = vld [vmem:[%s21318_s5 + $0x4d0] sm:$0xff]  ;;  %v12033_v1 = vpack.c.bf16 %v9926_v18, %v9923_v29  ;;  %v2250_v35 = vld [vmem:[%s21318_s5 + $0x4e8] sm:$0xff]  ;;  %v9932_v46 = vld [vmem:[%s21318_s5 + $0x1018] sm:$0xff] }
 0x4d5   :  { %v11731_v31 = vpack.c.bf16 %v2247_v36, %v2244_v32  ;;  %v12037_v44 = vpack.c.bf16 %v9932_v46, %v9929_v2  ;;  %v11735_v25 = vpack.c.bf16 %v2253_v55, %v2250_v35  ;;  %v2271_v29 = vld [vmem:[%s21318_s5 + $0x590] sm:$0xff]  ;;  %v2270_v18 = vld [vmem:[%s21318_s5 + $0x588] sm:$0xff] }
 0x4d6   :  { %12034 = vmatprep.subr.bf16.mxu0 %v12033_v1  ;;  %v2267_v32 = vld [vmem:[%s21318_s5 + $0x570] sm:$0xff]  ;;  %v2274_v36 = vld [vmem:[%s21318_s5 + $0x5a8] sm:$0xff]  ;;  %v2277_v1 = vld [vmem:[%s21318_s5 + $0x5c0] sm:$0xff] }
 0x4d7   :  { %11710 = vmatpush1.bf16.msra.mxu1 %v11709_v60  ;;  %v11729_v60 = vpack.c.bf16 %v2240_v5, %v2237_v37  ;;  %12036 = vmatpush3.bf16.msra.mxu0 %v12035_v17  ;;  %v2268_v37 = vld [vmem:[%s21318_s5 + $0x578] sm:$0xff]  ;;  %v11749_v23 = vpack.c.bf16 %v2270_v18, %v2267_v32  ;;  %v11751_v57 = vpack.c.bf16 %v2277_v1, %v2274_v36  ;;  %v2273_v17 = vld [vmem:[%s21318_s5 + $0x5a0] sm:$0xff]  ;;  %v2283_v2 = vld [vmem:[%s21318_s5 + $0x5f0] sm:$0xff] }
 0x4d8   :  { %11712 = vmatprep.subr.bf16.mxu1 %v11711_v14  ;;  %v2243_v14 = vld [vmem:[%s21318_s5 + $0x4b0] sm:$0xff]  ;;  %12038 = vmatprep.subr.bf16.mxu0 %v12037_v44  ;;  %v11747_v5 = vpack.c.bf16 %v2271_v29, %v2268_v37  ;;  %v2282_v55 = vld [vmem:[%s21318_s5 + $0x5e8] sm:$0xff]  ;;  %v9849_v37 = vld [vmem:[%s21318_s5 + $0xd80] sm:$0xff] }
 0x4d9   :  { %v11733_v41 = vpack.c.bf16 %v2246_v62, %v2243_v14  ;;  %v2280_v14 = vld [vmem:[%s21318_s5 + $0x5d8] sm:$0xff]  ;;  %v2279_v46 = vld [vmem:[%s21318_s5 + $0x5d0] sm:$0xff] }
 0x4da   :  { %v11755_v35 = vpack.c.bf16 %v2283_v2, %v2280_v14  ;;  %v9852_v29 = vld [vmem:[%s21318_s5 + $0xd98] sm:$0xff]  ;;  %v9855_v1 = vld [vmem:[%s21318_s5 + $0xdb0] sm:$0xff] }
 0x4db   :  { %11714 = vmatpush1.bf16.msra.mxu1 %v11713_v19  ;;  %v12039_v19 = vpack.c.bf16 %v9884_v4, %v9881_v30  ;;  %v2286_v30 = vld [vmem:[%s21318_s5 + $0x608] sm:$0xff]  ;;  %v2289_v4 = vld [vmem:[%s21318_s5 + $0x620] sm:$0xff]  ;;  %v11875_v32 = vpack.c.bf16 %v9852_v29, %v9849_v37  ;;  %v9904_v29 = vld [vmem:[%s21318_s5 + $0xf38] sm:$0xff] }
 0x4dc   :  { %11716 = vmatprep.subr.bf16.mxu1 %v11715_v27  ;;  %v2249_v27 = vld [vmem:[%s21318_s5 + $0x4e0] sm:$0xff] }
 0x4dd   :  { %12040 = vmatpush3.bf16.msra.mxu0 %v12039_v19  ;;  %v11737_v15 = vpack.c.bf16 %v2252_v51, %v2249_v27  ;;  %v11759_v27 = vpack.c.bf16 %v2289_v4, %v2286_v30  ;;  %v2288_v51 = vld [vmem:[%s21318_s5 + $0x618] sm:$0xff]  ;;  %v9870_v30 = vld [vmem:[%s21318_s5 + $0xe28] sm:$0xff] }
 0x4de   :  { %12042 = vmatprep.subr.bf16.mxu0 %v12041_v13  ;;  %v9874_v4 = vld [vmem:[%s21318_s5 + $0xe48] sm:$0xff] }
 0x4df   :  { %11718 = vmatpush1.bf16.msra.mxu1 %v11717_v47  ;;  %v12043_v47 = vpack.c.bf16 %v9890_v43, %v9887_v54  ;;  %v11763_v43 = vpack.c.bf16 %v2295_v20, %v2292_v56  ;;  %v9879_v20 = vld [vmem:[%s21318_s5 + $0xe70] sm:$0xff] }
 0x4e0   :  { %11720 = vmatprep.subr.bf16.mxu1 %v11719_v50  ;;  %v2255_v50 = vld [vmem:[%s21318_s5 + $0x510] sm:$0xff] }
 0x4e1   :  { %12044 = vmatpush3.bf16.msra.mxu0 %v12043_v47  ;;  %v11741_v3 = vpack.c.bf16 %v2258_v26, %v2255_v50  ;;  %v2294_v50 = vld [vmem:[%s21318_s5 + $0x648] sm:$0xff]  ;;  %v2301_v26 = vld [vmem:[%s21318_s5 + $0x680] sm:$0xff] }
 0x4e3   :  { %11722 = vmatpush1.bf16.msra.mxu1 %v11721_v42  ;;  %v9944_v42 = vld [vmem:[%s21318_s5 + $0x1078] sm:$0xff] }
 0x4e4   :  { %11724 = vmatprep.subr.bf16.mxu1 %v11723_v9  ;;  %v12045_v40 = vpack.c.bf16 %v9944_v42, %v9941_v33  ;;  %v9893_v9 = vld [vmem:[%s21318_s5 + $0xee0] sm:$0xff] }
 0x4e5   :  { %v12047_v10 = vpack.c.bf16 %v9896_v58, %v9893_v9  ;;  %v2300_v9 = vld [vmem:[%s21318_s5 + $0x678] sm:$0xff] }
 0x4e6   :  { %12046 = vmatprep.subr.bf16.mxu0 %v12045_v40  ;;  %v2297_v40 = vld [vmem:[%s21318_s5 + $0x660] sm:$0xff] }
 0x4e7   :  { %11726 = vmatpush1.bf16.msra.mxu1 %v11725_v38  ;;  %v2264_v38 = vld [vmem:[%s21318_s5 + $0x558] sm:$0xff]  ;;  %12048 = vmatpush3.bf16.msra.mxu0 %v12047_v10  ;;  %v11769_v58 = vpack.c.bf16 %v2300_v9, %v2297_v40 }
 0x4e8   :  { %11728 = vmatprep.subr.bf16.mxu1 %v11727_v39  ;;  %12050 = vmatprep.subr.bf16.mxu0 %v12049_v12  ;;  %v11745_v39 = vpack.c.bf16 %v2264_v38, %v2261_v49 }
 0x4eb   :  { %11730 = vmatpush1.bf16.msra.mxu1 %v11729_v60  ;;  %v2276_v60 = vld [vmem:[%s21318_s5 + $0x5b8] sm:$0xff] }
 0x4ec   :  { %11732 = vmatprep.subr.bf16.mxu1 %v11731_v31  ;;  %v11753_v31 = vpack.c.bf16 %v2276_v60, %v2273_v17  ;;  %v9862_v17 = vld [vmem:[%s21318_s5 + $0xde8] sm:$0xff]  ;;  %v9865_v60 = vld [vmem:[%s21318_s5 + $0xe00] sm:$0xff] }
 0x4ed   :  { %v11881_v2 = vpack.c.bf16 %v9865_v60, %v9862_v17  ;;  %v9910_v17 = vld [vmem:[%s21318_s5 + $0xf68] sm:$0xff]  ;;  %v9913_v60 = vld [vmem:[%s21318_s5 + $0xf80] sm:$0xff] }
 0x4ef   :  { %11734 = vmatpush1.bf16.msra.mxu1 %v11733_v41  ;;  %v11757_v41 = vpack.c.bf16 %v2282_v55, %v2279_v46 }
 0x4f0   :  { %11736 = vmatprep.subr.bf16.mxu1 %v11735_v25  ;;  %v2285_v25 = vld [vmem:[%s21318_s5 + $0x600] sm:$0xff] }
 0x4f1   :  { %v11761_v54 = vpack.c.bf16 %v2288_v51, %v2285_v25  ;;  %v9876_v25 = vld [vmem:[%s21318_s5 + $0xe58] sm:$0xff] }
 0x4f2   :  { %v9880_v51 = vld [vmem:[%s21318_s5 + $0xe78] sm:$0xff] }
 0x4f3   :  { %11738 = vmatpush1.bf16.msra.mxu1 %v11737_v15  ;;  %v2291_v15 = vld [vmem:[%s21318_s5 + $0x630] sm:$0xff] }
 0x4f4   :  { %11740 = vmatprep.subr.bf16.mxu1 %v11739_v28  ;;  %v2298_v28 = vld [vmem:[%s21318_s5 + $0x668] sm:$0xff]  ;;  %v11765_v42 = vpack.c.bf16 %v2294_v50, %v2291_v15 }
 0x4f5   :  { %v11767_v48 = vpack.c.bf16 %v2301_v26, %v2298_v28  ;;  %v9888_v28 = vld [vmem:[%s21318_s5 + $0xeb8] sm:$0xff] }
 0x4f6   :  { %v9892_v26 = vld [vmem:[%s21318_s5 + $0xed8] sm:$0xff] }
 0x4f7   :  { %11742 = vmatpush1.bf16.msra.mxu1 %v11741_v3  ;;  %v2306_v3 = vld [vmem:[%s21318_s5 + $0x6a8] sm:$0xff] }
 0x4f8   :  { %11744 = vmatprep.subr.bf16.mxu1 %v11743_v21  ;;  %v11773_v21 = vpack.c.bf16 %v2306_v3, %v2303_v16  ;;  %v9901_v16 = vld [vmem:[%s21318_s5 + $0xf20] sm:$0xff] }
 0x4fb   :  { %11746 = vmatpush1.bf16.msra.mxu1 %v11745_v39 }
 0x4fc   :  { %11748 = vmatprep.subr.bf16.mxu1 %v11747_v5  ;;  %v9859_v5 = vld [vmem:[%s21318_s5 + $0xdd0] sm:$0xff] }
 0x4ff   :  { %11750 = vmatpush1.bf16.msra.mxu1 %v11749_v23  ;;  %v9858_v23 = vld [vmem:[%s21318_s5 + $0xdc8] sm:$0xff] }
 0x500   :  { %11752 = vmatprep.subr.bf16.mxu1 %v11751_v57  ;;  %v11879_v14 = vpack.c.bf16 %v9858_v23, %v9855_v1  ;;  %v9903_v1 = vld [vmem:[%s21318_s5 + $0xf30] sm:$0xff]  ;;  %v9906_v23 = vld [vmem:[%s21318_s5 + $0xf48] sm:$0xff] }
 0x501   :  { %v10634_v62 = vpop.f32.mrb[64].mxu0 }
 0x502   :  { %v10635_v44 = vpop.f32.mrb[65].mxu0 }
 0x503   :  { %v16836_v19 = vadd.f32 %v10635_v44, %v10634_v62  ;;  %11754 = vmatpush1.bf16.msra.mxu1 %v11753_v31  ;;  %v9861_v31 = vld [vmem:[%s21318_s5 + $0xde0] sm:$0xff]  ;;  %v9864_v62 = vld [vmem:[%s21318_s5 + $0xdf8] sm:$0xff]  ;;  %v9867_v44 = vld [vmem:[%s21318_s5 + $0xe10] sm:$0xff] }
 0x504   :  { %11756 = vmatprep.subr.bf16.mxu1 %v11755_v35  ;;  %v9868_v35 = vld [vmem:[%s21318_s5 + $0xe18] sm:$0xff]  ;;  %v11883_v46 = vpack.c.bf16 %v9864_v62, %v9861_v31  ;;  %v11913_v31 = vpack.c.bf16 %v9913_v60, %v9910_v17  ;;  %v9909_v62 = vld [vmem:[%s21318_s5 + $0xf60] sm:$0xff] }
 0x505   :  { %v10637_v24 = vpop.f32.mrb[66].mxu0 }
 0x506   :  { %v10638_v0 = vpop.f32.mrb[67].mxu0 }
 0x507   :  { %v16850_v13 = vadd.f32 %v10638_v0, %v10637_v24  ;;  %11758 = vmatpush1.bf16.msra.mxu1 %v11757_v41  ;;  %v11887_v41 = vpack.c.bf16 %v9870_v30, %v9867_v44  ;;  %v9873_v24 = vld [vmem:[%s21318_s5 + $0xe40] sm:$0xff]  ;;  %v9915_v30 = vld [vmem:[%s21318_s5 + $0xf90] sm:$0xff] }
 0x508   :  { %11760 = vmatprep.subr.bf16.mxu1 %v11759_v27  ;;  %v11891_v0 = vpack.c.bf16 %v9876_v25, %v9873_v24  ;;  %v9921_v25 = vld [vmem:[%s21318_s5 + $0xfc0] sm:$0xff] }
 0x509   :  { %v10640_v47 = vpop.f32.mrb[68].mxu0 }
 0x50a   :  { %v10641_v33 = vpop.f32.mrb[69].mxu0  ;;  %3441 = vmatmul.mubr.f32.vlgmr.msra.gmra.mrb[52].mxu1 %v15579_v34  ;;  %v2304_v34 = vld [vmem:[%s21318_s5 + $0x698] sm:$0xff] }
 0x50b   :  { %v16865_v7 = vadd.f32 %v10641_v33, %v10640_v47  ;;  %3446 = vmatprep.mubr.f32.mxu1 %v15585_v22  ;;  %11762 = vmatpush1.bf16.msra.mxu1 %v11761_v54  ;;  %v2307_v22 = vld [vmem:[%s21318_s5 + $0x6b0] sm:$0xff]  ;;  %v9882_v54 = vld [vmem:[%s21318_s5 + $0xe88] sm:$0xff]  ;;  %v9889_v47 = vld [vmem:[%s21318_s5 + $0xec0] sm:$0xff] }
 0x50c   :  { %11764 = vmatprep.subr.bf16.mxu1 %v11763_v43  ;;  %v11771_v11 = vpack.c.bf16 %v2307_v22, %v2304_v34  ;;  %v9886_v43 = vld [vmem:[%s21318_s5 + $0xea8] sm:$0xff]  ;;  %v11895_v15 = vpack.c.bf16 %v9882_v54, %v9879_v20  ;;  %v9885_v33 = vld [vmem:[%s21318_s5 + $0xea0] sm:$0xff]  ;;  %v9891_v34 = vld [vmem:[%s21318_s5 + $0xed0] sm:$0xff] }
 0x50d   :  { %v11897_v50 = vpack.c.bf16 %v9889_v47, %v9886_v43  ;;  %v9894_v22 = vld [vmem:[%s21318_s5 + $0xee8] sm:$0xff]  ;;  %v9927_v54 = vld [vmem:[%s21318_s5 + $0xff0] sm:$0xff] }
 0x50e   :  { %3447 = vmatmul.mubr.f32.gmra.mrb[54].mxu1 %v15583_v6  ;;  %v9850_v6 = vld [vmem:[%s21318_s5 + $0xd88] sm:$0xff] }
 0x50f   :  { %3452 = vmatprep.mubr.f32.mxu1 %v15589_v63  ;;  %11766 = vmatpush1.bf16.msra.mxu1 %v11765_v42  ;;  %v9853_v63 = vld [vmem:[%s21318_s5 + $0xda0] sm:$0xff]  ;;  %v9895_v42 = vld [vmem:[%s21318_s5 + $0xef0] sm:$0xff]  ;;  %v9930_v43 = vld [vmem:[%s21318_s5 + $0x1008] sm:$0xff] }
 0x510   :  { %11768 = vmatprep.subr.bf16.mxu1 %v11767_v48  ;;  %v11873_v38 = vpack.c.bf16 %v9853_v63, %v9850_v6  ;;  %v11899_v48 = vpack.c.bf16 %v9888_v28, %v9885_v33  ;;  %v11901_v9 = vpack.c.bf16 %v9895_v42, %v9892_v26  ;;  %v9934_v47 = vld [vmem:[%s21318_s5 + $0x1028] sm:$0xff]  ;;  %v9933_v28 = vld [vmem:[%s21318_s5 + $0x1020] sm:$0xff]  ;;  %v9936_v26 = vld [vmem:[%s21318_s5 + $0x1038] sm:$0xff] }
 0x511   :  { %v16882_v10 = vpop.f32.mrb[70].mxu0  ;;  %v9940_v42 = vld [vmem:[%s21318_s5 + $0x1058] sm:$0xff] }
 0x512   :  { %v10919_v12 = vpop.f32.mrb[71].mxu0  ;;  %3453 = vmatmul.mubr.f32.gmra.mrb[56].mxu1 %v15587_v52  ;;  %v9856_v52 = vld [vmem:[%s21318_s5 + $0xdb8] sm:$0xff] }
 0x513   :  { %11770 = vmatpush1.bf16.msra.mxu1 %v11769_v58  ;;  %3523 = vmatprep.mubr.f32.mxu1 %v21319_v53  ;;  %v11877_v36 = vpack.c.bf16 %v9859_v5, %v9856_v52  ;;  %v11903_v12 = vpack.c.bf16 %v9894_v22, %v9891_v34  ;;  %v9939_v34 = vld [vmem:[%s21318_s5 + $0x1050] sm:$0xff]  ;;  %v9942_v22 = vld [vmem:[%s21318_s5 + $0x1068] sm:$0xff] }
 0x514   :  { %11772 = vmatprep.subr.bf16.mxu1 %v11771_v11  ;;  %v9898_v11 = vld [vmem:[%s21318_s5 + $0xf08] sm:$0xff] }
 0x515   :  { %v16898_v49 = vpop.f32.mrb[72].mxu0  ;;  %v11905_v63 = vpack.c.bf16 %v9901_v16, %v9898_v11  ;;  %v9949_v11 = vld [vmem:[%s21318_s5 + $0x10a0] sm:$0xff] }
 0x516   :  { %v10922_v39 = vpop.f32.mrb[73].mxu0 }
 0x517   :  { %11774 = vmatpush1.bf16.msra.mxu1 %v11773_v21  ;;  %v9897_v21 = vld [vmem:[%s21318_s5 + $0xf00] sm:$0xff]  ;;  %v9907_v39 = vld [vmem:[%s21318_s5 + $0xf50] sm:$0xff] }
 0x518   :  { %11874 = vmatprep.subr.bf16.mxu1 %v11873_v38  ;;  %v9900_v38 = vld [vmem:[%s21318_s5 + $0xf18] sm:$0xff] }
 0x519   :  { %v16912_v18 = vpop.f32.mrb[74].mxu0  ;;  %v11907_v5 = vpack.c.bf16 %v9900_v38, %v9897_v21 }
 0x51a   :  { %v10925_v57 = vpop.f32.mrb[75].mxu0  ;;  %9826 = vmatmul.mubr.msk.f32.vlgmr.msra.gmra.mrb[52].mxu1 %vm2785_vm15, %v15631_v8  ;;  %v9871_v8 = vld [vmem:[%s21318_s5 + $0xe30] sm:$0xff] }
 0x51b   :  { %3529 = vmatprep.mubr.f32.mxu1 %v21319_v53  ;;  %11876 = vmatpush1.bf16.msra.mxu1 %v11875_v32  ;;  %v11885_v55 = vpack.c.bf16 %v9871_v8, %v9868_v35  ;;  %v9912_v35 = vld [vmem:[%s21318_s5 + $0xf78] sm:$0xff] }
 0x51c   :  { %11878 = vmatprep.subr.bf16.mxu1 %v11877_v36  ;;  %v11909_v36 = vpack.c.bf16 %v9907_v39, %v9904_v29  ;;  %v9916_v8 = vld [vmem:[%s21318_s5 + $0xf98] sm:$0xff] }
 0x51e   :  { %9827 = vmatmul.mubr.msk.f32.gmra.mrb[54].mxu1 %vm2785_vm15, %v15647_v61  ;;  %v9877_v61 = vld [vmem:[%s21318_s5 + $0xe60] sm:$0xff] }
 0x51f   :  { %3535 = vmatprep.mubr.f32.mxu1 %v21319_v53  ;;  %11880 = vmatpush1.bf16.msra.mxu1 %v11879_v14  ;;  %v11889_v27 = vpack.c.bf16 %v9877_v61, %v9874_v4  ;;  %v9918_v4 = vld [vmem:[%s21318_s5 + $0xfa8] sm:$0xff] }
 0x520   :  { %11882 = vmatprep.subr.bf16.mxu1 %v11881_v2  ;;  %v11911_v2 = vpack.c.bf16 %v9906_v23, %v9903_v1  ;;  %v9922_v61 = vld [vmem:[%s21318_s5 + $0xfc8] sm:$0xff] }
 0x522   :  { %9828 = vmatmul.mubr.msk.f32.gmra.mrb[56].mxu1 %vm2785_vm15, %v15667_v59  ;;  %v9883_v59 = vld [vmem:[%s21318_s5 + $0xe90] sm:$0xff] }
 0x523   :  { %11884 = vmatpush1.bf16.msra.mxu1 %v11883_v46  ;;  %v11893_v56 = vpack.c.bf16 %v9883_v59, %v9880_v51  ;;  %v9919_v46 = vld [vmem:[%s21318_s5 + $0xfb0] sm:$0xff]  ;;  %v9924_v51 = vld [vmem:[%s21318_s5 + $0xfd8] sm:$0xff] }
 0x524   :  { %11886 = vmatprep.subr.bf16.mxu1 %v11885_v55  ;;  %v11915_v55 = vpack.c.bf16 %v9912_v35, %v9909_v62  ;;  %v11917_v44 = vpack.c.bf16 %v9919_v46, %v9916_v8  ;;  %v9928_v59 = vld [vmem:[%s21318_s5 + $0xff8] sm:$0xff] }
 0x527   :  { %11888 = vmatpush1.bf16.msra.mxu1 %v11887_v41  ;;  %v9925_v41 = vld [vmem:[%s21318_s5 + $0xfe0] sm:$0xff] }
 0x528   :  { %11890 = vmatprep.subr.bf16.mxu1 %v11889_v27  ;;  %v11919_v27 = vpack.c.bf16 %v9918_v4, %v9915_v30  ;;  %v11921_v24 = vpack.c.bf16 %v9925_v41, %v9922_v61 }
 0x52b   :  { %11892 = vmatpush1.bf16.msra.mxu1 %v11891_v0  ;;  %v9931_v0 = vld [vmem:[%s21318_s5 + $0x1010] sm:$0xff] }
 0x52c   :  { %11894 = vmatprep.subr.bf16.mxu1 %v11893_v56  ;;  %v11923_v56 = vpack.c.bf16 %v9924_v51, %v9921_v25  ;;  %v11925_v20 = vpack.c.bf16 %v9931_v0, %v9928_v59  ;;  %v9947_v0 = vld [vmem:[%s21318_s5 + $0x1090] sm:$0xff] }
 0x52f   :  { %11896 = vmatpush1.bf16.msra.mxu1 %v11895_v15  ;;  %v9937_v15 = vld [vmem:[%s21318_s5 + $0x1040] sm:$0xff] }
 0x530   :  { %11898 = vmatprep.subr.bf16.mxu1 %v11897_v50  ;;  %v11927_v50 = vpack.c.bf16 %v9930_v43, %v9927_v54  ;;  %v11929_v33 = vpack.c.bf16 %v9937_v15, %v9934_v47  ;;  %v10001_v54 = vld [vmem:[%s21318_s5 + $0x1240] sm:$0xff]  ;;  %v10004_v43 = vld [vmem:[%s21318_s5 + $0x1258] sm:$0xff] }
 0x531   :  { %v10686_v40 = vpop.f32.mrb[76].mxu0 }
 0x532   :  { %v10687_v58 = vpop.f32.mrb[77].mxu0 }
 0x533   :  { %v17006_v3 = vadd.f32 %v10687_v58, %v10686_v40  ;;  %11900 = vmatpush1.bf16.msra.mxu1 %v11899_v48  ;;  %v9943_v48 = vld [vmem:[%s21318_s5 + $0x1070] sm:$0xff]  ;;  %v11931_v40 = vpack.c.bf16 %v9936_v26, %v9933_v28  ;;  %v9946_v58 = vld [vmem:[%s21318_s5 + $0x1088] sm:$0xff] }
 0x534   :  { %11902 = vmatprep.subr.bf16.mxu1 %v11901_v9  ;;  %v11933_v9 = vpack.c.bf16 %v9943_v48, %v9940_v42  ;;  %v11937_v21 = vpack.c.bf16 %v9949_v11, %v9946_v58  ;;  %v9954_v28 = vld [vmem:[%s21318_s5 + $0x10c8] sm:$0xff]  ;;  %v12053_v48 = vpack.c.bf16 %v10004_v43, %v10001_v54  ;;  %v9961_v58 = vld [vmem:[%s21318_s5 + $0x1100] sm:$0xff]  ;;  %v10007_v11 = vld [vmem:[%s21318_s5 + $0x1270] sm:$0xff] }
 0x535   :  { %v10689_v6 = vpop.f32.mrb[78].mxu0 }
 0x536   :  { %v10690_v37 = vpop.f32.mrb[79].mxu0 }
 0x537   :  { %v17020_v52 = vadd.f32 %v10690_v37, %v10689_v6  ;;  %11904 = vmatpush1.bf16.msra.mxu1 %v11903_v12  ;;  %v11935_v6 = vpack.c.bf16 %v9942_v22, %v9939_v34  ;;  %v9958_v34 = vld [vmem:[%s21318_s5 + $0x10e8] sm:$0xff] }
 0x538   :  { %11906 = vmatprep.subr.bf16.mxu1 %v11905_v63 }
 0x539   :  { %v10692_v32 = vpop.f32.mrb[80].mxu0 }
 0x53a   :  { %v10693_v57 = vpop.f32.mrb[81].mxu0 }
 0x53b   :  { %v17034_v14 = vadd.f32 %v10693_v57, %v10692_v32  ;;  %11908 = vmatpush1.bf16.msra.mxu1 %v11907_v5 }
 0x53c   :  { %11910 = vmatprep.subr.bf16.mxu1 %v11909_v36 }
 0x53f   :  { %11912 = vmatpush1.bf16.msra.mxu1 %v11911_v2 }
 0x540   :  { %11914 = vmatprep.subr.bf16.mxu1 %v11913_v31 }
 0x543   :  { %11916 = vmatpush1.bf16.msra.mxu1 %v11915_v55 }
 0x544   :  { %11918 = vmatprep.subr.bf16.mxu1 %v11917_v44 }
 0x547   :  { %11920 = vmatpush1.bf16.msra.mxu1 %v11919_v27 }
 0x548   :  { %11922 = vmatprep.subr.bf16.mxu1 %v11921_v24 }
 0x54b   :  { %11924 = vmatpush1.bf16.msra.mxu1 %v11923_v56 }
 0x54c   :  { %11926 = vmatprep.subr.bf16.mxu1 %v11925_v20  ;;  %v9955_v20 = vld [vmem:[%s21318_s5 + $0x10d0] sm:$0xff] }
 0x54f   :  { %11928 = vmatpush1.bf16.msra.mxu1 %v11927_v50 }
 0x550   :  { %11930 = vmatprep.subr.bf16.mxu1 %v11929_v33 }
 0x552   :  { %v10727_v16 = vpop.f32.mrb[82].mxu0 }
 0x553   :  { %v10728_v12 = vpop.f32.mrb[83].mxu0  ;;  %11932 = vmatpush1.bf16.msra.mxu1 %v11931_v40  ;;  %v9953_v40 = vld [vmem:[%s21318_s5 + $0x10c0] sm:$0xff] }
 0x554   :  { %v10729_v63 = vadd.f32 %v10728_v12, %v10727_v16  ;;  %11934 = vmatprep.subr.bf16.mxu1 %v11933_v9  ;;  %v9956_v9 = vld [vmem:[%s21318_s5 + $0x10d8] sm:$0xff]  ;;  %v10010_v16 = vld [vmem:[%s21318_s5 + $0x1288] sm:$0xff] }
 0x556   :  { %v10730_v38 = vpop.f32.mrb[84].mxu0 }
 0x557   :  { %v10731_v37 = vpop.f32.mrb[85].mxu0  ;;  %11936 = vmatpush1.bf16.msra.mxu1 %v11935_v6  ;;  %v12055_v6 = vpack.c.bf16 %v9956_v9, %v9953_v40  ;;  %v9985_v40 = vld [vmem:[%s21318_s5 + $0x11c0] sm:$0xff]  ;;  %v10031_v9 = vld [vmem:[%s21318_s5 + $0x1330] sm:$0xff] }
 0x558   :  { %v10732_v29 = vadd.f32 %v10731_v37, %v10730_v38  ;;  %11938 = vmatprep.subr.bf16.mxu1 %v11937_v21  ;;  %v9960_v21 = vld [vmem:[%s21318_s5 + $0x10f8] sm:$0xff]  ;;  %v11945_v37 = vpack.c.bf16 %v9961_v58, %v9958_v34  ;;  %v10034_v34 = vld [vmem:[%s21318_s5 + $0x1348] sm:$0xff] }
 0x55a   :  { %v10733_v39 = vpop.f32.mrb[86].mxu0 }
 0x55b   :  { %v10734_v5 = vpop.f32.mrb[87].mxu0 }
 0x55c   :  { %v10735_v32 = vadd.f32 %v10734_v5, %v10733_v39  ;;  %v9959_v39 = vld [vmem:[%s21318_s5 + $0x10f0] sm:$0xff]  ;;  %v9962_v5 = vld [vmem:[%s21318_s5 + $0x1108] sm:$0xff] }
 0x55d   :  { %v10593_v36 = vpop.f32.mrb[58].mxu1 }
 0x55e   :  { %v10594_v1 = vpop.f32.mrb[59].mxu1 }
 0x55f   :  { %v10595_v23 = vadd.f32 %v10594_v1, %v10593_v36  ;;  %v9967_v1 = vld [vmem:[%s21318_s5 + $0x1130] sm:$0xff] }
 0x561   :  { %v3191_v57 = vadd.f32 %v16836_v19, %v10595_v23  ;;  %v10596_v17 = vpop.f32.mrb[60].mxu1  ;;  %v10013_v23 = vld [vmem:[%s21318_s5 + $0x12a0] sm:$0xff] }
 0x562   :  { %v10597_v60 = vpop.f32.mrb[61].mxu1 }
 0x563   :  { %v3271_v2 = vadd.f32 %v16882_v10, %v3191_v57  ;;  %v10598_v31 = vadd.f32 %v10597_v60, %v10596_v17  ;;  %v3768_v62 = vpop.f32.mrb[88].mxu0  ;;  %v10016_v57 = vld [vmem:[%s21318_s5 + $0x12b8] sm:$0xff]  ;;  %v12059_v60 = vpack.c.bf16 %v9962_v5, %v9959_v39  ;;  %v9991_v5 = vld [vmem:[%s21318_s5 + $0x11f0] sm:$0xff] }
 0x564   :  { %v10944_v35 = vpop.f32.mrb[89].mxu0 }
 0x565   :  { %v3196_v8 = vadd.f32 %v16850_v13, %v10598_v31  ;;  %v3609_v46 = vadd.f32 %v17006_v3, %v3271_v2  ;;  %v10599_v55 = vpop.f32.mrb[62].mxu1  ;;  %v9945_v3 = vld [vmem:[%s21318_s5 + $0x1080] sm:$0xff]  ;;  %v9963_v2 = vld [vmem:[%s21318_s5 + $0x1110] sm:$0xff]  ;;  %v9966_v31 = vld [vmem:[%s21318_s5 + $0x1128] sm:$0xff] }
 0x566   :  { %v10600_v44 = vpop.f32.mrb[63].mxu1 }
 0x567   :  { %v3276_v30 = vadd.f32 %v16898_v49, %v3196_v8  ;;  %v3689_v4 = vadd.f32 %v10729_v63, %v3609_v46  ;;  %v10601_v61 = vadd.f32 %v10600_v44, %v10599_v55  ;;  %v3773_v41 = vpop.f32.mrb[90].mxu0  ;;  %v9948_v49 = vld [vmem:[%s21318_s5 + $0x1098] sm:$0xff]  ;;  %v9957_v63 = vld [vmem:[%s21318_s5 + $0x10e0] sm:$0xff]  ;;  %v12061_v8 = vpack.c.bf16 %v10016_v57, %v10013_v23  ;;  %v9970_v44 = vld [vmem:[%s21318_s5 + $0x1148] sm:$0xff] }
 0x568   :  { %v10947_v27 = vpop.f32.mrb[91].mxu0  ;;  %v11939_v50 = vpack.c.bf16 %v9948_v49, %v9945_v3  ;;  %v11947_v17 = vpack.c.bf16 %v9960_v21, %v9957_v63  ;;  %v9965_v46 = vld [vmem:[%s21318_s5 + $0x1120] sm:$0xff]  ;;  %v9968_v55 = vld [vmem:[%s21318_s5 + $0x1138] sm:$0xff]  ;;  %v9971_v49 = vld [vmem:[%s21318_s5 + $0x1150] sm:$0xff]  ;;  %v12073_v21 = vpack.c.bf16 %v10034_v34, %v10031_v9 }
 0x569   :  { %v17113_v19 = vadd.f32 %v3768_v62, %v3689_v4  ;;  %v3201_v24 = vadd.f32 %v16865_v7, %v10601_v61  ;;  %v3614_v10 = vadd.f32 %v17020_v52, %v3276_v30  ;;  %v9950_v7 = vld [vmem:[%s21318_s5 + $0x10a8] sm:$0xff]  ;;  %v9973_v4 = vld [vmem:[%s21318_s5 + $0x1160] sm:$0xff]  ;;  %v10019_v61 = vld [vmem:[%s21318_s5 + $0x12d0] sm:$0xff]  ;;  %v11951_v27 = vpack.c.bf16 %v9966_v31, %v9963_v2 }
 0x56a   :  { %v12051_v33 = vpack.c.bf16 %v9950_v7, %v9947_v0  ;;  %v9976_v0 = vld [vmem:[%s21318_s5 + $0x1178] sm:$0xff]  ;;  %v9987_v57 = vld [vmem:[%s21318_s5 + $0x11d0] sm:$0xff]  ;;  %v9990_v31 = vld [vmem:[%s21318_s5 + $0x11e8] sm:$0xff] }
 0x56b   :  { %v3281_v25 = vadd.f32 %v16912_v18, %v3201_v24  ;;  %v3694_v51 = vadd.f32 %v10732_v29, %v3614_v10  ;;  %v3778_v13 = vpop.f32.mrb[92].mxu0  ;;  %v9952_v18 = vld [vmem:[%s21318_s5 + $0x10b8] sm:$0xff]  ;;  %v12057_v29 = vpack.c.bf16 %v10010_v16, %v10007_v11  ;;  %v12063_v24 = vpack.c.bf16 %v9968_v55, %v9965_v46  ;;  %v9969_v10 = vld [vmem:[%s21318_s5 + $0x1140] sm:$0xff]  ;;  %v9994_v46 = vld [vmem:[%s21318_s5 + $0x1208] sm:$0xff] }
 0x56c   :  { %v10950_v59 = vpop.f32.mrb[93].mxu0  ;;  %v11941_v42 = vpack.c.bf16 %v9955_v20, %v9952_v18  ;;  %v9979_v18 = vld [vmem:[%s21318_s5 + $0x1190] sm:$0xff]  ;;  %v10028_v20 = vld [vmem:[%s21318_s5 + $0x1318] sm:$0xff]  ;;  %v9981_v16 = vld [vmem:[%s21318_s5 + $0x11a0] sm:$0xff] }
 0x56d   :  { %v17133_v52 = vadd.f32 %v3773_v41, %v3694_v51  ;;  %v3619_v56 = vadd.f32 %v17034_v14, %v3281_v25  ;;  %v9951_v14 = vld [vmem:[%s21318_s5 + $0x10b0] sm:$0xff]  ;;  %v10022_v41 = vld [vmem:[%s21318_s5 + $0x12e8] sm:$0xff]  ;;  %v9972_v25 = vld [vmem:[%s21318_s5 + $0x1158] sm:$0xff] }
 0x56e   :  { %v11943_v12 = vpack.c.bf16 %v9954_v28, %v9951_v14  ;;  %v12065_v3 = vpack.c.bf16 %v10022_v41, %v10019_v61  ;;  %v9974_v59 = vld [vmem:[%s21318_s5 + $0x1168] sm:$0xff]  ;;  %v11955_v54 = vpack.c.bf16 %v9972_v25, %v9969_v10  ;;  %v9977_v28 = vld [vmem:[%s21318_s5 + $0x1180] sm:$0xff]  ;;  %v10012_v34 = vld [vmem:[%s21318_s5 + $0x1298] sm:$0xff] }
 0x56f   :  { %v3699_v47 = vadd.f32 %v10735_v32, %v3619_v56  ;;  %v3861_v15 = vpop.f32.mrb[94].mxu0  ;;  %v9964_v32 = vld [vmem:[%s21318_s5 + $0x1118] sm:$0xff]  ;;  %v10025_v56 = vld [vmem:[%s21318_s5 + $0x1300] sm:$0xff]  ;;  %v12067_v43 = vpack.c.bf16 %v9974_v59, %v9971_v49  ;;  %v10046_v10 = vld [vmem:[%s21318_s5 + $0x13a8] sm:$0xff] }
 0x570   :  { %v3863_v26 = vpop.f32.mrb[95].mxu0  ;;  %v11949_v35 = vpack.c.bf16 %v9967_v1, %v9964_v32  ;;  %v12069_v14 = vpack.c.bf16 %v10028_v20, %v10025_v56  ;;  %v10037_v32 = vld [vmem:[%s21318_s5 + $0x1360] sm:$0xff]  ;;  %v10002_v56 = vld [vmem:[%s21318_s5 + $0x1248] sm:$0xff] }
 0x571   :  { %v17160_v22 = vadd.f32 %v3778_v13, %v3699_v47  ;;  %4331 = vmatprep.mubr.f32.mxu1 %v3863_v26  ;;  %4580 = vmatprep.mubr.f32.mxu0 %v3863_v26  ;;  %v11953_v13 = vpack.c.bf16 %v9973_v4, %v9970_v44  ;;  %v9975_v47 = vld [vmem:[%s21318_s5 + $0x1170] sm:$0xff]  ;;  %v9980_v26 = vld [vmem:[%s21318_s5 + $0x1198] sm:$0xff]  ;;  %v9997_v55 = vld [vmem:[%s21318_s5 + $0x1220] sm:$0xff]  ;;  %v11967_v44 = vpack.c.bf16 %v9990_v31, %v9987_v57 }
 0x572   :  { %4332 = vmatmul.mubr.f32.vlgmr.msra.gmra.mrb[52].mxu1 %v3861_v15  ;;  %4581 = vmatmul.mubr.f32.vlgmr.msra.gmra.mrb[112].mxu0 %v3861_v15  ;;  %v9978_v15 = vld [vmem:[%s21318_s5 + $0x1188] sm:$0xff]  ;;  %v12071_v11 = vpack.c.bf16 %v9980_v26, %v9977_v28  ;;  %v9993_v4 = vld [vmem:[%s21318_s5 + $0x1200] sm:$0xff]  ;;  %v11969_v41 = vpack.c.bf16 %v9997_v55, %v9994_v46  ;;  %v10020_v57 = vld [vmem:[%s21318_s5 + $0x12d8] sm:$0xff] }
 0x573   :  { %11940 = vmatpush1.bf16.msra.mxu1 %v11939_v50  ;;  %12052 = vmatpush3.bf16.msra.mxu0 %v12051_v33  ;;  %v3867_v38 = vpop.f32.mrb[96].mxu0  ;;  %v11957_v33 = vpack.c.bf16 %v9979_v18, %v9976_v0  ;;  %v11959_v58 = vpack.c.bf16 %v9978_v15, %v9975_v47  ;;  %v9999_v0 = vld [vmem:[%s21318_s5 + $0x1230] sm:$0xff]  ;;  %v10049_v20 = vld [vmem:[%s21318_s5 + $0x13c0] sm:$0xff]  ;;  %v10006_v47 = vld [vmem:[%s21318_s5 + $0x1268] sm:$0xff] }
 0x574   :  { %11942 = vmatprep.subr.bf16.mxu1 %v11941_v42  ;;  %12054 = vmatprep.subr.bf16.mxu0 %v12053_v48  ;;  %v3869_v36 = vpop.f32.mrb[97].mxu0  ;;  %v9982_v42 = vld [vmem:[%s21318_s5 + $0x11a8] sm:$0xff]  ;;  %v10009_v15 = vld [vmem:[%s21318_s5 + $0x1280] sm:$0xff] }
 0x575   :  { %4585 = vmatprep.mubr.f32.mxu0 %v3869_v36  ;;  %4337 = vmatprep.mubr.f32.mxu1 %v3869_v36  ;;  %v11961_v63 = vpack.c.bf16 %v9985_v40, %v9982_v42  ;;  %v10040_v36 = vld [vmem:[%s21318_s5 + $0x1378] sm:$0xff]  ;;  %v10005_v28 = vld [vmem:[%s21318_s5 + $0x1260] sm:$0xff]  ;;  %v11977_v26 = vpack.c.bf16 %v10009_v15, %v10006_v47  ;;  %v10055_v40 = vld [vmem:[%s21318_s5 + $0x13f0] sm:$0xff] }
 0x576   :  { %4586 = vmatmul.mubr.f32.gmra.mrb[114].mxu0 %v3867_v38  ;;  %4338 = vmatmul.mubr.f32.gmra.mrb[54].mxu1 %v3867_v38  ;;  %v9983_v38 = vld [vmem:[%s21318_s5 + $0x11b0] sm:$0xff]  ;;  %v12077_v2 = vpack.c.bf16 %v10040_v36, %v10037_v32  ;;  %v10008_v42 = vld [vmem:[%s21318_s5 + $0x1278] sm:$0xff]  ;;  %v10058_v9 = vld [vmem:[%s21318_s5 + $0x1408] sm:$0xff] }
 0x577   :  { %11944 = vmatpush1.bf16.msra.mxu1 %v11943_v12  ;;  %12056 = vmatpush3.bf16.msra.mxu0 %v12055_v6  ;;  %v3873_v62 = vpop.f32.mrb[98].mxu0  ;;  %v9984_v12 = vld [vmem:[%s21318_s5 + $0x11b8] sm:$0xff]  ;;  %v10030_v46 = vld [vmem:[%s21318_s5 + $0x1328] sm:$0xff]  ;;  %v10033_v55 = vld [vmem:[%s21318_s5 + $0x1340] sm:$0xff] }
 0x578   :  { %11946 = vmatprep.subr.bf16.mxu1 %v11945_v37  ;;  %12058 = vmatprep.subr.bf16.mxu0 %v12057_v29  ;;  %v3875_v30 = vpop.f32.mrb[99].mxu0  ;;  %v9986_v37 = vld [vmem:[%s21318_s5 + $0x11c8] sm:$0xff]  ;;  %v9988_v29 = vld [vmem:[%s21318_s5 + $0x11d8] sm:$0xff]  ;;  %v11963_v1 = vpack.c.bf16 %v9984_v12, %v9981_v16  ;;  %v12088_v16 = vpack.c.bf16 %v10058_v9, %v10055_v40  ;;  %v10011_v12 = vld [vmem:[%s21318_s5 + $0x1290] sm:$0xff] }
 0x579   :  { %4590 = vmatprep.mubr.f32.mxu0 %v3875_v30  ;;  %4343 = vmatprep.mubr.f32.mxu1 %v3875_v30  ;;  %v12075_v23 = vpack.c.bf16 %v9986_v37, %v9983_v38  ;;  %v10061_v38 = vld [vmem:[%s21318_s5 + $0x1420] sm:$0xff]  ;;  %v10064_v37 = vld [vmem:[%s21318_s5 + $0x1438] sm:$0xff] }
 0x57a   :  { %4591 = vmatmul.mubr.f32.gmra.mrb[116].mxu0 %v3873_v62  ;;  %4344 = vmatmul.mubr.f32.gmra.mrb[56].mxu1 %v3873_v62  ;;  %v9989_v62 = vld [vmem:[%s21318_s5 + $0x11e0] sm:$0xff]  ;;  %v12091_v36 = vpack.c.bf16 %v10064_v37, %v10061_v38 }
 0x57b   :  { %11948 = vmatpush1.bf16.msra.mxu1 %v11947_v17  ;;  %12060 = vmatpush3.bf16.msra.mxu0 %v12059_v60  ;;  %v17225_v51 = vpop.f32.mrb[100].mxu0  ;;  %v11965_v60 = vpack.c.bf16 %v9991_v5, %v9988_v29  ;;  %v10018_v29 = vld [vmem:[%s21318_s5 + $0x12c8] sm:$0xff]  ;;  %v10021_v5 = vld [vmem:[%s21318_s5 + $0x12e0] sm:$0xff] }
 0x57c   :  { %11950 = vmatprep.subr.bf16.mxu1 %v11949_v35  ;;  %12062 = vmatprep.subr.bf16.mxu0 %v12061_v8  ;;  %v3946_v7 = vpop.f32.mrb[101].mxu0  ;;  %v9992_v35 = vld [vmem:[%s21318_s5 + $0x11f8] sm:$0xff]  ;;  %v10053_v9 = vld [vmem:[%s21318_s5 + $0x13e0] sm:$0xff] }
 0x57d   :  { %4660 = vmatprep.mubr.f32.mxu0 %v3946_v7  ;;  %4414 = vmatprep.mubr.f32.mxu1 %v3946_v7  ;;  %v12079_v30 = vpack.c.bf16 %v9992_v35, %v9989_v62  ;;  %v10023_v35 = vld [vmem:[%s21318_s5 + $0x12f0] sm:$0xff] }
 0x57f   :  { %11952 = vmatpush1.bf16.msra.mxu1 %v11951_v27  ;;  %12064 = vmatpush3.bf16.msra.mxu0 %v12063_v24  ;;  %v17251_v50 = vpop.f32.mrb[102].mxu0  ;;  %v9996_v27 = vld [vmem:[%s21318_s5 + $0x1218] sm:$0xff]  ;;  %v10043_v24 = vld [vmem:[%s21318_s5 + $0x1390] sm:$0xff] }
 0x580   :  { %11954 = vmatprep.subr.bf16.mxu1 %v11953_v13  ;;  %12066 = vmatprep.subr.bf16.mxu0 %v12065_v3  ;;  %v17262_v48 = vpop.f32.mrb[103].mxu0  ;;  %v10000_v13 = vld [vmem:[%s21318_s5 + $0x1238] sm:$0xff]  ;;  %v10003_v3 = vld [vmem:[%s21318_s5 + $0x1250] sm:$0xff]  ;;  %v11971_v49 = vpack.c.bf16 %v9996_v27, %v9993_v4  ;;  %v12082_v59 = vpack.c.bf16 %v10046_v10, %v10043_v24  ;;  %v10029_v4 = vld [vmem:[%s21318_s5 + $0x1320] sm:$0xff] }
 0x581   :  { %v11973_v18 = vpack.c.bf16 %v10003_v3, %v10000_v13  ;;  %v10036_v27 = vld [vmem:[%s21318_s5 + $0x1358] sm:$0xff]  ;;  %v10039_v24 = vld [vmem:[%s21318_s5 + $0x1370] sm:$0xff]  ;;  %v10038_v3 = vld [vmem:[%s21318_s5 + $0x1368] sm:$0xff] }
 0x582   :  { %v10035_v13 = vld [vmem:[%s21318_s5 + $0x1350] sm:$0xff] }
 0x583   :  { %11956 = vmatpush1.bf16.msra.mxu1 %v11955_v54  ;;  %12068 = vmatpush3.bf16.msra.mxu0 %v12067_v43  ;;  %v17279_v6 = vpop.f32.mrb[104].mxu0  ;;  %v10052_v54 = vld [vmem:[%s21318_s5 + $0x13d8] sm:$0xff] }
 0x584   :  { %11958 = vmatprep.subr.bf16.mxu1 %v11957_v33  ;;  %12070 = vmatprep.subr.bf16.mxu0 %v12069_v14  ;;  %v17290_v39 = vpop.f32.mrb[105].mxu0  ;;  %v11975_v33 = vpack.c.bf16 %v10002_v56, %v9999_v0  ;;  %v12085_v14 = vpack.c.bf16 %v10052_v54, %v10049_v20  ;;  %v11999_v0 = vpack.c.bf16 %v10038_v3, %v10035_v13  ;;  %v10041_v56 = vld [vmem:[%s21318_s5 + $0x1380] sm:$0xff]  ;;  %v10044_v20 = vld [vmem:[%s21318_s5 + $0x1398] sm:$0xff] }
 0x585   :  { %v10048_v54 = vld [vmem:[%s21318_s5 + $0x13b8] sm:$0xff]  ;;  %v12003_v47 = vpack.c.bf16 %v10044_v20, %v10041_v56 }
 0x587   :  { %11960 = vmatpush1.bf16.msra.mxu1 %v11959_v58  ;;  %12072 = vmatpush3.bf16.msra.mxu0 %v12071_v11  ;;  %v17304_v17 = vpop.f32.mrb[106].mxu0  ;;  %v10015_v58 = vld [vmem:[%s21318_s5 + $0x12b0] sm:$0xff]  ;;  %v11979_v11 = vpack.c.bf16 %v10008_v42, %v10005_v28  ;;  %v10054_v28 = vld [vmem:[%s21318_s5 + $0x13e8] sm:$0xff] }
 0x588   :  { %11962 = vmatprep.subr.bf16.mxu1 %v11961_v63  ;;  %12074 = vmatprep.subr.bf16.mxu0 %v12073_v21  ;;  %v10963_v8 = vpop.f32.mrb[107].mxu0  ;;  %v11981_v63 = vpack.c.bf16 %v10015_v58, %v10012_v34  ;;  %v10014_v21 = vld [vmem:[%s21318_s5 + $0x12a8] sm:$0xff]  ;;  %v10056_v34 = vld [vmem:[%s21318_s5 + $0x13f8] sm:$0xff] }
 0x589   :  { %v11983_v32 = vpack.c.bf16 %v10014_v21, %v10011_v12  ;;  %v10026_v8 = vld [vmem:[%s21318_s5 + $0x1308] sm:$0xff]  ;;  %v10060_v58 = vld [vmem:[%s21318_s5 + $0x1418] sm:$0xff] }
 0x58a   :  { %v10062_v12 = vld [vmem:[%s21318_s5 + $0x1428] sm:$0xff] }
 0x58b   :  { %11964 = vmatpush1.bf16.msra.mxu1 %v11963_v1  ;;  %12076 = vmatpush3.bf16.msra.mxu0 %v12075_v23  ;;  %v17324_v61 = vpop.f32.mrb[108].mxu0  ;;  %v11985_v1 = vpack.c.bf16 %v10021_v5, %v10018_v29  ;;  %v10017_v23 = vld [vmem:[%s21318_s5 + $0x12c0] sm:$0xff] }
 0x58c   :  { %11966 = vmatprep.subr.bf16.mxu1 %v11965_v60  ;;  %12078 = vmatprep.subr.bf16.mxu0 %v12077_v2  ;;  %v10966_v25 = vpop.f32.mrb[109].mxu0  ;;  %v10024_v60 = vld [vmem:[%s21318_s5 + $0x12f8] sm:$0xff]  ;;  %v10027_v2 = vld [vmem:[%s21318_s5 + $0x1310] sm:$0xff]  ;;  %v11987_v31 = vpack.c.bf16 %v10020_v57, %v10017_v23 }
 0x58d   :  { %v11989_v62 = vpack.c.bf16 %v10027_v2, %v10024_v60  ;;  %v11997_v25 = vpack.c.bf16 %v10039_v24, %v10036_v27 }
 0x58f   :  { %11968 = vmatpush1.bf16.msra.mxu1 %v11967_v44  ;;  %12080 = vmatpush3.bf16.msra.mxu0 %v12079_v30  ;;  %v17344_v7 = vpop.f32.mrb[110].mxu0  ;;  %v11991_v44 = vpack.c.bf16 %v10026_v8, %v10023_v35  ;;  %v11993_v30 = vpack.c.bf16 %v10033_v55, %v10030_v46  ;;  %v4765_v8 = vld [vmem:[%s21321_s27] sm:$0x7] }
 0x590   :  { %11970 = vmatprep.subr.bf16.mxu1 %v11969_v41  ;;  %12081 = vmatprep.subr.bf16.mxu0 %v21320_v45  ;;  %v10969_v43 = vpop.f32.mrb[111].mxu0  ;;  %v10032_v41 = vld [vmem:[%s21318_s5 + $0x1338] sm:$0xff] }
 0x591   :  { %v11995_v10 = vpack.c.bf16 %v10032_v41, %v10029_v4  ;;  %v10051_v43 = vld [vmem:[%s21318_s5 + $0x13d0] sm:$0xff] }
 0x592   :  { %4661 = vmatmul.mubr.f32.vlgmr.msra.gmra.mrb[118].mxu0 %v17225_v51  ;;  %v12005_v15 = vpack.c.bf16 %v10051_v43, %v10048_v54 }
 0x593   :  { %11972 = vmatpush1.bf16.msra.mxu1 %v11971_v49  ;;  %12083 = vmatpush3.bf16.msra.mxu0 %v12082_v59  ;;  %v10042_v49 = vld [vmem:[%s21318_s5 + $0x1388] sm:$0xff]  ;;  %v10045_v59 = vld [vmem:[%s21318_s5 + $0x13a0] sm:$0xff] }
 0x594   :  { %11974 = vmatprep.subr.bf16.mxu1 %v11973_v18  ;;  %12084 = vmatprep.subr.bf16.mxu0 %v21320_v45  ;;  %v12001_v18 = vpack.c.bf16 %v10045_v59, %v10042_v49 }
 0x595   :  { %4665 = vmatprep.mubr.f32.mxu0 %v17262_v48 }
 0x596   :  { %4666 = vmatmul.mubr.f32.gmra.mrb[120].mxu0 %v17251_v50 }
 0x597   :  { %11976 = vmatpush1.bf16.msra.mxu1 %v11975_v33  ;;  %12086 = vmatpush3.bf16.msra.mxu0 %v12085_v14  ;;  %v10047_v33 = vld [vmem:[%s21318_s5 + $0x13b0] sm:$0xff]  ;;  %v10050_v14 = vld [vmem:[%s21318_s5 + $0x13c8] sm:$0xff] }
 0x598   :  { %11978 = vmatprep.subr.bf16.mxu1 %v11977_v26  ;;  %12087 = vmatprep.subr.bf16.mxu0 %v21320_v45  ;;  %v10057_v26 = vld [vmem:[%s21318_s5 + $0x1400] sm:$0xff]  ;;  %v12007_v42 = vpack.c.bf16 %v10050_v14, %v10047_v33 }
 0x599   :  { %4670 = vmatprep.mubr.f32.mxu0 %v17290_v39  ;;  %v12009_v40 = vpack.c.bf16 %v10057_v26, %v10054_v28  ;;  %v21323_v26 = vld [vmem:[#allocation7_spill] sm:$0xff] }
 0x59a   :  { %4671 = vmatmul.mubr.f32.gmra.mrb[122].mxu0 %v17279_v6 }
 0x59b   :  { %11980 = vmatpush1.bf16.msra.mxu1 %v11979_v11  ;;  %12089 = vmatpush3.bf16.msra.mxu0 %v12088_v16  ;;  %v10059_v16 = vld [vmem:[%s21318_s5 + $0x1410] sm:$0xff] }
 0x59c   :  { %11982 = vmatprep.subr.bf16.mxu1 %v11981_v63  ;;  %12090 = vmatprep.subr.bf16.mxu0 %v21320_v45  ;;  %v12015_v63 = vpack.c.bf16 %v10062_v12, %v10059_v16 }
 0x59d   :  { %10986 = vmatprep.mubr.msk.f32.mxu0 %vm13609_vm2, %v21319_v53 }
 0x59f   :  { %11984 = vmatpush1.bf16.msra.mxu1 %v11983_v32  ;;  %12092 = vmatpush3.bf16.msra.mxu0 %v12091_v36 }
 0x5a0   :  { %11986 = vmatprep.subr.bf16.mxu1 %v11985_v1 }
 0x5a2   :  { %10987 = vmatmul.mubr.msk.f32.vlgmr.msra.gmra.mrb[124].mxu0 %vm2785_vm15, %v17304_v17 }
 0x5a3   :  { %11988 = vmatpush1.bf16.msra.mxu1 %v11987_v31  ;;  %10989 = vmatprep.mubr.msk.f32.mxu0 %vm13609_vm2, %v21319_v53 }
 0x5a4   :  { %11990 = vmatprep.subr.bf16.mxu1 %v11989_v62 }
 0x5a6   :  { %10990 = vmatmul.mubr.msk.f32.gmra.mrb[126].mxu0 %vm2785_vm15, %v17324_v61 }
 0x5a7   :  { %11992 = vmatpush1.bf16.msra.mxu1 %v11991_v44  ;;  %10992 = vmatprep.mubr.msk.f32.mxu0 %vm13609_vm2, %v21319_v53  ;;  %v21322_v44 = vld [vmem:[#allocation8_spill] sm:$0xff] }
 0x5a8   :  { %11994 = vmatprep.subr.bf16.mxu1 %v11993_v30  ;;  %v4778_v30 = vrot.slane %v4765_v8, %v21322_v44 }
 0x5aa   :  { %10993 = vmatmul.mubr.msk.f32.gmra.mrb[128].mxu0 %vm2785_vm15, %v17344_v7 }
 0x5ab   :  { %11996 = vmatpush1.bf16.msra.mxu1 %v11995_v10  ;;  %4928 = vmatprep.mubr.f32.mxu0 %v21319_v53 }
 0x5ac   :  { %11998 = vmatprep.subr.bf16.mxu1 %v11997_v25 }
 0x5af   :  { %12000 = vmatpush1.bf16.msra.mxu1 %v11999_v0 }
 0x5b0   :  { %12002 = vmatprep.subr.bf16.mxu1 %v12001_v18 }
 0x5b2   :  { %4415 = vmatmul.mubr.f32.vlgmr.msra.gmra.mrb[52].mxu1 %v17225_v51  ;;  %v10063_v51 = vld [vmem:[%s21318_s5 + $0x1430] sm:$0xff] }
 0x5b3   :  { %12004 = vmatpush1.bf16.msra.mxu1 %v12003_v47  ;;  %4420 = vmatprep.mubr.f32.mxu1 %v17262_v48  ;;  %v12011_v48 = vpack.c.bf16 %v10056_v34, %v10053_v9  ;;  %v12013_v11 = vpack.c.bf16 %v10063_v51, %v10060_v58 }
 0x5b4   :  { %12006 = vmatprep.subr.bf16.mxu1 %v12005_v15 }
 0x5b6   :  { %4421 = vmatmul.mubr.f32.gmra.mrb[54].mxu1 %v17251_v50 }
 0x5b7   :  { %12008 = vmatpush1.bf16.msra.mxu1 %v12007_v42  ;;  %4426 = vmatprep.mubr.f32.mxu1 %v17290_v39  ;;  %v4770_v42 = vrot.slane %v4765_v8, %v21323_v26 }
 0x5b8   :  { %12010 = vmatprep.subr.bf16.mxu1 %v12009_v40  ;;  %v21324_v40 = vld [vmem:[#allocation9_spill] sm:$0xff] }
 0x5b9   :  { %v4774_v9 = vrot.slane %v4765_v8, %v21324_v40 }
 0x5ba   :  { %4427 = vmatmul.mubr.f32.gmra.mrb[56].mxu1 %v17279_v6 }
 0x5bb   :  { %12012 = vmatpush1.bf16.msra.mxu1 %v12011_v48  ;;  %4497 = vmatprep.mubr.f32.mxu1 %v21319_v53 }
 0x5bc   :  { %12014 = vmatprep.subr.bf16.mxu1 %v12013_v11 }
 0x5bf   :  { %12016 = vmatpush1.bf16.msra.mxu1 %v12015_v63 }
 0x5c2   :  { %10065 = vmatmul.mubr.msk.f32.vlgmr.msra.gmra.mrb[52].mxu1 %vm2785_vm15, %v17304_v17 }
 0x5c3   :  { %4503 = vmatprep.mubr.f32.mxu1 %v21319_v53 }
 0x5c6   :  { %10066 = vmatmul.mubr.msk.f32.gmra.mrb[54].mxu1 %vm2785_vm15, %v17324_v61 }
 0x5c7   :  { %4509 = vmatprep.mubr.f32.mxu1 %v21319_v53 }
 0x5ca   :  { %10067 = vmatmul.mubr.msk.f32.gmra.mrb[56].mxu1 %vm2785_vm15, %v17344_v7 }
 0x5cb   :  { %5716 = vmatprep.mubr.f32.mxu1 %v21319_v53 }
 0x645   :  { %v10787_v50 = vpop.f32.mrb[112].mxu0 }
 0x646   :  { %v10788_v6 = vpop.f32.mrb[113].mxu0 }
 0x647   :  { %v10789_v39 = vadd.f32 %v10788_v6, %v10787_v50 }
 0x649   :  { %v10790_v21 = vpop.f32.mrb[114].mxu0 }
 0x64a   :  { %v10791_v38 = vpop.f32.mrb[115].mxu0 }
 0x64b   :  { %v10792_v37 = vadd.f32 %v10791_v38, %v10790_v21 }
 0x64d   :  { %v10793_v29 = vpop.f32.mrb[116].mxu0 }
 0x64e   :  { %v10794_v17 = vpop.f32.mrb[117].mxu0 }
 0x64f   :  { %v10795_v5 = vadd.f32 %v10794_v17, %v10793_v29 }
 0x665   :  { %v10828_v32 = vpop.f32.mrb[118].mxu0 }
 0x666   :  { %v10829_v36 = vpop.f32.mrb[119].mxu0 }
 0x667   :  { %v10830_v1 = vadd.f32 %v10829_v36, %v10828_v32 }
 0x669   :  { %v10831_v61 = vpop.f32.mrb[120].mxu0  ;;  %v4663_v23 = vadd.f32 %v10830_v1, %v10789_v39 }
 0x66a   :  { %v10832_v57 = vpop.f32.mrb[121].mxu0 }
 0x66b   :  { %v10833_v60 = vadd.f32 %v10832_v57, %v10831_v61 }
 0x66d   :  { %v10834_v2 = vpop.f32.mrb[122].mxu0  ;;  %v4668_v7 = vadd.f32 %v10833_v60, %v10792_v37 }
 0x66e   :  { %v10835_v31 = vpop.f32.mrb[123].mxu0 }
 0x66f   :  { %v10836_v62 = vadd.f32 %v10835_v31, %v10834_v2 }
 0x671   :  { %v4673_v35 = vadd.f32 %v10836_v62, %v10795_v5 }
 0x675   :  { %v4742_v46 = vpop.f32.mrb[124].mxu0 }
 0x676   :  { %v4743_v55 = vadd.f32 %v4742_v46, %v4663_v23  ;;  %v10988_v4 = vpop.f32.mrb[125].mxu0 }
 0x678   :  { %v4758_v41 = vadd.f32 %v4743_v55, %v17113_v19 }
 0x679   :  { %v4747_v27 = vpop.f32.mrb[126].mxu0 }
 0x67a   :  { %v4784_v24 = vadd.f32 %v4778_v30, %v4758_v41  ;;  %v4748_v10 = vadd.f32 %v4747_v27, %v4668_v7  ;;  %v10991_v25 = vpop.f32.mrb[127].mxu0 }
 0x67c   :  { %v4802_v13 = vmin.f32 %v4784_v24, 0.0  ;;  %v4761_v3 = vadd.f32 %v4748_v10, %v17133_v52  ;;  %vm4793_vm2 = vcmp.gt.f32.partialorder %v4784_v24, 0.0 }
 0x67d   :  { %v4752_v49 = vpop.f32.mrb[128].mxu0 }
 0x67e   :  { %v4813_v59 = vmul.f32 1.442695, %v4802_v13  ;;  %v4787_v0 = vadd.f32 %v4778_v30, %v4761_v3  ;;  %v4753_v18 = vadd.f32 %v4752_v49, %v4673_v35  ;;  %v10994_v56 = vpop.f32.mrb[129].mxu0 }
 0x680   :  { %13518 = vpow2.f32 %v4813_v59  ;;  %v4805_v20 = vmin.f32 %v4787_v0, 0.0  ;;  %v4764_v54 = vadd.f32 %v4753_v18, %v17160_v22  ;;  %vm4796_vm0 = vcmp.gt.f32.partialorder %v4787_v0, 0.0 }
 0x682   :  { %v4819_v43 = vmul.f32 1.442695, %v4805_v20  ;;  %v17535_v6 = vadd.f32 %v4778_v30, %v4764_v54  ;;  %v4845_v54 = vld [vmem:[%s21267_s7] sm:$0xff] }
 0x684   :  { %13520 = vpow2.f32 %v4819_v43  ;;  %v4808_v36 = vmin.f32 %v17535_v6, 0.0  ;;  %vm4799_vm10 = vcmp.gt.f32.partialorder %v17535_v6, 0.0 }
 0x686   :  { %v4825_v2 = vmul.f32 1.442695, %v4808_v36  ;;  %v10110_v36 = vld [vmem:[%s21268_s8 + $0x2b0] sm:$0xff] }
 0x68a   :  { %v13519_v47 = vpop.eup %13518 }
 0x68b   :  { %v10073_v19 = vadd.f32 -1.0, %v13519_v47  ;;  %v10172_v47 = vld [vmem:[%s21267_s7 + $0x20] sm:$0xff] }
 0x68d   :  { %v4838_v14 = vsel %vm4793_vm2, %v4784_v24, %v10073_v19  ;;  %vm13610_vm2 = vmmov 1  }
 0x68e   :  { %v13521_v15 = vpop.eup %13520 }
 0x68f   :  { %v10076_v33 = vadd.f32 -1.0, %v13521_v15  ;;  %v4846_v15 = vld [vmem:[%s21267_s7 + $0x8] sm:$0x3] }
 0x691   :  { %v4841_v28 = vsel %vm4796_vm0, %v4787_v0, %v10076_v33  ;;  %v10173_v33 = vld [vmem:[%s21267_s7 + $0x28] sm:$0x3]  ;;  %vm18364_vm0 = vmpackc.low %vm4854_vm6, %vm13610_vm2 }
 0x692   :  { %v17531_v52 = vpack.c.bf16 %v4841_v28, %v4838_v14  ;;  %v10087_v14 = vld [vmem:[%s21267_s7 + $0x10] sm:$0xff]  ;;  %v10097_v28 = vld [vmem:[%s21268_s8 + $0x248] sm:$0xff] }
 0x695   :  { %v4499_v34 = vpop.f32.mrb[52].mxu1 }
 0x696   :  { %v4782_v58 = vadd.f32 %v4770_v42, %v4499_v34  ;;  %v4501_v51 = vpop.f32.mrb[53].mxu1 }
 0x697   :  { %v4783_v22 = vadd.f32 %v4774_v9, %v4501_v51  ;;  %v10098_v51 = vld [vmem:[%s21268_s8 + $0x250] sm:$0xff] }
 0x698   :  { %v4800_v48 = vmin.f32 %v4782_v58, 0.0  ;;  %vm4791_vm1 = vcmp.gt.f32.partialorder %v4782_v58, 0.0 }
 0x699   :  { %v4801_v11 = vmin.f32 %v4783_v22, 0.0  ;;  %v4505_v16 = vpop.f32.mrb[54].mxu1  ;;  %vm4792_vm4 = vcmp.gt.f32.partialorder %v4783_v22, 0.0 }
 0x69a   :  { %v4809_v12 = vmul.f32 1.442695, %v4800_v48  ;;  %v4785_v63 = vadd.f32 %v4770_v42, %v4505_v16  ;;  %v4507_v50 = vpop.f32.mrb[55].mxu1  ;;  %v10100_v16 = vld [vmem:[%s21268_s8 + $0x260] sm:$0xff] }
 0x69b   :  { %v4811_v39 = vmul.f32 1.442695, %v4801_v11  ;;  %v4786_v21 = vadd.f32 %v4774_v9, %v4507_v50  ;;  %v10107_v50 = vld [vmem:[%s21268_s8 + $0x298] sm:$0xff] }
 0x69c   :  { %13522 = vpow2.f32 %v4809_v12  ;;  %v4803_v38 = vmin.f32 %v4785_v63, 0.0  ;;  %vm4794_vm3 = vcmp.gt.f32.partialorder %v4785_v63, 0.0  ;;  %v10102_v12 = vld [vmem:[%s21268_s8 + $0x270] sm:$0xff] }
 0x69d   :  { %13524 = vpow2.f32 %v4811_v39  ;;  %v4804_v37 = vmin.f32 %v4786_v21, 0.0  ;;  %v4511_v29 = vpop.f32.mrb[56].mxu1  ;;  %vm4795_vm5 = vcmp.gt.f32.partialorder %v4786_v21, 0.0 }
 0x69e   :  { %v4815_v17 = vmul.f32 1.442695, %v4803_v38  ;;  %v4788_v5 = vadd.f32 %v4770_v42, %v4511_v29  ;;  %v4513_v32 = vpop.f32.mrb[57].mxu1  ;;  %v10099_v42 = vld [vmem:[%s21268_s8 + $0x258] sm:$0xff]  ;;  %v10106_v38 = vld [vmem:[%s21268_s8 + $0x290] sm:$0xff] }
 0x69f   :  { %v4817_v1 = vmul.f32 1.442695, %v4804_v37  ;;  %v4789_v61 = vadd.f32 %v4774_v9, %v4513_v32  ;;  %v10088_v9 = vld [vmem:[%s21267_s7 + $0x18] sm:$0x3]  ;;  %v12109_v34 = vpack.c.bf16 %v10099_v42, %v10097_v28  ;;  %v10109_v37 = vld [vmem:[%s21268_s8 + $0x2a8] sm:$0xff]  ;;  %v10108_v32 = vld [vmem:[%s21268_s8 + $0x2a0] sm:$0xff] }
 0x6a0   :  { %13526 = vpow2.f32 %v4815_v17  ;;  %v4806_v23 = vmin.f32 %v4788_v5, 0.0  ;;  %vm4797_vm8 = vcmp.gt.f32.partialorder %v4788_v5, 0.0  ;;  %v10111_v29 = vld [vmem:[%s21268_s8 + $0x2b8] sm:$0xff]  ;;  %v10134_v28 = vld [vmem:[%s21268_s8 + $0x370] sm:$0xff]  ;;  %v10137_v42 = vld [vmem:[%s21268_s8 + $0x388] sm:$0xff] }
 0x6a1   :  { %13528 = vpow2.f32 %v4817_v1  ;;  %v4807_v57 = vmin.f32 %v4789_v61, 0.0  ;;  %vm4798_vm7 = vcmp.gt.f32.partialorder %v4789_v61, 0.0  ;;  %v10113_v1 = vld [vmem:[%s21268_s8 + $0x2c8] sm:$0xff] }
 0x6a2   :  { %v4821_v60 = vmul.f32 1.442695, %v4806_v23  ;;  %v12123_v23 = vpack.c.bf16 %v10110_v36, %v10108_v32  ;;  %v10148_v36 = vld [vmem:[%s21268_s8 + $0x3e0] sm:$0xff] }
 0x6a3   :  { %v4823_v7 = vmul.f32 1.442695, %v4807_v57 }
 0x6a4   :  { %13530 = vpow2.f32 %v4821_v60  ;;  %v10112_v60 = vld [vmem:[%s21268_s8 + $0x2c0] sm:$0xff] }
 0x6a5   :  { %13532 = vpow2.f32 %v4823_v7  ;;  %v10117_v7 = vld [vmem:[%s21268_s8 + $0x2e8] sm:$0xff] }
 0x6a6   :  { %v13523_v31 = vpop.eup %13522  ;;  %13534 = vpow2.f32 %v4825_v2  ;;  %v10114_v2 = vld [vmem:[%s21268_s8 + $0x2d0] sm:$0xff] }
 0x6a7   :  { %v13525_v62 = vpop.eup %13524  ;;  %v10071_v35 = vadd.f32 -1.0, %v13523_v31  ;;  %v10119_v31 = vld [vmem:[%s21268_s8 + $0x2f8] sm:$0xff] }
 0x6a8   :  { %v10072_v46 = vadd.f32 -1.0, %v13525_v62  ;;  %v12127_v62 = vpack.c.bf16 %v10114_v2, %v10112_v60  ;;  %v10152_v60 = vld [vmem:[%s21268_s8 + $0x400] sm:$0xff] }
 0x6a9   :  { %v4836_v41 = vsel %vm4791_vm1, %v4782_v58, %v10071_v35  ;;  %v10096_v58 = vld [vmem:[%s21268_s8 + $0x240] sm:$0xff]  ;;  %v12129_v35 = vpack.c.bf16 %v10119_v31, %v10117_v7  ;;  %v10154_v7 = vld [vmem:[%s21268_s8 + $0x410] sm:$0xff]  ;;  %vm6082_vm1 = vcmask 80896  }
 0x6aa   :  { %v13527_v8 = vpop.eup %13526  ;;  %v4837_v25 = vsel %vm4792_vm4, %v4783_v22, %v10072_v46  ;;  %v10103_v22 = vld [vmem:[%s21268_s8 + $0x278] sm:$0xff]  ;;  %v12111_v48 = vpack.c.bf16 %v10098_v51, %v10096_v58  ;;  %v10118_v46 = vld [vmem:[%s21268_s8 + $0x2f0] sm:$0xff]  ;;  %v10136_v51 = vld [vmem:[%s21268_s8 + $0x380] sm:$0xff]  ;;  %v12167_v31 = vpack.c.bf16 %v10154_v7, %v10152_v60  ;;  %vm7560_vm4 = vcmask 1043458  }
 0x6ab   :  { %v13529_v55 = vpop.eup %13528  ;;  %v10074_v30 = vadd.f32 -1.0, %v13527_v8  ;;  %v10116_v8 = vld [vmem:[%s21268_s8 + $0x2e0] sm:$0xff]  ;;  %v5033_v60 = vld [vmem:[%s21268_s8 + $0x88] sm:$0xff] }
 0x6ac   :  { %v10075_v4 = vadd.f32 -1.0, %v13529_v55  ;;  %v10121_v55 = vld [vmem:[%s21268_s8 + $0x308] sm:$0xff] }
 0x6ad   :  { %v4839_v27 = vsel %vm4794_vm3, %v4785_v63, %v10074_v30  ;;  %v10105_v63 = vld [vmem:[%s21268_s8 + $0x288] sm:$0xff]  ;;  %v10123_v30 = vld [vmem:[%s21268_s8 + $0x318] sm:$0xff] }
 0x6ae   :  { %v13531_v24 = vpop.eup %13530  ;;  %v12095_v10 = vpack.c.bf16 %v4839_v27, %v4836_v41  ;;  %v4840_v13 = vsel %vm4795_vm5, %v4786_v21, %v10075_v4  ;;  %v12117_v39 = vpack.c.bf16 %v10107_v50, %v10105_v63  ;;  %v10104_v21 = vld [vmem:[%s21268_s8 + $0x280] sm:$0xff]  ;;  %v12131_v4 = vpack.c.bf16 %v10118_v46, %v10116_v8  ;;  %v10142_v63 = vld [vmem:[%s21268_s8 + $0x3b0] sm:$0xff]  ;;  %v10145_v50 = vld [vmem:[%s21268_s8 + $0x3c8] sm:$0xff] }
 0x6af   :  { %v13533_v3 = vpop.eup %13532  ;;  %v12093_v49 = vpack.c.bf16 %v4840_v13, %v4837_v25  ;;  %v10077_v18 = vadd.f32 -1.0, %v13531_v24  ;;  %v12119_v17 = vpack.c.bf16 %v10106_v38, %v10104_v21  ;;  %v12133_v41 = vpack.c.bf16 %v10123_v30, %v10121_v55  ;;  %v10120_v27 = vld [vmem:[%s21268_s8 + $0x300] sm:$0xff]  ;;  %v10122_v24 = vld [vmem:[%s21268_s8 + $0x310] sm:$0xff]  ;;  %v10127_v25 = vld [vmem:[%s21268_s8 + $0x338] sm:$0xff] }
 0x6b0   :  { %v10078_v59 = vadd.f32 -1.0, %v13533_v3  ;;  %v13535_v0 = vpop.eup %13534  ;;  %v12135_v13 = vpack.c.bf16 %v10122_v24, %v10120_v27  ;;  %v10144_v38 = vld [vmem:[%s21268_s8 + $0x3c0] sm:$0xff]  ;;  %v10158_v55 = vld [vmem:[%s21268_s8 + $0x430] sm:$0xff] }
 0x6b1   :  { %12094 = vmatprep.subr.bf16.mxu0 %v12093_v49  ;;  %12254 = vmatprep.subr.bf16.mxu1 %v12093_v49  ;;  %v10079_v20 = vadd.f32 -1.0, %v13535_v0  ;;  %v4842_v43 = vsel %vm4797_vm8, %v4788_v5, %v10077_v18  ;;  %v12121_v5 = vpack.c.bf16 %v10111_v29, %v10109_v37  ;;  %v10129_v0 = vld [vmem:[%s21268_s8 + $0x348] sm:$0xff]  ;;  %v10131_v18 = vld [vmem:[%s21268_s8 + $0x358] sm:$0xff]  ;;  %v10146_v37 = vld [vmem:[%s21268_s8 + $0x3d0] sm:$0xff] }
 0x6b2   :  { %12096 = vmatpush1.bf16.msra.mxu0 %v12095_v10  ;;  %12256 = vmatpush1.bf16.msra.mxu1 %v12095_v10  ;;  %v4843_v56 = vsel %vm4798_vm7, %v4789_v61, %v10078_v59  ;;  %v10115_v61 = vld [vmem:[%s21268_s8 + $0x2d8] sm:$0xff]  ;;  %v10126_v59 = vld [vmem:[%s21268_s8 + $0x330] sm:$0xff]  ;;  %v10149_v29 = vld [vmem:[%s21268_s8 + $0x3e8] sm:$0xff] }
 0x6b3   :  { %10080 = vmatprep.subr.msk.mxu0 %vm4854_vm6, %v4843_v56  ;;  %10174 = vmatprep.subr.msk.mxu1 %vm4854_vm6, %v4843_v56  ;;  %v4844_v19 = vsel %vm4799_vm10, %v17535_v6, %v10079_v20  ;;  %v12115_v6 = vpack.c.bf16 %v10102_v12, %v10100_v16  ;;  %v12125_v57 = vpack.c.bf16 %v10115_v61, %v10113_v1  ;;  %v10140_v12 = vld [vmem:[%s21268_s8 + $0x3a0] sm:$0xff]  ;;  %v10150_v1 = vld [vmem:[%s21268_s8 + $0x3f0] sm:$0xff]  ;;  %vm7561_vm8 = vmor %vm7560_vm4, %vm4854_vm6 }
 0x6b4   :  { %v12141_v20 = vpack.c.bf16 %v10131_v18, %v10129_v0  ;;  %v12163_v61 = vpack.c.bf16 %v10150_v1, %v10148_v36  ;;  %v10156_v46 = vld [vmem:[%s21268_s8 + $0x420] sm:$0xff]  ;;  %v10162_v0 = vld [vmem:[%s21268_s8 + $0x450] sm:$0xff]  ;;  %v10165_v18 = vld [vmem:[%s21268_s8 + $0x468] sm:$0xff] }
 0x6b5   :  { %v12171_v30 = vpack.c.bf16 %v10158_v55, %v10156_v46  ;;  %v5034_v46 = vld [vmem:[%s21268_s8 + $0x90] sm:$0xff]  ;;  %v5037_v55 = vld [vmem:[%s21268_s8 + $0xa8] sm:$0xff] }
 0x6b6   :  { %10081 = vmatpush1.msk.msra.mxu0 %vm4854_vm6, %v4842_v43  ;;  %10175 = vmatpush1.msk.msra.mxu1 %vm4854_vm6, %v4842_v43 }
 0x6b7   :  { %10082 = vmatmul.mubr.msk.f32.vlgmr.msra.gmra.mrb[130].mxu0 %vm4847_vm9, %v4845_v54  ;;  %12098 = vmatprep.subr.bf16.mxu0 %v17531_v52 }
 0x6b8   :  { %12258 = vmatprep.subr.bf16.mxu1 %v17531_v52  ;;  %12100 = vmatpush3.bf16.msra.mxu0 %v17531_v52 }
 0x6b9   :  { %10176 = vmatmul.mubr.msk.f32.vlgmr.msra.gmra.mrb[64].mxu1 %vm4847_vm9, %v10172_v47  ;;  %10999 = vmatprep.subr.msk.mxu0 %vm4854_vm6, %v4844_v19 }
 0x6ba   :  { %12260 = vmatpush3.bf16.msra.mxu1 %v17531_v52  ;;  %4934 = vmatprep.mubr.f32.mxu0 %v21319_v53 }
 0x6bb   :  { %11017 = vmatprep.subr.msk.mxu1 %vm4854_vm6, %v4844_v19  ;;  %10083 = vmatmul.mubr.msk.f32.gmra.mrb[132].mxu0 %vm4847_vm9, %v4846_v15 }
 0x6bc   :  { %11000 = vmatpush3.msk.msra.mxu0 %vm4854_vm6, %v4844_v19  ;;  %11001 = vmatprep.mubr.msk.f32.mxu0 %vm4847_vm9, %v4845_v54  ;;  %v10128_v54 = vld [vmem:[%s21268_s8 + $0x340] sm:$0xff] }
 0x6bd   :  { %12102 = vmatprep.subr.bf16.mxu0 %v12093_v49  ;;  %5722 = vmatprep.mubr.f32.mxu1 %v21319_v53  ;;  %v10124_v49 = vld [vmem:[%s21268_s8 + $0x320] sm:$0xff] }
 0x6be   :  { %11018 = vmatpush3.msk.msra.mxu1 %vm4854_vm6, %v4844_v19 }
 0x6bf   :  { %11002 = vmatmul.mubr.msk.f32.vlgmr.msra.gmra.mrb[134].mxu0 %vm4847_vm9, %v4846_v15  ;;  %10177 = vmatmul.mubr.msk.f32.gmra.mrb[66].mxu1 %vm4847_vm9, %v10173_v33 }
 0x6c0   :  { %12104 = vmatpush1.bf16.msra.mxu0 %v12095_v10  ;;  %5161 = vmatprep.mubr.f32.mxu0 %v21319_v53  ;;  %v10125_v10 = vld [vmem:[%s21268_s8 + $0x328] sm:$0xff] }
 0x6c1   :  { %10089 = vmatprep.subr.msk.mxu0 %vm4854_vm6, %v4843_v56  ;;  %11019 = vmatprep.mubr.msk.f32.mxu1 %vm4847_vm9, %v10172_v47  ;;  %v12137_v3 = vpack.c.bf16 %v10127_v25, %v10125_v10  ;;  %v12139_v56 = vpack.c.bf16 %v10126_v59, %v10124_v49  ;;  %v10133_v47 = vld [vmem:[%s21268_s8 + $0x368] sm:$0xff]  ;;  %v10160_v59 = vld [vmem:[%s21268_s8 + $0x440] sm:$0xff] }
 0x6c3   :  { %11020 = vmatmul.mubr.msk.f32.vlgmr.msra.gmra.mrb[68].mxu1 %vm4847_vm9, %v10173_v33 }
 0x6c4   :  { %10090 = vmatpush1.msk.msra.mxu0 %vm4854_vm6, %v4842_v43  ;;  %6156 = vmatprep.mubr.f32.mxu1 %v21319_v53  ;;  %v10130_v43 = vld [vmem:[%s21268_s8 + $0x350] sm:$0xff] }
 0x6c5   :  { %10091 = vmatmul.mubr.msk.f32.vlgmr.msra.gmra.mrb[136].mxu0 %vm4847_vm9, %v10087_v14  ;;  %12106 = vmatprep.subr.bf16.mxu0 %v17531_v52  ;;  %v12143_v15 = vpack.c.bf16 %v10130_v43, %v10128_v54  ;;  %v12175_v54 = vpack.c.bf16 %v10162_v0, %v10160_v59  ;;  %v5038_v59 = vld [vmem:[%s21268_s8 + $0xb0] sm:$0xff] }
 0x6c6   :  { %12108 = vmatpush3.bf16.msra.mxu0 %v17531_v52  ;;  %5167 = vmatprep.mubr.f32.mxu0 %v21319_v53  ;;  %v10101_v52 = vld [vmem:[%s21268_s8 + $0x268] sm:$0xff] }
 0x6c7   :  { %11008 = vmatprep.subr.msk.mxu0 %vm4854_vm6, %v4844_v19  ;;  %v12113_v11 = vpack.c.bf16 %v10103_v22, %v10101_v52  ;;  %v10138_v52 = vld [vmem:[%s21268_s8 + $0x390] sm:$0xff]  ;;  %v10141_v22 = vld [vmem:[%s21268_s8 + $0x3a8] sm:$0xff] }
 0x6c9   :  { %10092 = vmatmul.mubr.msk.f32.gmra.mrb[138].mxu0 %vm4847_vm9, %v10088_v9 }
 0x6ca   :  { %11009 = vmatpush3.msk.msra.mxu0 %vm4854_vm6, %v4844_v19  ;;  %11010 = vmatprep.mubr.msk.f32.mxu0 %vm4847_vm9, %v10087_v14  ;;  %v10135_v19 = vld [vmem:[%s21268_s8 + $0x378] sm:$0xff]  ;;  %v10132_v14 = vld [vmem:[%s21268_s8 + $0x360] sm:$0xff]  ;;  %vm9268_vm6 = vcmask 1024  }
 0x6cb   :  { %12110 = vmatprep.subr.bf16.mxu0 %v12109_v34  ;;  %v12145_v33 = vpack.c.bf16 %v10135_v19, %v10133_v47  ;;  %v12147_v34 = vpack.c.bf16 %v10134_v28, %v10132_v14  ;;  %v10164_v19 = vld [vmem:[%s21268_s8 + $0x460] sm:$0xff]  ;;  %v5019_v14 = vld [vmem:[%s21268_s8 + $0x18] sm:$0xff] }
 0x6cd   :  { %11011 = vmatmul.mubr.msk.f32.vlgmr.msra.gmra.mrb[140].mxu0 %vm4847_vm9, %v10088_v9  ;;  %v10139_v9 = vld [vmem:[%s21268_s8 + $0x398] sm:$0xff]  ;;  %vm7562_vm9 = vcmask 259076  }
 0x6ce   :  { %12112 = vmatpush1.bf16.msra.mxu0 %v12111_v48  ;;  %v12149_v58 = vpack.c.bf16 %v10139_v9, %v10137_v42  ;;  %v10143_v48 = vld [vmem:[%s21268_s8 + $0x3b8] sm:$0xff]  ;;  %vm7563_vm10 = vmor %vm7562_vm9, %vm7561_vm8 }
 0x6cf   :  { %12114 = vmatprep.subr.bf16.mxu0 %v12113_v11  ;;  %v12151_v11 = vpack.c.bf16 %v10138_v52, %v10136_v51  ;;  %v12153_v16 = vpack.c.bf16 %v10143_v48, %v10141_v22  ;;  %v5018_v51 = vld [vmem:[%s21268_s8 + $0x10] sm:$0xff]  ;;  %v5021_v52 = vld [vmem:[%s21268_s8 + $0x28] sm:$0xff]  ;;  %v5023_v22 = vld [vmem:[%s21268_s8 + $0x38] sm:$0xff] }
 0x6d2   :  { %12116 = vmatpush1.bf16.msra.mxu0 %v12115_v6  ;;  %v10147_v6 = vld [vmem:[%s21268_s8 + $0x3d8] sm:$0xff] }
 0x6d3   :  { %12118 = vmatprep.subr.bf16.mxu0 %v12117_v39  ;;  %v12155_v39 = vpack.c.bf16 %v10142_v63, %v10140_v12  ;;  %v12157_v21 = vpack.c.bf16 %v10147_v6, %v10145_v50  ;;  %v12185_v12 = vpack.c.bf16 %v5023_v22, %v5021_v52  ;;  %v5020_v63 = vld [vmem:[%s21268_s8 + $0x20] sm:$0xff]  ;;  %v5022_v50 = vld [vmem:[%s21268_s8 + $0x30] sm:$0xff]  ;;  %v5025_v6 = vld [vmem:[%s21268_s8 + $0x48] sm:$0xff] }
 0x6d4   :  { %v5048_v52 = vld [vmem:[%s21268_s8 + $0x100] sm:$0xff]  ;;  %v5050_v22 = vld [vmem:[%s21268_s8 + $0x110] sm:$0xff] }
 0x6d6   :  { %12120 = vmatpush1.bf16.msra.mxu0 %v12119_v17  ;;  %v10151_v17 = vld [vmem:[%s21268_s8 + $0x3f8] sm:$0xff] }
 0x6d7   :  { %12122 = vmatprep.subr.bf16.mxu0 %v12121_v5  ;;  %v12159_v5 = vpack.c.bf16 %v10146_v37, %v10144_v38  ;;  %v12161_v32 = vpack.c.bf16 %v10151_v17, %v10149_v29  ;;  %v5024_v37 = vld [vmem:[%s21268_s8 + $0x40] sm:$0xff]  ;;  %v5026_v29 = vld [vmem:[%s21268_s8 + $0x50] sm:$0xff] }
 0x6d8   :  { %v12191_v36 = vpack.c.bf16 %v5026_v29, %v5024_v37  ;;  %v5056_v37 = vld [vmem:[%s21268_s8 + $0x140] sm:$0xff]  ;;  %v5058_v29 = vld [vmem:[%s21268_s8 + $0x150] sm:$0xff] }
 0x6da   :  { %12124 = vmatpush1.bf16.msra.mxu0 %v12123_v23  ;;  %v10153_v23 = vld [vmem:[%s21268_s8 + $0x408] sm:$0xff] }
 0x6db   :  { %12126 = vmatprep.subr.bf16.mxu0 %v12125_v57  ;;  %v10155_v57 = vld [vmem:[%s21268_s8 + $0x418] sm:$0xff] }
 0x6dc   :  { %v12165_v2 = vpack.c.bf16 %v10155_v57, %v10153_v23  ;;  %v5028_v23 = vld [vmem:[%s21268_s8 + $0x60] sm:$0xff]  ;;  %v5030_v57 = vld [vmem:[%s21268_s8 + $0x70] sm:$0xff] }
 0x6de   :  { %12128 = vmatpush1.bf16.msra.mxu0 %v12127_v62  ;;  %v10157_v62 = vld [vmem:[%s21268_s8 + $0x428] sm:$0xff] }
 0x6df   :  { %12130 = vmatprep.subr.bf16.mxu0 %v12129_v35  ;;  %v10159_v35 = vld [vmem:[%s21268_s8 + $0x438] sm:$0xff] }
 0x6e0   :  { %v12169_v8 = vpack.c.bf16 %v10159_v35, %v10157_v62 }
 0x6e2   :  { %12132 = vmatpush1.bf16.msra.mxu0 %v12131_v4  ;;  %v10161_v4 = vld [vmem:[%s21268_s8 + $0x448] sm:$0xff] }
 0x6e3   :  { %12134 = vmatprep.subr.bf16.mxu0 %v12133_v41  ;;  %v10163_v41 = vld [vmem:[%s21268_s8 + $0x458] sm:$0xff] }
 0x6e4   :  { %v12173_v27 = vpack.c.bf16 %v10163_v41, %v10161_v4 }
 0x6e6   :  { %12136 = vmatpush1.bf16.msra.mxu0 %v12135_v13 }
 0x6e7   :  { %12138 = vmatprep.subr.bf16.mxu0 %v12137_v3 }
 0x6ea   :  { %12140 = vmatpush1.bf16.msra.mxu0 %v12139_v56  ;;  %v10167_v56 = vld [vmem:[%s21268_s8 + $0x478] sm:$0xff] }
 0x6eb   :  { %12142 = vmatprep.subr.bf16.mxu0 %v12141_v20  ;;  %v12177_v47 = vpack.c.bf16 %v10167_v56, %v10165_v18  ;;  %v5041_v18 = vld [vmem:[%s21268_s8 + $0xc8] sm:$0xff]  ;;  %v5043_v56 = vld [vmem:[%s21268_s8 + $0xd8] sm:$0xff] }
 0x6ee   :  { %12144 = vmatpush1.bf16.msra.mxu0 %v12143_v15  ;;  %v10166_v15 = vld [vmem:[%s21268_s8 + $0x470] sm:$0xff] }
 0x6ef   :  { %12146 = vmatprep.subr.bf16.mxu0 %v12145_v33  ;;  %v5017_v33 = vld [vmem:[%s21268_s8 + $0x8] sm:$0xff]  ;;  %v12179_v42 = vpack.c.bf16 %v10166_v15, %v10164_v19  ;;  %v5047_v15 = vld [vmem:[%s21268_s8 + $0xf8] sm:$0xff] }
 0x6f0   :  { %v5045_v19 = vld [vmem:[%s21268_s8 + $0xe8] sm:$0xff] }
 0x6f2   :  { %12148 = vmatpush1.bf16.msra.mxu0 %v12147_v34  ;;  %v12181_v34 = vpack.c.bf16 %v5019_v14, %v5017_v33  ;;  %v12209_v14 = vpack.c.bf16 %v5047_v15, %v5045_v19  ;;  %v5077_v19 = vld [vmem:[%s21268_s8 + $0x1e8] sm:$0xff]  ;;  %v5079_v15 = vld [vmem:[%s21268_s8 + $0x1f8] sm:$0xff] }
 0x6f3   :  { %12150 = vmatprep.subr.bf16.mxu0 %v12149_v58  ;;  %v5016_v58 = vld [vmem:[%s21268_s8] sm:$0xff] }
 0x6f6   :  { %12152 = vmatpush1.bf16.msra.mxu0 %v12151_v11  ;;  %v12183_v11 = vpack.c.bf16 %v5018_v51, %v5016_v58 }
 0x6f7   :  { %12154 = vmatprep.subr.bf16.mxu0 %v12153_v16 }
 0x6fa   :  { %12156 = vmatpush1.bf16.msra.mxu0 %v12155_v39  ;;  %v5027_v39 = vld [vmem:[%s21268_s8 + $0x58] sm:$0xff] }
 0x6fb   :  { %12158 = vmatprep.subr.bf16.mxu0 %v12157_v21  ;;  %v12187_v21 = vpack.c.bf16 %v5022_v50, %v5020_v63  ;;  %v12189_v38 = vpack.c.bf16 %v5027_v39, %v5025_v6  ;;  %v5052_v63 = vld [vmem:[%s21268_s8 + $0x120] sm:$0xff]  ;;  %v5054_v50 = vld [vmem:[%s21268_s8 + $0x130] sm:$0xff]  ;;  %v5057_v6 = vld [vmem:[%s21268_s8 + $0x148] sm:$0xff] }
 0x6fc   :  { %v5059_v39 = vld [vmem:[%s21268_s8 + $0x158] sm:$0xff] }
 0x6fe   :  { %12160 = vmatpush1.bf16.msra.mxu0 %v12159_v5  ;;  %v5029_v5 = vld [vmem:[%s21268_s8 + $0x68] sm:$0xff] }
 0x6ff   :  { %12162 = vmatprep.subr.bf16.mxu0 %v12161_v32  ;;  %v5031_v32 = vld [vmem:[%s21268_s8 + $0x78] sm:$0xff] }
 0x702   :  { %12164 = vmatpush1.bf16.msra.mxu0 %v12163_v61  ;;  %v12193_v61 = vpack.c.bf16 %v5031_v32, %v5029_v5  ;;  %v5061_v5 = vld [vmem:[%s21268_s8 + $0x168] sm:$0xff]  ;;  %v5063_v32 = vld [vmem:[%s21268_s8 + $0x178] sm:$0xff] }
 0x703   :  { %12166 = vmatprep.subr.bf16.mxu0 %v12165_v2  ;;  %v5035_v2 = vld [vmem:[%s21268_s8 + $0x98] sm:$0xff] }
 0x704   :  { %v12197_v35 = vpack.c.bf16 %v5035_v2, %v5033_v60  ;;  %v5065_v60 = vld [vmem:[%s21268_s8 + $0x188] sm:$0xff]  ;;  %v5067_v2 = vld [vmem:[%s21268_s8 + $0x198] sm:$0xff] }
 0x706   :  { %12168 = vmatpush1.bf16.msra.mxu0 %v12167_v31  ;;  %v12195_v31 = vpack.c.bf16 %v5030_v57, %v5028_v23  ;;  %v5060_v23 = vld [vmem:[%s21268_s8 + $0x160] sm:$0xff]  ;;  %v5062_v57 = vld [vmem:[%s21268_s8 + $0x170] sm:$0xff] }
 0x707   :  { %12170 = vmatprep.subr.bf16.mxu0 %v12169_v8  ;;  %v5032_v8 = vld [vmem:[%s21268_s8 + $0x80] sm:$0xff] }
 0x708   :  { %v12199_v4 = vpack.c.bf16 %v5034_v46, %v5032_v8  ;;  %v5064_v8 = vld [vmem:[%s21268_s8 + $0x180] sm:$0xff]  ;;  %v5066_v46 = vld [vmem:[%s21268_s8 + $0x190] sm:$0xff] }
 0x70a   :  { %12172 = vmatpush1.bf16.msra.mxu0 %v12171_v30  ;;  %v5039_v30 = vld [vmem:[%s21268_s8 + $0xb8] sm:$0xff] }
 0x70b   :  { %12174 = vmatprep.subr.bf16.mxu0 %v12173_v27  ;;  %v12201_v27 = vpack.c.bf16 %v5039_v30, %v5037_v55  ;;  %v5069_v55 = vld [vmem:[%s21268_s8 + $0x1a8] sm:$0xff]  ;;  %v5071_v30 = vld [vmem:[%s21268_s8 + $0x1b8] sm:$0xff] }
 0x78a   :  { %v17791_v24 = vpop.f32.mrb[130].mxu0 }
 0x78b   :  { %v4932_v10 = vpop.f32.mrb[131].mxu0 }
 0x78c   :  { %v17858_v17 = vpop.f32.mrb[64].mxu1 }
 0x78d   :  { %v17867_v1 = vpop.f32.mrb[65].mxu1 }
 0x78e   :  { %v17793_v25 = vpop.f32.mrb[132].mxu0 }
 0x78f   :  { %v17795_v13 = vpop.f32.mrb[133].mxu0 }
 0x792   :  { %v17797_v3 = vpop.f32.mrb[134].mxu0  ;;  %v17881_v7 = vpop.f32.mrb[66].mxu1 }
 0x793   :  { %v17799_v49 = vpop.f32.mrb[135].mxu0  ;;  %v17883_v62 = vpop.f32.mrb[67].mxu1 }
 0x796   :  { %v17897_v41 = vpop.f32.mrb[68].mxu1 }
 0x797   :  { %v17905_v0 = vpop.f32.mrb[69].mxu1 }
 0x798   :  { %v5163_v20 = vpop.f32.mrb[136].mxu0 }
 0x799   :  { %v5165_v43 = vpop.f32.mrb[137].mxu0 }
 0x79a   :  { %5393 = vmatprep.mubr.f32.mxu0 %v5165_v43  ;;  %v5040_v43 = vld [vmem:[%s21268_s8 + $0xc0] sm:$0xff] }
 0x79b   :  { %5394 = vmatmul.mubr.f32.vlgmr.msra.gmra.mrb[142].mxu0 %v5163_v20 }
 0x79c   :  { %12176 = vmatpush1.bf16.msra.mxu0 %v12175_v54  ;;  %v5169_v28 = vpop.f32.mrb[138].mxu0  ;;  %v12205_v54 = vpack.c.bf16 %v5043_v56, %v5041_v18  ;;  %v5073_v18 = vld [vmem:[%s21268_s8 + $0x1c8] sm:$0xff]  ;;  %v5075_v56 = vld [vmem:[%s21268_s8 + $0x1d8] sm:$0xff] }
 0x79d   :  { %v5171_v9 = vpop.f32.mrb[139].mxu0  ;;  %12178 = vmatprep.subr.bf16.mxu0 %v12177_v47  ;;  %v5042_v47 = vld [vmem:[%s21268_s8 + $0xd0] sm:$0xff] }
 0x79e   :  { %5399 = vmatprep.mubr.f32.mxu0 %v5171_v9  ;;  %v12207_v33 = vpack.c.bf16 %v5042_v47, %v5040_v43  ;;  %v5049_v9 = vld [vmem:[%s21268_s8 + $0x108] sm:$0xff]  ;;  %v5072_v43 = vld [vmem:[%s21268_s8 + $0x1c0] sm:$0xff]  ;;  %v5074_v47 = vld [vmem:[%s21268_s8 + $0x1d0] sm:$0xff] }
 0x79f   :  { %5400 = vmatmul.mubr.f32.gmra.mrb[144].mxu0 %v5169_v28  ;;  %v5044_v28 = vld [vmem:[%s21268_s8 + $0xe0] sm:$0xff] }
 0x7a0   :  { %12180 = vmatpush1.bf16.msra.mxu0 %v12179_v42  ;;  %v11012_v48 = vpop.f32.mrb[140].mxu0  ;;  %5470 = vmatprep.mubr.f32.mxu0 %v21319_v53  ;;  %v5046_v42 = vld [vmem:[%s21268_s8 + $0xf0] sm:$0xff] }
 0x7a1   :  { %v5240_v16 = vpop.f32.mrb[141].mxu0  ;;  %12182 = vmatprep.subr.bf16.mxu0 %v12181_v34  ;;  %v5051_v34 = vld [vmem:[%s21268_s8 + $0x118] sm:$0xff]  ;;  %v12211_v58 = vpack.c.bf16 %v5046_v42, %v5044_v28  ;;  %v5076_v28 = vld [vmem:[%s21268_s8 + $0x1e0] sm:$0xff]  ;;  %v5078_v42 = vld [vmem:[%s21268_s8 + $0x1f0] sm:$0xff] }
 0x7a2   :  { %v12213_v51 = vpack.c.bf16 %v5051_v34, %v5049_v9  ;;  %v5081_v9 = vld [vmem:[%s21268_s8 + $0x208] sm:$0xff]  ;;  %v5083_v34 = vld [vmem:[%s21268_s8 + $0x218] sm:$0xff] }
 0x7a3   :  { %10168 = vmatmul.mubr.msk.f32.vlgmr.msra.gmra.mrb[142].mxu0 %vm5322_vm11, %v5240_v16  ;;  %v12215_v16 = vpack.c.bf16 %v5050_v22, %v5048_v52  ;;  %v5080_v52 = vld [vmem:[%s21268_s8 + $0x200] sm:$0xff]  ;;  %v5082_v22 = vld [vmem:[%s21268_s8 + $0x210] sm:$0xff] }
 0x7a4   :  { %12184 = vmatpush1.bf16.msra.mxu0 %v12183_v11  ;;  %5476 = vmatprep.mubr.f32.mxu0 %v21319_v53  ;;  %v5055_v11 = vld [vmem:[%s21268_s8 + $0x138] sm:$0xff] }
 0x7a5   :  { %12186 = vmatprep.subr.bf16.mxu0 %v12185_v12 }
 0x7a7   :  { %10169 = vmatmul.mubr.msk.f32.gmra.mrb[144].mxu0 %vm5322_vm11, %v11012_v48  ;;  %v5053_v48 = vld [vmem:[%s21268_s8 + $0x128] sm:$0xff] }
 0x7a8   :  { %12188 = vmatpush1.bf16.msra.mxu0 %v12187_v21  ;;  %5553 = vmatprep.mubr.f32.mxu0 %v4932_v10  ;;  %v5036_v10 = vld [vmem:[%s21268_s8 + $0xa0] sm:$0xff]  ;;  %v12217_v12 = vpack.c.bf16 %v5055_v11, %v5053_v48  ;;  %v12219_v21 = vpack.c.bf16 %v5054_v50, %v5052_v63  ;;  %v5085_v48 = vld [vmem:[%s21268_s8 + $0x228] sm:$0xff]  ;;  %v5087_v11 = vld [vmem:[%s21268_s8 + $0x238] sm:$0xff] }
 0x7a9   :  { %12190 = vmatprep.subr.bf16.mxu0 %v12189_v38  ;;  %v12203_v20 = vpack.c.bf16 %v5038_v59, %v5036_v10  ;;  %v12221_v38 = vpack.c.bf16 %v5059_v39, %v5057_v6  ;;  %v5068_v10 = vld [vmem:[%s21268_s8 + $0x1a0] sm:$0xff]  ;;  %v5070_v59 = vld [vmem:[%s21268_s8 + $0x1b0] sm:$0xff]  ;;  %v10182_v6 = vld [vmem:[%s21268_s8 + $0x488] sm:$0xff] }
 0x7aa   :  { %v5084_v63 = vld [vmem:[%s21268_s8 + $0x220] sm:$0xff]  ;;  %v5086_v50 = vld [vmem:[%s21268_s8 + $0x230] sm:$0xff]  ;;  %v10184_v39 = vld [vmem:[%s21268_s8 + $0x498] sm:$0xff] }
 0x7ac   :  { %12192 = vmatpush1.bf16.msra.mxu0 %v12191_v36  ;;  %v12223_v36 = vpack.c.bf16 %v5058_v29, %v5056_v37  ;;  %v10181_v37 = vld [vmem:[%s21268_s8 + $0x480] sm:$0xff]  ;;  %v10183_v29 = vld [vmem:[%s21268_s8 + $0x490] sm:$0xff] }
 0x7ad   :  { %12194 = vmatprep.subr.bf16.mxu0 %v12193_v61  ;;  %v12225_v61 = vpack.c.bf16 %v5063_v32, %v5061_v5  ;;  %v10186_v5 = vld [vmem:[%s21268_s8 + $0x4a8] sm:$0xff] }
 0x7b0   :  { %12196 = vmatpush1.bf16.msra.mxu0 %v12195_v31  ;;  %v12227_v31 = vpack.c.bf16 %v5062_v57, %v5060_v23  ;;  %v10190_v23 = vld [vmem:[%s21268_s8 + $0x4c8] sm:$0xff] }
 0x7b1   :  { %12198 = vmatprep.subr.bf16.mxu0 %v12197_v35  ;;  %v12229_v35 = vpack.c.bf16 %v5067_v2, %v5065_v60  ;;  %v10189_v2 = vld [vmem:[%s21268_s8 + $0x4c0] sm:$0xff] }
 0x7b4   :  { %12200 = vmatpush1.bf16.msra.mxu0 %v12199_v4  ;;  %v12231_v4 = vpack.c.bf16 %v5066_v46, %v5064_v8 }
 0x7b5   :  { %12202 = vmatprep.subr.bf16.mxu0 %v12201_v27  ;;  %v12233_v27 = vpack.c.bf16 %v5071_v30, %v5069_v55  ;;  %v10193_v55 = vld [vmem:[%s21268_s8 + $0x4e0] sm:$0xff]  ;;  %v10195_v30 = vld [vmem:[%s21268_s8 + $0x4f0] sm:$0xff] }
 0x7b8   :  { %12204 = vmatpush1.bf16.msra.mxu0 %v12203_v20  ;;  %v12235_v20 = vpack.c.bf16 %v5070_v59, %v5068_v10  ;;  %v10197_v10 = vld [vmem:[%s21268_s8 + $0x500] sm:$0xff]  ;;  %v10199_v59 = vld [vmem:[%s21268_s8 + $0x510] sm:$0xff] }
 0x7b9   :  { %12206 = vmatprep.subr.bf16.mxu0 %v12205_v54  ;;  %v12237_v54 = vpack.c.bf16 %v5075_v56, %v5073_v18  ;;  %v10202_v18 = vld [vmem:[%s21268_s8 + $0x528] sm:$0xff]  ;;  %v10204_v56 = vld [vmem:[%s21268_s8 + $0x538] sm:$0xff] }
 0x7bc   :  { %12208 = vmatpush1.bf16.msra.mxu0 %v12207_v33  ;;  %v12239_v33 = vpack.c.bf16 %v5074_v47, %v5072_v43  ;;  %v10201_v43 = vld [vmem:[%s21268_s8 + $0x520] sm:$0xff]  ;;  %v10203_v47 = vld [vmem:[%s21268_s8 + $0x530] sm:$0xff] }
 0x7bd   :  { %12210 = vmatprep.subr.bf16.mxu0 %v12209_v14  ;;  %v12241_v14 = vpack.c.bf16 %v5079_v15, %v5077_v19  ;;  %v10206_v19 = vld [vmem:[%s21268_s8 + $0x548] sm:$0xff]  ;;  %v10208_v15 = vld [vmem:[%s21268_s8 + $0x558] sm:$0xff] }
 0x7c0   :  { %12212 = vmatpush1.bf16.msra.mxu0 %v12211_v58  ;;  %v12243_v58 = vpack.c.bf16 %v5078_v42, %v5076_v28  ;;  %v10205_v28 = vld [vmem:[%s21268_s8 + $0x540] sm:$0xff]  ;;  %v10207_v42 = vld [vmem:[%s21268_s8 + $0x550] sm:$0xff] }
 0x7c1   :  { %12214 = vmatprep.subr.bf16.mxu0 %v12213_v51  ;;  %v12245_v51 = vpack.c.bf16 %v5083_v34, %v5081_v9  ;;  %v10210_v9 = vld [vmem:[%s21268_s8 + $0x568] sm:$0xff]  ;;  %v10212_v34 = vld [vmem:[%s21268_s8 + $0x578] sm:$0xff] }
 0x7c4   :  { %12216 = vmatpush1.bf16.msra.mxu0 %v12215_v16  ;;  %v12247_v16 = vpack.c.bf16 %v5082_v22, %v5080_v52  ;;  %v10209_v52 = vld [vmem:[%s21268_s8 + $0x560] sm:$0xff]  ;;  %v10211_v22 = vld [vmem:[%s21268_s8 + $0x570] sm:$0xff] }
 0x7c5   :  { %12218 = vmatprep.subr.bf16.mxu0 %v12217_v12  ;;  %v12249_v12 = vpack.c.bf16 %v5087_v11, %v5085_v48  ;;  %v10214_v48 = vld [vmem:[%s21268_s8 + $0x588] sm:$0xff]  ;;  %v10216_v11 = vld [vmem:[%s21268_s8 + $0x598] sm:$0xff] }
 0x7c8   :  { %12220 = vmatpush1.bf16.msra.mxu0 %v12219_v21  ;;  %v12251_v21 = vpack.c.bf16 %v5086_v50, %v5084_v63  ;;  %v10213_v63 = vld [vmem:[%s21268_s8 + $0x580] sm:$0xff]  ;;  %v10215_v50 = vld [vmem:[%s21268_s8 + $0x590] sm:$0xff] }
 0x7c9   :  { %12222 = vmatprep.subr.bf16.mxu0 %v12221_v38  ;;  %v12261_v38 = vpack.c.bf16 %v10184_v39, %v10182_v6  ;;  %v10218_v6 = vld [vmem:[%s21268_s8 + $0x5a8] sm:$0xff]  ;;  %v10220_v39 = vld [vmem:[%s21268_s8 + $0x5b8] sm:$0xff] }
 0x7cc   :  { %12224 = vmatpush1.bf16.msra.mxu0 %v12223_v36  ;;  %v10185_v36 = vld [vmem:[%s21268_s8 + $0x4a0] sm:$0xff] }
 0x7cd   :  { %12226 = vmatprep.subr.bf16.mxu0 %v12225_v61  ;;  %v10187_v61 = vld [vmem:[%s21268_s8 + $0x4b0] sm:$0xff] }
 0x7ce   :  { %v12267_v57 = vpack.c.bf16 %v10187_v61, %v10185_v36  ;;  %v10221_v36 = vld [vmem:[%s21268_s8 + $0x5c0] sm:$0xff]  ;;  %v10223_v61 = vld [vmem:[%s21268_s8 + $0x5d0] sm:$0xff] }
 0x7d0   :  { %12228 = vmatpush1.bf16.msra.mxu0 %v12227_v31  ;;  %v10191_v31 = vld [vmem:[%s21268_s8 + $0x4d0] sm:$0xff] }
 0x7d1   :  { %12230 = vmatprep.subr.bf16.mxu0 %v12229_v35  ;;  %v10194_v35 = vld [vmem:[%s21268_s8 + $0x4e8] sm:$0xff]  ;;  %v12271_v8 = vpack.c.bf16 %v10191_v31, %v10189_v2  ;;  %v10225_v2 = vld [vmem:[%s21268_s8 + $0x5e0] sm:$0xff]  ;;  %v10227_v31 = vld [vmem:[%s21268_s8 + $0x5f0] sm:$0xff] }
 0x7d4   :  { %12232 = vmatpush1.bf16.msra.mxu0 %v12231_v4  ;;  %v10198_v4 = vld [vmem:[%s21268_s8 + $0x508] sm:$0xff] }
 0x7d5   :  { %12234 = vmatprep.subr.bf16.mxu0 %v12233_v27 }
 0x7d8   :  { %12236 = vmatpush1.bf16.msra.mxu0 %v12235_v20  ;;  %v12279_v20 = vpack.c.bf16 %v10199_v59, %v10197_v10  ;;  %v10233_v10 = vld [vmem:[%s21268_s8 + $0x620] sm:$0xff]  ;;  %v10235_v59 = vld [vmem:[%s21268_s8 + $0x630] sm:$0xff] }
 0x7d9   :  { %12238 = vmatprep.subr.bf16.mxu0 %v12237_v54  ;;  %v12281_v54 = vpack.c.bf16 %v10204_v56, %v10202_v18  ;;  %v10238_v18 = vld [vmem:[%s21268_s8 + $0x648] sm:$0xff]  ;;  %v10240_v56 = vld [vmem:[%s21268_s8 + $0x658] sm:$0xff] }
 0x7dc   :  { %12240 = vmatpush1.bf16.msra.mxu0 %v12239_v33  ;;  %v12283_v33 = vpack.c.bf16 %v10203_v47, %v10201_v43  ;;  %v10237_v43 = vld [vmem:[%s21268_s8 + $0x640] sm:$0xff]  ;;  %v10239_v47 = vld [vmem:[%s21268_s8 + $0x650] sm:$0xff] }
 0x7dd   :  { %12242 = vmatprep.subr.bf16.mxu0 %v12241_v14  ;;  %v12285_v14 = vpack.c.bf16 %v10208_v15, %v10206_v19  ;;  %v10242_v19 = vld [vmem:[%s21268_s8 + $0x668] sm:$0xff]  ;;  %v10244_v15 = vld [vmem:[%s21268_s8 + $0x678] sm:$0xff] }
 0x7e0   :  { %12244 = vmatpush1.bf16.msra.mxu0 %v12243_v58  ;;  %v12287_v58 = vpack.c.bf16 %v10207_v42, %v10205_v28  ;;  %v10241_v28 = vld [vmem:[%s21268_s8 + $0x660] sm:$0xff]  ;;  %v10243_v42 = vld [vmem:[%s21268_s8 + $0x670] sm:$0xff] }
 0x7e1   :  { %12246 = vmatprep.subr.bf16.mxu0 %v12245_v51  ;;  %v12289_v51 = vpack.c.bf16 %v10212_v34, %v10210_v9  ;;  %v10246_v9 = vld [vmem:[%s21268_s8 + $0x688] sm:$0xff]  ;;  %v10248_v34 = vld [vmem:[%s21268_s8 + $0x698] sm:$0xff] }
 0x7e3   :  { %5554 = vmatmul.mubr.f32.vlgmr.msra.gmra.mrb[142].mxu0 %v17791_v24  ;;  %v10188_v24 = vld [vmem:[%s21268_s8 + $0x4b8] sm:$0xff] }
 0x7e4   :  { %5559 = vmatprep.mubr.f32.mxu0 %v17795_v13  ;;  %12248 = vmatpush1.bf16.msra.mxu0 %v12247_v16  ;;  %v12263_v13 = vpack.c.bf16 %v10183_v29, %v10181_v37  ;;  %v12265_v32 = vpack.c.bf16 %v10188_v24, %v10186_v5  ;;  %v12291_v16 = vpack.c.bf16 %v10211_v22, %v10209_v52  ;;  %v10217_v37 = vld [vmem:[%s21268_s8 + $0x5a0] sm:$0xff]  ;;  %v10219_v29 = vld [vmem:[%s21268_s8 + $0x5b0] sm:$0xff]  ;;  %v10222_v5 = vld [vmem:[%s21268_s8 + $0x5c8] sm:$0xff] }
 0x7e5   :  { %12250 = vmatprep.subr.bf16.mxu0 %v12249_v12  ;;  %v12293_v12 = vpack.c.bf16 %v10216_v11, %v10214_v48  ;;  %v10224_v24 = vld [vmem:[%s21268_s8 + $0x5d8] sm:$0xff]  ;;  %v10245_v52 = vld [vmem:[%s21268_s8 + $0x680] sm:$0xff]  ;;  %v10247_v22 = vld [vmem:[%s21268_s8 + $0x690] sm:$0xff] }
 0x7e6   :  { %v10250_v48 = vld [vmem:[%s21268_s8 + $0x6a8] sm:$0xff]  ;;  %v10252_v11 = vld [vmem:[%s21268_s8 + $0x6b8] sm:$0xff] }
 0x7e7   :  { %5560 = vmatmul.mubr.f32.gmra.mrb[144].mxu0 %v17793_v25  ;;  %v10192_v25 = vld [vmem:[%s21268_s8 + $0x4d8] sm:$0xff] }
 0x7e8   :  { %12252 = vmatpush1.bf16.msra.mxu0 %v12251_v21  ;;  %5630 = vmatprep.mubr.f32.mxu0 %v21319_v53  ;;  %v12269_v60 = vpack.c.bf16 %v10192_v25, %v10190_v23  ;;  %v12295_v21 = vpack.c.bf16 %v10215_v50, %v10213_v63  ;;  %v10226_v23 = vld [vmem:[%s21268_s8 + $0x5e8] sm:$0xff]  ;;  %v10228_v25 = vld [vmem:[%s21268_s8 + $0x5f8] sm:$0xff]  ;;  %v10249_v63 = vld [vmem:[%s21268_s8 + $0x6a0] sm:$0xff] }
 0x7e9   :  { %12262 = vmatprep.subr.bf16.mxu0 %v12261_v38  ;;  %v12297_v38 = vpack.c.bf16 %v10220_v39, %v10218_v6  ;;  %v10251_v50 = vld [vmem:[%s21268_s8 + $0x6b0] sm:$0xff] }
 0x7ea   :  { %v12331_v6 = vpack.c.bf16 %v10251_v50, %v10249_v63  ;;  %v6165_v39 = vld [vmem:[%s21271_s11 + $0x10] sm:$0xff] }
 0x7eb   :  { %10170 = vmatmul.mubr.msk.f32.vlgmr.msra.gmra.mrb[142].mxu0 %vm5322_vm11, %v17799_v49  ;;  %v10196_v49 = vld [vmem:[%s21268_s8 + $0x4f8] sm:$0xff] }
 0x7ec   :  { %12264 = vmatpush1.bf16.msra.mxu0 %v12263_v13  ;;  %5636 = vmatprep.mubr.f32.mxu0 %v21319_v53  ;;  %v12273_v46 = vpack.c.bf16 %v10196_v49, %v10194_v35  ;;  %v12299_v13 = vpack.c.bf16 %v10219_v29, %v10217_v37  ;;  %v10230_v35 = vld [vmem:[%s21268_s8 + $0x608] sm:$0xff]  ;;  %v10232_v49 = vld [vmem:[%s21268_s8 + $0x618] sm:$0xff]  ;;  %v6177_v37 = vld [vmem:[%s21271_s11 + $0x70] sm:$0xff] }
 0x7ed   :  { %12266 = vmatprep.subr.bf16.mxu0 %v12265_v32  ;;  %v12301_v32 = vpack.c.bf16 %v10224_v24, %v10222_v5  ;;  %v6180_v29 = vld [vmem:[%s21271_s11 + $0x88] sm:$0xff]  ;;  %v6186_v24 = vld [vmem:[%s21271_s11 + $0xb8] sm:$0xff] }
 0x7ee   :  { %v12462_v5 = vpack.c.bf16 %v6180_v29, %v6177_v37  ;;  %v10270_v37 = vld [vmem:[%s21271_s11 + $0x200] sm:$0xff] }
 0x7ef   :  { %10171 = vmatmul.mubr.msk.f32.gmra.mrb[144].mxu0 %vm5322_vm11, %v17797_v3  ;;  %v10200_v3 = vld [vmem:[%s21268_s8 + $0x518] sm:$0xff]  ;;  %v6081_v29 = vld [vmem:[%s21270_s10] sm:$0x3] }
 0x7f0   :  { %12268 = vmatpush1.bf16.msra.mxu0 %v12267_v57  ;;  %5947 = vmatprep.mubr.f32.mxu0 %v17867_v1  ;;  %v12275_v1 = vpack.c.bf16 %v10195_v30, %v10193_v55  ;;  %v12277_v27 = vpack.c.bf16 %v10200_v3, %v10198_v4  ;;  %v12303_v57 = vpack.c.bf16 %v10223_v61, %v10221_v36  ;;  %v10229_v55 = vld [vmem:[%s21268_s8 + $0x600] sm:$0xff]  ;;  %v10231_v30 = vld [vmem:[%s21268_s8 + $0x610] sm:$0xff]  ;;  %v10234_v4 = vld [vmem:[%s21268_s8 + $0x628] sm:$0xff] }
 0x7f1   :  { %12270 = vmatprep.subr.bf16.mxu0 %v12269_v60  ;;  %v12305_v60 = vpack.c.bf16 %v10228_v25, %v10226_v23  ;;  %v10236_v3 = vld [vmem:[%s21268_s8 + $0x638] sm:$0xff]  ;;  %v6195_v61 = vld [vmem:[%s21271_s11 + $0x100] sm:$0xff] }
 0x7f2   :  { %v6198_v23 = vld [vmem:[%s21271_s11 + $0x118] sm:$0xff] }
 0x7f3   :  { %v12471_v25 = vpack.c.bf16 %v6198_v23, %v6195_v61  ;;  %v10272_v23 = vld [vmem:[%s21271_s11 + $0x210] sm:$0xff] }
 0x7f4   :  { %12272 = vmatpush1.bf16.msra.mxu0 %v12271_v8  ;;  %v12307_v8 = vpack.c.bf16 %v10227_v31, %v10225_v2  ;;  %v6207_v31 = vld [vmem:[%s21271_s11 + $0x160] sm:$0xff] }
 0x7f5   :  { %12274 = vmatprep.subr.bf16.mxu0 %v12273_v46  ;;  %v12309_v46 = vpack.c.bf16 %v10232_v49, %v10230_v35  ;;  %v6210_v35 = vld [vmem:[%s21271_s11 + $0x178] sm:$0xff] }
 0x7f6   :  { %v12477_v49 = vpack.c.bf16 %v6210_v35, %v6207_v31  ;;  %v10278_v35 = vld [vmem:[%s21271_s11 + $0x240] sm:$0xff] }
 0x7f8   :  { %12276 = vmatpush1.bf16.msra.mxu0 %v12275_v1  ;;  %v12311_v1 = vpack.c.bf16 %v10231_v30, %v10229_v55  ;;  %v6219_v30 = vld [vmem:[%s21271_s11 + $0x1c0] sm:$0xff] }
 0x7f9   :  { %12278 = vmatprep.subr.bf16.mxu0 %v12277_v27  ;;  %v12313_v27 = vpack.c.bf16 %v10236_v3, %v10234_v4  ;;  %v6222_v4 = vld [vmem:[%s21271_s11 + $0x1d8] sm:$0xff] }
 0x7fa   :  { %v12483_v3 = vpack.c.bf16 %v6222_v4, %v6219_v30  ;;  %v10284_v4 = vld [vmem:[%s21271_s11 + $0x270] sm:$0xff] }
 0x7fc   :  { %12280 = vmatpush1.bf16.msra.mxu0 %v12279_v20  ;;  %v12315_v20 = vpack.c.bf16 %v10235_v59, %v10233_v10 }
 0x7fd   :  { %12282 = vmatprep.subr.bf16.mxu0 %v12281_v54  ;;  %v12317_v54 = vpack.c.bf16 %v10240_v56, %v10238_v18 }
 0x800   :  { %12284 = vmatpush1.bf16.msra.mxu0 %v12283_v33  ;;  %v12319_v33 = vpack.c.bf16 %v10239_v47, %v10237_v43 }
 0x801   :  { %12286 = vmatprep.subr.bf16.mxu0 %v12285_v14  ;;  %v12321_v14 = vpack.c.bf16 %v10244_v15, %v10242_v19 }
 0x804   :  { %12288 = vmatpush1.bf16.msra.mxu0 %v12287_v58  ;;  %v12323_v58 = vpack.c.bf16 %v10243_v42, %v10241_v28 }
 0x805   :  { %12290 = vmatprep.subr.bf16.mxu0 %v12289_v51  ;;  %v12325_v51 = vpack.c.bf16 %v10248_v34, %v10246_v9 }
 0x808   :  { %12292 = vmatpush1.bf16.msra.mxu0 %v12291_v16  ;;  %v12327_v16 = vpack.c.bf16 %v10247_v22, %v10245_v52 }
 0x809   :  { %12294 = vmatprep.subr.bf16.mxu0 %v12293_v12  ;;  %v12329_v12 = vpack.c.bf16 %v10252_v11, %v10250_v48 }
 0x80c   :  { %12296 = vmatpush1.bf16.msra.mxu0 %v12295_v21  ;;  %v6168_v21 = vld [vmem:[%s21271_s11 + $0x28] sm:$0xff] }
 0x80d   :  { %12298 = vmatprep.subr.bf16.mxu0 %v12297_v38  ;;  %v12456_v38 = vpack.c.bf16 %v6168_v21, %v6165_v39 }
 0x810   :  { %12300 = vmatpush1.bf16.msra.mxu0 %v12299_v13 }
 0x811   :  { %12302 = vmatprep.subr.bf16.mxu0 %v12301_v32  ;;  %v6192_v32 = vld [vmem:[%s21271_s11 + $0xe8] sm:$0xff] }
 0x814   :  { %12304 = vmatpush1.bf16.msra.mxu0 %v12303_v57  ;;  %v6201_v57 = vld [vmem:[%s21271_s11 + $0x130] sm:$0xff] }
 0x815   :  { %12306 = vmatprep.subr.bf16.mxu0 %v12305_v60  ;;  %v6204_v60 = vld [vmem:[%s21271_s11 + $0x148] sm:$0xff] }
 0x816   :  { %v12474_v2 = vpack.c.bf16 %v6204_v60, %v6201_v57  ;;  %v10279_v57 = vld [vmem:[%s21271_s11 + $0x248] sm:$0xff]  ;;  %v10282_v60 = vld [vmem:[%s21271_s11 + $0x260] sm:$0xff] }
 0x817   :  { %v12353_v31 = vpack.c.bf16 %v10282_v60, %v10279_v57  ;;  %v10330_v60 = vld [vmem:[%s21270_s10 + $0x4] sm:$0x3] }
 0x818   :  { %12308 = vmatpush1.bf16.msra.mxu0 %v12307_v8  ;;  %v6213_v8 = vld [vmem:[%s21271_s11 + $0x190] sm:$0xff] }
 0x819   :  { %12310 = vmatprep.subr.bf16.mxu0 %v12309_v46  ;;  %v6216_v46 = vld [vmem:[%s21271_s11 + $0x1a8] sm:$0xff] }
 0x81a   :  { %v12480_v55 = vpack.c.bf16 %v6216_v46, %v6213_v8  ;;  %v10285_v8 = vld [vmem:[%s21271_s11 + $0x278] sm:$0xff]  ;;  %v10288_v46 = vld [vmem:[%s21271_s11 + $0x290] sm:$0xff] }
 0x81b   :  { %v12357_v30 = vpack.c.bf16 %v10288_v46, %v10285_v8  ;;  %v10342_v8 = vld [vmem:[%s21271_s11 + $0x400] sm:$0xff]  ;;  %v10345_v46 = vld [vmem:[%s21271_s11 + $0x418] sm:$0xff] }
 0x81c   :  { %12312 = vmatpush1.bf16.msra.mxu0 %v12311_v1  ;;  %v6041_v1 = vld [vmem:[%s21269_s9] sm:$0x3] }
 0x81d   :  { %12314 = vmatprep.subr.bf16.mxu0 %v12313_v27  ;;  %v6046_v27 = vrot.slane %v6041_v1, %v21323_v26  ;;  %v6050_v10 = vrot.slane %v6041_v1, %v21324_v40  ;;  %v10291_v1 = vld [vmem:[%s21271_s11 + $0x2a8] sm:$0xff] }
 0x820   :  { %12316 = vmatpush1.bf16.msra.mxu0 %v12315_v20 }
 0x821   :  { %12318 = vmatprep.subr.bf16.mxu0 %v12317_v54 }
 0x824   :  { %12320 = vmatpush1.bf16.msra.mxu0 %v12319_v33 }
 0x825   :  { %12322 = vmatprep.subr.bf16.mxu0 %v12321_v14 }
 0x828   :  { %12324 = vmatpush1.bf16.msra.mxu0 %v12323_v58 }
 0x829   :  { %12326 = vmatprep.subr.bf16.mxu0 %v12325_v51 }
 0x82b   :  { %5948 = vmatmul.mubr.f32.vlgmr.msra.gmra.mrb[142].mxu0 %v17858_v17  ;;  %v6171_v17 = vld [vmem:[%s21271_s11 + $0x40] sm:$0xff] }
 0x82c   :  { %12328 = vmatpush1.bf16.msra.mxu0 %v12327_v16  ;;  %5953 = vmatprep.mubr.f32.mxu0 %v17883_v62  ;;  %v6174_v62 = vld [vmem:[%s21271_s11 + $0x58] sm:$0xff] }
 0x82d   :  { %12330 = vmatprep.subr.bf16.mxu0 %v12329_v12 }
 0x82f   :  { %5954 = vmatmul.mubr.f32.gmra.mrb[144].mxu0 %v17881_v7  ;;  %v12459_v7 = vpack.c.bf16 %v6174_v62, %v6171_v17 }
 0x830   :  { %12332 = vmatpush1.bf16.msra.mxu0 %v12331_v6  ;;  %6024 = vmatprep.mubr.f32.mxu0 %v21319_v53 }
 0x831   :  { %12455 = vmatprep.subr.bf16.mxu0 %v21320_v45 }
 0x833   :  { %10253 = vmatmul.mubr.msk.f32.vlgmr.msra.gmra.mrb[142].mxu0 %vm5322_vm11, %v17905_v0  ;;  %v6183_v0 = vld [vmem:[%s21271_s11 + $0xa0] sm:$0xff] }
 0x834   :  { %6030 = vmatprep.mubr.f32.mxu0 %v21319_v53  ;;  %12457 = vmatpush1.bf16.msra.mxu0 %v12456_v38  ;;  %v12465_v13 = vpack.c.bf16 %v6186_v24, %v6183_v0  ;;  %v10266_v0 = vld [vmem:[%s21271_s11 + $0x1e0] sm:$0xff]  ;;  %v10269_v24 = vld [vmem:[%s21271_s11 + $0x1f8] sm:$0xff] }
 0x835   :  { %12458 = vmatprep.subr.bf16.mxu0 %v21320_v45 }
 0x837   :  { %10254 = vmatmul.mubr.msk.f32.gmra.mrb[144].mxu0 %vm5322_vm11, %v17897_v41  ;;  %v6189_v41 = vld [vmem:[%s21271_s11 + $0xd0] sm:$0xff] }
 0x838   :  { %12460 = vmatpush1.bf16.msra.mxu0 %v12459_v7  ;;  %v12468_v36 = vpack.c.bf16 %v6192_v32, %v6189_v41  ;;  %v10267_v7 = vld [vmem:[%s21271_s11 + $0x1e8] sm:$0xff]  ;;  %v10276_v41 = vld [vmem:[%s21271_s11 + $0x230] sm:$0xff]  ;;  %v10262_v32 = vld [vmem:[%s21270_s10 + $0x2] sm:$0x3] }
 0x839   :  { %12461 = vmatprep.subr.bf16.mxu0 %v21320_v45 }
 0x83c   :  { %12463 = vmatpush1.bf16.msra.mxu0 %v12462_v5  ;;  %v12345_v5 = vpack.c.bf16 %v10270_v37, %v10267_v7  ;;  %v10321_v7 = vld [vmem:[%s21271_s11 + $0x398] sm:$0xff]  ;;  %v10324_v37 = vld [vmem:[%s21271_s11 + $0x3b0] sm:$0xff] }
 0x83d   :  { %12464 = vmatprep.subr.bf16.mxu0 %v21320_v45 }
 0x840   :  { %12466 = vmatpush1.bf16.msra.mxu0 %v12465_v13  ;;  %v10273_v13 = vld [vmem:[%s21271_s11 + $0x218] sm:$0xff] }
 0x841   :  { %12467 = vmatprep.subr.bf16.mxu0 %v21320_v45  ;;  %v12349_v61 = vpack.c.bf16 %v10276_v41, %v10273_v13  ;;  %v10268_v41 = vld [vmem:[%s21271_s11 + $0x1f0] sm:$0xff] }
 0x844   :  { %12469 = vmatpush1.bf16.msra.mxu0 %v12468_v36  ;;  %v12347_v36 = vpack.c.bf16 %v10269_v24, %v10266_v0  ;;  %v10323_v0 = vld [vmem:[%s21271_s11 + $0x3a8] sm:$0xff] }
 0x845   :  { %12470 = vmatprep.subr.bf16.mxu0 %v21320_v45 }
 0x848   :  { %12472 = vmatpush1.bf16.msra.mxu0 %v12471_v25  ;;  %v10275_v25 = vld [vmem:[%s21271_s11 + $0x228] sm:$0xff] }
 0x849   :  { %12473 = vmatprep.subr.bf16.mxu0 %v21320_v45 }
 0x84c   :  { %12475 = vmatpush1.bf16.msra.mxu0 %v12474_v2  ;;  %v12351_v2 = vpack.c.bf16 %v10275_v25, %v10272_v23  ;;  %v10339_v23 = vld [vmem:[%s21271_s11 + $0x3e8] sm:$0xff] }
 0x84d   :  { %12476 = vmatprep.subr.bf16.mxu0 %v21320_v45 }
 0x850   :  { %12478 = vmatpush1.bf16.msra.mxu0 %v12477_v49  ;;  %v10281_v49 = vld [vmem:[%s21271_s11 + $0x258] sm:$0xff] }
 0x851   :  { %12479 = vmatprep.subr.bf16.mxu0 %v21320_v45 }
 0x854   :  { %12481 = vmatpush1.bf16.msra.mxu0 %v12480_v55  ;;  %v12355_v55 = vpack.c.bf16 %v10281_v49, %v10278_v35  ;;  %v10277_v49 = vld [vmem:[%s21271_s11 + $0x238] sm:$0xff] }
 0x855   :  { %12482 = vmatprep.subr.bf16.mxu0 %v21320_v45 }
 0x858   :  { %12484 = vmatpush1.bf16.msra.mxu0 %v12483_v3  ;;  %v10287_v3 = vld [vmem:[%s21271_s11 + $0x288] sm:$0xff] }
 0x906   :  { %v6026_v59 = vpop.f32.mrb[142].mxu0 }
 0x907   :  { %v6053_v18 = vadd.f32 %v6046_v27, %v6026_v59  ;;  %v6028_v56 = vpop.f32.mrb[143].mxu0 }
 0x908   :  { %v6054_v20 = vadd.f32 %v6050_v10, %v6028_v56  ;;  %v10293_v56 = vld [vmem:[%s21271_s11 + $0x2b8] sm:$0xff] }
 0x909   :  { %v6061_v54 = vmin.f32 %v6053_v18, 0.0  ;;  %vm6057_vm12 = vcmp.gt.f32.partialorder %v6053_v18, 0.0 }
 0x90a   :  { %v6062_v43 = vmin.f32 %v6054_v20, 0.0  ;;  %v6032_v47 = vpop.f32.mrb[144].mxu0  ;;  %vm6058_vm14 = vcmp.gt.f32.partialorder %v6054_v20, 0.0 }
 0x90b   :  { %v6065_v19 = vmul.f32 1.442695, %v6061_v54  ;;  %v6055_v15 = vadd.f32 %v6046_v27, %v6032_v47  ;;  %v6034_v33 = vpop.f32.mrb[145].mxu0  ;;  %v10294_v27 = vld [vmem:[%s21271_s11 + $0x2c0] sm:$0xff]  ;;  %v10300_v54 = vld [vmem:[%s21271_s11 + $0x2f0] sm:$0xff] }
 0x90c   :  { %v6067_v14 = vmul.f32 1.442695, %v6062_v43  ;;  %v6056_v28 = vadd.f32 %v6050_v10, %v6034_v33  ;;  %v12359_v10 = vpack.c.bf16 %v10287_v3, %v10284_v4  ;;  %v12361_v59 = vpack.c.bf16 %v10294_v27, %v10291_v1  ;;  %v10303_v33 = vld [vmem:[%s21271_s11 + $0x308] sm:$0xff]  ;;  %v10280_v4 = vld [vmem:[%s21271_s11 + $0x250] sm:$0xff] }
 0x90d   :  { %13536 = vpow2.f32 %v6065_v19  ;;  %v6063_v42 = vmin.f32 %v6055_v15, 0.0  ;;  %vm6059_vm13 = vcmp.gt.f32.partialorder %v6055_v15, 0.0  ;;  %v10296_v19 = vld [vmem:[%s21271_s11 + $0x2d0] sm:$0xff]  ;;  %v10283_v3 = vld [vmem:[%s21271_s11 + $0x268] sm:$0xff] }
 0x90e   :  { %13538 = vpow2.f32 %v6067_v14  ;;  %v6064_v9 = vmin.f32 %v6056_v28, 0.0  ;;  %vm6060_vm15 = vcmp.gt.f32.partialorder %v6056_v28, 0.0  ;;  %v10306_v14 = vld [vmem:[%s21271_s11 + $0x320] sm:$0xff]  ;;  %v10348_v1 = vld [vmem:[%s21271_s11 + $0x430] sm:$0xff]  ;;  %v10351_v27 = vld [vmem:[%s21271_s11 + $0x448] sm:$0xff] }
 0x90f   :  { %v6069_v34 = vmul.f32 1.442695, %v6063_v42  ;;  %v12369_v42 = vpack.c.bf16 %v10306_v14, %v10303_v33  ;;  %v10360_v33 = vld [vmem:[%s21271_s11 + $0x490] sm:$0xff]  ;;  %v10363_v14 = vld [vmem:[%s21271_s11 + $0x4a8] sm:$0xff] }
 0x910   :  { %v6071_v58 = vmul.f32 1.442695, %v6064_v9  ;;  %v10302_v9 = vld [vmem:[%s21271_s11 + $0x300] sm:$0xff] }
 0x911   :  { %13540 = vpow2.f32 %v6069_v34  ;;  %v10305_v34 = vld [vmem:[%s21271_s11 + $0x318] sm:$0xff] }
 0x912   :  { %13542 = vpow2.f32 %v6071_v58  ;;  %v10309_v58 = vld [vmem:[%s21271_s11 + $0x338] sm:$0xff] }
 0x917   :  { %v13537_v51 = vpop.eup %13536 }
 0x918   :  { %v13539_v52 = vpop.eup %13538  ;;  %v10255_v22 = vadd.f32 -1.0, %v13537_v51  ;;  %v10312_v51 = vld [vmem:[%s21271_s11 + $0x350] sm:$0xff] }
 0x919   :  { %v10256_v11 = vadd.f32 -1.0, %v13539_v52  ;;  %v12371_v52 = vpack.c.bf16 %v10305_v34, %v10302_v9  ;;  %v10298_v9 = vld [vmem:[%s21271_s11 + $0x2e0] sm:$0xff]  ;;  %v10301_v34 = vld [vmem:[%s21271_s11 + $0x2f8] sm:$0xff] }
 0x91a   :  { %v6077_v50 = vsel %vm6057_vm12, %v6053_v18, %v10255_v22  ;;  %v10290_v18 = vld [vmem:[%s21271_s11 + $0x2a0] sm:$0xff]  ;;  %v12373_v22 = vpack.c.bf16 %v10312_v51, %v10309_v58  ;;  %v10369_v51 = vld [vmem:[%s21271_s11 + $0x4d8] sm:$0xff] }
 0x91b   :  { %v13541_v48 = vpop.eup %13540  ;;  %v6078_v39 = vsel %vm6058_vm14, %v6054_v20, %v10256_v11  ;;  %v10297_v20 = vld [vmem:[%s21271_s11 + $0x2d8] sm:$0xff]  ;;  %v12363_v43 = vpack.c.bf16 %v10293_v56, %v10290_v18  ;;  %v10311_v11 = vld [vmem:[%s21271_s11 + $0x348] sm:$0xff]  ;;  %v10286_v18 = vld [vmem:[%s21271_s11 + $0x280] sm:$0xff] }
 0x91c   :  { %v13543_v16 = vpop.eup %13542  ;;  %v10257_v12 = vadd.f32 -1.0, %v13541_v48  ;;  %v12365_v47 = vpack.c.bf16 %v10300_v54, %v10297_v20  ;;  %v10308_v48 = vld [vmem:[%s21271_s11 + $0x330] sm:$0xff]  ;;  %v10289_v56 = vld [vmem:[%s21271_s11 + $0x298] sm:$0xff]  ;;  %v10354_v20 = vld [vmem:[%s21271_s11 + $0x460] sm:$0xff] }
 0x91d   :  { %v10258_v63 = vadd.f32 -1.0, %v13543_v16  ;;  %v10315_v16 = vld [vmem:[%s21271_s11 + $0x368] sm:$0xff]  ;;  %v10357_v54 = vld [vmem:[%s21271_s11 + $0x478] sm:$0xff]  ;;  %v10366_v58 = vld [vmem:[%s21271_s11 + $0x4c0] sm:$0xff] }
 0x91e   :  { %v6079_v6 = vsel %vm6059_vm13, %v6055_v15, %v10257_v12  ;;  %v10299_v15 = vld [vmem:[%s21271_s11 + $0x2e8] sm:$0xff]  ;;  %v10318_v12 = vld [vmem:[%s21271_s11 + $0x380] sm:$0xff] }
 0x91f   :  { %v18361_v21 = vpack.c.bf16 %v6079_v6, %v6077_v50  ;;  %v6080_v38 = vsel %vm6060_vm15, %v6056_v28, %v10258_v63  ;;  %v12367_v28 = vpack.c.bf16 %v10299_v15, %v10296_v19  ;;  %v12375_v63 = vpack.c.bf16 %v10311_v11, %v10308_v48  ;;  %v10314_v6 = vld [vmem:[%s21271_s11 + $0x360] sm:$0xff]  ;;  %v10292_v19 = vld [vmem:[%s21271_s11 + $0x2b0] sm:$0xff]  ;;  %v10295_v15 = vld [vmem:[%s21271_s11 + $0x2c8] sm:$0xff] }
 0x920   :  { %v18368_v62 = vpack.c.bf16 %v6080_v38, %v6078_v39  ;;  %v12377_v50 = vpack.c.bf16 %v10318_v12, %v10315_v16  ;;  %v10317_v39 = vld [vmem:[%s21271_s11 + $0x378] sm:$0xff]  ;;  %v10304_v48 = vld [vmem:[%s21271_s11 + $0x310] sm:$0xff]  ;;  %v10307_v11 = vld [vmem:[%s21271_s11 + $0x328] sm:$0xff] }
 0x921   :  { %v12379_v38 = vpack.c.bf16 %v10317_v39, %v10314_v6  ;;  %v10372_v16 = vld [vmem:[%s21271_s11 + $0x4f0] sm:$0xff]  ;;  %v10375_v12 = vld [vmem:[%s21271_s11 + $0x508] sm:$0xff]  ;;  %v10310_v6 = vld [vmem:[%s21271_s11 + $0x340] sm:$0xff] }
 0x922   :  { %12335 = vmatprep.subr.msk.bf16.mxu1 %vm18364_vm0, %v18368_v62  ;;  %12487 = vmatprep.subr.msk.bf16.mxu0 %vm18364_vm0, %v18368_v62  ;;  %v10313_v39 = vld [vmem:[%s21271_s11 + $0x358] sm:$0xff] }
 0x923   :  { %12338 = vmatpush1.bf16.msk.msra.mxu1 %vm18364_vm0, %v18361_v21 }
 0x924   :  { %12341 = vmatprep.subr.msk.bf16.mxu1 %vm18364_vm0, %v18368_v62 }
 0x926   :  { %10261 = vmatmul.mubr.msk.f32.vlgmr.msra.gmra.mrb[70].mxu1 %vm6082_vm1, %v6081_v29  ;;  %v12381_v29 = vpack.c.bf16 %v10324_v37, %v10321_v7  ;;  %v10381_v7 = vld [vmem:[%s21271_s11 + $0x538] sm:$0xff]  ;;  %v12407_v37 = vpack.c.bf16 %v10313_v39, %v10310_v6 }
 0x927   :  { %12344 = vmatpush1.bf16.msk.msra.mxu1 %vm18364_vm0, %v18361_v21  ;;  %6292 = vmatprep.mubr.f32.mxu1 %v21319_v53 }
 0x928   :  { %12346 = vmatprep.subr.bf16.mxu1 %v12345_v5  ;;  %v10320_v5 = vld [vmem:[%s21271_s11 + $0x390] sm:$0xff] }
 0x929   :  { %v12383_v24 = vpack.c.bf16 %v10323_v0, %v10320_v5  ;;  %v10316_v5 = vld [vmem:[%s21271_s11 + $0x370] sm:$0xff]  ;;  %v10319_v0 = vld [vmem:[%s21271_s11 + $0x388] sm:$0xff] }
 0x92a   :  { %10265 = vmatmul.mubr.msk.f32.vlgmr.msra.gmra.mrb[72].mxu1 %vm6082_vm1, %v10262_v32 }
 0x92b   :  { %12348 = vmatpush1.bf16.msra.mxu1 %v12347_v36  ;;  %v10271_v36 = vld [vmem:[%s21271_s11 + $0x208] sm:$0xff] }
 0x92c   :  { %12350 = vmatprep.subr.bf16.mxu1 %v12349_v61  ;;  %v10336_v61 = vld [vmem:[%s21271_s11 + $0x3d0] sm:$0xff]  ;;  %v12386_v57 = vpack.c.bf16 %v10271_v36, %v10268_v41  ;;  %v10387_v41 = vld [vmem:[%s21271_s11 + $0x568] sm:$0xff]  ;;  %v12410_v36 = vpack.c.bf16 %v10319_v0, %v10316_v5 }
 0x92f   :  { %12352 = vmatpush1.bf16.msra.mxu1 %v12351_v2  ;;  %v12532_v2 = vpack.c.bf16 %v10339_v23, %v10336_v61  ;;  %v10322_v23 = vld [vmem:[%s21271_s11 + $0x3a0] sm:$0xff] }
 0x930   :  { %12354 = vmatprep.subr.bf16.mxu1 %v12353_v31  ;;  %v10274_v31 = vld [vmem:[%s21271_s11 + $0x220] sm:$0xff] }
 0x933   :  { %12356 = vmatpush1.bf16.msra.mxu1 %v12355_v55  ;;  %v12389_v55 = vpack.c.bf16 %v10277_v49, %v10274_v31  ;;  %v6164_v31 = vld [vmem:[%s21271_s11 + $0x8] sm:$0xff] }
 0x934   :  { %12358 = vmatprep.subr.bf16.mxu1 %v12357_v30  ;;  %v12535_v30 = vpack.c.bf16 %v10345_v46, %v10342_v8 }
 0x937   :  { %12360 = vmatpush1.bf16.msra.mxu1 %v12359_v10  ;;  %v12392_v10 = vpack.c.bf16 %v10283_v3, %v10280_v4  ;;  %v6170_v4 = vld [vmem:[%s21271_s11 + $0x38] sm:$0xff]  ;;  %v6173_v3 = vld [vmem:[%s21271_s11 + $0x50] sm:$0xff] }
 0x938   :  { %12362 = vmatprep.subr.bf16.mxu1 %v12361_v59  ;;  %v12538_v59 = vpack.c.bf16 %v10351_v27, %v10348_v1  ;;  %v12419_v27 = vpack.c.bf16 %v6173_v3, %v6170_v4  ;;  %v10338_v4 = vld [vmem:[%s21271_s11 + $0x3e0] sm:$0xff] }
 0x93b   :  { %12364 = vmatpush1.bf16.msra.mxu1 %v12363_v43  ;;  %v12395_v43 = vpack.c.bf16 %v10289_v56, %v10286_v18  ;;  %v6176_v18 = vld [vmem:[%s21271_s11 + $0x68] sm:$0xff]  ;;  %v6179_v56 = vld [vmem:[%s21271_s11 + $0x80] sm:$0xff] }
 0x93c   :  { %12366 = vmatprep.subr.bf16.mxu1 %v12365_v47  ;;  %v12541_v47 = vpack.c.bf16 %v10357_v54, %v10354_v20  ;;  %v12423_v54 = vpack.c.bf16 %v6179_v56, %v6176_v18  ;;  %v10344_v18 = vld [vmem:[%s21271_s11 + $0x410] sm:$0xff] }
 0x93f   :  { %12368 = vmatpush1.bf16.msra.mxu1 %v12367_v28  ;;  %v12398_v28 = vpack.c.bf16 %v10295_v15, %v10292_v19  ;;  %v6182_v19 = vld [vmem:[%s21271_s11 + $0x98] sm:$0xff] }
 0x940   :  { %12370 = vmatprep.subr.bf16.mxu1 %v12369_v42  ;;  %v12544_v42 = vpack.c.bf16 %v10363_v14, %v10360_v33  ;;  %v6181_v33 = vld [vmem:[%s21271_s11 + $0x90] sm:$0xff]  ;;  %v6184_v14 = vld [vmem:[%s21271_s11 + $0xa8] sm:$0xff] }
 0x943   :  { %12372 = vmatpush1.bf16.msra.mxu1 %v12371_v52  ;;  %v12401_v52 = vpack.c.bf16 %v10301_v34, %v10298_v9  ;;  %v12429_v9 = vpack.c.bf16 %v6184_v14, %v6181_v33  ;;  %v10349_v33 = vld [vmem:[%s21271_s11 + $0x438] sm:$0xff] }
 0x944   :  { %12374 = vmatprep.subr.bf16.mxu1 %v12373_v22  ;;  %v12547_v22 = vpack.c.bf16 %v10369_v51, %v10366_v58  ;;  %v6187_v58 = vld [vmem:[%s21271_s11 + $0xc0] sm:$0xff]  ;;  %v6190_v51 = vld [vmem:[%s21271_s11 + $0xd8] sm:$0xff] }
 0x945   :  { %v10353_v14 = vld [vmem:[%s21271_s11 + $0x458] sm:$0xff] }
 0x947   :  { %12376 = vmatpush1.bf16.msra.mxu1 %v12375_v63  ;;  %v12404_v63 = vpack.c.bf16 %v10307_v11, %v10304_v48  ;;  %v12433_v48 = vpack.c.bf16 %v6190_v51, %v6187_v58  ;;  %v10359_v58 = vld [vmem:[%s21271_s11 + $0x488] sm:$0xff]  ;;  %v10362_v51 = vld [vmem:[%s21271_s11 + $0x4a0] sm:$0xff] }
 0x948   :  { %12378 = vmatprep.subr.bf16.mxu1 %v12377_v50  ;;  %v12550_v50 = vpack.c.bf16 %v10375_v12, %v10372_v16  ;;  %v6193_v16 = vld [vmem:[%s21271_s11 + $0xf0] sm:$0xff]  ;;  %v6196_v12 = vld [vmem:[%s21271_s11 + $0x108] sm:$0xff] }
 0x949   :  { %v12437_v6 = vpack.c.bf16 %v6196_v12, %v6193_v16  ;;  %v10365_v16 = vld [vmem:[%s21271_s11 + $0x4b8] sm:$0xff]  ;;  %v10368_v12 = vld [vmem:[%s21271_s11 + $0x4d0] sm:$0xff] }
 0x94b   :  { %12380 = vmatpush1.bf16.msra.mxu1 %v12379_v38  ;;  %v10378_v38 = vld [vmem:[%s21271_s11 + $0x520] sm:$0xff] }
 0x94c   :  { %12382 = vmatprep.subr.bf16.mxu1 %v12381_v29  ;;  %v12553_v29 = vpack.c.bf16 %v10381_v7, %v10378_v38  ;;  %v6199_v38 = vld [vmem:[%s21271_s11 + $0x120] sm:$0xff]  ;;  %v6202_v7 = vld [vmem:[%s21271_s11 + $0x138] sm:$0xff] }
 0x94d   :  { %v12441_v5 = vpack.c.bf16 %v6202_v7, %v6199_v38  ;;  %v10371_v38 = vld [vmem:[%s21271_s11 + $0x4e8] sm:$0xff]  ;;  %v10374_v7 = vld [vmem:[%s21271_s11 + $0x500] sm:$0xff] }
 0x94f   :  { %12384 = vmatpush1.bf16.msra.mxu1 %v12383_v24  ;;  %v10384_v24 = vld [vmem:[%s21271_s11 + $0x550] sm:$0xff] }
 0x950   :  { %12385 = vmatprep.subr.bf16.mxu1 %v21320_v45  ;;  %v12556_v61 = vpack.c.bf16 %v10387_v41, %v10384_v24  ;;  %v6205_v24 = vld [vmem:[%s21271_s11 + $0x150] sm:$0xff]  ;;  %v6208_v41 = vld [vmem:[%s21271_s11 + $0x168] sm:$0xff] }
 0x9f9   :  { %v18515_v13 = vpop.f32.mrb[70].mxu1 }
 0x9fa   :  { %v18520_v32 = vpop.f32.mrb[71].mxu1 }
 0x9fb   :  { %10329 = vmatprep.mubr.msk.f32.mxu0 %vm5322_vm11, %v18520_v32 }
 0x9fc   :  { %6643 = vmatmul.mubr.f32.vlgmr.msra.gmra.mrb[146].mxu0 %v18515_v13 }
 0x9fd   :  { %12490 = vmatpush1.bf16.msk.msra.mxu0 %vm18364_vm0, %v18361_v21  ;;  %v18537_v25 = vpop.f32.mrb[72].mxu1  ;;  %6717 = vmatprep.mubr.f32.mxu0 %v21319_v53 }
 0x9fe   :  { %v6296_v35 = vpop.f32.mrb[73].mxu1  ;;  %12531 = vmatprep.subr.bf16.mxu0 %v21320_v45 }
 0x9ff   :  { %10326 = vmatprep.mubr.msk.f32.mxu1 %vm5322_vm11, %v6296_v35 }
 0xa00   :  { %6428 = vmatmul.mubr.f32.vlgmr.msra.gmra.mrb[74].mxu1 %v18537_v25  ;;  %10333 = vmatmul.mubr.msk.f32.vlgmr.msra.gmra.mrb[148].mxu0 %vm6082_vm1, %v10330_v60  ;;  %v10390_v60 = vld [vmem:[%s21271_s11 + $0x580] sm:$0xff] }
 0xa01   :  { %12387 = vmatpush1.bf16.msra.mxu1 %v12386_v57  ;;  %12533 = vmatpush1.bf16.msra.mxu0 %v12532_v2  ;;  %v10325_v57 = vld [vmem:[%s21271_s11 + $0x3b8] sm:$0xff] }
 0xa02   :  { %12388 = vmatprep.subr.bf16.mxu1 %v21320_v45  ;;  %12534 = vmatprep.subr.bf16.mxu0 %v21320_v45  ;;  %v10393_v2 = vld [vmem:[%s21271_s11 + $0x598] sm:$0xff]  ;;  %v12413_v49 = vpack.c.bf16 %v10325_v57, %v10322_v23  ;;  %v12445_v23 = vpack.c.bf16 %v6208_v41, %v6205_v24  ;;  %v10380_v41 = vld [vmem:[%s21271_s11 + $0x530] sm:$0xff] }
 0xa03   :  { %10327 = vmatprep.mubr.msk.f32.mxu1 %vm5322_vm11, %v6296_v35  ;;  %v6167_v35 = vld [vmem:[%s21271_s11 + $0x20] sm:$0xff]  ;;  %v12559_v8 = vpack.c.bf16 %v10393_v2, %v10390_v60  ;;  %v6214_v2 = vld [vmem:[%s21271_s11 + $0x198] sm:$0xff] }
 0xa04   :  { %v12415_v46 = vpack.c.bf16 %v6167_v35, %v6164_v31  ;;  %v6211_v60 = vld [vmem:[%s21271_s11 + $0x180] sm:$0xff]  ;;  %v6218_v31 = vld [vmem:[%s21271_s11 + $0x1b8] sm:$0xff]  ;;  %v6221_v35 = vld [vmem:[%s21271_s11 + $0x1d0] sm:$0xff] }
 0xa05   :  { %12390 = vmatpush1.bf16.msra.mxu1 %v12389_v55  ;;  %12536 = vmatpush1.bf16.msra.mxu0 %v12535_v30  ;;  %v6163_v55 = vld [vmem:[%s21271_s11] sm:$0xff]  ;;  %v6166_v30 = vld [vmem:[%s21271_s11 + $0x18] sm:$0xff] }
 0xa06   :  { %12391 = vmatprep.subr.bf16.mxu1 %v21320_v45  ;;  %12537 = vmatprep.subr.bf16.mxu0 %v21320_v45  ;;  %v12417_v1 = vpack.c.bf16 %v6166_v30, %v6163_v55  ;;  %v6220_v55 = vld [vmem:[%s21271_s11 + $0x1c8] sm:$0xff]  ;;  %v10377_v24 = vld [vmem:[%s21271_s11 + $0x518] sm:$0xff] }
 0xa07   :  { %v10335_v30 = vld [vmem:[%s21271_s11 + $0x3c8] sm:$0xff] }
 0xa09   :  { %12393 = vmatpush1.bf16.msra.mxu1 %v12392_v10  ;;  %12539 = vmatpush1.bf16.msra.mxu0 %v12538_v59  ;;  %v6169_v10 = vld [vmem:[%s21271_s11 + $0x30] sm:$0xff]  ;;  %v6172_v59 = vld [vmem:[%s21271_s11 + $0x48] sm:$0xff] }
 0xa0a   :  { %12394 = vmatprep.subr.bf16.mxu1 %v21320_v45  ;;  %12540 = vmatprep.subr.bf16.mxu0 %v21320_v45  ;;  %v12421_v20 = vpack.c.bf16 %v6172_v59, %v6169_v10  ;;  %v10337_v10 = vld [vmem:[%s21271_s11 + $0x3d8] sm:$0xff] }
 0xa0b   :  { %v10341_v59 = vld [vmem:[%s21271_s11 + $0x3f8] sm:$0xff] }
 0xa0d   :  { %12396 = vmatpush1.bf16.msra.mxu1 %v12395_v43  ;;  %12542 = vmatpush1.bf16.msra.mxu0 %v12541_v47  ;;  %v6175_v43 = vld [vmem:[%s21271_s11 + $0x60] sm:$0xff]  ;;  %v6178_v47 = vld [vmem:[%s21271_s11 + $0x78] sm:$0xff] }
 0xa0e   :  { %12397 = vmatprep.subr.bf16.mxu1 %v21320_v45  ;;  %12543 = vmatprep.subr.bf16.mxu0 %v21320_v45 }
 0xa11   :  { %12399 = vmatpush1.bf16.msra.mxu1 %v12398_v28  ;;  %12545 = vmatpush1.bf16.msra.mxu0 %v12544_v42  ;;  %v6188_v28 = vld [vmem:[%s21271_s11 + $0xc8] sm:$0xff]  ;;  %v6191_v42 = vld [vmem:[%s21271_s11 + $0xe0] sm:$0xff] }
 0xa12   :  { %12400 = vmatprep.subr.bf16.mxu1 %v21320_v45  ;;  %12546 = vmatprep.subr.bf16.mxu0 %v21320_v45  ;;  %v12431_v34 = vpack.c.bf16 %v6191_v42, %v6188_v28 }
 0xa15   :  { %12402 = vmatpush1.bf16.msra.mxu1 %v12401_v52  ;;  %12548 = vmatpush1.bf16.msra.mxu0 %v12547_v22  ;;  %v6194_v52 = vld [vmem:[%s21271_s11 + $0xf8] sm:$0xff]  ;;  %v6197_v22 = vld [vmem:[%s21271_s11 + $0x110] sm:$0xff] }
 0xa16   :  { %12403 = vmatprep.subr.bf16.mxu1 %v21320_v45  ;;  %12549 = vmatprep.subr.bf16.mxu0 %v21320_v45  ;;  %v12435_v11 = vpack.c.bf16 %v6197_v22, %v6194_v52  ;;  %v12507_v22 = vpack.c.bf16 %v10362_v51, %v10359_v58  ;;  %v10396_v58 = vld [vmem:[%s21270_s10 + $0x6] sm:$0x3] }
 0xa19   :  { %12405 = vmatpush1.bf16.msra.mxu1 %v12404_v63  ;;  %12551 = vmatpush1.bf16.msra.mxu0 %v12550_v50  ;;  %v6200_v63 = vld [vmem:[%s21271_s11 + $0x128] sm:$0xff]  ;;  %v6203_v50 = vld [vmem:[%s21271_s11 + $0x140] sm:$0xff] }
 0xa1a   :  { %12406 = vmatprep.subr.bf16.mxu1 %v21320_v45  ;;  %12552 = vmatprep.subr.bf16.mxu0 %v21320_v45  ;;  %v12439_v39 = vpack.c.bf16 %v6203_v50, %v6200_v63  ;;  %v12511_v50 = vpack.c.bf16 %v10368_v12, %v10365_v16  ;;  %v10408_v16 = vld [vmem:[%s21271_s11 + $0x5e0] sm:$0xff]  ;;  %v10411_v12 = vld [vmem:[%s21271_s11 + $0x5f8] sm:$0xff] }
 0xa1d   :  { %12408 = vmatpush1.bf16.msra.mxu1 %v12407_v37  ;;  %12554 = vmatpush1.bf16.msra.mxu0 %v12553_v29  ;;  %v6206_v37 = vld [vmem:[%s21271_s11 + $0x158] sm:$0xff]  ;;  %v6209_v29 = vld [vmem:[%s21271_s11 + $0x170] sm:$0xff] }
 0xa1e   :  { %12409 = vmatprep.subr.bf16.mxu1 %v21320_v45  ;;  %12555 = vmatprep.subr.bf16.mxu0 %v21320_v45  ;;  %v12443_v0 = vpack.c.bf16 %v6209_v29, %v6206_v37  ;;  %v12515_v29 = vpack.c.bf16 %v10374_v7, %v10371_v38  ;;  %v12611_v38 = vpack.c.bf16 %v10411_v12, %v10408_v16  ;;  %v10447_v16 = vld [vmem:[%s21271_s11 + $0x718] sm:$0xff] }
 0xa1f   :  { %v10455_v12 = vld [vmem:[%s21271_s11 + $0x758] sm:$0xff] }
 0xa21   :  { %12411 = vmatpush1.bf16.msra.mxu1 %v12410_v36  ;;  %12557 = vmatpush1.bf16.msra.mxu0 %v12556_v61  ;;  %v6212_v36 = vld [vmem:[%s21271_s11 + $0x188] sm:$0xff]  ;;  %v6215_v61 = vld [vmem:[%s21271_s11 + $0x1a0] sm:$0xff] }
 0xa22   :  { %12412 = vmatprep.subr.bf16.mxu1 %v21320_v45  ;;  %12558 = vmatprep.subr.bf16.mxu0 %v21320_v45  ;;  %v12447_v57 = vpack.c.bf16 %v6215_v61, %v6212_v36  ;;  %v12519_v61 = vpack.c.bf16 %v10380_v41, %v10377_v24  ;;  %v10428_v24 = vld [vmem:[%s21271_s11 + $0x680] sm:$0xff] }
 0xa25   :  { %12414 = vmatpush1.bf16.msra.mxu1 %v12413_v49  ;;  %12560 = vmatpush1.bf16.msra.mxu0 %v12559_v8  ;;  %v12449_v49 = vpack.c.bf16 %v6214_v2, %v6211_v60  ;;  %v12451_v8 = vpack.c.bf16 %v6221_v35, %v6218_v31  ;;  %v10383_v60 = vld [vmem:[%s21271_s11 + $0x548] sm:$0xff]  ;;  %v10386_v2 = vld [vmem:[%s21271_s11 + $0x560] sm:$0xff] }
 0xa26   :  { %12563 = vmatprep.subr.msk.bf16.mxu0 %vm18364_vm0, %v18368_v62  ;;  %12416 = vmatprep.subr.bf16.mxu1 %v12415_v46  ;;  %v6217_v46 = vld [vmem:[%s21271_s11 + $0x1b0] sm:$0xff]  ;;  %v12523_v35 = vpack.c.bf16 %v10386_v2, %v10383_v60  ;;  %v10420_v60 = vld [vmem:[%s21271_s11 + $0x640] sm:$0xff]  ;;  %v10423_v2 = vld [vmem:[%s21271_s11 + $0x658] sm:$0xff] }
 0xa27   :  { %v12453_v3 = vpack.c.bf16 %v6220_v55, %v6217_v46  ;;  %v10389_v46 = vld [vmem:[%s21271_s11 + $0x578] sm:$0xff]  ;;  %v10392_v55 = vld [vmem:[%s21271_s11 + $0x590] sm:$0xff] }
 0xa28   :  { %6499 = vmatmul.mubr.f32.vlgmr.msra.gmra.mrb[76].mxu1 %v18537_v25  ;;  %v6185_v25 = vld [vmem:[%s21271_s11 + $0xb0] sm:$0xff] }
 0xa29   :  { %12418 = vmatpush1.bf16.msra.mxu1 %v12417_v1  ;;  %10328 = vmatprep.mubr.msk.f32.mxu1 %vm5322_vm11, %v18520_v32  ;;  %v12425_v32 = vpack.c.bf16 %v6178_v47, %v6175_v43  ;;  %v12427_v15 = vpack.c.bf16 %v6185_v25, %v6182_v19  ;;  %v12491_v1 = vpack.c.bf16 %v10338_v4, %v10335_v30  ;;  %v10343_v43 = vld [vmem:[%s21271_s11 + $0x408] sm:$0xff]  ;;  %v10350_v19 = vld [vmem:[%s21271_s11 + $0x440] sm:$0xff] }
 0xa2a   :  { %12420 = vmatprep.subr.bf16.mxu1 %v12419_v27  ;;  %v10334_v27 = vld [vmem:[%s21271_s11 + $0x3c0] sm:$0xff]  ;;  %v10347_v47 = vld [vmem:[%s21271_s11 + $0x428] sm:$0xff]  ;;  %v12527_v4 = vpack.c.bf16 %v10392_v55, %v10389_v46  ;;  %v12617_v46 = vpack.c.bf16 %v10423_v2, %v10420_v60 }
 0xa2b   :  { %v12493_v56 = vpack.c.bf16 %v10337_v10, %v10334_v27  ;;  %v10401_v27 = vld [vmem:[%s21271_s11 + $0x5a8] sm:$0xff]  ;;  %v10404_v10 = vld [vmem:[%s21271_s11 + $0x5c0] sm:$0xff] }
 0xa2c   :  { %v10467_v2 = vld [vmem:[%s21271_s11 + $0x788] sm:$0xff] }
 0xa2d   :  { %12422 = vmatpush1.bf16.msra.mxu1 %v12421_v20  ;;  %v12495_v20 = vpack.c.bf16 %v10344_v18, %v10341_v59  ;;  %v12567_v18 = vpack.c.bf16 %v10404_v10, %v10401_v27  ;;  %v10440_v27 = vld [vmem:[%s21271_s11 + $0x6e0] sm:$0xff] }
 0xa2e   :  { %12424 = vmatprep.subr.bf16.mxu1 %v12423_v54  ;;  %v10340_v54 = vld [vmem:[%s21271_s11 + $0x3f0] sm:$0xff] }
 0xa2f   :  { %v12497_v25 = vpack.c.bf16 %v10343_v43, %v10340_v54  ;;  %v10400_v54 = vld [vmem:[%s21271_s11 + $0x5a0] sm:$0xff]  ;;  %v10403_v43 = vld [vmem:[%s21271_s11 + $0x5b8] sm:$0xff] }
 0xa31   :  { %12426 = vmatpush1.bf16.msra.mxu1 %v12425_v32  ;;  %v12499_v32 = vpack.c.bf16 %v10350_v19, %v10347_v47  ;;  %v10407_v47 = vld [vmem:[%s21271_s11 + $0x5d8] sm:$0xff]  ;;  %v10410_v19 = vld [vmem:[%s21271_s11 + $0x5f0] sm:$0xff] }
 0xa32   :  { %12428 = vmatprep.subr.bf16.mxu1 %v12427_v15  ;;  %v10346_v15 = vld [vmem:[%s21271_s11 + $0x420] sm:$0xff] }
 0xa33   :  { %v12501_v28 = vpack.c.bf16 %v10349_v33, %v10346_v15  ;;  %v10406_v15 = vld [vmem:[%s21271_s11 + $0x5d0] sm:$0xff] }
 0xa35   :  { %12430 = vmatpush1.bf16.msra.mxu1 %v12429_v9  ;;  %v10352_v9 = vld [vmem:[%s21271_s11 + $0x450] sm:$0xff] }
 0xa36   :  { %12432 = vmatprep.subr.bf16.mxu1 %v12431_v34  ;;  %v10355_v34 = vld [vmem:[%s21271_s11 + $0x468] sm:$0xff] }
 0xa37   :  { %v12505_v52 = vpack.c.bf16 %v10355_v34, %v10352_v9  ;;  %v10413_v9 = vld [vmem:[%s21271_s11 + $0x608] sm:$0xff]  ;;  %v10416_v34 = vld [vmem:[%s21271_s11 + $0x620] sm:$0xff] }
 0xa39   :  { %12434 = vmatpush1.bf16.msra.mxu1 %v12433_v48  ;;  %v10358_v48 = vld [vmem:[%s21271_s11 + $0x480] sm:$0xff] }
 0xa3a   :  { %12436 = vmatprep.subr.bf16.mxu1 %v12435_v11  ;;  %v10361_v11 = vld [vmem:[%s21271_s11 + $0x498] sm:$0xff] }
 0xa3b   :  { %v12509_v63 = vpack.c.bf16 %v10361_v11, %v10358_v48  ;;  %v12575_v48 = vpack.c.bf16 %v10416_v34, %v10413_v9  ;;  %v10415_v11 = vld [vmem:[%s21271_s11 + $0x618] sm:$0xff]  ;;  %v10449_v9 = vld [vmem:[%s21271_s11 + $0x728] sm:$0xff]  ;;  %v10452_v34 = vld [vmem:[%s21271_s11 + $0x740] sm:$0xff] }
 0xa3d   :  { %12438 = vmatpush1.bf16.msra.mxu1 %v12437_v6  ;;  %v10364_v6 = vld [vmem:[%s21271_s11 + $0x4b0] sm:$0xff] }
 0xa3e   :  { %12440 = vmatprep.subr.bf16.mxu1 %v12439_v39  ;;  %v10367_v39 = vld [vmem:[%s21271_s11 + $0x4c8] sm:$0xff] }
 0xa3f   :  { %v12513_v37 = vpack.c.bf16 %v10367_v39, %v10364_v6  ;;  %v10418_v39 = vld [vmem:[%s21271_s11 + $0x630] sm:$0xff] }
 0xa41   :  { %12442 = vmatpush1.bf16.msra.mxu1 %v12441_v5  ;;  %v10370_v5 = vld [vmem:[%s21271_s11 + $0x4e0] sm:$0xff] }
 0xa42   :  { %12444 = vmatprep.subr.bf16.mxu1 %v12443_v0  ;;  %v10373_v0 = vld [vmem:[%s21271_s11 + $0x4f8] sm:$0xff] }
 0xa43   :  { %v12517_v36 = vpack.c.bf16 %v10373_v0, %v10370_v5  ;;  %v10417_v5 = vld [vmem:[%s21271_s11 + $0x628] sm:$0xff] }
 0xa44   :  { %v10425_v0 = vld [vmem:[%s21271_s11 + $0x668] sm:$0xff] }
 0xa45   :  { %12446 = vmatpush1.bf16.msra.mxu1 %v12445_v23  ;;  %v10376_v23 = vld [vmem:[%s21271_s11 + $0x510] sm:$0xff] }
 0xa46   :  { %12448 = vmatprep.subr.bf16.mxu1 %v12447_v57  ;;  %v10379_v57 = vld [vmem:[%s21271_s11 + $0x528] sm:$0xff] }
 0xa47   :  { %v12521_v31 = vpack.c.bf16 %v10379_v57, %v10376_v23  ;;  %v12583_v23 = vpack.c.bf16 %v10428_v24, %v10425_v0  ;;  %v10427_v57 = vld [vmem:[%s21271_s11 + $0x678] sm:$0xff]  ;;  %v10450_v24 = vld [vmem:[%s21271_s11 + $0x730] sm:$0xff] }
 0xa49   :  { %12450 = vmatpush1.bf16.msra.mxu1 %v12449_v49  ;;  %v10382_v49 = vld [vmem:[%s21271_s11 + $0x540] sm:$0xff] }
 0xa4a   :  { %12452 = vmatprep.subr.bf16.mxu1 %v12451_v8  ;;  %v10385_v8 = vld [vmem:[%s21271_s11 + $0x558] sm:$0xff] }
 0xa4b   :  { %v12525_v30 = vpack.c.bf16 %v10385_v8, %v10382_v49  ;;  %v10430_v8 = vld [vmem:[%s21271_s11 + $0x690] sm:$0xff] }
 0xa4d   :  { %12454 = vmatpush1.bf16.msra.mxu1 %v12453_v3  ;;  %v10388_v3 = vld [vmem:[%s21271_s11 + $0x570] sm:$0xff] }
 0xa4e   :  { %12492 = vmatprep.subr.bf16.mxu1 %v12491_v1  ;;  %v10391_v1 = vld [vmem:[%s21271_s11 + $0x588] sm:$0xff] }
 0xa4f   :  { %v12529_v59 = vpack.c.bf16 %v10391_v1, %v10388_v3  ;;  %v10429_v3 = vld [vmem:[%s21271_s11 + $0x688] sm:$0xff] }
 0xa50   :  { %6572 = vmatmul.mubr.f32.vlgmr.msra.gmra.mrb[74].mxu1 %v18515_v13  ;;  %v10356_v13 = vld [vmem:[%s21271_s11 + $0x470] sm:$0xff]  ;;  %v10437_v1 = vld [vmem:[%s21271_s11 + $0x6c8] sm:$0xff] }
 0xa51   :  { %12494 = vmatpush1.bf16.msra.mxu1 %v12493_v56  ;;  %v12503_v42 = vpack.c.bf16 %v10356_v13, %v10353_v14  ;;  %v12571_v14 = vpack.c.bf16 %v10410_v19, %v10407_v47  ;;  %v10409_v13 = vld [vmem:[%s21271_s11 + $0x5e8] sm:$0xff]  ;;  %v10435_v47 = vld [vmem:[%s21271_s11 + $0x6b8] sm:$0xff] }
 0xa52   :  { %12496 = vmatprep.subr.bf16.mxu1 %v12495_v20  ;;  %v12573_v51 = vpack.c.bf16 %v10409_v13, %v10406_v15  ;;  %v10443_v19 = vld [vmem:[%s21271_s11 + $0x6f8] sm:$0xff]  ;;  %v10442_v15 = vld [vmem:[%s21271_s11 + $0x6f0] sm:$0xff]  ;;  %v10445_v13 = vld [vmem:[%s21271_s11 + $0x708] sm:$0xff] }
 0xa55   :  { %12498 = vmatpush1.bf16.msra.mxu1 %v12497_v25 }
 0xa56   :  { %12500 = vmatprep.subr.bf16.mxu1 %v12499_v32  ;;  %v12569_v32 = vpack.c.bf16 %v10403_v43, %v10400_v54  ;;  %v10439_v54 = vld [vmem:[%s21271_s11 + $0x6d8] sm:$0xff]  ;;  %v10432_v43 = vld [vmem:[%s21271_s11 + $0x6a0] sm:$0xff] }
 0xa59   :  { %12502 = vmatpush1.bf16.msra.mxu1 %v12501_v28  ;;  %v10402_v28 = vld [vmem:[%s21271_s11 + $0x5b0] sm:$0xff] }
 0xa5a   :  { %12504 = vmatprep.subr.bf16.mxu1 %v12503_v42  ;;  %v10405_v42 = vld [vmem:[%s21271_s11 + $0x5c8] sm:$0xff] }
 0xa5d   :  { %12506 = vmatpush1.bf16.msra.mxu1 %v12505_v52  ;;  %v10412_v52 = vld [vmem:[%s21271_s11 + $0x600] sm:$0xff] }
 0xa5e   :  { %12508 = vmatprep.subr.bf16.mxu1 %v12507_v22  ;;  %v12608_v22 = vpack.c.bf16 %v10405_v42, %v10402_v28  ;;  %v12577_v6 = vpack.c.bf16 %v10415_v11, %v10412_v52  ;;  %v10438_v28 = vld [vmem:[%s21271_s11 + $0x6d0] sm:$0xff]  ;;  %v10441_v42 = vld [vmem:[%s21271_s11 + $0x6e8] sm:$0xff]  ;;  %v10444_v11 = vld [vmem:[%s21271_s11 + $0x700] sm:$0xff] }
 0xa5f   :  { %v12626_v52 = vpack.c.bf16 %v10441_v42, %v10438_v28  ;;  %v10485_v42 = vld [vmem:[%s21271_s11 + $0x818] sm:$0xff] }
 0xa61   :  { %12510 = vmatpush1.bf16.msra.mxu1 %v12509_v63  ;;  %v10419_v63 = vld [vmem:[%s21271_s11 + $0x638] sm:$0xff] }
 0xa62   :  { %12512 = vmatprep.subr.bf16.mxu1 %v12511_v50  ;;  %v10422_v50 = vld [vmem:[%s21271_s11 + $0x650] sm:$0xff] }
 0xa63   :  { %v12579_v7 = vpack.c.bf16 %v10422_v50, %v10419_v63  ;;  %v10458_v63 = vld [vmem:[%s21271_s11 + $0x770] sm:$0xff] }
 0xa65   :  { %12514 = vmatpush1.bf16.msra.mxu1 %v12513_v37  ;;  %v10421_v37 = vld [vmem:[%s21271_s11 + $0x648] sm:$0xff] }
 0xa66   :  { %12516 = vmatprep.subr.bf16.mxu1 %v12515_v29  ;;  %v10414_v29 = vld [vmem:[%s21271_s11 + $0x610] sm:$0xff]  ;;  %v12581_v41 = vpack.c.bf16 %v10421_v37, %v10418_v39  ;;  %v12603_v39 = vpack.c.bf16 %v10458_v63, %v10455_v12  ;;  %v10494_v12 = vld [vmem:[%s21271_s11 + $0x860] sm:$0xff] }
 0xa67   :  { %v10492_v63 = vld [vmem:[%s21271_s11 + $0x850] sm:$0xff] }
 0xa69   :  { %12518 = vmatpush1.bf16.msra.mxu1 %v12517_v36  ;;  %v10424_v36 = vld [vmem:[%s21271_s11 + $0x660] sm:$0xff] }
 0xa6a   :  { %12520 = vmatprep.subr.bf16.mxu1 %v12519_v61  ;;  %v12614_v61 = vpack.c.bf16 %v10417_v5, %v10414_v29  ;;  %v12585_v49 = vpack.c.bf16 %v10427_v57, %v10424_v36 }
 0xa6d   :  { %12522 = vmatpush1.bf16.msra.mxu1 %v12521_v31  ;;  %v10431_v31 = vld [vmem:[%s21271_s11 + $0x698] sm:$0xff] }
 0xa6e   :  { %12524 = vmatprep.subr.bf16.mxu1 %v12523_v35  ;;  %v10434_v35 = vld [vmem:[%s21271_s11 + $0x6b0] sm:$0xff] }
 0xa6f   :  { %v12587_v55 = vpack.c.bf16 %v10434_v35, %v10431_v31  ;;  %v10470_v31 = vld [vmem:[%s21271_s11 + $0x7a0] sm:$0xff]  ;;  %v10468_v35 = vld [vmem:[%s21271_s11 + $0x790] sm:$0xff] }
 0xa71   :  { %12526 = vmatpush1.bf16.msra.mxu1 %v12525_v30  ;;  %v10433_v30 = vld [vmem:[%s21271_s11 + $0x6a8] sm:$0xff] }
 0xa72   :  { %12528 = vmatprep.subr.bf16.mxu1 %v12527_v4  ;;  %v10426_v4 = vld [vmem:[%s21271_s11 + $0x670] sm:$0xff]  ;;  %v12589_v10 = vpack.c.bf16 %v10433_v30, %v10430_v8  ;;  %v10466_v30 = vld [vmem:[%s21271_s11 + $0x780] sm:$0xff] }
 0xa75   :  { %12530 = vmatpush1.bf16.msra.mxu1 %v12529_v59  ;;  %v10436_v59 = vld [vmem:[%s21271_s11 + $0x6c0] sm:$0xff] }
 0xa76   :  { %12568 = vmatprep.subr.bf16.mxu1 %v12567_v18  ;;  %v12620_v18 = vpack.c.bf16 %v10429_v3, %v10426_v4  ;;  %v10469_v4 = vld [vmem:[%s21271_s11 + $0x798] sm:$0xff] }
 0xacf   :  { %v18927_v56 = vpop.f32.mrb[146].mxu0 }
 0xad0   :  { %v6646_v20 = vpop.f32.mrb[147].mxu0 }
 0xad1   :  { %v12591_v20 = vpack.c.bf16 %v10440_v27, %v10437_v1  ;;  %v10473_v1 = vld [vmem:[%s21271_s11 + $0x7b8] sm:$0xff]  ;;  %v10476_v27 = vld [vmem:[%s21271_s11 + $0x7d0] sm:$0xff] }
 0xad3   :  { %v6719_v25 = vpop.f32.mrb[148].mxu0 }
 0xad4   :  { %v6721_v33 = vpop.f32.mrb[149].mxu0 }
 0xad5   :  { %10394 = vmatprep.mubr.msk.f32.mxu1 %vm5322_vm11, %v6721_v33  ;;  %10395 = vmatprep.mubr.msk.f32.mxu0 %vm5322_vm11, %v6721_v33  ;;  %v12623_v33 = vpack.c.bf16 %v10435_v47, %v10432_v43  ;;  %v10472_v43 = vld [vmem:[%s21271_s11 + $0x7b0] sm:$0xff]  ;;  %v10475_v47 = vld [vmem:[%s21271_s11 + $0x7c8] sm:$0xff] }
 0xad6   :  { %6853 = vmatmul.mubr.f32.vlgmr.msra.gmra.mrb[74].mxu1 %v6719_v25  ;;  %6924 = vmatmul.mubr.f32.vlgmr.msra.gmra.mrb[150].mxu0 %v6719_v25  ;;  %v10446_v25 = vld [vmem:[%s21271_s11 + $0x710] sm:$0xff] }
 0xad7   :  { %12566 = vmatpush1.bf16.msk.msra.mxu0 %vm18364_vm0, %v18361_v21  ;;  %12570 = vmatpush1.bf16.msra.mxu1 %v12569_v32  ;;  %v12593_v32 = vpack.c.bf16 %v10439_v54, %v10436_v59  ;;  %v10477_v59 = vld [vmem:[%s21271_s11 + $0x7d8] sm:$0xff]  ;;  %v12647_v54 = vpack.c.bf16 %v10476_v27, %v10473_v1 }
 0xad8   :  { %7001 = vmatprep.mubr.f32.mxu0 %v21319_v53  ;;  %12572 = vmatprep.subr.bf16.mxu1 %v12571_v14  ;;  %v12595_v14 = vpack.c.bf16 %v10446_v25, %v10443_v19  ;;  %v10482_v19 = vld [vmem:[%s21271_s11 + $0x800] sm:$0xff]  ;;  %v10480_v25 = vld [vmem:[%s21271_s11 + $0x7f0] sm:$0xff]  ;;  %v10513_v1 = vld [vmem:[%s21271_s11 + $0x8f8] sm:$0xff] }
 0xad9   :  { %12607 = vmatprep.subr.bf16.mxu0 %v21320_v45 }
 0xada   :  { %10399 = vmatmul.mubr.msk.f32.vlgmr.msra.gmra.mrb[152].mxu0 %vm6082_vm1, %v10396_v58  ;;  %v12597_v58 = vpack.c.bf16 %v10445_v13, %v10442_v15  ;;  %v12649_v15 = vpack.c.bf16 %v10475_v47, %v10472_v43  ;;  %v10481_v13 = vld [vmem:[%s21271_s11 + $0x7f8] sm:$0xff]  ;;  %v10518_v43 = vld [vmem:[%s21271_s11 + $0x920] sm:$0xff] }
 0xadb   :  { %12574 = vmatpush1.bf16.msra.mxu1 %v12573_v51  ;;  %12609 = vmatpush1.bf16.msra.mxu0 %v12608_v22  ;;  %v10448_v51 = vld [vmem:[%s21271_s11 + $0x720] sm:$0xff]  ;;  %v12599_v22 = vpack.c.bf16 %v10452_v34, %v10449_v9  ;;  %v10488_v9 = vld [vmem:[%s21271_s11 + $0x830] sm:$0xff] }
 0xadc   :  { %12576 = vmatprep.subr.bf16.mxu1 %v12575_v48  ;;  %12610 = vmatprep.subr.bf16.mxu0 %v21320_v45  ;;  %v10451_v48 = vld [vmem:[%s21271_s11 + $0x738] sm:$0xff]  ;;  %v10486_v34 = vld [vmem:[%s21271_s11 + $0x820] sm:$0xff] }
 0xadd   :  { %v12601_v50 = vpack.c.bf16 %v10451_v48, %v10448_v51  ;;  %v10487_v48 = vld [vmem:[%s21271_s11 + $0x828] sm:$0xff] }
 0xadf   :  { %12578 = vmatpush1.bf16.msra.mxu1 %v12577_v6  ;;  %12612 = vmatpush1.bf16.msra.mxu0 %v12611_v38  ;;  %v12629_v6 = vpack.c.bf16 %v10447_v16, %v10444_v11  ;;  %v10454_v38 = vld [vmem:[%s21271_s11 + $0x750] sm:$0xff]  ;;  %v10491_v16 = vld [vmem:[%s21271_s11 + $0x848] sm:$0xff] }
 0xae0   :  { %12580 = vmatprep.subr.bf16.mxu1 %v12579_v7  ;;  %12613 = vmatprep.subr.bf16.mxu0 %v21320_v45  ;;  %v10457_v7 = vld [vmem:[%s21271_s11 + $0x768] sm:$0xff] }
 0xae1   :  { %v12605_v37 = vpack.c.bf16 %v10457_v7, %v10454_v38  ;;  %v10490_v38 = vld [vmem:[%s21271_s11 + $0x840] sm:$0xff]  ;;  %v10493_v7 = vld [vmem:[%s21271_s11 + $0x858] sm:$0xff] }
 0xae3   :  { %12582 = vmatpush1.bf16.msra.mxu1 %v12581_v41  ;;  %12615 = vmatpush1.bf16.msra.mxu0 %v12614_v61  ;;  %v10453_v41 = vld [vmem:[%s21271_s11 + $0x748] sm:$0xff] }
 0xae4   :  { %12584 = vmatprep.subr.bf16.mxu1 %v12583_v23  ;;  %12616 = vmatprep.subr.bf16.mxu0 %v21320_v45  ;;  %v12632_v36 = vpack.c.bf16 %v10453_v41, %v10450_v24  ;;  %v10501_v24 = vld [vmem:[%s21271_s11 + $0x898] sm:$0xff]  ;;  %v12661_v41 = vpack.c.bf16 %v10493_v7, %v10490_v38  ;;  %v7569_v7 = vld [vmem:[%s21275_s15 + $0x10] sm:$0xff] }
 0xae7   :  { %12586 = vmatpush1.bf16.msra.mxu1 %v12585_v49  ;;  %12618 = vmatpush1.bf16.msra.mxu0 %v12617_v46  ;;  %v10471_v49 = vld [vmem:[%s21271_s11 + $0x7a8] sm:$0xff] }
 0xae8   :  { %12588 = vmatprep.subr.bf16.mxu1 %v12587_v55  ;;  %12619 = vmatprep.subr.bf16.mxu0 %v21320_v45  ;;  %v12643_v55 = vpack.c.bf16 %v10470_v31, %v10467_v2  ;;  %v12684_v3 = vpack.c.bf16 %v10471_v49, %v10468_v35  ;;  %v10504_v2 = vld [vmem:[%s21271_s11 + $0x8b0] sm:$0xff]  ;;  %v10507_v31 = vld [vmem:[%s21271_s11 + $0x8c8] sm:$0xff] }
 0xaeb   :  { %12590 = vmatpush1.bf16.msra.mxu1 %v12589_v10  ;;  %12621 = vmatpush1.bf16.msra.mxu0 %v12620_v18  ;;  %v10474_v10 = vld [vmem:[%s21271_s11 + $0x7c0] sm:$0xff]  ;;  %v10462_v18 = vld [vmem:[%s21270_s10 + $0x8] sm:$0x3] }
 0xaec   :  { %12592 = vmatprep.subr.bf16.mxu1 %v12591_v20  ;;  %12622 = vmatprep.subr.bf16.mxu0 %v21320_v45  ;;  %v12645_v20 = vpack.c.bf16 %v10469_v4, %v10466_v30  ;;  %v12687_v17 = vpack.c.bf16 %v10477_v59, %v10474_v10  ;;  %v10509_v30 = vld [vmem:[%s21271_s11 + $0x8d8] sm:$0xff]  ;;  %v10512_v4 = vld [vmem:[%s21271_s11 + $0x8f0] sm:$0xff] }
 0xaed   :  { %v12671_v10 = vpack.c.bf16 %v10512_v4, %v10509_v30  ;;  %v10508_v59 = vld [vmem:[%s21271_s11 + $0x8d0] sm:$0xff]  ;;  %v7599_v4 = vld [vmem:[%s21275_s15 + $0x100] sm:$0xff] }
 0xaef   :  { %12594 = vmatpush1.bf16.msra.mxu1 %v12593_v32  ;;  %12624 = vmatpush1.bf16.msra.mxu0 %v12623_v33  ;;  %v10483_v32 = vld [vmem:[%s21271_s11 + $0x808] sm:$0xff] }
 0xaf0   :  { %12596 = vmatprep.subr.bf16.mxu1 %v12595_v14  ;;  %12625 = vmatprep.subr.bf16.mxu0 %v21320_v45  ;;  %v10478_v14 = vld [vmem:[%s21271_s11 + $0x7e0] sm:$0xff]  ;;  %v12690_v28 = vpack.c.bf16 %v10483_v32, %v10480_v25  ;;  %v10516_v25 = vld [vmem:[%s21271_s11 + $0x910] sm:$0xff] }
 0xaf1   :  { %v12653_v51 = vpack.c.bf16 %v10481_v13, %v10478_v14  ;;  %v10521_v14 = vld [vmem:[%s21271_s11 + $0x938] sm:$0xff]  ;;  %v10524_v13 = vld [vmem:[%s21271_s11 + $0x950] sm:$0xff] }
 0xaf3   :  { %12598 = vmatpush1.bf16.msra.mxu1 %v12597_v58  ;;  %12627 = vmatpush1.bf16.msra.mxu0 %v12626_v52  ;;  %v10489_v58 = vld [vmem:[%s21271_s11 + $0x838] sm:$0xff]  ;;  %v12655_v52 = vpack.c.bf16 %v10488_v9, %v10485_v42  ;;  %v10520_v42 = vld [vmem:[%s21271_s11 + $0x930] sm:$0xff]  ;;  %v10523_v9 = vld [vmem:[%s21271_s11 + $0x948] sm:$0xff] }
 0xaf4   :  { %12600 = vmatprep.subr.bf16.mxu1 %v12599_v22  ;;  %12628 = vmatprep.subr.bf16.mxu0 %v21320_v45  ;;  %v10484_v22 = vld [vmem:[%s21271_s11 + $0x810] sm:$0xff]  ;;  %v12693_v11 = vpack.c.bf16 %v10489_v58, %v10486_v34  ;;  %v10522_v34 = vld [vmem:[%s21271_s11 + $0x940] sm:$0xff]  ;;  %v12681_v58 = vpack.c.bf16 %v10523_v9, %v10520_v42  ;;  %v7642_v42 = vld [vmem:[%s21275_s15 + $0x258] sm:$0xff] }
 0xaf7   :  { %12602 = vmatpush1.bf16.msra.mxu1 %v12601_v50  ;;  %12630 = vmatpush1.bf16.msra.mxu0 %v12629_v6  ;;  %v10495_v50 = vld [vmem:[%s21271_s11 + $0x868] sm:$0xff]  ;;  %v12657_v6 = vpack.c.bf16 %v10487_v48, %v10484_v22 }
 0xaf8   :  { %12604 = vmatprep.subr.bf16.mxu1 %v12603_v39  ;;  %12631 = vmatprep.subr.bf16.mxu0 %v21320_v45  ;;  %v12659_v39 = vpack.c.bf16 %v10494_v12, %v10491_v16  ;;  %v7568_v22 = vld [vmem:[%s21275_s15 + $0x8] sm:$0xff]  ;;  %v7578_v16 = vld [vmem:[%s21275_s15 + $0x58] sm:$0xff] }
 0xaf9   :  { %v7576_v48 = vld [vmem:[%s21275_s15 + $0x48] sm:$0xff] }
 0xafb   :  { %v6500_v29 = vpop.f32.mrb[76].mxu1  ;;  %12606 = vmatpush1.bf16.msra.mxu1 %v12605_v37  ;;  %12633 = vmatpush1.bf16.msra.mxu0 %v12632_v36  ;;  %v12696_v37 = vpack.c.bf16 %v10495_v50, %v10492_v63  ;;  %v7567_v50 = vld [vmem:[%s21275_s15] sm:$0xff] }
 0xafc   :  { %v6645_v5 = vadd.f32 %v18927_v56, %v6500_v29  ;;  %12639 = vmatprep.subr.msk.bf16.mxu1 %vm18364_vm0, %v18368_v62  ;;  %v6502_v0 = vpop.f32.mrb[77].mxu1  ;;  %12634 = vmatprep.subr.bf16.mxu0 %v21320_v45  ;;  %v10456_v56 = vld [vmem:[%s21271_s11 + $0x760] sm:$0xff]  ;;  %v10459_v62 = vld [vmem:[%s21271_s11 + $0x778] sm:$0xff] }
 0xafd   :  { %v12635_v61 = vpack.c.bf16 %v10459_v62, %v10456_v56  ;;  %v10497_v29 = vld [vmem:[%s21271_s11 + $0x878] sm:$0xff]  ;;  %v10498_v0 = vld [vmem:[%s21271_s11 + $0x880] sm:$0xff]  ;;  %v10496_v56 = vld [vmem:[%s21271_s11 + $0x870] sm:$0xff] }
 0xafe   :  { %v10499_v62 = vld [vmem:[%s21271_s11 + $0x888] sm:$0xff] }
 0xaff   :  { %12636 = vmatpush1.bf16.msra.mxu0 %v12635_v61  ;;  %v12699_v61 = vpack.c.bf16 %v10501_v24, %v10498_v0  ;;  %v12665_v35 = vpack.c.bf16 %v10499_v62, %v10496_v56  ;;  %v7594_v0 = vld [vmem:[%s21275_s15 + $0xd8] sm:$0xff]  ;;  %v7583_v56 = vld [vmem:[%s21275_s15 + $0x80] sm:$0xff] }
 0xb00   :  { %12683 = vmatprep.subr.bf16.mxu0 %v21320_v45  ;;  %v7591_v62 = vld [vmem:[%s21275_s15 + $0xc0] sm:$0xff] }
 0xba9   :  { %v6925_v23 = vpop.f32.mrb[150].mxu0 }
 0xbaa   :  { %v19128_v57 = vadd.f32 %v6925_v23, %v6645_v5  ;;  %v6927_v60 = vpop.f32.mrb[151].mxu0  ;;  %v10500_v5 = vld [vmem:[%s21271_s11 + $0x890] sm:$0xff]  ;;  %v10503_v23 = vld [vmem:[%s21271_s11 + $0x8a8] sm:$0xff] }
 0xbab   :  { %v12663_v36 = vpack.c.bf16 %v10500_v5, %v10497_v29  ;;  %v10506_v60 = vld [vmem:[%s21271_s11 + $0x8c0] sm:$0xff]  ;;  %v7584_v29 = vld [vmem:[%s21275_s15 + $0x88] sm:$0xff] }
 0xbac   :  { %v12667_v49 = vpack.c.bf16 %v10506_v60, %v10503_v23  ;;  %v7592_v5 = vld [vmem:[%s21275_s15 + $0xc8] sm:$0xff] }
 0xbad   :  { %v7003_v8 = vpop.f32.mrb[152].mxu0  ;;  %v12717_v23 = vpack.c.bf16 %v7592_v5, %v7584_v29  ;;  %v7655_v29 = vld [vmem:[%s21275_s15 + $0x2c0] sm:$0xff]  ;;  %v7649_v5 = vld [vmem:[%s21275_s15 + $0x290] sm:$0xff] }
 0xbae   :  { %v7005_v46 = vpop.f32.mrb[153].mxu0 }
 0xbaf   :  { %10460 = vmatprep.mubr.msk.f32.mxu1 %vm5322_vm11, %v7005_v46  ;;  %10461 = vmatprep.mubr.msk.f32.mxu0 %vm5322_vm11, %v7005_v46  ;;  %v10505_v46 = vld [vmem:[%s21271_s11 + $0x8b8] sm:$0xff] }
 0xbb0   :  { %7137 = vmatmul.mubr.f32.vlgmr.msra.gmra.mrb[74].mxu1 %v7003_v8  ;;  %7208 = vmatmul.mubr.f32.vlgmr.msra.gmra.mrb[154].mxu0 %v7003_v8  ;;  %v10502_v8 = vld [vmem:[%s21271_s11 + $0x8a0] sm:$0xff] }
 0xbb1   :  { %12642 = vmatpush1.bf16.msk.msra.mxu1 %vm18364_vm0, %v18361_v21  ;;  %7285 = vmatprep.mubr.f32.mxu1 %v21319_v53  ;;  %v10479_v21 = vld [vmem:[%s21271_s11 + $0x7e8] sm:$0xff]  ;;  %v12669_v27 = vpack.c.bf16 %v10505_v46, %v10502_v8  ;;  %v7602_v8 = vld [vmem:[%s21275_s15 + $0x118] sm:$0xff] }
 0xbb2   :  { %12644 = vmatprep.subr.bf16.mxu1 %v12643_v55  ;;  %12685 = vmatpush1.bf16.msra.mxu0 %v12684_v3  ;;  %v12651_v33 = vpack.c.bf16 %v10482_v19, %v10479_v21  ;;  %v12702_v55 = vpack.c.bf16 %v10507_v31, %v10504_v2  ;;  %v10510_v3 = vld [vmem:[%s21271_s11 + $0x8e0] sm:$0xff]  ;;  %v10517_v19 = vld [vmem:[%s21271_s11 + $0x918] sm:$0xff]  ;;  %v7585_v2 = vld [vmem:[%s21275_s15 + $0x90] sm:$0xff] }
 0xbb3   :  { %12686 = vmatprep.subr.bf16.mxu0 %v21320_v45  ;;  %v10514_v21 = vld [vmem:[%s21271_s11 + $0x900] sm:$0xff]  ;;  %v7593_v31 = vld [vmem:[%s21275_s15 + $0xd0] sm:$0xff]  ;;  %v7610_v46 = vld [vmem:[%s21275_s15 + $0x158] sm:$0xff] }
 0xbb4   :  { %10465 = vmatmul.mubr.msk.f32.vlgmr.msra.gmra.mrb[78].mxu1 %vm6082_vm1, %v10462_v18  ;;  %v10511_v18 = vld [vmem:[%s21271_s11 + $0x8e8] sm:$0xff]  ;;  %v12677_v32 = vpack.c.bf16 %v10517_v19, %v10514_v21  ;;  %v12855_v30 = vpack.c.bf16 %v7593_v31, %v7585_v2  ;;  %v7615_v21 = vld [vmem:[%s21275_s15 + $0x180] sm:$0xff]  ;;  %v7665_v31 = vld [vmem:[%s21275_s15 + $0x310] sm:$0xff] }
 0xbb5   :  { %12646 = vmatpush1.bf16.msra.mxu1 %v12645_v20  ;;  %v12705_v20 = vpack.c.bf16 %v10513_v1, %v10510_v3  ;;  %v12673_v47 = vpack.c.bf16 %v10511_v18, %v10508_v59  ;;  %v7607_v3 = vld [vmem:[%s21275_s15 + $0x140] sm:$0xff]  ;;  %v7609_v59 = vld [vmem:[%s21275_s15 + $0x150] sm:$0xff]  ;;  %v7616_v18 = vld [vmem:[%s21275_s15 + $0x188] sm:$0xff] }
 0xbb6   :  { %12648 = vmatprep.subr.bf16.mxu1 %v12647_v54  ;;  %12688 = vmatpush1.bf16.msra.mxu0 %v12687_v17  ;;  %v10515_v54 = vld [vmem:[%s21271_s11 + $0x908] sm:$0xff]  ;;  %v7623_v19 = vld [vmem:[%s21275_s15 + $0x1c0] sm:$0xff] }
 0xbb7   :  { %12689 = vmatprep.subr.bf16.mxu0 %v21320_v45  ;;  %v12675_v17 = vpack.c.bf16 %v10518_v43, %v10515_v54  ;;  %v7618_v54 = vld [vmem:[%s21275_s15 + $0x198] sm:$0xff]  ;;  %v12727_v9 = vpack.c.bf16 %v7623_v19, %v7615_v21  ;;  %v7671_v2 = vld [vmem:[%s21275_s15 + $0x340] sm:$0xff] }
 0xbb8   :  { %v7626_v43 = vld [vmem:[%s21275_s15 + $0x1d8] sm:$0xff] }
 0xbb9   :  { %12650 = vmatpush1.bf16.msra.mxu1 %v12649_v15  ;;  %v10519_v15 = vld [vmem:[%s21271_s11 + $0x928] sm:$0xff]  ;;  %v7706_v19 = vld [vmem:[%s21275_s15 + $0x458] sm:$0xff] }
 0xbba   :  { %12652 = vmatprep.subr.bf16.mxu1 %v12651_v33  ;;  %12691 = vmatpush1.bf16.msra.mxu0 %v12690_v28  ;;  %v12708_v33 = vpack.c.bf16 %v10519_v15, %v10516_v25  ;;  %v12679_v28 = vpack.c.bf16 %v10524_v13, %v10521_v14  ;;  %v7617_v15 = vld [vmem:[%s21275_s15 + $0x190] sm:$0xff]  ;;  %v7632_v14 = vld [vmem:[%s21275_s15 + $0x208] sm:$0xff] }
 0xbbb   :  { %12692 = vmatprep.subr.bf16.mxu0 %v21320_v45  ;;  %v7640_v13 = vld [vmem:[%s21275_s15 + $0x248] sm:$0xff] }
 0xbbd   :  { %12654 = vmatpush1.bf16.msra.mxu1 %v12653_v51  ;;  %v10525_v51 = vld [vmem:[%s21271_s11 + $0x958] sm:$0xff] }
 0xbbe   :  { %12656 = vmatprep.subr.bf16.mxu1 %v12655_v52  ;;  %12694 = vmatpush1.bf16.msra.mxu0 %v12693_v11  ;;  %v12711_v52 = vpack.c.bf16 %v10525_v51, %v10522_v34  ;;  %v12713_v11 = vpack.c.bf16 %v7576_v48, %v7568_v22  ;;  %v7639_v51 = vld [vmem:[%s21275_s15 + $0x240] sm:$0xff]  ;;  %v7633_v48 = vld [vmem:[%s21275_s15 + $0x210] sm:$0xff] }
 0xbbf   :  { %12695 = vmatprep.subr.bf16.mxu0 %v21320_v45 }
 0xbc1   :  { %12658 = vmatpush1.bf16.msra.mxu1 %v12657_v6  ;;  %v7575_v6 = vld [vmem:[%s21275_s15 + $0x40] sm:$0xff] }
 0xbc2   :  { %12660 = vmatprep.subr.bf16.mxu1 %v12659_v39  ;;  %12697 = vmatpush1.bf16.msra.mxu0 %v12696_v37  ;;  %v7577_v37 = vld [vmem:[%s21275_s15 + $0x50] sm:$0xff] }
 0xbc3   :  { %12698 = vmatprep.subr.bf16.mxu0 %v21320_v45 }
 0xbc5   :  { %12662 = vmatpush1.bf16.msra.mxu1 %v12661_v41  ;;  %v12715_v41 = vpack.c.bf16 %v7575_v6, %v7567_v50 }
 0xbc6   :  { %12664 = vmatprep.subr.bf16.mxu1 %v12663_v36  ;;  %12700 = vmatpush1.bf16.msra.mxu0 %v12699_v61  ;;  %v12851_v36 = vpack.c.bf16 %v7577_v37, %v7569_v7 }
 0xbc7   :  { %12701 = vmatprep.subr.bf16.mxu0 %v21320_v45 }
 0xbc9   :  { %12666 = vmatpush1.bf16.msra.mxu1 %v12665_v35  ;;  %v7600_v35 = vld [vmem:[%s21275_s15 + $0x108] sm:$0xff] }
 0xbca   :  { %12668 = vmatprep.subr.bf16.mxu1 %v12667_v49  ;;  %12703 = vmatpush1.bf16.msra.mxu0 %v12702_v55  ;;  %v7608_v49 = vld [vmem:[%s21275_s15 + $0x148] sm:$0xff]  ;;  %v12719_v55 = vpack.c.bf16 %v7591_v62, %v7583_v56  ;;  %v7666_v56 = vld [vmem:[%s21275_s15 + $0x318] sm:$0xff] }
 0xbcb   :  { %12704 = vmatprep.subr.bf16.mxu0 %v21320_v45  ;;  %v12721_v1 = vpack.c.bf16 %v7608_v49, %v7600_v35  ;;  %v7673_v35 = vld [vmem:[%s21275_s15 + $0x350] sm:$0xff] }
 0xbcd   :  { %12670 = vmatpush1.bf16.msra.mxu1 %v12669_v27  ;;  %v12857_v27 = vpack.c.bf16 %v7610_v46, %v7602_v8  ;;  %v12875_v8 = vpack.c.bf16 %v7673_v35, %v7665_v31  ;;  %v7680_v46 = vld [vmem:[%s21275_s15 + $0x388] sm:$0xff] }
 0xbce   :  { %12672 = vmatprep.subr.bf16.mxu1 %v12671_v10  ;;  %12706 = vmatpush1.bf16.msra.mxu0 %v12705_v20  ;;  %v7601_v10 = vld [vmem:[%s21275_s15 + $0x110] sm:$0xff]  ;;  %v7624_v20 = vld [vmem:[%s21275_s15 + $0x1c8] sm:$0xff] }
 0xbcf   :  { %12707 = vmatprep.subr.bf16.mxu0 %v21320_v45  ;;  %v12725_v25 = vpack.c.bf16 %v7624_v20, %v7616_v18  ;;  %v7681_v18 = vld [vmem:[%s21275_s15 + $0x390] sm:$0xff] }
 0xbd0   :  { %v7689_v20 = vld [vmem:[%s21275_s15 + $0x3d0] sm:$0xff] }
 0xbd1   :  { %12674 = vmatpush1.bf16.msra.mxu1 %v12673_v47  ;;  %v12723_v47 = vpack.c.bf16 %v7607_v3, %v7599_v4  ;;  %v7690_v3 = vld [vmem:[%s21275_s15 + $0x3d8] sm:$0xff] }
 0xbd2   :  { %12676 = vmatprep.subr.bf16.mxu1 %v12675_v17  ;;  %12709 = vmatpush1.bf16.msra.mxu0 %v12708_v33  ;;  %v12859_v17 = vpack.c.bf16 %v7609_v59, %v7601_v10  ;;  %v7625_v33 = vld [vmem:[%s21275_s15 + $0x1d0] sm:$0xff] }
 0xbd3   :  { %12710 = vmatprep.subr.bf16.mxu0 %v21320_v45  ;;  %v7570_v45 = vld [vmem:[%s21275_s15 + $0x18] sm:$0xff]  ;;  %v12863_v34 = vpack.c.bf16 %v7625_v33, %v7617_v15 }
 0xbd4   :  { %v12849_v12 = vpack.c.bf16 %v7578_v16, %v7570_v45  ;;  %v7641_v45 = vld [vmem:[%s21275_s15 + $0x250] sm:$0xff]  ;;  %v7656_v16 = vld [vmem:[%s21275_s15 + $0x2c8] sm:$0xff] }
 0xbd5   :  { %12678 = vmatpush1.bf16.msra.mxu1 %v12677_v32  ;;  %v12861_v32 = vpack.c.bf16 %v7626_v43, %v7618_v54  ;;  %v12867_v6 = vpack.c.bf16 %v7641_v45, %v7633_v48  ;;  %v12879_v54 = vpack.c.bf16 %v7689_v20, %v7681_v18  ;;  %v7696_v43 = vld [vmem:[%s21275_s15 + $0x408] sm:$0xff]  ;;  %v7761_v20 = vld [vmem:[%s21275_s15 + $0x610] sm:$0xff] }
 0xbd6   :  { %12680 = vmatprep.subr.bf16.mxu1 %v12679_v28  ;;  %12712 = vmatpush1.bf16.msra.mxu0 %v12711_v52  ;;  %v7634_v28 = vld [vmem:[%s21275_s15 + $0x218] sm:$0xff]  ;;  %v12729_v52 = vpack.c.bf16 %v7640_v13, %v7632_v14  ;;  %v7697_v14 = vld [vmem:[%s21275_s15 + $0x410] sm:$0xff] }
 0xbd7   :  { %12714 = vmatprep.subr.bf16.mxu0 %v12713_v11  ;;  %v12865_v22 = vpack.c.bf16 %v7642_v42, %v7634_v28  ;;  %v7648_v11 = vld [vmem:[%s21275_s15 + $0x288] sm:$0xff]  ;;  %v7705_v13 = vld [vmem:[%s21275_s15 + $0x450] sm:$0xff] }
 0xbd8   :  { %v12733_v7 = vpack.c.bf16 %v7656_v16, %v7648_v11  ;;  %v12883_v28 = vpack.c.bf16 %v7705_v13, %v7697_v14  ;;  %v7712_v42 = vld [vmem:[%s21275_s15 + $0x488] sm:$0xff]  ;;  %v7713_v11 = vld [vmem:[%s21275_s15 + $0x490] sm:$0xff] }
 0xbd9   :  { %12682 = vmatpush1.bf16.msra.mxu1 %v12681_v58  ;;  %v7631_v58 = vld [vmem:[%s21275_s15 + $0x200] sm:$0xff]  ;;  %v7721_v16 = vld [vmem:[%s21275_s15 + $0x4d0] sm:$0xff] }
 0xbda   :  { %12850 = vmatprep.subr.bf16.mxu1 %v12849_v12  ;;  %v7650_v12 = vld [vmem:[%s21275_s15 + $0x298] sm:$0xff]  ;;  %v12731_v50 = vpack.c.bf16 %v7639_v51, %v7631_v58  ;;  %v7777_v14 = vld [vmem:[%s21275_s15 + $0x690] sm:$0xff] }
 0xbdb   :  { %v7722_v51 = vld [vmem:[%s21275_s15 + $0x4d8] sm:$0xff] }
 0xc83   :  { %v7209_v63 = vpop.f32.mrb[154].mxu0 }
 0xc84   :  { %v19348_v39 = vadd.f32 %v7209_v63, %v19128_v57  ;;  %v7211_v38 = vpop.f32.mrb[155].mxu0  ;;  %v7586_v57 = vld [vmem:[%s21275_s15 + $0x98] sm:$0xff] }
 0xc85   :  { %v12853_v60 = vpack.c.bf16 %v7594_v0, %v7586_v57  ;;  %v7658_v63 = vld [vmem:[%s21275_s15 + $0x2d8] sm:$0xff]  ;;  %v7647_v38 = vld [vmem:[%s21275_s15 + $0x280] sm:$0xff]  ;;  %v7657_v57 = vld [vmem:[%s21275_s15 + $0x2d0] sm:$0xff] }
 0xc86   :  { %v12869_v37 = vpack.c.bf16 %v7658_v63, %v7650_v12  ;;  %v12735_v0 = vpack.c.bf16 %v7655_v29, %v7647_v38  ;;  %v12887_v12 = vpack.c.bf16 %v7721_v16, %v7713_v11  ;;  %v7728_v63 = vld [vmem:[%s21275_s15 + $0x508] sm:$0xff]  ;;  %v7735_v29 = vld [vmem:[%s21275_s15 + $0x540] sm:$0xff]  ;;  %v7793_v11 = vld [vmem:[%s21275_s15 + $0x710] sm:$0xff] }
 0xc87   :  { %v7287_v24 = vpop.f32.mrb[78].mxu1  ;;  %v7801_v16 = vld [vmem:[%s21275_s15 + $0x750] sm:$0xff] }
 0xc88   :  { %v7289_v61 = vpop.f32.mrb[79].mxu1 }
 0xc89   :  { %10526 = vmatprep.mubr.msk.f32.mxu1 %vm5322_vm11, %v7289_v61  ;;  %10527 = vmatprep.mubr.msk.f32.mxu0 %vm5322_vm11, %v7289_v61  ;;  %v7674_v61 = vld [vmem:[%s21275_s15 + $0x358] sm:$0xff] }
 0xc8a   :  { %7421 = vmatmul.mubr.f32.vlgmr.msra.gmra.mrb[74].mxu1 %v7287_v24  ;;  %7492 = vmatmul.mubr.f32.vlgmr.msra.gmra.mrb[156].mxu0 %v7287_v24  ;;  %v12871_v24 = vpack.c.bf16 %v7657_v57, %v7649_v5 }
 0xc8b   :  { %12716 = vmatpush1.bf16.msra.mxu0 %v12715_v41  ;;  %12852 = vmatpush1.bf16.msra.mxu1 %v12851_v36  ;;  %v7664_v41 = vld [vmem:[%s21275_s15 + $0x308] sm:$0xff] }
 0xc8c   :  { %12718 = vmatprep.subr.bf16.mxu0 %v12717_v23  ;;  %12854 = vmatprep.subr.bf16.mxu1 %v12853_v60  ;;  %v7672_v36 = vld [vmem:[%s21275_s15 + $0x348] sm:$0xff]  ;;  %v7663_v23 = vld [vmem:[%s21275_s15 + $0x300] sm:$0xff]  ;;  %v12873_v60 = vpack.c.bf16 %v7674_v61, %v7666_v56 }
 0xc8d   :  { %v12737_v62 = vpack.c.bf16 %v7672_v36, %v7664_v41  ;;  %v12739_v49 = vpack.c.bf16 %v7671_v2, %v7663_v23  ;;  %v7744_v36 = vld [vmem:[%s21275_s15 + $0x588] sm:$0xff]  ;;  %v7754_v23 = vld [vmem:[%s21275_s15 + $0x5d8] sm:$0xff]  ;;  %v7751_v2 = vld [vmem:[%s21275_s15 + $0x5c0] sm:$0xff] }
 0xc8e   :  { %v7752_v56 = vld [vmem:[%s21275_s15 + $0x5c8] sm:$0xff] }
 0xc8f   :  { %12720 = vmatpush1.bf16.msra.mxu0 %v12719_v55  ;;  %12856 = vmatpush1.bf16.msra.mxu1 %v12855_v30  ;;  %v7688_v55 = vld [vmem:[%s21275_s15 + $0x3c8] sm:$0xff]  ;;  %v7682_v30 = vld [vmem:[%s21275_s15 + $0x398] sm:$0xff]  ;;  %v12757_v61 = vpack.c.bf16 %v7752_v56, %v7744_v36 }
 0xc90   :  { %12722 = vmatprep.subr.bf16.mxu0 %v12721_v1  ;;  %12858 = vmatprep.subr.bf16.mxu1 %v12857_v27  ;;  %v12741_v4 = vpack.c.bf16 %v7688_v55, %v7680_v46  ;;  %v7679_v1 = vld [vmem:[%s21275_s15 + $0x380] sm:$0xff]  ;;  %v12877_v10 = vpack.c.bf16 %v7690_v3, %v7682_v30  ;;  %v7760_v55 = vld [vmem:[%s21275_s15 + $0x608] sm:$0xff] }
 0xc91   :  { %v7687_v27 = vld [vmem:[%s21275_s15 + $0x3c0] sm:$0xff]  ;;  %v7768_v30 = vld [vmem:[%s21275_s15 + $0x648] sm:$0xff] }
 0xc92   :  { %v12743_v59 = vpack.c.bf16 %v7687_v27, %v7679_v1  ;;  %v12761_v3 = vpack.c.bf16 %v7768_v30, %v7760_v55  ;;  %v7770_v1 = vld [vmem:[%s21275_s15 + $0x658] sm:$0xff]  ;;  %v7759_v27 = vld [vmem:[%s21275_s15 + $0x600] sm:$0xff] }
 0xc93   :  { %12724 = vmatpush1.bf16.msra.mxu0 %v12723_v47  ;;  %12860 = vmatpush1.bf16.msra.mxu1 %v12859_v17  ;;  %v7704_v47 = vld [vmem:[%s21275_s15 + $0x448] sm:$0xff]  ;;  %v7698_v17 = vld [vmem:[%s21275_s15 + $0x418] sm:$0xff] }
 0xc94   :  { %12726 = vmatprep.subr.bf16.mxu0 %v12725_v25  ;;  %12862 = vmatprep.subr.bf16.mxu1 %v12861_v32  ;;  %v12745_v21 = vpack.c.bf16 %v7704_v47, %v7696_v43  ;;  %v7695_v25 = vld [vmem:[%s21275_s15 + $0x400] sm:$0xff]  ;;  %v12881_v15 = vpack.c.bf16 %v7706_v19, %v7698_v17  ;;  %v7776_v47 = vld [vmem:[%s21275_s15 + $0x688] sm:$0xff]  ;;  %v7778_v19 = vld [vmem:[%s21275_s15 + $0x698] sm:$0xff] }
 0xc95   :  { %v7703_v32 = vld [vmem:[%s21275_s15 + $0x440] sm:$0xff]  ;;  %v7784_v17 = vld [vmem:[%s21275_s15 + $0x6c8] sm:$0xff] }
 0xc96   :  { %v12747_v33 = vpack.c.bf16 %v7703_v32, %v7695_v25  ;;  %v7786_v25 = vld [vmem:[%s21275_s15 + $0x6d8] sm:$0xff] }
 0xc97   :  { %12728 = vmatpush1.bf16.msra.mxu0 %v12727_v9  ;;  %12864 = vmatpush1.bf16.msra.mxu1 %v12863_v34  ;;  %v7720_v9 = vld [vmem:[%s21275_s15 + $0x4c8] sm:$0xff]  ;;  %v7714_v34 = vld [vmem:[%s21275_s15 + $0x498] sm:$0xff]  ;;  %v12901_v32 = vpack.c.bf16 %v7786_v25, %v7778_v19 }
 0xc98   :  { %12730 = vmatprep.subr.bf16.mxu0 %v12729_v52  ;;  %12866 = vmatprep.subr.bf16.mxu1 %v12865_v22  ;;  %v12749_v58 = vpack.c.bf16 %v7720_v9, %v7712_v42  ;;  %v7711_v52 = vld [vmem:[%s21275_s15 + $0x480] sm:$0xff]  ;;  %v12885_v48 = vpack.c.bf16 %v7722_v51, %v7714_v34  ;;  %v7792_v42 = vld [vmem:[%s21275_s15 + $0x708] sm:$0xff]  ;;  %v7794_v51 = vld [vmem:[%s21275_s15 + $0x718] sm:$0xff] }
 0xc99   :  { %v7719_v22 = vld [vmem:[%s21275_s15 + $0x4c0] sm:$0xff]  ;;  %v7800_v9 = vld [vmem:[%s21275_s15 + $0x748] sm:$0xff] }
 0xc9a   :  { %v12751_v45 = vpack.c.bf16 %v7719_v22, %v7711_v52  ;;  %v7802_v52 = vld [vmem:[%s21275_s15 + $0x758] sm:$0xff]  ;;  %v7791_v22 = vld [vmem:[%s21275_s15 + $0x700] sm:$0xff] }
 0xc9b   :  { %12732 = vmatpush1.bf16.msra.mxu0 %v12731_v50  ;;  %12868 = vmatpush1.bf16.msra.mxu1 %v12867_v6  ;;  %v7736_v50 = vld [vmem:[%s21275_s15 + $0x548] sm:$0xff]  ;;  %v7730_v6 = vld [vmem:[%s21275_s15 + $0x518] sm:$0xff] }
 0xc9c   :  { %12734 = vmatprep.subr.bf16.mxu0 %v12733_v7  ;;  %12870 = vmatprep.subr.bf16.mxu1 %v12869_v37  ;;  %v12753_v38 = vpack.c.bf16 %v7736_v50, %v7728_v63  ;;  %v7738_v7 = vld [vmem:[%s21275_s15 + $0x558] sm:$0xff]  ;;  %v7727_v37 = vld [vmem:[%s21275_s15 + $0x500] sm:$0xff]  ;;  %v12907_v63 = vpack.c.bf16 %v7801_v16, %v7793_v11  ;;  %v7808_v50 = vld [vmem:[%s21275_s15 + $0x788] sm:$0xff] }
 0xc9d   :  { %v12889_v5 = vpack.c.bf16 %v7738_v7, %v7730_v6  ;;  %v12755_v57 = vpack.c.bf16 %v7735_v29, %v7727_v37  ;;  %v7816_v6 = vld [vmem:[%s21275_s15 + $0x7c8] sm:$0xff]  ;;  %v7818_v37 = vld [vmem:[%s21275_s15 + $0x7d8] sm:$0xff]  ;;  %v7807_v29 = vld [vmem:[%s21275_s15 + $0x780] sm:$0xff] }
 0xc9e   :  { %v12773_v7 = vpack.c.bf16 %v7816_v6, %v7808_v50  ;;  %v7831_v11 = vld [vmem:[%s21275_s15 + $0x840] sm:$0xff] }
 0xc9f   :  { %12736 = vmatpush1.bf16.msra.mxu0 %v12735_v0  ;;  %12872 = vmatpush1.bf16.msra.mxu1 %v12871_v24  ;;  %v7729_v0 = vld [vmem:[%s21275_s15 + $0x510] sm:$0xff] }
 0xca0   :  { %12738 = vmatprep.subr.bf16.mxu0 %v12737_v62  ;;  %12874 = vmatprep.subr.bf16.mxu1 %v12873_v60  ;;  %v7737_v24 = vld [vmem:[%s21275_s15 + $0x550] sm:$0xff]  ;;  %v7746_v62 = vld [vmem:[%s21275_s15 + $0x598] sm:$0xff]  ;;  %v7743_v60 = vld [vmem:[%s21275_s15 + $0x580] sm:$0xff] }
 0xca1   :  { %v12891_v41 = vpack.c.bf16 %v7737_v24, %v7729_v0  ;;  %v12893_v31 = vpack.c.bf16 %v7754_v23, %v7746_v62  ;;  %v12759_v35 = vpack.c.bf16 %v7751_v2, %v7743_v60  ;;  %v7809_v0 = vld [vmem:[%s21275_s15 + $0x790] sm:$0xff]  ;;  %v7824_v62 = vld [vmem:[%s21275_s15 + $0x808] sm:$0xff]  ;;  %v7826_v23 = vld [vmem:[%s21275_s15 + $0x818] sm:$0xff] }
 0xca2   :  { %v7817_v24 = vld [vmem:[%s21275_s15 + $0x7d0] sm:$0xff]  ;;  %v7834_v2 = vld [vmem:[%s21275_s15 + $0x858] sm:$0xff] }
 0xca3   :  { %12740 = vmatpush1.bf16.msra.mxu0 %v12739_v49  ;;  %12876 = vmatpush1.bf16.msra.mxu1 %v12875_v8  ;;  %v7745_v49 = vld [vmem:[%s21275_s15 + $0x590] sm:$0xff]  ;;  %v12911_v56 = vpack.c.bf16 %v7817_v24, %v7809_v0 }
 0xca4   :  { %12742 = vmatprep.subr.bf16.mxu0 %v12741_v4  ;;  %12878 = vmatprep.subr.bf16.mxu1 %v12877_v10  ;;  %v7753_v8 = vld [vmem:[%s21275_s15 + $0x5d0] sm:$0xff]  ;;  %v7762_v4 = vld [vmem:[%s21275_s15 + $0x618] sm:$0xff]  ;;  %v7767_v10 = vld [vmem:[%s21275_s15 + $0x640] sm:$0xff] }
 0xca5   :  { %v12895_v46 = vpack.c.bf16 %v7753_v8, %v7745_v49  ;;  %v12763_v18 = vpack.c.bf16 %v7767_v10, %v7759_v27 }
 0xca7   :  { %12744 = vmatpush1.bf16.msra.mxu0 %v12743_v59  ;;  %12880 = vmatpush1.bf16.msra.mxu1 %v12879_v54  ;;  %v12897_v59 = vpack.c.bf16 %v7770_v1, %v7762_v4  ;;  %v7769_v54 = vld [vmem:[%s21275_s15 + $0x650] sm:$0xff] }
 0xca8   :  { %12746 = vmatprep.subr.bf16.mxu0 %v12745_v21  ;;  %12882 = vmatprep.subr.bf16.mxu1 %v12881_v15  ;;  %v12899_v43 = vpack.c.bf16 %v7769_v54, %v7761_v20  ;;  %v12765_v21 = vpack.c.bf16 %v7784_v17, %v7776_v47  ;;  %v7775_v15 = vld [vmem:[%s21275_s15 + $0x680] sm:$0xff] }
 0xcab   :  { %12748 = vmatpush1.bf16.msra.mxu0 %v12747_v33  ;;  %12884 = vmatpush1.bf16.msra.mxu1 %v12883_v28  ;;  %v7783_v33 = vld [vmem:[%s21275_s15 + $0x6c0] sm:$0xff]  ;;  %v7785_v28 = vld [vmem:[%s21275_s15 + $0x6d0] sm:$0xff] }
 0xcac   :  { %12750 = vmatprep.subr.bf16.mxu0 %v12749_v58  ;;  %12886 = vmatprep.subr.bf16.mxu1 %v12885_v48  ;;  %v12767_v13 = vpack.c.bf16 %v7783_v33, %v7775_v15  ;;  %v12903_v34 = vpack.c.bf16 %v7785_v28, %v7777_v14  ;;  %v12769_v58 = vpack.c.bf16 %v7800_v9, %v7792_v42  ;;  %v21327_v14 = vld [vmem:[#allocation6_spill] sm:$0xff] }
 0xcad   :  { %v12905_v48 = vpack.c.bf16 %v7802_v52, %v7794_v51 }
 0xcaf   :  { %12752 = vmatpush1.bf16.msra.mxu0 %v12751_v45  ;;  %12888 = vmatpush1.bf16.msra.mxu1 %v12887_v12  ;;  %v7799_v45 = vld [vmem:[%s21275_s15 + $0x740] sm:$0xff] }
 0xcb0   :  { %12754 = vmatprep.subr.bf16.mxu0 %v12753_v38  ;;  %12890 = vmatprep.subr.bf16.mxu1 %v12889_v5  ;;  %v12771_v12 = vpack.c.bf16 %v7799_v45, %v7791_v22  ;;  %v7810_v38 = vld [vmem:[%s21275_s15 + $0x798] sm:$0xff]  ;;  %v7815_v5 = vld [vmem:[%s21275_s15 + $0x7c0] sm:$0xff] }
 0xcb1   :  { %v12775_v36 = vpack.c.bf16 %v7815_v5, %v7807_v29  ;;  %v7823_v45 = vld [vmem:[%s21275_s15 + $0x800] sm:$0xff]  ;;  %v7850_v29 = vld [vmem:[%s21275_s15 + $0x8d8] sm:$0xff] }
 0xcb3   :  { %12756 = vmatpush1.bf16.msra.mxu0 %v12755_v57  ;;  %12892 = vmatpush1.bf16.msra.mxu1 %v12891_v41  ;;  %v12909_v57 = vpack.c.bf16 %v7818_v37, %v7810_v38  ;;  %v7538_v41 = vld [vmem:[%s21273_s13] sm:$0xf]  ;;  %v7840_v38 = vld [vmem:[%s21275_s15 + $0x888] sm:$0xff]  ;;  %v7842_v37 = vld [vmem:[%s21275_s15 + $0x898] sm:$0xff] }
 0xcb4   :  { %12758 = vmatprep.subr.bf16.mxu0 %v12757_v61  ;;  %12894 = vmatprep.subr.bf16.mxu1 %v12893_v31  ;;  %7539 = vst [vmem:[#allocation2] sm:$0xf] %v7538_v41  ;;  %v7832_v61 = vld [vmem:[%s21275_s15 + $0x848] sm:$0xff]  ;;  %v12913_v31 = vpack.c.bf16 %v7834_v2, %v7826_v23  ;;  %v7839_v41 = vld [vmem:[%s21275_s15 + $0x880] sm:$0xff]  ;;  %v12917_v2 = vpack.c.bf16 %v7850_v29, %v7842_v37  ;;  %v7905_v29 = vld [vmem:[%s21275_s15 + $0xa90] sm:$0xff] }
 0xcb5   :  { %v12777_v60 = vpack.c.bf16 %v7832_v61, %v7824_v62  ;;  %v7849_v62 = vld [vmem:[%s21275_s15 + $0x8d0] sm:$0xff]  ;;  %v7856_v61 = vld [vmem:[%s21275_s15 + $0x908] sm:$0xff] }
 0xcb7   :  { %12760 = vmatpush1.bf16.msra.mxu0 %v12759_v35  ;;  %12896 = vmatpush1.bf16.msra.mxu1 %v12895_v46  ;;  %v7500_v35 = vld [vmem:[%s21272_s12] sm:$0x7] }
 0xcb8   :  { %12762 = vmatprep.subr.bf16.mxu0 %v12761_v3  ;;  %12898 = vmatprep.subr.bf16.mxu1 %v12897_v59  ;;  %v7505_v49 = vrot.slane %v7500_v35, %v21323_v26  ;;  %v7509_v8 = vrot.slane %v7500_v35, %v21324_v40  ;;  %v7513_v46 = vrot.slane %v7500_v35, %v21322_v44  ;;  %v7858_v35 = vld [vmem:[%s21275_s15 + $0x918] sm:$0xff] }
 0xcbb   :  { %12764 = vmatpush1.bf16.msra.mxu0 %v12763_v18  ;;  %12900 = vmatpush1.bf16.msra.mxu1 %v12899_v43 }
 0xcbc   :  { %12766 = vmatprep.subr.bf16.mxu0 %v12765_v21  ;;  %12902 = vmatprep.subr.bf16.mxu1 %v12901_v32  ;;  %v13611_v21 = vmov 1983009808  }
 0xcbd   :  { %v7545_v19 = vunpack.c.l.s4 %v13611_v21 }
 0xcbf   :  { %12768 = vmatpush1.bf16.msra.mxu0 %v12767_v13  ;;  %12904 = vmatpush1.bf16.msra.mxu1 %v12903_v34  ;;  %v7546_v25 = vunpack.c.0.s8 %v7545_v19 }
 0xcc0   :  { %12770 = vmatprep.subr.bf16.mxu0 %v12769_v58  ;;  %12906 = vmatprep.subr.bf16.mxu1 %v12905_v48 }
 0xcc1   :  { %v7549_v13 = vsub.s32 %v7546_v25, %v21327_v14  ;;  %v7873_v25 = vld [vmem:[%s21275_s15 + $0x990] sm:$0xff] }
 0xcc3   :  { %12772 = vmatpush1.bf16.msra.mxu0 %v12771_v12  ;;  %12908 = vmatpush1.bf16.msra.mxu1 %v12907_v63  ;;  %v7825_v12 = vld [vmem:[%s21275_s15 + $0x810] sm:$0xff] }
 0xcc4   :  { %12774 = vmatprep.subr.bf16.mxu0 %v12773_v7  ;;  %12910 = vmatprep.subr.bf16.mxu1 %v12909_v57  ;;  %v7833_v63 = vld [vmem:[%s21275_s15 + $0x850] sm:$0xff]  ;;  %v7848_v7 = vld [vmem:[%s21275_s15 + $0x8c8] sm:$0xff]  ;;  %v12779_v57 = vpack.c.bf16 %v7831_v11, %v7823_v45  ;;  %v7906_v11 = vld [vmem:[%s21275_s15 + $0xa98] sm:$0xff] }
 0xcc5   :  { %v12915_v0 = vpack.c.bf16 %v7833_v63, %v7825_v12  ;;  %v7912_v45 = vld [vmem:[%s21275_s15 + $0xac8] sm:$0xff] }
 0xcc7   :  { %12776 = vmatpush1.bf16.msra.mxu0 %v12775_v36  ;;  %12912 = vmatpush1.bf16.msra.mxu1 %v12911_v56  ;;  %v7847_v36 = vld [vmem:[%s21275_s15 + $0x8c0] sm:$0xff]  ;;  %v7841_v56 = vld [vmem:[%s21275_s15 + $0x890] sm:$0xff] }
 0xcc8   :  { %12778 = vmatprep.subr.bf16.mxu0 %v12777_v60  ;;  %12914 = vmatprep.subr.bf16.mxu1 %v12913_v31  ;;  %v12781_v60 = vpack.c.bf16 %v7848_v7, %v7840_v38  ;;  %v7864_v31 = vld [vmem:[%s21275_s15 + $0x948] sm:$0xff]  ;;  %v7911_v38 = vld [vmem:[%s21275_s15 + $0xac0] sm:$0xff] }
 0xd5d   :  { %v7422_v55 = vpop.f32.mrb[74].mxu1  ;;  %v7493_v30 = vpop.f32.mrb[156].mxu0 }
 0xd5e   :  { %v7517_v4 = vadd.f32 %v7505_v49, %v7422_v55  ;;  %v7499_v3 = vadd.f32 %v7493_v30, %v19348_v39  ;;  %v7424_v1 = vpop.f32.mrb[75].mxu1  ;;  %v7495_v27 = vpop.f32.mrb[157].mxu0  ;;  %v7866_v49 = vld [vmem:[%s21275_s15 + $0x958] sm:$0xff]  ;;  %v7855_v55 = vld [vmem:[%s21275_s15 + $0x900] sm:$0xff] }
 0xd5f   :  { %v7518_v10 = vadd.f32 %v7509_v8, %v7424_v1  ;;  %v12783_v8 = vpack.c.bf16 %v7847_v36, %v7839_v41  ;;  %v7863_v30 = vld [vmem:[%s21275_s15 + $0x940] sm:$0xff]  ;;  %v7857_v1 = vld [vmem:[%s21275_s15 + $0x910] sm:$0xff]  ;;  %v7928_v41 = vld [vmem:[%s21275_s15 + $0xb48] sm:$0xff] }
 0xd60   :  { %v7523_v59 = vmin.f32 %v7517_v4, 0.0  ;;  %v7519_v18 = vadd.f32 %v7513_v46, %v7499_v3  ;;  %vm7520_vm3 = vcmp.gt.f32.partialorder %v7517_v4, 0.0  ;;  %v12919_v46 = vpack.c.bf16 %v7849_v62, %v7841_v56  ;;  %v7865_v27 = vld [vmem:[%s21275_s15 + $0x950] sm:$0xff]  ;;  %v7922_v36 = vld [vmem:[%s21275_s15 + $0xb18] sm:$0xff] }
 0xd61   :  { %v7524_v20 = vmin.f32 %v7518_v10, 0.0  ;;  %vm7521_vm5 = vcmp.gt.f32.partialorder %v7518_v10, 0.0  ;;  %v12921_v3 = vpack.c.bf16 %v7866_v49, %v7858_v35  ;;  %v7930_v56 = vld [vmem:[%s21275_s15 + $0xb58] sm:$0xff]  ;;  %v7921_v49 = vld [vmem:[%s21275_s15 + $0xb10] sm:$0xff] }
 0xd62   :  { %v7526_v54 = vmul.f32 1.442695, %v7523_v59  ;;  %v7525_v43 = vmin.f32 %v7519_v18, 0.0  ;;  %vm7522_vm7 = vcmp.gt.f32.partialorder %v7519_v18, 0.0  ;;  %v7880_v59 = vld [vmem:[%s21275_s15 + $0x9c8] sm:$0xff]  ;;  %v12937_v35 = vpack.c.bf16 %v7930_v56, %v7922_v36  ;;  %v7985_v56 = vld [vmem:[%s21275_s15 + $0xd10] sm:$0xff] }
 0xd63   :  { %v7528_v47 = vmul.f32 1.442695, %v7524_v20  ;;  %v7882_v20 = vld [vmem:[%s21275_s15 + $0x9d8] sm:$0xff] }
 0xd64   :  { %13544 = vpow2.f32 %v7526_v54  ;;  %v7530_v17 = vmul.f32 1.442695, %v7525_v43  ;;  %v12787_v54 = vpack.c.bf16 %v7863_v30, %v7855_v55  ;;  %v12923_v43 = vpack.c.bf16 %v7865_v27, %v7857_v1  ;;  %v7944_v55 = vld [vmem:[%s21275_s15 + $0xbc8] sm:$0xff]  ;;  %v7938_v30 = vld [vmem:[%s21275_s15 + $0xb98] sm:$0xff]  ;;  %v7935_v27 = vld [vmem:[%s21275_s15 + $0xb80] sm:$0xff] }
 0xd65   :  { %13546 = vpow2.f32 %v7528_v47  ;;  %v7871_v47 = vld [vmem:[%s21275_s15 + $0x980] sm:$0xff] }
 0xd66   :  { %13548 = vpow2.f32 %v7530_v17  ;;  %v7879_v17 = vld [vmem:[%s21275_s15 + $0x9c0] sm:$0xff] }
 0xd6e   :  { %v13545_v32 = vpop.eup %13544 }
 0xd6f   :  { %v13547_v15 = vpop.eup %13546  ;;  %v10528_v33 = vadd.f32 -1.0, %v13545_v32  ;;  %v7881_v32 = vld [vmem:[%s21275_s15 + $0x9d0] sm:$0xff] }
 0xd70   :  { %v13549_v39 = vpop.eup %13548  ;;  %v10529_v28 = vadd.f32 -1.0, %v13547_v15  ;;  %v7888_v15 = vld [vmem:[%s21275_s15 + $0xa08] sm:$0xff] }
 0xd71   :  { %v7535_v42 = vsel %vm7520_vm3, %v7517_v4, %v10528_v33  ;;  %v10530_v9 = vadd.f32 -1.0, %v13549_v39  ;;  %v12785_v4 = vpack.c.bf16 %v7864_v31, %v7856_v61  ;;  %v7896_v33 = vld [vmem:[%s21275_s15 + $0xa48] sm:$0xff]  ;;  %v7890_v39 = vld [vmem:[%s21275_s15 + $0xa18] sm:$0xff] }
 0xd72   :  { %v7536_v34 = vsel %vm7521_vm5, %v7518_v10, %v10529_v28  ;;  %v7872_v10 = vld [vmem:[%s21275_s15 + $0x988] sm:$0xff]  ;;  %v12791_v28 = vpack.c.bf16 %v7879_v17, %v7871_v47  ;;  %v7954_v17 = vld [vmem:[%s21275_s15 + $0xc18] sm:$0xff] }
 0xd73   :  { %v7537_v58 = vsel %vm7522_vm7, %v7519_v18, %v10530_v9  ;;  %v7543_v51 = vcombine.low %v7535_v42, %v7536_v34  ;;  %v7874_v18 = vld [vmem:[%s21275_s15 + $0x998] sm:$0xff]  ;;  %v12789_v21 = vpack.c.bf16 %v7880_v59, %v7872_v10  ;;  %v12927_v42 = vpack.c.bf16 %v7881_v32, %v7873_v25  ;;  %v7887_v9 = vld [vmem:[%s21275_s15 + $0xa00] sm:$0xff]  ;;  %v7960_v47 = vld [vmem:[%s21275_s15 + $0xc48] sm:$0xff] }
 0xd74   :  { %v7557_v52 = vrot.slane %v7537_v58, %v7549_v13  ;;  %v12925_v19 = vpack.c.bf16 %v7882_v20, %v7874_v18  ;;  %v7895_v34 = vld [vmem:[%s21275_s15 + $0xa40] sm:$0xff]  ;;  %v12793_v58 = vpack.c.bf16 %v7896_v33, %v7888_v15  ;;  %v7937_v20 = vld [vmem:[%s21275_s15 + $0xb90] sm:$0xff] }
 0xd75   :  { %v7550_v22 = vrot.slane %v7543_v51, %v7549_v13  ;;  %v12795_v12 = vpack.c.bf16 %v7895_v34, %v7887_v9  ;;  %v7943_v10 = vld [vmem:[%s21275_s15 + $0xbc0] sm:$0xff]  ;;  %v7976_v9 = vld [vmem:[%s21275_s15 + $0xcc8] sm:$0xff]  ;;  %v7970_v34 = vld [vmem:[%s21275_s15 + $0xc98] sm:$0xff] }
 0xd76   :  { %v7951_v32 = vld [vmem:[%s21275_s15 + $0xc00] sm:$0xff] }
 0xd77   :  { %v7558_v48 = vcombine.low %v7550_v22, %v7557_v52  ;;  %v7889_v52 = vld [vmem:[%s21275_s15 + $0xa10] sm:$0xff]  ;;  %v7959_v15 = vld [vmem:[%s21275_s15 + $0xc40] sm:$0xff] }
 0xd78   :  { %v7897_v22 = vld [vmem:[%s21275_s15 + $0xa50] sm:$0xff] }
 0xd79   :  { %7564 = vst.msk [vmem:[#allocation2 + $0x4] sm:$0x3f] %vm7563_vm10, %v7558_v48  ;;  %v7904_v48 = vld [vmem:[%s21275_s15 + $0xa88] sm:$0xff]  ;;  %v12931_v63 = vpack.c.bf16 %v7897_v22, %v7889_v52  ;;  %v7967_v22 = vld [vmem:[%s21275_s15 + $0xc80] sm:$0xff] }
 0xd7a   :  { %v12797_v7 = vpack.c.bf16 %v7912_v45, %v7904_v48  ;;  %v7975_v48 = vld [vmem:[%s21275_s15 + $0xcc0] sm:$0xff] }
 0xd80   :  { %v7565_v16 = vld [vmem:[#allocation2] sm:$0xff] }
 0xd81   :  { %v19754_v50 = vrot.slane %v7565_v16, %v7549_v13  ;;  %v8155_v6 = vcombine.high %v7565_v16, %v7565_v16  ;;  %v7914_v16 = vld [vmem:[%s21275_s15 + $0xad8] sm:$0xff] }
 0xd82   :  { %v12933_v37 = vpack.c.bf16 %v7914_v16, %v7906_v11  ;;  %v7969_v16 = vld [vmem:[%s21275_s15 + $0xc90] sm:$0xff] }
 0xd83   :  { %v19770_v5 = vcombine.high %v19754_v50, %v19754_v50  ;;  %v19772_v24 = vrot.slane %v8155_v6, %v7549_v13  ;;  %v7898_v13 = vld [vmem:[%s21275_s15 + $0xa58] sm:$0xff]  ;;  %v7903_v6 = vld [vmem:[%s21275_s15 + $0xa80] sm:$0xff] }
 0xd84   :  { %v12929_v51 = vpack.c.bf16 %v7898_v13, %v7890_v39  ;;  %v12799_v62 = vpack.c.bf16 %v7911_v38, %v7903_v6  ;;  %v7953_v13 = vld [vmem:[%s21275_s15 + $0xc10] sm:$0xff]  ;;  %v7992_v6 = vld [vmem:[%s21275_s15 + $0xd48] sm:$0xff]  ;;  %v7986_v38 = vld [vmem:[%s21275_s15 + $0xd18] sm:$0xff] }
 0xd85   :  { %8249 = vmatprep.mubr.f32.mxu0 %v19770_v5  ;;  %8462 = vmatprep.mubr.f32.mxu1 %v19770_v5  ;;  %v19793_v23 = vcombine.high %v19772_v24, %v19772_v24 }
 0xd86   :  { %8250 = vmatmul.mubr.f32.vlgmr.msra.gmra.mrb[158].mxu0 %v19754_v50  ;;  %8463 = vmatmul.mubr.f32.vlgmr.msra.gmra.mrb[80].mxu1 %v19754_v50 }
 0xd87   :  { %12780 = vmatpush1.bf16.msra.mxu0 %v12779_v57  ;;  %12916 = vmatpush1.bf16.msra.mxu1 %v12915_v0  ;;  %v7913_v57 = vld [vmem:[%s21275_s15 + $0xad0] sm:$0xff]  ;;  %v7920_v0 = vld [vmem:[%s21275_s15 + $0xb08] sm:$0xff] }
 0xd88   :  { %8320 = vmatprep.mubr.f32.mxu0 %v19793_v23  ;;  %8533 = vmatprep.mubr.f32.mxu1 %v19793_v23  ;;  %v12935_v61 = vpack.c.bf16 %v7913_v57, %v7905_v29  ;;  %v12801_v31 = vpack.c.bf16 %v7928_v41, %v7920_v0  ;;  %v7983_v57 = vld [vmem:[%s21275_s15 + $0xd00] sm:$0xff] }
 0xd89   :  { %12782 = vmatprep.subr.bf16.mxu0 %v12781_v60  ;;  %12918 = vmatprep.subr.bf16.mxu1 %v12917_v2  ;;  %v7919_v60 = vld [vmem:[%s21275_s15 + $0xb00] sm:$0xff] }
 0xd8a   :  { %v7927_v2 = vld [vmem:[%s21275_s15 + $0xb40] sm:$0xff] }
 0xd8b   :  { %12784 = vmatpush1.bf16.msra.mxu0 %v12783_v8  ;;  %12920 = vmatpush1.bf16.msra.mxu1 %v12919_v46  ;;  %v7929_v8 = vld [vmem:[%s21275_s15 + $0xb50] sm:$0xff]  ;;  %v7936_v46 = vld [vmem:[%s21275_s15 + $0xb88] sm:$0xff]  ;;  %v7991_v0 = vld [vmem:[%s21275_s15 + $0xd40] sm:$0xff] }
 0xd8c   :  { %12786 = vmatprep.subr.bf16.mxu0 %v12785_v4  ;;  %12922 = vmatprep.subr.bf16.mxu1 %v12921_v3  ;;  %v7946_v4 = vld [vmem:[%s21275_s15 + $0xbd8] sm:$0xff]  ;;  %v12803_v3 = vpack.c.bf16 %v7927_v2, %v7919_v60  ;;  %v12939_v1 = vpack.c.bf16 %v7929_v8, %v7921_v49  ;;  %v12805_v59 = vpack.c.bf16 %v7944_v55, %v7936_v46  ;;  %v8008_v60 = vld [vmem:[%s21275_s15 + $0xdc8] sm:$0xff]  ;;  %v7999_v8 = vld [vmem:[%s21275_s15 + $0xd80] sm:$0xff] }
 0xd8d   :  { %v12941_v18 = vpack.c.bf16 %v7946_v4, %v7938_v30  ;;  %v8002_v2 = vld [vmem:[%s21275_s15 + $0xd98] sm:$0xff]  ;;  %v8007_v46 = vld [vmem:[%s21275_s15 + $0xdc0] sm:$0xff]  ;;  %v8001_v4 = vld [vmem:[%s21275_s15 + $0xd90] sm:$0xff] }
 0xd8f   :  { %12788 = vmatpush1.bf16.msra.mxu0 %v12787_v54  ;;  %12924 = vmatpush1.bf16.msra.mxu1 %v12923_v43  ;;  %v7945_v54 = vld [vmem:[%s21275_s15 + $0xbd0] sm:$0xff]  ;;  %v7952_v43 = vld [vmem:[%s21275_s15 + $0xc08] sm:$0xff] }
 0xd90   :  { %12790 = vmatprep.subr.bf16.mxu0 %v12789_v21  ;;  %12926 = vmatprep.subr.bf16.mxu1 %v12925_v19  ;;  %v7962_v21 = vld [vmem:[%s21275_s15 + $0xc58] sm:$0xff]  ;;  %v12807_v19 = vpack.c.bf16 %v7943_v10, %v7935_v27  ;;  %v12943_v25 = vpack.c.bf16 %v7945_v54, %v7937_v20  ;;  %v12809_v33 = vpack.c.bf16 %v7960_v47, %v7952_v43  ;;  %v8024_v27 = vld [vmem:[%s21275_s15 + $0xe48] sm:$0xff]  ;;  %v8015_v54 = vld [vmem:[%s21275_s15 + $0xe00] sm:$0xff] }
 0xd91   :  { %v12945_v39 = vpack.c.bf16 %v7962_v21, %v7954_v17  ;;  %v8018_v10 = vld [vmem:[%s21275_s15 + $0xe18] sm:$0xff]  ;;  %v8023_v43 = vld [vmem:[%s21275_s15 + $0xe40] sm:$0xff]  ;;  %v8017_v21 = vld [vmem:[%s21275_s15 + $0xe10] sm:$0xff] }
 0xd93   :  { %12792 = vmatpush1.bf16.msra.mxu0 %v12791_v28  ;;  %12928 = vmatpush1.bf16.msra.mxu1 %v12927_v42  ;;  %v7961_v28 = vld [vmem:[%s21275_s15 + $0xc50] sm:$0xff]  ;;  %v7968_v42 = vld [vmem:[%s21275_s15 + $0xc88] sm:$0xff] }
 0xd94   :  { %12794 = vmatprep.subr.bf16.mxu0 %v12793_v58  ;;  %12930 = vmatprep.subr.bf16.mxu1 %v12929_v51  ;;  %v7978_v58 = vld [vmem:[%s21275_s15 + $0xcd8] sm:$0xff]  ;;  %v12811_v51 = vpack.c.bf16 %v7959_v15, %v7951_v32  ;;  %v12947_v52 = vpack.c.bf16 %v7961_v28, %v7953_v13  ;;  %v12813_v45 = vpack.c.bf16 %v7976_v9, %v7968_v42  ;;  %v8040_v32 = vld [vmem:[%s21275_s15 + $0xec8] sm:$0xff]  ;;  %v8031_v28 = vld [vmem:[%s21275_s15 + $0xe80] sm:$0xff] }
 0xd95   :  { %v12949_v11 = vpack.c.bf16 %v7978_v58, %v7970_v34  ;;  %v8034_v15 = vld [vmem:[%s21275_s15 + $0xe98] sm:$0xff]  ;;  %v8039_v42 = vld [vmem:[%s21275_s15 + $0xec0] sm:$0xff]  ;;  %v8033_v58 = vld [vmem:[%s21275_s15 + $0xe90] sm:$0xff] }
 0xd97   :  { %12796 = vmatpush1.bf16.msra.mxu0 %v12795_v12  ;;  %12932 = vmatpush1.bf16.msra.mxu1 %v12931_v63  ;;  %v7977_v12 = vld [vmem:[%s21275_s15 + $0xcd0] sm:$0xff]  ;;  %v7984_v63 = vld [vmem:[%s21275_s15 + $0xd08] sm:$0xff] }
 0xd98   :  { %12798 = vmatprep.subr.bf16.mxu0 %v12797_v7  ;;  %12934 = vmatprep.subr.bf16.mxu1 %v12933_v37  ;;  %v7994_v7 = vld [vmem:[%s21275_s15 + $0xd58] sm:$0xff]  ;;  %v12815_v37 = vpack.c.bf16 %v7975_v48, %v7967_v22  ;;  %v12951_v29 = vpack.c.bf16 %v7977_v12, %v7969_v16  ;;  %v12817_v41 = vpack.c.bf16 %v7992_v6, %v7984_v63  ;;  %v8056_v22 = vld [vmem:[%s21275_s15 + $0xf48] sm:$0xff]  ;;  %v8047_v12 = vld [vmem:[%s21275_s15 + $0xf00] sm:$0xff] }
 0xd99   :  { %v12953_v36 = vpack.c.bf16 %v7994_v7, %v7986_v38  ;;  %v8050_v48 = vld [vmem:[%s21275_s15 + $0xf18] sm:$0xff]  ;;  %v8055_v63 = vld [vmem:[%s21275_s15 + $0xf40] sm:$0xff]  ;;  %v8049_v7 = vld [vmem:[%s21275_s15 + $0xf10] sm:$0xff] }
 0xd9b   :  { %12800 = vmatpush1.bf16.msra.mxu0 %v12799_v62  ;;  %12936 = vmatpush1.bf16.msra.mxu1 %v12935_v61  ;;  %v7993_v62 = vld [vmem:[%s21275_s15 + $0xd50] sm:$0xff]  ;;  %v8000_v61 = vld [vmem:[%s21275_s15 + $0xd88] sm:$0xff] }
 0xd9c   :  { %12802 = vmatprep.subr.bf16.mxu0 %v12801_v31  ;;  %12938 = vmatprep.subr.bf16.mxu1 %v12937_v35  ;;  %v8010_v31 = vld [vmem:[%s21275_s15 + $0xdd8] sm:$0xff]  ;;  %v12819_v35 = vpack.c.bf16 %v7991_v0, %v7983_v57  ;;  %v12955_v49 = vpack.c.bf16 %v7993_v62, %v7985_v56  ;;  %v12821_v55 = vpack.c.bf16 %v8008_v60, %v8000_v61  ;;  %v8072_v57 = vld [vmem:[%s21275_s15 + $0xfc8] sm:$0xff]  ;;  %v8063_v62 = vld [vmem:[%s21275_s15 + $0xf80] sm:$0xff] }
 0xd9d   :  { %v12957_v30 = vpack.c.bf16 %v8010_v31, %v8002_v2  ;;  %v8066_v0 = vld [vmem:[%s21275_s15 + $0xf98] sm:$0xff]  ;;  %v8071_v61 = vld [vmem:[%s21275_s15 + $0xfc0] sm:$0xff]  ;;  %v8065_v31 = vld [vmem:[%s21275_s15 + $0xf90] sm:$0xff] }
 0xd9f   :  { %12804 = vmatpush1.bf16.msra.mxu0 %v12803_v3  ;;  %12940 = vmatpush1.bf16.msra.mxu1 %v12939_v1  ;;  %v8009_v3 = vld [vmem:[%s21275_s15 + $0xdd0] sm:$0xff]  ;;  %v8016_v1 = vld [vmem:[%s21275_s15 + $0xe08] sm:$0xff] }
 0xda0   :  { %12806 = vmatprep.subr.bf16.mxu0 %v12805_v59  ;;  %12942 = vmatprep.subr.bf16.mxu1 %v12941_v18  ;;  %v8026_v59 = vld [vmem:[%s21275_s15 + $0xe58] sm:$0xff]  ;;  %v12823_v18 = vpack.c.bf16 %v8007_v46, %v7999_v8  ;;  %v12959_v20 = vpack.c.bf16 %v8009_v3, %v8001_v4  ;;  %v12825_v47 = vpack.c.bf16 %v8024_v27, %v8016_v1  ;;  %v8088_v8 = vld [vmem:[%s21275_s15 + $0x1048] sm:$0xff]  ;;  %v8079_v3 = vld [vmem:[%s21275_s15 + $0x1000] sm:$0xff] }
 0xda1   :  { %v12961_v17 = vpack.c.bf16 %v8026_v59, %v8018_v10  ;;  %v8082_v46 = vld [vmem:[%s21275_s15 + $0x1018] sm:$0xff]  ;;  %v8087_v1 = vld [vmem:[%s21275_s15 + $0x1040] sm:$0xff]  ;;  %v8081_v59 = vld [vmem:[%s21275_s15 + $0x1010] sm:$0xff] }
 0xda3   :  { %12808 = vmatpush1.bf16.msra.mxu0 %v12807_v19  ;;  %12944 = vmatpush1.bf16.msra.mxu1 %v12943_v25  ;;  %v8025_v19 = vld [vmem:[%s21275_s15 + $0xe50] sm:$0xff]  ;;  %v8032_v25 = vld [vmem:[%s21275_s15 + $0xe88] sm:$0xff] }
 0xda4   :  { %12810 = vmatprep.subr.bf16.mxu0 %v12809_v33  ;;  %12946 = vmatprep.subr.bf16.mxu1 %v12945_v39  ;;  %v8042_v33 = vld [vmem:[%s21275_s15 + $0xed8] sm:$0xff]  ;;  %v12827_v39 = vpack.c.bf16 %v8023_v43, %v8015_v54  ;;  %v12963_v13 = vpack.c.bf16 %v8025_v19, %v8017_v21  ;;  %v12829_v9 = vpack.c.bf16 %v8040_v32, %v8032_v25  ;;  %v8104_v54 = vld [vmem:[%s21275_s15 + $0x10c8] sm:$0xff]  ;;  %v8095_v19 = vld [vmem:[%s21275_s15 + $0x1080] sm:$0xff] }
 0xda5   :  { %v12965_v34 = vpack.c.bf16 %v8042_v33, %v8034_v15  ;;  %v8098_v43 = vld [vmem:[%s21275_s15 + $0x1098] sm:$0xff]  ;;  %v8103_v25 = vld [vmem:[%s21275_s15 + $0x10c0] sm:$0xff]  ;;  %v8097_v33 = vld [vmem:[%s21275_s15 + $0x1090] sm:$0xff] }
 0xda7   :  { %12812 = vmatpush1.bf16.msra.mxu0 %v12811_v51  ;;  %12948 = vmatpush1.bf16.msra.mxu1 %v12947_v52  ;;  %v8041_v51 = vld [vmem:[%s21275_s15 + $0xed0] sm:$0xff]  ;;  %v8048_v52 = vld [vmem:[%s21275_s15 + $0xf08] sm:$0xff] }
 0xda8   :  { %12814 = vmatprep.subr.bf16.mxu0 %v12813_v45  ;;  %12950 = vmatprep.subr.bf16.mxu1 %v12949_v11  ;;  %v8058_v45 = vld [vmem:[%s21275_s15 + $0xf58] sm:$0xff]  ;;  %v12831_v11 = vpack.c.bf16 %v8039_v42, %v8031_v28  ;;  %v12967_v16 = vpack.c.bf16 %v8041_v51, %v8033_v58  ;;  %v12833_v6 = vpack.c.bf16 %v8056_v22, %v8048_v52  ;;  %v7580_v28 = vld [vmem:[%s21275_s15 + $0x68] sm:$0xff]  ;;  %v7571_v22 = vld [vmem:[%s21275_s15 + $0x20] sm:$0xff] }
 0xda9   :  { %v12969_v38 = vpack.c.bf16 %v8058_v45, %v8050_v48  ;;  %v7574_v42 = vld [vmem:[%s21275_s15 + $0x38] sm:$0xff]  ;;  %v7579_v48 = vld [vmem:[%s21275_s15 + $0x60] sm:$0xff]  ;;  %v7573_v45 = vld [vmem:[%s21275_s15 + $0x30] sm:$0xff] }
 0xdab   :  { %12816 = vmatpush1.bf16.msra.mxu0 %v12815_v37  ;;  %12952 = vmatpush1.bf16.msra.mxu1 %v12951_v29  ;;  %v8057_v37 = vld [vmem:[%s21275_s15 + $0xf50] sm:$0xff]  ;;  %v8064_v29 = vld [vmem:[%s21275_s15 + $0xf88] sm:$0xff] }
 0xdac   :  { %12818 = vmatprep.subr.bf16.mxu0 %v12817_v41  ;;  %12954 = vmatprep.subr.bf16.mxu1 %v12953_v36  ;;  %v8074_v41 = vld [vmem:[%s21275_s15 + $0xfd8] sm:$0xff]  ;;  %v12835_v36 = vpack.c.bf16 %v8055_v63, %v8047_v12  ;;  %v12971_v56 = vpack.c.bf16 %v8057_v37, %v8049_v7  ;;  %v12837_v60 = vpack.c.bf16 %v8072_v57, %v8064_v29  ;;  %v7596_v12 = vld [vmem:[%s21275_s15 + $0xe8] sm:$0xff]  ;;  %v7587_v7 = vld [vmem:[%s21275_s15 + $0xa0] sm:$0xff] }
 0xdad   :  { %v12973_v2 = vpack.c.bf16 %v8074_v41, %v8066_v0  ;;  %v7590_v63 = vld [vmem:[%s21275_s15 + $0xb8] sm:$0xff]  ;;  %v7595_v29 = vld [vmem:[%s21275_s15 + $0xe0] sm:$0xff]  ;;  %v7589_v57 = vld [vmem:[%s21275_s15 + $0xb0] sm:$0xff] }
 0xdae   :  { %v7597_v0 = vld [vmem:[%s21275_s15 + $0xf0] sm:$0xff]  ;;  %v10531_v41 = vld.sshfl [vmem:[#allocation2 + $0x8] sm:$0x3 pattern:$0x76325410] }
 0xdaf   :  { %12820 = vmatpush1.bf16.msra.mxu0 %v12819_v35  ;;  %12956 = vmatpush1.bf16.msra.mxu1 %v12955_v49  ;;  %v8073_v35 = vld [vmem:[%s21275_s15 + $0xfd0] sm:$0xff]  ;;  %v8080_v49 = vld [vmem:[%s21275_s15 + $0x1008] sm:$0xff] }
 0xdb0   :  { %12822 = vmatprep.subr.bf16.mxu0 %v12821_v55  ;;  %12958 = vmatprep.subr.bf16.mxu1 %v12957_v30  ;;  %v8090_v55 = vld [vmem:[%s21275_s15 + $0x1058] sm:$0xff]  ;;  %v12839_v30 = vpack.c.bf16 %v8071_v61, %v8063_v62  ;;  %v12975_v4 = vpack.c.bf16 %v8073_v35, %v8065_v31  ;;  %v12841_v27 = vpack.c.bf16 %v8088_v8, %v8080_v49  ;;  %v7604_v62 = vld [vmem:[%s21275_s15 + $0x128] sm:$0xff]  ;;  %v7603_v8 = vld [vmem:[%s21275_s15 + $0x120] sm:$0xff] }
 0xdb1   :  { %v12977_v10 = vpack.c.bf16 %v8090_v55, %v8082_v46  ;;  %v7612_v61 = vld [vmem:[%s21275_s15 + $0x168] sm:$0xff]  ;;  %v12991_v31 = vpack.c.bf16 %v7595_v29, %v7587_v7  ;;  %v13127_v35 = vpack.c.bf16 %v7597_v0, %v7589_v57  ;;  %v7611_v46 = vld [vmem:[%s21275_s15 + $0x160] sm:$0xff]  ;;  %v7605_v55 = vld [vmem:[%s21275_s15 + $0x130] sm:$0xff] }
 0xdb2   :  { %v12993_v49 = vpack.c.bf16 %v7612_v61, %v7604_v62  ;;  %v7668_v7 = vld [vmem:[%s21275_s15 + $0x328] sm:$0xff]  ;;  %v7670_v29 = vld [vmem:[%s21275_s15 + $0x338] sm:$0xff]  ;;  %v7675_v62 = vld [vmem:[%s21275_s15 + $0x360] sm:$0xff] }
 0xdb3   :  { %12824 = vmatpush1.bf16.msra.mxu0 %v12823_v18  ;;  %12960 = vmatpush1.bf16.msra.mxu1 %v12959_v20  ;;  %v8089_v18 = vld [vmem:[%s21275_s15 + $0x1050] sm:$0xff]  ;;  %v8096_v20 = vld [vmem:[%s21275_s15 + $0x1088] sm:$0xff]  ;;  %v7678_v57 = vld [vmem:[%s21275_s15 + $0x378] sm:$0xff] }
 0xdb4   :  { %12826 = vmatprep.subr.bf16.mxu0 %v12825_v47  ;;  %12962 = vmatprep.subr.bf16.mxu1 %v12961_v17  ;;  %v8106_v47 = vld [vmem:[%s21275_s15 + $0x10d8] sm:$0xff]  ;;  %v12843_v17 = vpack.c.bf16 %v8087_v1, %v8079_v3  ;;  %v12979_v21 = vpack.c.bf16 %v8089_v18, %v8081_v59  ;;  %v12845_v32 = vpack.c.bf16 %v8104_v54, %v8096_v20  ;;  %v7628_v3 = vld [vmem:[%s21275_s15 + $0x1e8] sm:$0xff]  ;;  %v7619_v20 = vld [vmem:[%s21275_s15 + $0x1a0] sm:$0xff] }
 0xdb5   :  { %v12981_v15 = vpack.c.bf16 %v8106_v47, %v8098_v43  ;;  %v7622_v1 = vld [vmem:[%s21275_s15 + $0x1b8] sm:$0xff]  ;;  %v7627_v54 = vld [vmem:[%s21275_s15 + $0x1e0] sm:$0xff]  ;;  %v7621_v43 = vld [vmem:[%s21275_s15 + $0x1b0] sm:$0xff] }
 0xdb6   :  { %v7669_v61 = vld [vmem:[%s21275_s15 + $0x330] sm:$0xff] }
 0xdb7   :  { %12828 = vmatpush1.bf16.msra.mxu0 %v12827_v39  ;;  %12964 = vmatpush1.bf16.msra.mxu1 %v12963_v13  ;;  %v8105_v39 = vld [vmem:[%s21275_s15 + $0x10d0] sm:$0xff]  ;;  %v7572_v13 = vld [vmem:[%s21275_s15 + $0x28] sm:$0xff] }
 0xdb8   :  { %12830 = vmatprep.subr.bf16.mxu0 %v12829_v9  ;;  %12966 = vmatprep.subr.bf16.mxu1 %v12965_v34  ;;  %v7582_v9 = vld [vmem:[%s21275_s15 + $0x78] sm:$0xff]  ;;  %v12847_v34 = vpack.c.bf16 %v8103_v25, %v8095_v19  ;;  %v12983_v58 = vpack.c.bf16 %v8105_v39, %v8097_v33  ;;  %v12985_v51 = vpack.c.bf16 %v7580_v28, %v7572_v13  ;;  %v7644_v19 = vld [vmem:[%s21275_s15 + $0x268] sm:$0xff]  ;;  %v7635_v13 = vld [vmem:[%s21275_s15 + $0x220] sm:$0xff] }
 0xdb9   :  { %v13121_v52 = vpack.c.bf16 %v7582_v9, %v7574_v42  ;;  %v7638_v25 = vld [vmem:[%s21275_s15 + $0x238] sm:$0xff]  ;;  %v7643_v28 = vld [vmem:[%s21275_s15 + $0x260] sm:$0xff]  ;;  %v7637_v42 = vld [vmem:[%s21275_s15 + $0x230] sm:$0xff] }
 0xdbb   :  { %12832 = vmatpush1.bf16.msra.mxu0 %v12831_v11  ;;  %12968 = vmatpush1.bf16.msra.mxu1 %v12967_v16  ;;  %v7581_v11 = vld [vmem:[%s21275_s15 + $0x70] sm:$0xff]  ;;  %v7588_v16 = vld [vmem:[%s21275_s15 + $0xa8] sm:$0xff] }
 0xdbc   :  { %12834 = vmatprep.subr.bf16.mxu0 %v12833_v6  ;;  %12970 = vmatprep.subr.bf16.mxu1 %v12969_v38  ;;  %v7598_v6 = vld [vmem:[%s21275_s15 + $0xf8] sm:$0xff]  ;;  %v12987_v38 = vpack.c.bf16 %v7579_v48, %v7571_v22  ;;  %v13123_v37 = vpack.c.bf16 %v7581_v11, %v7573_v45  ;;  %v13003_v48 = vpack.c.bf16 %v7643_v28, %v7635_v13 }
 0xdbd   :  { %v7662_v22 = vld [vmem:[%s21275_s15 + $0x2f8] sm:$0xff] }
 0xdbe   :  { %v7726_v13 = vld [vmem:[%s21275_s15 + $0x4f8] sm:$0xff] }
 0xdbf   :  { %12836 = vmatpush1.bf16.msra.mxu0 %v12835_v36  ;;  %12972 = vmatpush1.bf16.msra.mxu1 %v12971_v56  ;;  %v12989_v36 = vpack.c.bf16 %v7596_v12, %v7588_v16  ;;  %v13125_v56 = vpack.c.bf16 %v7598_v6, %v7590_v63  ;;  %v7651_v16 = vld [vmem:[%s21275_s15 + $0x2a0] sm:$0xff]  ;;  %v7653_v63 = vld [vmem:[%s21275_s15 + $0x2b0] sm:$0xff] }
 0xdc0   :  { %12838 = vmatprep.subr.bf16.mxu0 %v12837_v60  ;;  %12974 = vmatprep.subr.bf16.mxu1 %v12973_v2  ;;  %v7606_v60 = vld [vmem:[%s21275_s15 + $0x138] sm:$0xff]  ;;  %v7659_v12 = vld [vmem:[%s21275_s15 + $0x2e0] sm:$0xff] }
 0xdc1   :  { %v7614_v2 = vld [vmem:[%s21275_s15 + $0x178] sm:$0xff]  ;;  %v13007_v0 = vpack.c.bf16 %v7659_v12, %v7651_v16 }
 0xdc2   :  { %v7742_v16 = vld [vmem:[%s21275_s15 + $0x578] sm:$0xff] }
 0xdc3   :  { %12840 = vmatpush1.bf16.msra.mxu0 %v12839_v30  ;;  %12976 = vmatpush1.bf16.msra.mxu1 %v12975_v4  ;;  %v13129_v30 = vpack.c.bf16 %v7614_v2, %v7606_v60  ;;  %v7620_v4 = vld [vmem:[%s21275_s15 + $0x1a8] sm:$0xff]  ;;  %v13145_v60 = vpack.c.bf16 %v7678_v57, %v7670_v29  ;;  %v7677_v2 = vld [vmem:[%s21275_s15 + $0x370] sm:$0xff] }
 0xdc4   :  { %12842 = vmatprep.subr.bf16.mxu0 %v12841_v27  ;;  %12978 = vmatprep.subr.bf16.mxu1 %v12977_v10  ;;  %v7630_v27 = vld [vmem:[%s21275_s15 + $0x1f8] sm:$0xff]  ;;  %v12995_v10 = vpack.c.bf16 %v7611_v46, %v7603_v8  ;;  %v12997_v18 = vpack.c.bf16 %v7628_v3, %v7620_v4  ;;  %v7691_v4 = vld [vmem:[%s21275_s15 + $0x3e0] sm:$0xff]  ;;  %v7685_v3 = vld [vmem:[%s21275_s15 + $0x3b0] sm:$0xff] }
 0xdc5   :  { %v13133_v47 = vpack.c.bf16 %v7630_v27, %v7622_v1  ;;  %v7694_v8 = vld [vmem:[%s21275_s15 + $0x3f8] sm:$0xff]  ;;  %v7693_v27 = vld [vmem:[%s21275_s15 + $0x3f0] sm:$0xff] }
 0xdc6   :  { %8321 = vmatmul.mubr.f32.vlgmr.msra.gmra.mrb[158].mxu0 %v19772_v24  ;;  %8534 = vmatmul.mubr.f32.vlgmr.msra.gmra.mrb[80].mxu1 %v19772_v24  ;;  %v7741_v57 = vld [vmem:[%s21275_s15 + $0x570] sm:$0xff] }
 0xdc7   :  { %12844 = vmatpush1.bf16.msra.mxu0 %v12843_v17  ;;  %12980 = vmatpush1.bf16.msra.mxu1 %v12979_v21  ;;  %v7629_v17 = vld [vmem:[%s21275_s15 + $0x1f0] sm:$0xff]  ;;  %v7636_v21 = vld [vmem:[%s21275_s15 + $0x228] sm:$0xff] }
 0xdc8   :  { %12846 = vmatprep.subr.bf16.mxu0 %v12845_v32  ;;  %12982 = vmatprep.subr.bf16.mxu1 %v12981_v15  ;;  %v7646_v32 = vld [vmem:[%s21275_s15 + $0x278] sm:$0xff]  ;;  %v12999_v15 = vpack.c.bf16 %v7627_v54, %v7619_v20  ;;  %v13135_v33 = vpack.c.bf16 %v7629_v17, %v7621_v43  ;;  %v13001_v39 = vpack.c.bf16 %v7644_v19, %v7636_v21  ;;  %v7699_v17 = vld [vmem:[%s21275_s15 + $0x420] sm:$0xff]  ;;  %v7701_v19 = vld [vmem:[%s21275_s15 + $0x430] sm:$0xff] }
 0xdc9   :  { %8391 = vmatprep.mubr.f32.mxu0 %v21319_v53  ;;  %8604 = vmatprep.mubr.f32.mxu1 %v21319_v53  ;;  %v13137_v9 = vpack.c.bf16 %v7646_v32, %v7638_v25  ;;  %v7710_v20 = vld [vmem:[%s21275_s15 + $0x478] sm:$0xff]  ;;  %v13151_v43 = vpack.c.bf16 %v7693_v27, %v7685_v3  ;;  %v7707_v21 = vld [vmem:[%s21275_s15 + $0x460] sm:$0xff]  ;;  %v7709_v32 = vld [vmem:[%s21275_s15 + $0x470] sm:$0xff] }
 0xdca   :  { %v13019_v28 = vpack.c.bf16 %v7707_v21, %v7699_v17  ;;  %v7763_v27 = vld [vmem:[%s21275_s15 + $0x620] sm:$0xff]  ;;  %v7790_v17 = vld [vmem:[%s21275_s15 + $0x6f8] sm:$0xff] }
 0xdcb   :  { %12848 = vmatpush1.bf16.msra.mxu0 %v12847_v34  ;;  %12984 = vmatpush1.bf16.msra.mxu1 %v12983_v58  ;;  %v7645_v34 = vld [vmem:[%s21275_s15 + $0x270] sm:$0xff]  ;;  %v7652_v58 = vld [vmem:[%s21275_s15 + $0x2a8] sm:$0xff] }
 0xdcc   :  { %12986 = vmatprep.subr.bf16.mxu0 %v12985_v51  ;;  %13122 = vmatprep.subr.bf16.mxu1 %v13121_v52  ;;  %v7660_v51 = vld [vmem:[%s21275_s15 + $0x2e8] sm:$0xff]  ;;  %v7654_v52 = vld [vmem:[%s21275_s15 + $0x2b8] sm:$0xff]  ;;  %v13139_v45 = vpack.c.bf16 %v7645_v34, %v7637_v42  ;;  %v13155_v42 = vpack.c.bf16 %v7709_v32, %v7701_v19  ;;  %v7715_v34 = vld [vmem:[%s21275_s15 + $0x4a0] sm:$0xff] }
 0xdcd   :  { %v13005_v11 = vpack.c.bf16 %v7660_v51, %v7652_v58  ;;  %v13141_v6 = vpack.c.bf16 %v7662_v22, %v7654_v52  ;;  %v7723_v58 = vld [vmem:[%s21275_s15 + $0x4e0] sm:$0xff]  ;;  %v7717_v51 = vld [vmem:[%s21275_s15 + $0x4b0] sm:$0xff] }
 0xdce   :  { %10532 = vmatmul.mubr.msk.f32.vlgmr.msra.gmra.mrb[158].mxu0 %vm5322_vm11, %v10531_v41  ;;  %10533 = vmatmul.mubr.msk.f32.vlgmr.msra.gmra.mrb[80].mxu1 %vm5322_vm11, %v10531_v41  ;;  %v7725_v22 = vld [vmem:[%s21275_s15 + $0x4f0] sm:$0xff]  ;;  %v13023_v12 = vpack.c.bf16 %v7723_v58, %v7715_v34  ;;  %v7779_v32 = vld [vmem:[%s21275_s15 + $0x6a0] sm:$0xff]  ;;  %v7806_v34 = vld [vmem:[%s21275_s15 + $0x778] sm:$0xff] }
 0xdcf   :  { %12988 = vmatpush1.bf16.msra.mxu0 %v12987_v38  ;;  %8675 = vmatprep.mubr.f32.mxu0 %v19770_v5  ;;  %v7661_v38 = vld [vmem:[%s21275_s15 + $0x2f0] sm:$0xff] }
 0xdd0   :  { %13124 = vmatpush1.bf16.msra.mxu1 %v13123_v37  ;;  %8888 = vmatprep.mubr.f32.mxu1 %v19770_v5  ;;  %v7613_v5 = vld [vmem:[%s21275_s15 + $0x170] sm:$0xff]  ;;  %v7676_v37 = vld [vmem:[%s21275_s15 + $0x368] sm:$0xff]  ;;  %v13143_v41 = vpack.c.bf16 %v7661_v38, %v7653_v63  ;;  %v13159_v63 = vpack.c.bf16 %v7725_v22, %v7717_v51  ;;  %v7731_v38 = vld [vmem:[%s21275_s15 + $0x520] sm:$0xff] }
 0xdd1   :  { %12990 = vmatprep.subr.bf16.mxu0 %v12989_v36  ;;  %13126 = vmatprep.subr.bf16.mxu1 %v13125_v56  ;;  %v13131_v59 = vpack.c.bf16 %v7613_v5, %v7605_v55  ;;  %v13009_v36 = vpack.c.bf16 %v7676_v37, %v7668_v7  ;;  %v7667_v56 = vld [vmem:[%s21275_s15 + $0x320] sm:$0xff]  ;;  %v13147_v55 = vpack.c.bf16 %v7677_v2, %v7669_v61  ;;  %v7733_v37 = vld [vmem:[%s21275_s15 + $0x530] sm:$0xff] }
 0xdd2   :  { %v13011_v46 = vpack.c.bf16 %v7675_v62, %v7667_v56  ;;  %v7683_v5 = vld [vmem:[%s21275_s15 + $0x3a0] sm:$0xff]  ;;  %v7758_v56 = vld [vmem:[%s21275_s15 + $0x5f8] sm:$0xff]  ;;  %v13163_v61 = vpack.c.bf16 %v7741_v57, %v7733_v37 }
 0xdd3   :  { %12992 = vmatpush1.bf16.msra.mxu0 %v12991_v31  ;;  %v7684_v31 = vld [vmem:[%s21275_s15 + $0x3a8] sm:$0xff]  ;;  %v13015_v54 = vpack.c.bf16 %v7691_v4, %v7683_v5  ;;  %v7739_v7 = vld [vmem:[%s21275_s15 + $0x560] sm:$0xff]  ;;  %v7774_v5 = vld [vmem:[%s21275_s15 + $0x678] sm:$0xff] }
 0xdd4   :  { %13128 = vmatpush1.bf16.msra.mxu1 %v13127_v35  ;;  %12994 = vmatprep.subr.bf16.mxu0 %v12993_v49  ;;  %v7692_v35 = vld [vmem:[%s21275_s15 + $0x3e8] sm:$0xff]  ;;  %v7686_v49 = vld [vmem:[%s21275_s15 + $0x3b8] sm:$0xff]  ;;  %v13027_v62 = vpack.c.bf16 %v7739_v7, %v7731_v38  ;;  %v7747_v2 = vld [vmem:[%s21275_s15 + $0x5a0] sm:$0xff] }
 0xdd5   :  { %13130 = vmatprep.subr.bf16.mxu1 %v13129_v30  ;;  %v13013_v30 = vpack.c.bf16 %v7692_v35, %v7684_v31  ;;  %v13149_v1 = vpack.c.bf16 %v7694_v8, %v7686_v49  ;;  %v7755_v31 = vld [vmem:[%s21275_s15 + $0x5e0] sm:$0xff]  ;;  %v7749_v35 = vld [vmem:[%s21275_s15 + $0x5b0] sm:$0xff]  ;;  %v7822_v38 = vld [vmem:[%s21275_s15 + $0x7f8] sm:$0xff] }
 0xdd6   :  { %v7757_v8 = vld [vmem:[%s21275_s15 + $0x5f0] sm:$0xff]  ;;  %v13031_v4 = vpack.c.bf16 %v7755_v31, %v7747_v2  ;;  %v7795_v22 = vld [vmem:[%s21275_s15 + $0x720] sm:$0xff]  ;;  %v7838_v2 = vld [vmem:[%s21275_s15 + $0x878] sm:$0xff] }
 0xdd7   :  { %12996 = vmatpush1.bf16.msra.mxu0 %v12995_v10  ;;  %v7700_v10 = vld [vmem:[%s21275_s15 + $0x428] sm:$0xff]  ;;  %v13167_v3 = vpack.c.bf16 %v7757_v8, %v7749_v35  ;;  %v7811_v57 = vld [vmem:[%s21275_s15 + $0x7a0] sm:$0xff] }
 0xdd8   :  { %13132 = vmatpush1.bf16.msra.mxu1 %v13131_v59  ;;  %12998 = vmatprep.subr.bf16.mxu0 %v12997_v18  ;;  %v7708_v59 = vld [vmem:[%s21275_s15 + $0x468] sm:$0xff]  ;;  %v7702_v18 = vld [vmem:[%s21275_s15 + $0x438] sm:$0xff]  ;;  %v7827_v8 = vld [vmem:[%s21275_s15 + $0x820] sm:$0xff] }
 0xdd9   :  { %13134 = vmatprep.subr.bf16.mxu1 %v13133_v47  ;;  %v13017_v47 = vpack.c.bf16 %v7708_v59, %v7700_v10  ;;  %v13153_v25 = vpack.c.bf16 %v7710_v20, %v7702_v18  ;;  %v7771_v10 = vld [vmem:[%s21275_s15 + $0x660] sm:$0xff]  ;;  %v7765_v59 = vld [vmem:[%s21275_s15 + $0x630] sm:$0xff] }
 0xdda   :  { %v7773_v20 = vld [vmem:[%s21275_s15 + $0x670] sm:$0xff]  ;;  %v13035_v21 = vpack.c.bf16 %v7771_v10, %v7763_v27  ;;  %v7846_v27 = vld [vmem:[%s21275_s15 + $0x8b8] sm:$0xff] }
 0xddb   :  { %13000 = vmatpush1.bf16.msra.mxu0 %v12999_v15  ;;  %v7716_v15 = vld [vmem:[%s21275_s15 + $0x4a8] sm:$0xff]  ;;  %v13171_v19 = vpack.c.bf16 %v7773_v20, %v7765_v59  ;;  %v7854_v10 = vld [vmem:[%s21275_s15 + $0x8f8] sm:$0xff]  ;;  %v7851_v20 = vld [vmem:[%s21275_s15 + $0x8e0] sm:$0xff] }
 0xddc   :  { %13136 = vmatpush1.bf16.msra.mxu1 %v13135_v33  ;;  %13002 = vmatprep.subr.bf16.mxu0 %v13001_v39  ;;  %v7724_v33 = vld [vmem:[%s21275_s15 + $0x4e8] sm:$0xff]  ;;  %v7718_v39 = vld [vmem:[%s21275_s15 + $0x4b8] sm:$0xff] }
 0xddd   :  { %13138 = vmatprep.subr.bf16.mxu1 %v13137_v9  ;;  %v13021_v9 = vpack.c.bf16 %v7724_v33, %v7716_v15  ;;  %v13157_v52 = vpack.c.bf16 %v7726_v13, %v7718_v39  ;;  %v7787_v15 = vld [vmem:[%s21275_s15 + $0x6e0] sm:$0xff]  ;;  %v7781_v33 = vld [vmem:[%s21275_s15 + $0x6b0] sm:$0xff] }
 0xdde   :  { %v7789_v13 = vld [vmem:[%s21275_s15 + $0x6f0] sm:$0xff]  ;;  %v13039_v58 = vpack.c.bf16 %v7787_v15, %v7779_v32  ;;  %v7870_v32 = vld [vmem:[%s21275_s15 + $0x978] sm:$0xff] }
 0xddf   :  { %13004 = vmatpush1.bf16.msra.mxu0 %v13003_v48  ;;  %v7732_v48 = vld [vmem:[%s21275_s15 + $0x528] sm:$0xff]  ;;  %v13175_v51 = vpack.c.bf16 %v7789_v13, %v7781_v33  ;;  %v7859_v13 = vld [vmem:[%s21275_s15 + $0x920] sm:$0xff] }
 0xde0   :  { %13140 = vmatpush1.bf16.msra.mxu1 %v13139_v45  ;;  %13006 = vmatprep.subr.bf16.mxu0 %v13005_v11  ;;  %v7740_v45 = vld [vmem:[%s21275_s15 + $0x568] sm:$0xff]  ;;  %v7734_v11 = vld [vmem:[%s21275_s15 + $0x538] sm:$0xff] }
 0xde1   :  { %13142 = vmatprep.subr.bf16.mxu1 %v13141_v6  ;;  %v13025_v6 = vpack.c.bf16 %v7740_v45, %v7732_v48  ;;  %v13161_v29 = vpack.c.bf16 %v7742_v16, %v7734_v11  ;;  %v7803_v48 = vld [vmem:[%s21275_s15 + $0x760] sm:$0xff]  ;;  %v7797_v45 = vld [vmem:[%s21275_s15 + $0x730] sm:$0xff] }
 0xde2   :  { %v7805_v16 = vld [vmem:[%s21275_s15 + $0x770] sm:$0xff]  ;;  %v13043_v7 = vpack.c.bf16 %v7803_v48, %v7795_v22 }
 0xde3   :  { %13008 = vmatpush1.bf16.msra.mxu0 %v13007_v0  ;;  %v7748_v0 = vld [vmem:[%s21275_s15 + $0x5a8] sm:$0xff]  ;;  %v13179_v37 = vpack.c.bf16 %v7805_v16, %v7797_v45  ;;  %v7875_v45 = vld [vmem:[%s21275_s15 + $0x9a0] sm:$0xff]  ;;  %v7877_v16 = vld [vmem:[%s21275_s15 + $0x9b0] sm:$0xff] }
 0xde4   :  { %13144 = vmatpush1.bf16.msra.mxu1 %v13143_v41  ;;  %13010 = vmatprep.subr.bf16.mxu0 %v13009_v36  ;;  %v7756_v41 = vld [vmem:[%s21275_s15 + $0x5e8] sm:$0xff]  ;;  %v7750_v36 = vld [vmem:[%s21275_s15 + $0x5b8] sm:$0xff] }
 0xde5   :  { %13146 = vmatprep.subr.bf16.mxu1 %v13145_v60  ;;  %v13029_v60 = vpack.c.bf16 %v7756_v41, %v7748_v0  ;;  %v13165_v49 = vpack.c.bf16 %v7758_v56, %v7750_v36  ;;  %v7819_v0 = vld [vmem:[%s21275_s15 + $0x7e0] sm:$0xff]  ;;  %v7813_v41 = vld [vmem:[%s21275_s15 + $0x7b0] sm:$0xff] }
 0xde6   :  { %v7821_v56 = vld [vmem:[%s21275_s15 + $0x7f0] sm:$0xff]  ;;  %v13047_v31 = vpack.c.bf16 %v7819_v0, %v7811_v57 }
 0xde7   :  { %13012 = vmatpush1.bf16.msra.mxu0 %v13011_v46  ;;  %v7764_v46 = vld [vmem:[%s21275_s15 + $0x628] sm:$0xff]  ;;  %v13183_v35 = vpack.c.bf16 %v7821_v56, %v7813_v41  ;;  %v7891_v41 = vld [vmem:[%s21275_s15 + $0xa20] sm:$0xff]  ;;  %v7893_v56 = vld [vmem:[%s21275_s15 + $0xa30] sm:$0xff] }
 0xde8   :  { %13148 = vmatpush1.bf16.msra.mxu1 %v13147_v55  ;;  %13014 = vmatprep.subr.bf16.mxu0 %v13013_v30  ;;  %v7772_v55 = vld [vmem:[%s21275_s15 + $0x668] sm:$0xff]  ;;  %v7766_v30 = vld [vmem:[%s21275_s15 + $0x638] sm:$0xff] }
 0xde9   :  { %13150 = vmatprep.subr.bf16.mxu1 %v13149_v1  ;;  %v13033_v1 = vpack.c.bf16 %v7772_v55, %v7764_v46  ;;  %v13169_v18 = vpack.c.bf16 %v7774_v5, %v7766_v30  ;;  %v7835_v46 = vld [vmem:[%s21275_s15 + $0x860] sm:$0xff]  ;;  %v7829_v30 = vld [vmem:[%s21275_s15 + $0x830] sm:$0xff] }
 0xdea   :  { %v7837_v5 = vld [vmem:[%s21275_s15 + $0x870] sm:$0xff] }
 0xdeb   :  { %13016 = vmatpush1.bf16.msra.mxu0 %v13015_v54  ;;  %v7780_v54 = vld [vmem:[%s21275_s15 + $0x6a8] sm:$0xff]  ;;  %v13187_v59 = vpack.c.bf16 %v7837_v5, %v7829_v30  ;;  %v7915_v30 = vld [vmem:[%s21275_s15 + $0xae0] sm:$0xff]  ;;  %v7909_v5 = vld [vmem:[%s21275_s15 + $0xab0] sm:$0xff] }
 0xdec   :  { %13152 = vmatpush1.bf16.msra.mxu1 %v13151_v43  ;;  %13018 = vmatprep.subr.bf16.mxu0 %v13017_v47  ;;  %v7788_v43 = vld [vmem:[%s21275_s15 + $0x6e8] sm:$0xff]  ;;  %v7782_v47 = vld [vmem:[%s21275_s15 + $0x6b8] sm:$0xff] }
 0xded   :  { %13154 = vmatprep.subr.bf16.mxu1 %v13153_v25  ;;  %v13037_v25 = vpack.c.bf16 %v7788_v43, %v7780_v54  ;;  %v13173_v39 = vpack.c.bf16 %v7790_v17, %v7782_v47  ;;  %v7845_v54 = vld [vmem:[%s21275_s15 + $0x8b0] sm:$0xff]  ;;  %v7860_v17 = vld [vmem:[%s21275_s15 + $0x928] sm:$0xff] }
 0xdee   :  { %v7853_v47 = vld [vmem:[%s21275_s15 + $0x8f0] sm:$0xff] }
 0xdef   :  { %13020 = vmatpush1.bf16.msra.mxu0 %v13019_v28  ;;  %v7796_v28 = vld [vmem:[%s21275_s15 + $0x728] sm:$0xff]  ;;  %v13191_v33 = vpack.c.bf16 %v7853_v47, %v7845_v54  ;;  %v7931_v47 = vld [vmem:[%s21275_s15 + $0xb60] sm:$0xff] }
 0xdf0   :  { %13156 = vmatpush1.bf16.msra.mxu1 %v13155_v42  ;;  %13022 = vmatprep.subr.bf16.mxu0 %v13021_v9  ;;  %v7804_v42 = vld [vmem:[%s21275_s15 + $0x768] sm:$0xff]  ;;  %v7798_v9 = vld [vmem:[%s21275_s15 + $0x738] sm:$0xff] }
 0xdf1   :  { %13158 = vmatprep.subr.bf16.mxu1 %v13157_v52  ;;  %v13041_v52 = vpack.c.bf16 %v7804_v42, %v7796_v28  ;;  %v13177_v11 = vpack.c.bf16 %v7806_v34, %v7798_v9  ;;  %v7867_v28 = vld [vmem:[%s21275_s15 + $0x960] sm:$0xff]  ;;  %v7861_v42 = vld [vmem:[%s21275_s15 + $0x930] sm:$0xff]  ;;  %v7876_v34 = vld [vmem:[%s21275_s15 + $0x9a8] sm:$0xff] }
 0xdf2   :  { %v7869_v9 = vld [vmem:[%s21275_s15 + $0x970] sm:$0xff] }
 0xdf3   :  { %13024 = vmatpush1.bf16.msra.mxu0 %v13023_v12  ;;  %v7812_v12 = vld [vmem:[%s21275_s15 + $0x7a8] sm:$0xff]  ;;  %v13195_v22 = vpack.c.bf16 %v7869_v9, %v7861_v42  ;;  %v7939_v42 = vld [vmem:[%s21275_s15 + $0xba0] sm:$0xff]  ;;  %v7941_v9 = vld [vmem:[%s21275_s15 + $0xbb0] sm:$0xff] }
 0xdf4   :  { %13160 = vmatpush1.bf16.msra.mxu1 %v13159_v63  ;;  %13026 = vmatprep.subr.bf16.mxu0 %v13025_v6  ;;  %v7820_v63 = vld [vmem:[%s21275_s15 + $0x7e8] sm:$0xff]  ;;  %v7814_v6 = vld [vmem:[%s21275_s15 + $0x7b8] sm:$0xff] }
 0xdf5   :  { %13162 = vmatprep.subr.bf16.mxu1 %v13161_v29  ;;  %v13045_v29 = vpack.c.bf16 %v7820_v63, %v7812_v12  ;;  %v13181_v36 = vpack.c.bf16 %v7822_v38, %v7814_v6  ;;  %v7885_v63 = vld [vmem:[%s21275_s15 + $0x9f0] sm:$0xff]  ;;  %v7892_v6 = vld [vmem:[%s21275_s15 + $0xa28] sm:$0xff] }
 0xdf6   :  { %v7900_v38 = vld [vmem:[%s21275_s15 + $0xa68] sm:$0xff]  ;;  %v13199_v57 = vpack.c.bf16 %v7885_v63, %v7877_v16  ;;  %v7955_v16 = vld [vmem:[%s21275_s15 + $0xc20] sm:$0xff]  ;;  %v7957_v63 = vld [vmem:[%s21275_s15 + $0xc30] sm:$0xff] }
 0xdf7   :  { %13028 = vmatpush1.bf16.msra.mxu0 %v13027_v62  ;;  %v7828_v62 = vld [vmem:[%s21275_s15 + $0x828] sm:$0xff]  ;;  %v13065_v0 = vpack.c.bf16 %v7900_v38, %v7892_v6  ;;  %v7965_v38 = vld [vmem:[%s21275_s15 + $0xc70] sm:$0xff] }
 0xdf8   :  { %13164 = vmatpush1.bf16.msra.mxu1 %v13163_v61  ;;  %13030 = vmatprep.subr.bf16.mxu0 %v13029_v60  ;;  %v7836_v61 = vld [vmem:[%s21275_s15 + $0x868] sm:$0xff]  ;;  %v7830_v60 = vld [vmem:[%s21275_s15 + $0x838] sm:$0xff] }
 0xdf9   :  { %13166 = vmatprep.subr.bf16.mxu1 %v13165_v49  ;;  %v13049_v49 = vpack.c.bf16 %v7836_v61, %v7828_v62  ;;  %v13185_v55 = vpack.c.bf16 %v7838_v2, %v7830_v60  ;;  %v7901_v61 = vld [vmem:[%s21275_s15 + $0xa70] sm:$0xff]  ;;  %v7908_v60 = vld [vmem:[%s21275_s15 + $0xaa8] sm:$0xff] }
 0xdfa   :  { %v7916_v2 = vld [vmem:[%s21275_s15 + $0xae8] sm:$0xff] }
 0xdfb   :  { %13032 = vmatpush1.bf16.msra.mxu0 %v13031_v4  ;;  %v7844_v4 = vld [vmem:[%s21275_s15 + $0x8a8] sm:$0xff] }
 0xdfc   :  { %13168 = vmatpush1.bf16.msra.mxu1 %v13167_v3  ;;  %13034 = vmatprep.subr.bf16.mxu0 %v13033_v1  ;;  %v7852_v3 = vld [vmem:[%s21275_s15 + $0x8e8] sm:$0xff]  ;;  %v13051_v1 = vpack.c.bf16 %v7835_v46, %v7827_v8  ;;  %v13203_v8 = vpack.c.bf16 %v7901_v61, %v7893_v56  ;;  %v13069_v46 = vpack.c.bf16 %v7916_v2, %v7908_v60  ;;  %v7971_v56 = vld [vmem:[%s21275_s15 + $0xca0] sm:$0xff]  ;;  %v7973_v61 = vld [vmem:[%s21275_s15 + $0xcb0] sm:$0xff] }
 0xdfd   :  { %13170 = vmatprep.subr.bf16.mxu1 %v13169_v18  ;;  %v7843_v18 = vld [vmem:[%s21275_s15 + $0x8a0] sm:$0xff]  ;;  %v13053_v43 = vpack.c.bf16 %v7852_v3, %v7844_v4  ;;  %v7917_v3 = vld [vmem:[%s21275_s15 + $0xaf0] sm:$0xff] }
 0xdfe   :  { %v13055_v15 = vpack.c.bf16 %v7851_v20, %v7843_v18  ;;  %v13207_v20 = vpack.c.bf16 %v7917_v3, %v7909_v5  ;;  %v7981_v2 = vld [vmem:[%s21275_s15 + $0xcf0] sm:$0xff]  ;;  %v7987_v5 = vld [vmem:[%s21275_s15 + $0xd20] sm:$0xff] }
 0xdff   :  { %13036 = vmatpush1.bf16.msra.mxu0 %v13035_v21  ;;  %v7868_v21 = vld [vmem:[%s21275_s15 + $0x968] sm:$0xff]  ;;  %v7989_v3 = vld [vmem:[%s21275_s15 + $0xd30] sm:$0xff] }
 0xe00   :  { %13172 = vmatpush1.bf16.msra.mxu1 %v13171_v19  ;;  %13038 = vmatprep.subr.bf16.mxu0 %v13037_v25  ;;  %v13189_v19 = vpack.c.bf16 %v7854_v10, %v7846_v27  ;;  %v7862_v25 = vld [vmem:[%s21275_s15 + $0x938] sm:$0xff]  ;;  %v7932_v27 = vld [vmem:[%s21275_s15 + $0xb68] sm:$0xff] }
 0xe01   :  { %13174 = vmatprep.subr.bf16.mxu1 %v13173_v39  ;;  %v13057_v39 = vpack.c.bf16 %v7868_v21, %v7860_v17  ;;  %v7926_v10 = vld [vmem:[%s21275_s15 + $0xb38] sm:$0xff]  ;;  %v7925_v17 = vld [vmem:[%s21275_s15 + $0xb30] sm:$0xff] }
 0xe03   :  { %13040 = vmatpush1.bf16.msra.mxu0 %v13039_v58  ;;  %v7884_v58 = vld [vmem:[%s21275_s15 + $0x9e8] sm:$0xff] }
 0xe04   :  { %13176 = vmatpush1.bf16.msra.mxu1 %v13175_v51  ;;  %13042 = vmatprep.subr.bf16.mxu0 %v13041_v52  ;;  %v7878_v51 = vld [vmem:[%s21275_s15 + $0x9b8] sm:$0xff]  ;;  %v13059_v52 = vpack.c.bf16 %v7867_v28, %v7859_v13  ;;  %v13061_v48 = vpack.c.bf16 %v7884_v58, %v7876_v34  ;;  %v7949_v58 = vld [vmem:[%s21275_s15 + $0xbf0] sm:$0xff] }
 0xe05   :  { %13178 = vmatprep.subr.bf16.mxu1 %v13177_v11  ;;  %v7883_v11 = vld [vmem:[%s21275_s15 + $0x9e0] sm:$0xff] }
 0xe07   :  { %13044 = vmatpush1.bf16.msra.mxu0 %v13043_v7  ;;  %v7894_v7 = vld [vmem:[%s21275_s15 + $0xa38] sm:$0xff] }
 0xe08   :  { %13180 = vmatpush1.bf16.msra.mxu1 %v13179_v37  ;;  %13046 = vmatprep.subr.bf16.mxu0 %v13045_v29  ;;  %v7902_v37 = vld [vmem:[%s21275_s15 + $0xa78] sm:$0xff]  ;;  %v13063_v29 = vpack.c.bf16 %v7883_v11, %v7875_v45  ;;  %v13215_v45 = vpack.c.bf16 %v7949_v58, %v7941_v9  ;;  %v8019_v9 = vld [vmem:[%s21275_s15 + $0xe20] sm:$0xff]  ;;  %v8021_v58 = vld [vmem:[%s21275_s15 + $0xe30] sm:$0xff] }
 0xe09   :  { %13182 = vmatprep.subr.bf16.mxu1 %v13181_v36  ;;  %v7899_v36 = vld [vmem:[%s21275_s15 + $0xa60] sm:$0xff]  ;;  %v13201_v62 = vpack.c.bf16 %v7902_v37, %v7894_v7  ;;  %v7972_v7 = vld [vmem:[%s21275_s15 + $0xca8] sm:$0xff] }
 0xe0a   :  { %v7980_v37 = vld [vmem:[%s21275_s15 + $0xce8] sm:$0xff] }
 0xe0b   :  { %13048 = vmatpush1.bf16.msra.mxu0 %v13047_v31  ;;  %v7910_v31 = vld [vmem:[%s21275_s15 + $0xab8] sm:$0xff] }
 0xe0c   :  { %13184 = vmatpush1.bf16.msra.mxu1 %v13183_v35  ;;  %13050 = vmatprep.subr.bf16.mxu0 %v13049_v49  ;;  %v7918_v35 = vld [vmem:[%s21275_s15 + $0xaf8] sm:$0xff]  ;;  %v13067_v49 = vpack.c.bf16 %v7899_v36, %v7891_v41  ;;  %v13219_v41 = vpack.c.bf16 %v7965_v38, %v7957_v63  ;;  %v13085_v36 = vpack.c.bf16 %v7980_v37, %v7972_v7  ;;  %v8035_v63 = vld [vmem:[%s21275_s15 + $0xea0] sm:$0xff]  ;;  %v8037_v38 = vld [vmem:[%s21275_s15 + $0xeb0] sm:$0xff] }
 0xe0d   :  { %13186 = vmatprep.subr.bf16.mxu1 %v13185_v55  ;;  %v7907_v55 = vld [vmem:[%s21275_s15 + $0xaa0] sm:$0xff]  ;;  %v13205_v4 = vpack.c.bf16 %v7918_v35, %v7910_v31  ;;  %v7988_v31 = vld [vmem:[%s21275_s15 + $0xd28] sm:$0xff]  ;;  %v8045_v37 = vld [vmem:[%s21275_s15 + $0xef0] sm:$0xff] }
 0xe0e   :  { %8676 = vmatmul.mubr.f32.vlgmr.msra.gmra.mrb[160].mxu0 %v19754_v50  ;;  %v13071_v18 = vpack.c.bf16 %v7915_v30, %v7907_v55  ;;  %v7996_v35 = vld [vmem:[%s21275_s15 + $0xd68] sm:$0xff]  ;;  %v13223_v55 = vpack.c.bf16 %v7981_v2, %v7973_v61  ;;  %v8051_v61 = vld [vmem:[%s21275_s15 + $0xf20] sm:$0xff]  ;;  %v8053_v2 = vld [vmem:[%s21275_s15 + $0xf30] sm:$0xff] }
 0xe0f   :  { %8889 = vmatmul.mubr.f32.vlgmr.msra.gmra.mrb[82].mxu1 %v19754_v50  ;;  %13052 = vmatpush1.bf16.msra.mxu0 %v13051_v1  ;;  %v13193_v50 = vpack.c.bf16 %v7870_v32, %v7862_v25  ;;  %v7924_v1 = vld [vmem:[%s21275_s15 + $0xb28] sm:$0xff]  ;;  %v13089_v30 = vpack.c.bf16 %v7996_v35, %v7988_v31  ;;  %v8061_v35 = vld [vmem:[%s21275_s15 + $0xf70] sm:$0xff] }
 0xe10   :  { %8746 = vmatprep.mubr.f32.mxu0 %v19793_v23  ;;  %13188 = vmatpush1.bf16.msra.mxu1 %v13187_v59  ;;  %v7934_v59 = vld [vmem:[%s21275_s15 + $0xb78] sm:$0xff]  ;;  %v13073_v54 = vpack.c.bf16 %v7932_v27, %v7924_v1  ;;  %v7940_v25 = vld [vmem:[%s21275_s15 + $0xba8] sm:$0xff]  ;;  %v7997_v27 = vld [vmem:[%s21275_s15 + $0xd70] sm:$0xff] }
 0xe11   :  { %8959 = vmatprep.mubr.f32.mxu1 %v19793_v23  ;;  %13054 = vmatprep.subr.bf16.mxu0 %v13053_v43  ;;  %v7886_v23 = vld [vmem:[%s21275_s15 + $0x9f8] sm:$0xff]  ;;  %v7923_v43 = vld [vmem:[%s21275_s15 + $0xb20] sm:$0xff]  ;;  %v13209_v21 = vpack.c.bf16 %v7934_v59, %v7926_v10  ;;  %v7948_v32 = vld [vmem:[%s21275_s15 + $0xbe8] sm:$0xff] }
 0xe12   :  { %13190 = vmatprep.subr.bf16.mxu1 %v13189_v19  ;;  %v13197_v12 = vpack.c.bf16 %v7886_v23, %v7878_v51  ;;  %v7933_v19 = vld [vmem:[%s21275_s15 + $0xb70] sm:$0xff]  ;;  %v13077_v28 = vpack.c.bf16 %v7948_v32, %v7940_v25  ;;  %v7956_v51 = vld [vmem:[%s21275_s15 + $0xc28] sm:$0xff] }
 0xe13   :  { %13056 = vmatpush1.bf16.msra.mxu0 %v13055_v15  ;;  %v7942_v15 = vld [vmem:[%s21275_s15 + $0xbb8] sm:$0xff]  ;;  %v13211_v13 = vpack.c.bf16 %v7933_v19, %v7925_v17  ;;  %v7964_v23 = vld [vmem:[%s21275_s15 + $0xc68] sm:$0xff]  ;;  %v8003_v17 = vld [vmem:[%s21275_s15 + $0xda0] sm:$0xff] }
 0xe14   :  { %13192 = vmatpush1.bf16.msra.mxu1 %v13191_v33  ;;  %13058 = vmatprep.subr.bf16.mxu0 %v13057_v39  ;;  %v7950_v33 = vld [vmem:[%s21275_s15 + $0xbf8] sm:$0xff]  ;;  %v13075_v39 = vpack.c.bf16 %v7931_v47, %v7923_v43  ;;  %v13081_v11 = vpack.c.bf16 %v7964_v23, %v7956_v51  ;;  %v8004_v10 = vld [vmem:[%s21275_s15 + $0xda8] sm:$0xff]  ;;  %v13227_v43 = vpack.c.bf16 %v7997_v27, %v7989_v3  ;;  %v8005_v19 = vld [vmem:[%s21275_s15 + $0xdb0] sm:$0xff] }
 0xe15   :  { %13194 = vmatprep.subr.bf16.mxu1 %v13193_v50  ;;  %v7947_v50 = vld [vmem:[%s21275_s15 + $0xbe0] sm:$0xff]  ;;  %v13213_v34 = vpack.c.bf16 %v7950_v33, %v7942_v15  ;;  %v8012_v59 = vld [vmem:[%s21275_s15 + $0xde8] sm:$0xff]  ;;  %v8013_v32 = vld [vmem:[%s21275_s15 + $0xdf0] sm:$0xff] }
 0xe16   :  { %v13093_v47 = vpack.c.bf16 %v8012_v59, %v8004_v10  ;;  %v8020_v15 = vld [vmem:[%s21275_s15 + $0xe28] sm:$0xff]  ;;  %v8029_v23 = vld [vmem:[%s21275_s15 + $0xe70] sm:$0xff]  ;;  %v8067_v3 = vld [vmem:[%s21275_s15 + $0xfa0] sm:$0xff] }
 0xe17   :  { %13060 = vmatpush1.bf16.msra.mxu0 %v13059_v52  ;;  %v7958_v52 = vld [vmem:[%s21275_s15 + $0xc38] sm:$0xff]  ;;  %v8028_v33 = vld [vmem:[%s21275_s15 + $0xe68] sm:$0xff]  ;;  %v8069_v27 = vld [vmem:[%s21275_s15 + $0xfb0] sm:$0xff] }
 0xe18   :  { %13196 = vmatpush1.bf16.msra.mxu1 %v13195_v22  ;;  %13062 = vmatprep.subr.bf16.mxu0 %v13061_v48  ;;  %v7966_v22 = vld [vmem:[%s21275_s15 + $0xc78] sm:$0xff]  ;;  %v13079_v48 = vpack.c.bf16 %v7947_v50, %v7939_v42  ;;  %v13231_v42 = vpack.c.bf16 %v8013_v32, %v8005_v19  ;;  %v13097_v50 = vpack.c.bf16 %v8028_v33, %v8020_v15  ;;  %v8077_v59 = vld [vmem:[%s21275_s15 + $0xff0] sm:$0xff]  ;;  %v8083_v19 = vld [vmem:[%s21275_s15 + $0x1020] sm:$0xff] }
 0xe19   :  { %13198 = vmatprep.subr.bf16.mxu1 %v13197_v12  ;;  %v7963_v12 = vld [vmem:[%s21275_s15 + $0xc60] sm:$0xff]  ;;  %v13217_v6 = vpack.c.bf16 %v7966_v22, %v7958_v52  ;;  %v8036_v52 = vld [vmem:[%s21275_s15 + $0xea8] sm:$0xff]  ;;  %v8085_v32 = vld [vmem:[%s21275_s15 + $0x1030] sm:$0xff] }
 0xe1a   :  { %v8044_v22 = vld [vmem:[%s21275_s15 + $0xee8] sm:$0xff]  ;;  %v8093_v33 = vld [vmem:[%s21275_s15 + $0x1070] sm:$0xff] }
 0xe1b   :  { %13064 = vmatpush1.bf16.msra.mxu0 %v13063_v29  ;;  %v7974_v29 = vld [vmem:[%s21275_s15 + $0xcb8] sm:$0xff] }
 0xe1c   :  { %13200 = vmatpush1.bf16.msra.mxu1 %v13199_v57  ;;  %13066 = vmatprep.subr.bf16.mxu0 %v13065_v0  ;;  %v7982_v57 = vld [vmem:[%s21275_s15 + $0xcf8] sm:$0xff]  ;;  %v13083_v0 = vpack.c.bf16 %v7963_v12, %v7955_v16  ;;  %v13235_v16 = vpack.c.bf16 %v8029_v23, %v8021_v58  ;;  %v13101_v12 = vpack.c.bf16 %v8044_v22, %v8036_v52  ;;  %v8099_v58 = vld [vmem:[%s21275_s15 + $0x10a0] sm:$0xff]  ;;  %v8101_v23 = vld [vmem:[%s21275_s15 + $0x10b0] sm:$0xff] }
 0xe1d   :  { %13202 = vmatprep.subr.bf16.mxu1 %v13201_v62  ;;  %v7979_v62 = vld [vmem:[%s21275_s15 + $0xce0] sm:$0xff]  ;;  %v13221_v60 = vpack.c.bf16 %v7982_v57, %v7974_v29  ;;  %v8052_v29 = vld [vmem:[%s21275_s15 + $0xf28] sm:$0xff]  ;;  %v8109_v22 = vld [vmem:[%s21275_s15 + $0x10f0] sm:$0xff] }
 0xe1e   :  { %v8060_v57 = vld [vmem:[%s21275_s15 + $0xf68] sm:$0xff] }
 0xe1f   :  { %13068 = vmatpush1.bf16.msra.mxu0 %v13067_v49  ;;  %v7990_v49 = vld [vmem:[%s21275_s15 + $0xd38] sm:$0xff] }
 0xe20   :  { %13204 = vmatpush1.bf16.msra.mxu1 %v13203_v8  ;;  %13070 = vmatprep.subr.bf16.mxu0 %v13069_v46  ;;  %v7998_v8 = vld [vmem:[%s21275_s15 + $0xd78] sm:$0xff]  ;;  %v13087_v46 = vpack.c.bf16 %v7979_v62, %v7971_v56  ;;  %v13239_v56 = vpack.c.bf16 %v8045_v37, %v8037_v38  ;;  %v13105_v62 = vpack.c.bf16 %v8060_v57, %v8052_v29  ;;  %v9125_v29 = vld [vmem:[%s21277_s17 + $0x20] sm:$0xff]  ;;  %v9127_v57 = vld [vmem:[%s21277_s17 + $0x30] sm:$0xff] }
 0xe21   :  { %13206 = vmatprep.subr.bf16.mxu1 %v13205_v4  ;;  %v7995_v4 = vld [vmem:[%s21275_s15 + $0xd60] sm:$0xff]  ;;  %v13225_v1 = vpack.c.bf16 %v7998_v8, %v7990_v49  ;;  %v8068_v49 = vld [vmem:[%s21275_s15 + $0xfa8] sm:$0xff]  ;;  %v9128_v38 = vld [vmem:[%s21277_s17 + $0x38] sm:$0xff] }
 0xe22   :  { %v8076_v8 = vld [vmem:[%s21275_s15 + $0xfe8] sm:$0xff] }
 0xe23   :  { %13072 = vmatpush1.bf16.msra.mxu0 %v13071_v18  ;;  %v8006_v18 = vld [vmem:[%s21275_s15 + $0xdb8] sm:$0xff] }
 0xe24   :  { %13208 = vmatpush1.bf16.msra.mxu1 %v13207_v20  ;;  %13074 = vmatprep.subr.bf16.mxu0 %v13073_v54  ;;  %v8014_v20 = vld [vmem:[%s21275_s15 + $0xdf8] sm:$0xff]  ;;  %v13091_v54 = vpack.c.bf16 %v7995_v4, %v7987_v5  ;;  %v13243_v5 = vpack.c.bf16 %v8061_v35, %v8053_v2  ;;  %v13109_v4 = vpack.c.bf16 %v8076_v8, %v8068_v49  ;;  %v9133_v49 = vld [vmem:[%s21277_s17 + $0x60] sm:$0xff]  ;;  %v9135_v8 = vld [vmem:[%s21277_s17 + $0x70] sm:$0xff] }
 0xe25   :  { %13210 = vmatprep.subr.bf16.mxu1 %v13209_v21  ;;  %v8011_v21 = vld [vmem:[%s21275_s15 + $0xde0] sm:$0xff]  ;;  %v13229_v25 = vpack.c.bf16 %v8014_v20, %v8006_v18  ;;  %v8084_v18 = vld [vmem:[%s21275_s15 + $0x1028] sm:$0xff]  ;;  %v9136_v2 = vld [vmem:[%s21277_s17 + $0x78] sm:$0xff] }
 0xe26   :  { %v8092_v20 = vld [vmem:[%s21275_s15 + $0x1068] sm:$0xff] }
 0xe27   :  { %13076 = vmatpush1.bf16.msra.mxu0 %v13075_v39  ;;  %v8022_v39 = vld [vmem:[%s21275_s15 + $0xe38] sm:$0xff] }
 0xe28   :  { %13212 = vmatpush1.bf16.msra.mxu1 %v13211_v13  ;;  %13078 = vmatprep.subr.bf16.mxu0 %v13077_v28  ;;  %v8030_v13 = vld [vmem:[%s21275_s15 + $0xe78] sm:$0xff]  ;;  %v13095_v28 = vpack.c.bf16 %v8011_v21, %v8003_v17  ;;  %v13247_v17 = vpack.c.bf16 %v8077_v59, %v8069_v27  ;;  %v13113_v21 = vpack.c.bf16 %v8092_v20, %v8084_v18  ;;  %v9141_v18 = vld [vmem:[%s21277_s17 + $0xa0] sm:$0xff]  ;;  %v9143_v20 = vld [vmem:[%s21277_s17 + $0xb0] sm:$0xff] }
 0xe29   :  { %13214 = vmatprep.subr.bf16.mxu1 %v13213_v34  ;;  %v8027_v34 = vld [vmem:[%s21275_s15 + $0xe60] sm:$0xff]  ;;  %v13233_v51 = vpack.c.bf16 %v8030_v13, %v8022_v39  ;;  %v8100_v39 = vld [vmem:[%s21275_s15 + $0x10a8] sm:$0xff]  ;;  %v9144_v27 = vld [vmem:[%s21277_s17 + $0xb8] sm:$0xff] }
 0xe2a   :  { %v8108_v13 = vld [vmem:[%s21275_s15 + $0x10e8] sm:$0xff] }
 0xe2b   :  { %13080 = vmatpush1.bf16.msra.mxu0 %v13079_v48  ;;  %v8038_v48 = vld [vmem:[%s21275_s15 + $0xeb8] sm:$0xff] }
 0xe2c   :  { %13216 = vmatpush1.bf16.msra.mxu1 %v13215_v45  ;;  %13082 = vmatprep.subr.bf16.mxu0 %v13081_v11  ;;  %v8046_v45 = vld [vmem:[%s21275_s15 + $0xef8] sm:$0xff]  ;;  %v13099_v11 = vpack.c.bf16 %v8027_v34, %v8019_v9  ;;  %v13251_v9 = vpack.c.bf16 %v8093_v33, %v8085_v32  ;;  %v13117_v34 = vpack.c.bf16 %v8108_v13, %v8100_v39  ;;  %v9149_v39 = vld [vmem:[%s21277_s17 + $0xe0] sm:$0xff]  ;;  %v9151_v13 = vld [vmem:[%s21277_s17 + $0xf0] sm:$0xff] }
 0xe2d   :  { %13218 = vmatprep.subr.bf16.mxu1 %v13217_v6  ;;  %v8043_v6 = vld [vmem:[%s21275_s15 + $0xee0] sm:$0xff]  ;;  %v13237_v7 = vpack.c.bf16 %v8046_v45, %v8038_v48  ;;  %v9122_v48 = vld [vmem:[%s21277_s17 + $0x8] sm:$0xff]  ;;  %v9124_v45 = vld [vmem:[%s21277_s17 + $0x18] sm:$0xff] }
 0xe2e   :  { %v9152_v32 = vld [vmem:[%s21277_s17 + $0xf8] sm:$0xff] }
 0xe2f   :  { %13084 = vmatpush1.bf16.msra.mxu0 %v13083_v0  ;;  %v8054_v0 = vld [vmem:[%s21275_s15 + $0xf38] sm:$0xff] }
 0xe30   :  { %13220 = vmatpush1.bf16.msra.mxu1 %v13219_v41  ;;  %13086 = vmatprep.subr.bf16.mxu0 %v13085_v36  ;;  %v8062_v41 = vld [vmem:[%s21275_s15 + $0xf78] sm:$0xff]  ;;  %v13103_v36 = vpack.c.bf16 %v8043_v6, %v8035_v63  ;;  %v9121_v63 = vld [vmem:[%s21277_s17] sm:$0xff]  ;;  %v9123_v6 = vld [vmem:[%s21277_s17 + $0x10] sm:$0xff] }
 0xe31   :  { %13222 = vmatprep.subr.bf16.mxu1 %v13221_v60  ;;  %v8059_v60 = vld [vmem:[%s21275_s15 + $0xf60] sm:$0xff]  ;;  %v13241_v31 = vpack.c.bf16 %v8062_v41, %v8054_v0  ;;  %v9130_v0 = vld [vmem:[%s21277_s17 + $0x48] sm:$0xff] }
 0xe32   :  { %v13582_v41 = vld.sshfl [vmem:[#allocation2 + $0x8] sm:$0x3 pattern:$0x76325410] }
 0xe33   :  { %13088 = vmatpush1.bf16.msra.mxu0 %v13087_v46  ;;  %v8070_v46 = vld [vmem:[%s21275_s15 + $0xfb8] sm:$0xff] }
 0xe34   :  { %13224 = vmatpush1.bf16.msra.mxu1 %v13223_v55  ;;  %13090 = vmatprep.subr.bf16.mxu0 %v13089_v30  ;;  %v8078_v55 = vld [vmem:[%s21275_s15 + $0xff8] sm:$0xff]  ;;  %v13107_v30 = vpack.c.bf16 %v8059_v60, %v8051_v61  ;;  %v9131_v61 = vld [vmem:[%s21277_s17 + $0x50] sm:$0xff]  ;;  %v9134_v60 = vld [vmem:[%s21277_s17 + $0x68] sm:$0xff] }
 0xe35   :  { %13226 = vmatprep.subr.bf16.mxu1 %v13225_v1  ;;  %v8075_v1 = vld [vmem:[%s21275_s15 + $0xfe0] sm:$0xff]  ;;  %v13245_v10 = vpack.c.bf16 %v8078_v55, %v8070_v46  ;;  %v13269_v35 = vpack.c.bf16 %v9136_v2, %v9134_v60  ;;  %v9138_v46 = vld [vmem:[%s21277_s17 + $0x88] sm:$0xff]  ;;  %v9140_v55 = vld [vmem:[%s21277_s17 + $0x98] sm:$0xff] }
 0xe36   :  { %v9172_v60 = vld [vmem:[%s21277_s17 + $0x198] sm:$0xff] }
 0xe37   :  { %13092 = vmatpush1.bf16.msra.mxu0 %v13091_v54  ;;  %v8086_v54 = vld [vmem:[%s21275_s15 + $0x1038] sm:$0xff] }
 0xe38   :  { %13228 = vmatpush1.bf16.msra.mxu1 %v13227_v43  ;;  %13094 = vmatprep.subr.bf16.mxu0 %v13093_v47  ;;  %v8094_v43 = vld [vmem:[%s21275_s15 + $0x1078] sm:$0xff]  ;;  %v13111_v47 = vpack.c.bf16 %v8075_v1, %v8067_v3  ;;  %v9139_v3 = vld [vmem:[%s21277_s17 + $0x90] sm:$0xff]  ;;  %v9142_v1 = vld [vmem:[%s21277_s17 + $0xa8] sm:$0xff] }
 0xe39   :  { %13230 = vmatprep.subr.bf16.mxu1 %v13229_v25  ;;  %v8091_v25 = vld [vmem:[%s21275_s15 + $0x1060] sm:$0xff]  ;;  %v13249_v15 = vpack.c.bf16 %v8094_v43, %v8086_v54  ;;  %v13277_v59 = vpack.c.bf16 %v9144_v27, %v9142_v1  ;;  %v9146_v54 = vld [vmem:[%s21277_s17 + $0xc8] sm:$0xff]  ;;  %v9148_v43 = vld [vmem:[%s21277_s17 + $0xd8] sm:$0xff] }
 0xe3a   :  { %v9180_v1 = vld [vmem:[%s21277_s17 + $0x1d8] sm:$0xff]  ;;  %v9177_v27 = vld [vmem:[%s21277_s17 + $0x1c0] sm:$0xff] }
 0xe3b   :  { %13096 = vmatpush1.bf16.msra.mxu0 %v13095_v28  ;;  %v8102_v28 = vld [vmem:[%s21275_s15 + $0x10b8] sm:$0xff] }
 0xe3c   :  { %13232 = vmatpush1.bf16.msra.mxu1 %v13231_v42  ;;  %13098 = vmatprep.subr.bf16.mxu0 %v13097_v50  ;;  %v8110_v42 = vld [vmem:[%s21275_s15 + $0x10f8] sm:$0xff]  ;;  %v13115_v50 = vpack.c.bf16 %v8091_v25, %v8083_v19  ;;  %v9147_v19 = vld [vmem:[%s21277_s17 + $0xd0] sm:$0xff]  ;;  %v9150_v25 = vld [vmem:[%s21277_s17 + $0xe8] sm:$0xff] }
 0xe3d   :  { %13234 = vmatprep.subr.bf16.mxu1 %v13233_v51  ;;  %v8107_v51 = vld [vmem:[%s21275_s15 + $0x10e0] sm:$0xff]  ;;  %v13253_v52 = vpack.c.bf16 %v8110_v42, %v8102_v28  ;;  %v13285_v33 = vpack.c.bf16 %v9152_v32, %v9150_v25  ;;  %v13287_v28 = vpack.c.bf16 %v9151_v13, %v9149_v39 }
 0xe3f   :  { %13100 = vmatpush1.bf16.msra.mxu0 %v13099_v11  ;;  %v13119_v11 = vpack.c.bf16 %v8107_v51, %v8099_v58  ;;  %v9154_v58 = vld [vmem:[%s21277_s17 + $0x108] sm:$0xff]  ;;  %v9156_v51 = vld [vmem:[%s21277_s17 + $0x118] sm:$0xff] }
 0xe40   :  { %13236 = vmatpush1.bf16.msra.mxu1 %v13235_v16  ;;  %13102 = vmatprep.subr.bf16.mxu0 %v13101_v12  ;;  %v13255_v16 = vpack.c.bf16 %v8109_v22, %v8101_v23  ;;  %v13257_v12 = vpack.c.bf16 %v9124_v45, %v9122_v48  ;;  %v13289_v23 = vpack.c.bf16 %v9156_v51, %v9154_v58  ;;  %v9155_v22 = vld [vmem:[%s21277_s17 + $0x110] sm:$0xff]  ;;  %v9158_v45 = vld [vmem:[%s21277_s17 + $0x128] sm:$0xff] }
 0xe41   :  { %13238 = vmatprep.subr.bf16.mxu1 %v13237_v7  ;;  %v13259_v7 = vpack.c.bf16 %v9123_v6, %v9121_v63  ;;  %v9159_v63 = vld [vmem:[%s21277_s17 + $0x130] sm:$0xff] }
 0xe43   :  { %13104 = vmatpush1.bf16.msra.mxu0 %v13103_v36  ;;  %v13263_v36 = vpack.c.bf16 %v9127_v57, %v9125_v29  ;;  %v9163_v29 = vld [vmem:[%s21277_s17 + $0x150] sm:$0xff] }
 0xe44   :  { %13240 = vmatpush1.bf16.msra.mxu1 %v13239_v56  ;;  %13106 = vmatprep.subr.bf16.mxu0 %v13105_v62  ;;  %v9129_v62 = vld [vmem:[%s21277_s17 + $0x40] sm:$0xff] }
 0xe45   :  { %13242 = vmatprep.subr.bf16.mxu1 %v13241_v31  ;;  %v13267_v31 = vpack.c.bf16 %v9131_v61, %v9129_v62  ;;  %v9170_v61 = vld [vmem:[%s21277_s17 + $0x188] sm:$0xff] }
 0xe46   :  { %v13305_v2 = vpack.c.bf16 %v9172_v60, %v9170_v61 }
 0xe47   :  { %13108 = vmatpush1.bf16.msra.mxu0 %v13107_v30  ;;  %v13271_v30 = vpack.c.bf16 %v9135_v8, %v9133_v49  ;;  %v9174_v8 = vld [vmem:[%s21277_s17 + $0x1a8] sm:$0xff] }
 0xe48   :  { %13244 = vmatpush1.bf16.msra.mxu1 %v13243_v5  ;;  %13110 = vmatprep.subr.bf16.mxu0 %v13109_v4  ;;  %v13273_v5 = vpack.c.bf16 %v9140_v55, %v9138_v46  ;;  %v9137_v4 = vld [vmem:[%s21277_s17 + $0x80] sm:$0xff]  ;;  %v9176_v46 = vld [vmem:[%s21277_s17 + $0x1b8] sm:$0xff] }
 0xe49   :  { %13246 = vmatprep.subr.bf16.mxu1 %v13245_v10  ;;  %v13275_v10 = vpack.c.bf16 %v9139_v3, %v9137_v4  ;;  %v13309_v55 = vpack.c.bf16 %v9176_v46, %v9174_v8  ;;  %v9178_v4 = vld [vmem:[%s21277_s17 + $0x1c8] sm:$0xff] }
 0xe4b   :  { %13112 = vmatpush1.bf16.msra.mxu0 %v13111_v47  ;;  %v13279_v47 = vpack.c.bf16 %v9143_v20, %v9141_v18  ;;  %v9182_v18 = vld [vmem:[%s21277_s17 + $0x1e8] sm:$0xff]  ;;  %v9184_v20 = vld [vmem:[%s21277_s17 + $0x1f8] sm:$0xff] }
 0xe4c   :  { %13248 = vmatpush1.bf16.msra.mxu1 %v13247_v17  ;;  %13114 = vmatprep.subr.bf16.mxu0 %v13113_v21  ;;  %v13281_v17 = vpack.c.bf16 %v9148_v43, %v9146_v54  ;;  %v9145_v21 = vld [vmem:[%s21277_s17 + $0xc0] sm:$0xff]  ;;  %v13317_v43 = vpack.c.bf16 %v9184_v20, %v9182_v18 }
 0xe4d   :  { %13250 = vmatprep.subr.bf16.mxu1 %v13249_v15  ;;  %v13283_v15 = vpack.c.bf16 %v9147_v19, %v9145_v21  ;;  %v8111_v19 = vld [vmem:[%s21276_s16] sm:$0xff] }
 0xe4e   :  { %8747 = vmatmul.mubr.f32.vlgmr.msra.gmra.mrb[160].mxu0 %v19772_v24  ;;  %v8116_v25 = vrot.slane %v8111_v19, %v21323_v26  ;;  %v8124_v32 = vrot.slane %v8111_v19, %v21322_v44 }
 0xe4f   :  { %8960 = vmatmul.mubr.f32.vlgmr.msra.gmra.mrb[82].mxu1 %v19772_v24  ;;  %13116 = vmatpush1.bf16.msra.mxu0 %v13115_v50  ;;  %v9126_v24 = vld [vmem:[%s21277_s17 + $0x28] sm:$0xff] }
 0xe50   :  { %13252 = vmatpush1.bf16.msra.mxu1 %v13251_v9  ;;  %13118 = vmatprep.subr.bf16.mxu0 %v13117_v34  ;;  %v13261_v37 = vpack.c.bf16 %v9128_v38, %v9126_v24  ;;  %v9162_v24 = vld [vmem:[%s21277_s17 + $0x148] sm:$0xff]  ;;  %v9164_v38 = vld [vmem:[%s21277_s17 + $0x158] sm:$0xff] }
 0xe51   :  { %13254 = vmatprep.subr.bf16.mxu1 %v13253_v52  ;;  %8817 = vmatprep.mubr.f32.mxu0 %v21319_v53  ;;  %v9153_v52 = vld [vmem:[%s21277_s17 + $0x100] sm:$0xff] }
 0xe52   :  { %9030 = vmatprep.mubr.f32.mxu1 %v21319_v53  ;;  %v9132_v53 = vld [vmem:[%s21277_s17 + $0x58] sm:$0xff]  ;;  %v13291_v48 = vpack.c.bf16 %v9155_v22, %v9153_v52 }
 0xe53   :  { %13120 = vmatpush1.bf16.msra.mxu0 %v13119_v11  ;;  %v13265_v56 = vpack.c.bf16 %v9132_v53, %v9130_v0  ;;  %v9160_v11 = vld [vmem:[%s21277_s17 + $0x138] sm:$0xff]  ;;  %v9166_v0 = vld [vmem:[%s21277_s17 + $0x168] sm:$0xff] }
 0xe54   :  { %13256 = vmatpush1.bf16.msra.mxu1 %v13255_v16  ;;  %13258 = vmatprep.subr.bf16.mxu0 %v13257_v12  ;;  %v13293_v16 = vpack.c.bf16 %v9160_v11, %v9158_v45  ;;  %v9157_v12 = vld [vmem:[%s21277_s17 + $0x120] sm:$0xff]  ;;  %v9168_v53 = vld [vmem:[%s21277_s17 + $0x178] sm:$0xff] }
 0xe55   :  { %v13295_v6 = vpack.c.bf16 %v9159_v63, %v9157_v12 }
 0xe56   :  { %10534 = vmatmul.mubr.msk.f32.vlgmr.msra.gmra.mrb[160].mxu0 %vm5322_vm11, %v13582_v41 }
 0xe57   :  { %10535 = vmatmul.mubr.msk.f32.vlgmr.msra.gmra.mrb[82].mxu1 %vm5322_vm11, %v13582_v41  ;;  %13260 = vmatpush1.bf16.msra.mxu0 %v13259_v7  ;;  %v13297_v7 = vpack.c.bf16 %v9164_v38, %v9162_v24  ;;  %v13301_v41 = vpack.c.bf16 %v9168_v53, %v9166_v0  ;;  %vm9270_vm11 = vcmask 41984  }
 0xe58   :  { %13262 = vmatprep.subr.bf16.mxu0 %v13261_v37  ;;  %v9161_v37 = vld [vmem:[%s21277_s17 + $0x140] sm:$0xff] }
 0xe59   :  { %v13299_v57 = vpack.c.bf16 %v9163_v29, %v9161_v37 }
 0xe5b   :  { %13264 = vmatpush1.bf16.msra.mxu0 %v13263_v36  ;;  %v9165_v36 = vld [vmem:[%s21277_s17 + $0x160] sm:$0xff] }
 0xe5c   :  { %13266 = vmatprep.subr.bf16.mxu0 %v13265_v56  ;;  %v9167_v56 = vld [vmem:[%s21277_s17 + $0x170] sm:$0xff] }
 0xe5d   :  { %v13303_v62 = vpack.c.bf16 %v9167_v56, %v9165_v36 }
 0xe5f   :  { %13268 = vmatpush1.bf16.msra.mxu0 %v13267_v31  ;;  %v9169_v31 = vld [vmem:[%s21277_s17 + $0x180] sm:$0xff] }
 0xe60   :  { %13270 = vmatprep.subr.bf16.mxu0 %v13269_v35  ;;  %v9171_v35 = vld [vmem:[%s21277_s17 + $0x190] sm:$0xff] }
 0xe61   :  { %v13307_v49 = vpack.c.bf16 %v9171_v35, %v9169_v31 }
 0xe63   :  { %13272 = vmatpush1.bf16.msra.mxu0 %v13271_v30  ;;  %v9173_v30 = vld [vmem:[%s21277_s17 + $0x1a0] sm:$0xff] }
 0xe64   :  { %13274 = vmatprep.subr.bf16.mxu0 %v13273_v5  ;;  %v9175_v5 = vld [vmem:[%s21277_s17 + $0x1b0] sm:$0xff] }
 0xe65   :  { %v13311_v3 = vpack.c.bf16 %v9175_v5, %v9173_v30 }
 0xe67   :  { %13276 = vmatpush1.bf16.msra.mxu0 %v13275_v10  ;;  %v9179_v10 = vld [vmem:[%s21277_s17 + $0x1d0] sm:$0xff] }
 0xe68   :  { %13278 = vmatprep.subr.bf16.mxu0 %v13277_v59  ;;  %v13313_v59 = vpack.c.bf16 %v9180_v1, %v9178_v4  ;;  %v13315_v54 = vpack.c.bf16 %v9179_v10, %v9177_v27 }
 0xe6b   :  { %13280 = vmatpush1.bf16.msra.mxu0 %v13279_v47  ;;  %v9181_v47 = vld [vmem:[%s21277_s17 + $0x1e0] sm:$0xff] }
 0xe6c   :  { %13282 = vmatprep.subr.bf16.mxu0 %v13281_v17  ;;  %v9183_v17 = vld [vmem:[%s21277_s17 + $0x1f0] sm:$0xff] }
 0xe6d   :  { %v13319_v21 = vpack.c.bf16 %v9183_v17, %v9181_v47 }
 0xe6f   :  { %13284 = vmatpush1.bf16.msra.mxu0 %v13283_v15  ;;  %v8120_v15 = vrot.slane %v8111_v19, %v21324_v40 }
 0xe70   :  { %13286 = vmatprep.subr.bf16.mxu0 %v13285_v33  ;;  %v21328_v33 = vsub.s32 3, %v21327_v14 }
 0xe72   :  { %v8128_v39 = vrot.slane %v8111_v19, %v21328_v33  ;;  %v9185_v33 = vld [vmem:[%s21278_s18] sm:$0x3] }
 0xe73   :  { %13288 = vmatpush1.bf16.msra.mxu0 %v13287_v28 }
 0xe74   :  { %13290 = vmatprep.subr.bf16.mxu0 %v13289_v23 }
 0xe77   :  { %13292 = vmatpush1.bf16.msra.mxu0 %v13291_v48 }
 0xe78   :  { %13294 = vmatprep.subr.bf16.mxu0 %v13293_v16  ;;  %v8139_v16 = vsub.s32 6, %v21327_v14 }
 0xe7b   :  { %13296 = vmatpush1.bf16.msra.mxu0 %v13295_v6  ;;  %v21329_v6 = vsub.s32 4, %v21327_v14 }
 0xe7c   :  { %13298 = vmatprep.subr.bf16.mxu0 %v13297_v7  ;;  %v8140_v7 = vrot.slane %v8111_v19, %v8139_v16 }
 0xe7d   :  { %v8132_v24 = vrot.slane %v8111_v19, %v21329_v6 }
 0xe7f   :  { %13300 = vmatpush1.bf16.msra.mxu0 %v13299_v57 }
 0xe80   :  { %13302 = vmatprep.subr.bf16.mxu0 %v13301_v41 }
 0xe83   :  { %13304 = vmatpush1.bf16.msra.mxu0 %v13303_v62 }
 0xe84   :  { %13306 = vmatprep.subr.bf16.mxu0 %v13305_v2  ;;  %v10542_v2 = vld.sshfl [vmem:[%s21274_s14] sm:$0x33 pattern:$0x76325410] }
 0xe85   :  { %v9084_v8 = vcombine.high %v10542_v2, %v10542_v2 }
 0xe87   :  { %13308 = vmatpush1.bf16.msra.mxu0 %v13307_v49 }
 0xe88   :  { %13310 = vmatprep.subr.bf16.mxu0 %v13309_v55 }
 0xe8b   :  { %13312 = vmatpush1.bf16.msra.mxu0 %v13311_v3 }
 0xe8c   :  { %13314 = vmatprep.subr.bf16.mxu0 %v13313_v59 }
 0xe8f   :  { %13316 = vmatpush1.bf16.msra.mxu0 %v13315_v54 }
 0xe90   :  { %13318 = vmatprep.subr.bf16.mxu0 %v13317_v43 }
 0xe93   :  { %13320 = vmatpush1.bf16.msra.mxu0 %v13319_v21 }
 0xea1   :  { %v21110_v42 = vpop.f32.mrb[158].mxu0  ;;  %v21112_v50 = vpop.f32.mrb[80].mxu1 }
 0xea2   :  { %v21114_v9 = vpop.f32.mrb[159].mxu0  ;;  %v21116_v34 = vpop.f32.mrb[81].mxu1  ;;  %v13321_v13 = vadd.f32 %v21110_v42, %v8116_v25  ;;  %v13323_v28 = vadd.f32 %v21112_v50, %v8124_v32  ;;  %v8135_v42 = vsub.s32 5, %v21327_v14 }
 0xea3   :  { %v13322_v58 = vadd.f32 %v21114_v9, %v8120_v15  ;;  %v13324_v51 = vadd.f32 %v21116_v34, %v8128_v39  ;;  %v8143_v9 = vsub.s32 7, %v21327_v14  ;;  %v9190_v39 = vrot.slane %v9185_v33, %v21323_v26 }
 0xea4   :  { %v10536_v23 = vmul.f32 -1.442695, %v13321_v13  ;;  %v10538_v52 = vmul.f32 -1.442695, %v13323_v28  ;;  %v8136_v37 = vrot.slane %v8111_v19, %v8135_v42  ;;  %v9194_v13 = vrot.slane %v9185_v33, %v21324_v40 }
 0xea5   :  { %v10537_v22 = vmul.f32 -1.442695, %v13322_v58  ;;  %v10539_v48 = vmul.f32 -1.442695, %v13324_v51  ;;  %v8144_v29 = vrot.slane %v8111_v19, %v8143_v9 }
 0xea6   :  { %13550 = vpow2.f32 %v10536_v23 }
 0xea7   :  { %13552 = vpow2.f32 %v10538_v52 }
 0xea8   :  { %13554 = vpow2.f32 %v10537_v22 }
 0xea9   :  { %13556 = vpow2.f32 %v10539_v48 }
 0xeb0   :  { %v13551_v44 = vpop.eup %13550 }
 0xeb1   :  { %v13553_v45 = vpop.eup %13552  ;;  %v9043_v12 = vadd.f32 1.0, %v13551_v44 }
 0xeb2   :  { %v13555_v11 = vpop.eup %13554  ;;  %v9055_v34 = vadd.f32 1.0, %v13553_v45 }
 0xeb3   :  { %v13557_v50 = vpop.eup %13556  ;;  %v9044_v63 = vadd.f32 1.0, %v13555_v11  ;;  %13558 = vrcp.f32 %v9043_v12 }
 0xeb4   :  { %v9056_v38 = vadd.f32 1.0, %v13557_v50  ;;  %13560 = vrcp.f32 %v9055_v34 }
 0xeb5   :  { %13562 = vrcp.f32 %v9044_v63 }
 0xeb6   :  { %13564 = vrcp.f32 %v9056_v38 }
 0xebd   :  { %v13559_v31 = vpop.eup %13558 }
 0xebe   :  { %v13561_v35 = vpop.eup %13560 }
 0xebf   :  { %v13563_v49 = vpop.eup %13562  ;;  %v9087_v5 = vmul.f32 %v13561_v35, %v10542_v2 }
 0xec0   :  { %v13565_v46 = vpop.eup %13564 }
 0xec1   :  { %v9088_v3 = vmul.f32 %v13565_v46, %v9084_v8 }
 0xf29   :  { %v8819_v57 = vpop.f32.mrb[160].mxu0 }
 0xf2a   :  { %v13325_v0 = vadd.f32 %v8819_v57, %v8132_v24  ;;  %v9032_v53 = vpop.f32.mrb[82].mxu1  ;;  %v8821_v41 = vpop.f32.mrb[161].mxu0 }
 0xf2b   :  { %v13327_v36 = vadd.f32 %v9032_v53, %v8140_v7  ;;  %v13326_v56 = vadd.f32 %v8821_v41, %v8136_v37  ;;  %v9034_v62 = vpop.f32.mrb[83].mxu1 }
 0xf2c   :  { %13566 = vtanh.f32 %v13325_v0  ;;  %v13328_v61 = vadd.f32 %v9034_v62, %v8144_v29 }
 0xf2d   :  { %v10540_v60 = vmul.f32 -1.442695, %v13327_v36  ;;  %13568 = vtanh.f32 %v13326_v56 }
 0xf2e   :  { %v10541_v14 = vmul.f32 -1.442695, %v13328_v61 }
 0xf2f   :  { %13570 = vpow2.f32 %v10540_v60 }
 0xf30   :  { %13572 = vpow2.f32 %v10541_v14 }
 0xf36   :  { %v13567_v55 = vpop.eup %13566 }
 0xf37   :  { %v13569_v30 = vpop.eup %13568  ;;  %v9089_v4 = vmul.f32 %v13567_v55, %v13559_v31 }
 0xf38   :  { %v9090_v1 = vmul.f32 %v13569_v30, %v13563_v49 }
 0xf39   :  { %v13571_v27 = vpop.eup %13570  ;;  %v9091_v10 = vadd.f32 %v9089_v4, %v9087_v5 }
 0xf3a   :  { %v13573_v59 = vpop.eup %13572  ;;  %v9069_v18 = vadd.f32 1.0, %v13571_v27  ;;  %v9092_v20 = vadd.f32 %v9090_v1, %v9088_v3 }
 0xf3b   :  { %13574 = vtanh.f32 %v9091_v10  ;;  %v9070_v54 = vadd.f32 1.0, %v13573_v59 }
 0xf3c   :  { %13576 = vrcp.f32 %v9069_v18  ;;  %v9099_v43 = vcombine.low %v9091_v10, %v9092_v20 }
 0xf3d   :  { %13578 = vrcp.f32 %v9070_v54 }
 0xf3e   :  { %10543 = vst.sshfl [vmem:[%s21282_s22] sm:$0x33 pattern:$0x76325410] %v9099_v43  ;;  %13580 = vtanh.f32 %v9092_v20  ;;  %s13612_s22 = smov [#allocation3]  }
 0xf3f   :  { %s9280_s9 = sshll.u32 %s13612_s22, 4  ;;  %s9281_s9 = int_to_ptr.vmem [resolvable:$true] %s9280_s9 }
 0xf40   :  { %p13588_p1 = scmp.lt.s32.totalorder %s9281_s9, %s9281_s9 }
 0xf45   :  { %v13575_v47 = vpop.eup %13574 }
 0xf46   :  { %v13577_v17 = vpop.eup %13576 }
 0xf47   :  { %v13579_v21 = vpop.eup %13578  ;;  %v9095_v19 = vmul.f32 %v13577_v17, %v13575_v47 }
 0xf48   :  { %v13581_v25 = vpop.eup %13580 }
 0xf49   :  { %v9096_v32 = vmul.f32 %v13581_v25, %v13579_v21 }
 0xf4b   :  { %v9111_v15 = vcombine.low %v9095_v19, %v9096_v32  ;;  %9261 = vmatprep.mubr.f32.mxu0 %v9096_v32 }
 0xf4c   :  { %9262 = vmatmul.mubr.f32.vlgmr.msra.gmra.mrb[162].mxu0 %v9095_v19 }
 0xf4d   :  { %10544 = vst.sshfl [vmem:[%s21281_s21] sm:$0x33 pattern:$0x76325410] %v9111_v15  ;;  %s13583_s21 = scalar_lea.vmem %s9281_s9, 32 }
 0xf4e   :  { %p13584_p0 = scmp.ne.s32.totalorder %s9281_s9, %s13583_s21  ;;  %p13589_p2 = scmp.lt.s32.totalorder %s13583_s21, %s13583_s21 }
 0xf50   :  { %p13590_p3 = por %p13589_p2, %p13588_p1 }
 0xf52   :  { %p13591_p4 = pnand %p13590_p3, %p13584_p0 }
0x101f   :  { %v9263_v28 = vpop.f32.mrb[162].mxu0 }
0x1020   :  { %v9264_v58 = vadd.f32 %v9263_v28, %v9190_v39  ;;  %v9265_v51 = vpop.f32.mrb[163].mxu0 }
0x1021   :  { %v9266_v23 = vadd.f32 %v9265_v51, %v9194_v13 }
0x1022   :  { %9269 = vst.msk [vmem:[%s21279_s19] sm:$0x3] %vm9268_vm6, %v9264_v58 }
0x1023   :  { %9271 = vst.msk [vmem:[#allocation3] sm:$0x3] %vm9270_vm11, %v9266_v23 }
0x1024   :  { %13594 = shalt.err (!%p13591_p4)
}
0x1025   :  { %s13595_s24 = scalar_lea.hbm %s21280_s20, 32 }
0x1026   :  { %p13596_p5 = scmp.ne.s32.totalorder %s21280_s20, %s13595_s24  ;;  %p13599_p6 = scmp.lt.u32.totalorder %s13595_s24, %s21280_s20 }
0x1028   :  { %p13601_p7 = pnand %p13599_p6, %p13596_p5 }
0x102a   :  { %13604 = shalt.err (!%p13601_p7)
}
0x102b   :  { %9283 = dma.vmem_to_hbm [thread:$0]  %s9281_s9, 32, %s21280_s20, [#allocation4]  }
0x102c   :  { %13605 = dma.done.wait [#allocation4], 32  }
0x102d   :  { %13606 = vsyncadd [#allocation4], 4294967264 }
0x102e   :  { %9297 = vsyncpa [#allocation4], 1 }

</bundles_post_ra>
